<compile_context>
chip_gen: v6e
topology: v6e:2x2x1
jax: 0.10.0
libtpu: 0.0.40
codegen_flags: <defaults>
</compile_context>

<pallas_src>
import jax
import jax.numpy as jnp
from jax.experimental import pallas as pl
from jax.experimental.pallas import tpu as pltpu


# ---------------------------------------------------------------------------
# Helpers
# ---------------------------------------------------------------------------
def _round_up(n, m):
    return ((n + m - 1) // m) * m


def _pick_tile(c, cap):
    """Largest tile <= cap dividing c (c is either <= cap or a multiple of 128)."""
    if c <= cap:
        return c
    t = cap
    while t > 128:
        if c % t == 0:
            return t
        t -= 128
    return 128


def _pad_to(a, shape):
    """Zero-pad array `a` up to `shape` (trailing padding on every axis)."""
    if tuple(a.shape) == tuple(shape):
        return a
    out = jnp.zeros(shape, a.dtype)
    return out.at[tuple(slice(0, s) for s in a.shape)].set(a)


_LP = 8                                  # sublane-aligned left pad along W in the halo scratch
_VMEM_LIMIT = 48 * 1024 * 1024           # safe on v5e/v6e (128 MiB) and v7x (64 MiB)


# ---------------------------------------------------------------------------
# Kernel 1: depthwise 3x3 conv (padding=1) -> bf16 LHS, gridded over channel chunks.
# ---------------------------------------------------------------------------
def _make_dw_kernel(B, H, W, TKC):
    M = B * H * W

    def kernel(x_ref, wdw_ref, bdw_ref, o_ref, xpad_ref):
        # Build the zero-halo copy of this channel chunk once (f32 scratch, bounded size).
        xpad_ref[...] = jnp.zeros_like(xpad_ref)
        xpad_ref[:, 1:H + 1, _LP:_LP + W, :] = x_ref[...].astype(jnp.float32)

        acc = jnp.zeros((B, H, W, TKC), jnp.float32)
        for t in range(9):                           # 9 taps, f32 accumulate
            dy, dx = t // 3, t % 3
            tap = wdw_ref[t:t + 1, :].reshape(1, 1, 1, TKC)
            win = xpad_ref[:, dy:dy + H, _LP - 1 + dx:_LP - 1 + dx + W, :]
            acc = acc + win * tap
        acc = acc + bdw_ref[0:1, :].reshape(1, 1, 1, TKC)

        # Cast to bf16 only at the MXU boundary (this array is the matmul LHS).
        o_ref[...] = acc.reshape(M, TKC).astype(jnp.bfloat16)

    return kernel


def _depthwise_call(x, wdw, bdw):
    """x: (B,H,W,Cx) f32/bf16 -> (M, Cx) bf16 depthwise-conv result (the matmul LHS)."""
    B, H, W, Cx = x.shape
    M = B * H * W
    TKC = _pick_tile(Cx, 512)
    NKC = Cx // TKC

    return pl.pallas_call(
        _make_dw_kernel(B, H, W, TKC),
        out_shape=jax.ShapeDtypeStruct((M, Cx), jnp.bfloat16),
        grid=(NKC,),
        in_specs=[
            pl.BlockSpec((B, H, W, TKC), lambda k: (0, 0, 0, k)),   # activation chunk
            pl.BlockSpec((9, TKC), lambda k: (0, k)),               # depthwise taps
            pl.BlockSpec((1, TKC), lambda k: (0, k)),               # depthwise bias
        ],
        out_specs=pl.BlockSpec((M, TKC), lambda k: (0, k)),
        scratch_shapes=[pltpu.VMEM((B, H + 2, W + _LP + 1, TKC), jnp.float32)],
        compiler_params=pltpu.CompilerParams(
            dimension_semantics=("parallel",),
            vmem_limit_bytes=_VMEM_LIMIT),
    )(x, wdw, bdw)


# ---------------------------------------------------------------------------
# Kernel 2: full-K 1x1 conv (MXU matmul) -> BN(eval) -> ReLU, N-tiled (TN<=512).
# ---------------------------------------------------------------------------
def _pw_kernel(lhs_ref, w_ref, s_ref, b_ref, o_ref):
    acc = jnp.dot(lhs_ref[...], w_ref[...], preferred_element_type=jnp.float32)
    y = jnp.maximum(acc * s_ref[...] + b_ref[...], 0.0)
    o_ref[...] = y.astype(o_ref.dtype)


def _pointwise_call(lhs, wpw, scale_p, bias_p):
    M, K = lhs.shape
    Cout_pad = wpw.shape[1]
    TN = _pick_tile(Cout_pad, 512)
    NN = Cout_pad // TN

    return pl.pallas_call(
        _pw_kernel,
        out_shape=jax.ShapeDtypeStruct((M, Cout_pad), jnp.bfloat16),  # bf16 inter-half act
        grid=(NN,),
        in_specs=[
            pl.BlockSpec((M, K), lambda n: (0, 0)),      # resident full-K bf16 LHS
            pl.BlockSpec((K, TN), lambda n: (0, n)),     # streamed bf16 weight tile
            pl.BlockSpec((1, TN), lambda n: (0, n)),     # folded BN scale
            pl.BlockSpec((1, TN), lambda n: (0, n)),     # folded BN bias
        ],
        out_specs=pl.BlockSpec((M, TN), lambda n: (0, n)),
        compiler_params=pltpu.CompilerParams(
            dimension_semantics=("parallel",),           # N tiles independent -> megacore
            vmem_limit_bytes=_VMEM_LIMIT),
    )(lhs, wpw, scale_p, bias_p)


# ---------------------------------------------------------------------------
# Kernel 3: same as kernel 2 plus fused avg-pool + FC, emitting per-tile partial logits.
# ---------------------------------------------------------------------------
def _make_pw_fc_kernel(B, HW):
    inv_hw = 1.0 / float(HW)

    def kernel(lhs_ref, w_ref, s_ref, b_ref, fcw_ref, o_ref):
        acc = jnp.dot(lhs_ref[...], w_ref[...], preferred_element_type=jnp.float32)
        y = jnp.maximum(acc * s_ref[...] + b_ref[...], 0.0)           # (M, TN)
        tn = y.shape[-1]
        pooled = y.reshape(B, HW, tn).sum(axis=1) * inv_hw            # (B, TN) row-reduce
        # Partial logits for this N tile; cross-tile sum + bias happen in the wrapper,
        # so the grid axis can stay "parallel".
        o_ref[...] = jnp.dot(pooled, fcw_ref[...],
                             preferred_element_type=jnp.float32)      # (B, NP)

    return kernel


def _pointwise_fc_call(lhs, wpw, scale_p, bias_p, fcw, B, HW):
    M, K = lhs.shape
    Cout_pad = wpw.shape[1]
    NP = fcw.shape[1]
    TN = _pick_tile(Cout_pad, 512)
    NN = Cout_pad // TN

    return pl.pallas_call(
        _make_pw_fc_kernel(B, HW),
        out_shape=jax.ShapeDtypeStruct((NN, B, NP), jnp.float32),
        grid=(NN,),
        in_specs=[
            pl.BlockSpec((M, K), lambda n: (0, 0)),
            pl.BlockSpec((K, TN), lambda n: (0, n)),
            pl.BlockSpec((1, TN), lambda n: (0, n)),
            pl.BlockSpec((1, TN), lambda n: (0, n)),
            pl.BlockSpec((TN, NP), lambda n: (n, 0)),    # FC weight slice for this tile
        ],
        out_specs=pl.BlockSpec((None, B, NP), lambda n: (n, 0, 0)),
        compiler_params=pltpu.CompilerParams(
            dimension_semantics=("parallel",),
            vmem_limit_bytes=_VMEM_LIMIT),
    )(lhs, wpw, scale_p, bias_p, fcw)


# ---------------------------------------------------------------------------
# Module-level glue
# ---------------------------------------------------------------------------
def _separable_half(x, p, idx, fc=None, eps=1e-5):
    """One (dwconv3x3 -> 1x1 conv -> BN(eval) -> ReLU) block, as two fused kernels.

    x: (B, H, W, Cx) NHWC, Cx padded to a multiple of 128 (padded channels are zero).
    Returns (B, H, W, Cout_pad) bf16, or (B, NP) f32 logits(+padding) when fc is given.
    """
    B, H, W, Cx = x.shape
    dw_w = p[f"dw{idx}_w"]   # (3, 3, Cin_nat)
    dw_b = p[f"dw{idx}_b"]   # (Cin_nat,)
    pw_w = p[f"pw{idx}_w"]   # (Cin_nat, Cout_nat)
    pw_b = p[f"pw{idx}_b"]   # (Cout_nat,)
    g, be = p[f"bn{idx}_g"], p[f"bn{idx}_b"]
    m, v = p[f"bn{idx}_m"], p[f"bn{idx}_v"]
    Cin_nat, Cout_nat = pw_w.shape
    assert Cx >= Cin_nat
    Cout_pad = _round_up(Cout_nat, 128)

    # Fold BatchNorm (eval) + conv bias into a per-output-channel scale/bias epilogue.
    scale = g / jnp.sqrt(v + eps)
    bias = be + (pw_b - m) * scale

    wdw = _pad_to(dw_w.reshape(9, Cin_nat), (9, Cx))
    bdw = _pad_to(dw_b.reshape(1, Cin_nat), (1, Cx))
    wpw = _pad_to(pw_w, (Cx, Cout_pad)).astype(jnp.bfloat16)
    scale_p = _pad_to(scale.reshape(1, Cout_nat), (1, Cout_pad))
    bias_p = _pad_to(bias.reshape(1, Cout_nat), (1, Cout_pad))

    # Depthwise LHS computed once per half (kernel 1).
    lhs = _depthwise_call(x, wdw, bdw)                        # (M, Cx) bf16

    if fc is None:
        y = _pointwise_call(lhs, wpw, scale_p, bias_p)        # (M, Cout_pad) bf16
        return y.reshape(B, H, W, Cout_pad)

    fc_w, fc_b = fc
    n_cls = fc_w.shape[1]
    NP = _round_up(n_cls, 128)
    fcw = _pad_to(fc_w, (Cout_pad, NP))
    fcb = _pad_to(fc_b.reshape(1, n_cls), (1, NP))
    partials = _pointwise_fc_call(lhs, wpw, scale_p, bias_p, fcw, B, H * W)  # (NN,B,NP)
    return partials.sum(axis=0) + fcb                          # (B, NP)


def classifier_forward(x_nchw, params):
    """Matches torch Classifier.forward: fold 9 batch entries into channels, two
    Separable blocks, AdaptiveAvgPool2d(1), Linear."""
    B0, C0, H, W = x_nchw.shape
    x = x_nchw.reshape(-1, 9 * C0, H, W)            # torch: x.reshape((-1, 9*C, H, W))
    x = jnp.transpose(x, (0, 2, 3, 1))              # NCHW -> NHWC (channels -> lanes)
    cin0 = x.shape[-1]
    cpad0 = _round_up(cin0, 128)
    if cpad0 != cin0:                               # lane-pad the network input once
        x = jnp.pad(x, ((0, 0), (0, 0), (0, 0), (0, cpad0 - cin0)))

    p1, p2 = params["layer1"], params["layer2"]
    x = _separable_half(x, p1, 1)
    x = _separable_half(x, p1, 2)
    x = _separable_half(x, p2, 1)
    logits = _separable_half(x, p2, 2, fc=(params["fc_w"], params["fc_b"]))
    return logits[:, :params["fc_w"].shape[1]]


# ---------------------------------------------------------------------------
# Deterministic parameter init (shapes follow the PyTorch module, NHWC-friendly)
# ---------------------------------------------------------------------------
def init_separable(key, cin, cout):
    ks = jax.random.split(key, 8)
    f32 = jnp.float32
    return {
        "dw1_w": jax.random.normal(ks[0], (3, 3, cin), f32) * 0.1,
        "dw1_b": jax.random.normal(ks[1], (cin,), f32) * 0.01,
        "pw1_w": jax.random.normal(ks[2], (cin, cin), f32) * (1.0 / jnp.sqrt(cin)),
        "pw1_b": jax.random.normal(ks[3], (cin,), f32) * 0.01,
        "bn1_g": jnp.ones((cin,), f32),
        "bn1_b": jnp.zeros((cin,), f32),
        "bn1_m": jnp.zeros((cin,), f32),
        "bn1_v": jnp.ones((cin,), f32),
        "dw2_w": jax.random.normal(ks[4], (3, 3, cin), f32) * 0.1,
        "dw2_b": jax.random.normal(ks[5], (cin,), f32) * 0.01,
        "pw2_w": jax.random.normal(ks[6], (cin, cout), f32) * (1.0 / jnp.sqrt(cin)),
        "pw2_b": jax.random.normal(ks[7], (cout,), f32) * 0.01,
        "bn2_g": jnp.ones((cout,), f32),
        "bn2_b": jnp.zeros((cout,), f32),
        "bn2_m": jnp.zeros((cout,), f32),
        "bn2_v": jnp.ones((cout,), f32),
    }


# ---------------------------------------------------------------------------
# Pure-jnp reference (same math, f32 end-to-end, no Pallas) for a sanity check
# ---------------------------------------------------------------------------
def _ref_forward(x_nchw, params, eps=1e-5):
    def dw(x, w, b):
        H, W = x.shape[1], x.shape[2]
        xp = jnp.pad(x, ((0, 0), (1, 1), (1, 1), (0, 0)))
        acc = sum(xp[:, dy:dy + H, dx:dx + W, :] * w[dy, dx]
                  for dy in range(3) for dx in range(3))
        return acc + b

    def pwbr(x, w, bb, g, be, m, v):
        s = g / jnp.sqrt(v + eps)
        y = jnp.einsum("bhwc,cd->bhwd", x, w) * s + (be + (bb - m) * s)
        return jnp.maximum(y, 0.0)

    def sep(x, p):
        x = dw(x, p["dw1_w"], p["dw1_b"])
        x = pwbr(x, p["pw1_w"], p["pw1_b"], p["bn1_g"], p["bn1_b"], p["bn1_m"], p["bn1_v"])
        x = dw(x, p["dw2_w"], p["dw2_b"])
        x = pwbr(x, p["pw2_w"], p["pw2_b"], p["bn2_g"], p["bn2_b"], p["bn2_m"], p["bn2_v"])
        return x

    B, C, H, W = x_nchw.shape
    x = x_nchw.reshape(-1, 9 * C, H, W)
    x = jnp.transpose(x, (0, 2, 3, 1))
    x = sep(sep(x, params["layer1"]), params["layer2"])
    pooled = jnp.mean(x, axis=(1, 2))
    return pooled @ params["fc_w"] + params["fc_b"]


if __name__ == "__main__":
    key = jax.random.PRNGKey(0)
    Cb = 16                         # scaled-down analogue of 512
    B, C, H, W = 18, Cb, 8, 8       # B multiple of 9 (forward folds 9 batch items into channels)
    in_chn = 9 * Cb                 # 144  (analogue of 9*512)
    mid_chn = 6 * Cb                # 96   (analogue of 6*512)
    out_chn = 3 * Cb                # 48   (analogue of 3*512)
    num_classes = 10

    kx, k1, k2, kw, kb = jax.random.split(key, 5)
    x = jax.random.normal(kx, (B, C, H, W), jnp.float32)
    params = {
        "layer1": init_separable(k1, in_chn, mid_chn),
        "layer2": init_separable(k2, mid_chn, out_chn),
        "fc_w": jax.random.normal(kw, (out_chn, num_classes), jnp.float32) * (1.0 / jnp.sqrt(out_chn)),
        "fc_b": jax.random.normal(kb, (num_classes,), jnp.float32) * 0.01,
    }

    fwd = jax.jit(classifier_forward)
    out = jax.block_until_ready(fwd(x, params))
    assert out.shape == (B // 9, num_classes), out.shape

    ref = jax.block_until_ready(_ref_forward(x, params))
    max_err = float(jnp.max(jnp.abs(out - ref)))
    # bf16 MXU operands + bf16 inter-half activations (intentional inference precision
    # choice) vs an all-f32 reference -> tolerance 3e-2.
    assert jnp.allclose(out, ref, rtol=3e-2, atol=3e-2), max_err

    print("KERNEL_OK")
</pallas_src>

<mosaic_0001>
module attributes {stable_mosaic.version = 11 : i64} {
  func.func @kernel(%arg0: i32, %arg1: memref<2x8x8x256xf32, #tpu.memory_space<vmem>>, %arg2: memref<9x256xf32, #tpu.memory_space<vmem>>, %arg3: memref<1x256xf32, #tpu.memory_space<vmem>>, %arg4: memref<128x256xbf16, #tpu.memory_space<vmem>>, %arg5: memref<2x10x17x256xf32, #tpu.memory_space<vmem>>) attributes {dimension_semantics = [#tpu.dimension_semantics<parallel>], iteration_bounds = array<i64: 1>, scalar_prefetch = 0 : i64, scratch_operands = 1 : i64, tpu.core_type = #tpu.core_type<tc>, window_params = [{transform_indices = @transform_0, window_bounds = array<i64: 2, 8, 8, 256>}, {transform_indices = @transform_1, window_bounds = array<i64: 9, 256>}, {transform_indices = @transform_2, window_bounds = array<i64: 1, 256>}, {transform_indices = @transform_3, window_bounds = array<i64: 128, 256>}]} {
    %cst = arith.constant 0.000000e+00 : f32
    %0 = vector.broadcast %cst : f32 to vector<2x10x17x256xf32>
    %c0 = arith.constant 0 : index
    %c0_0 = arith.constant 0 : index
    %c0_1 = arith.constant 0 : index
    %c0_2 = arith.constant 0 : index
    %1 = vector.load %arg5[%c0, %c0_0, %c0_1, %c0_2] : memref<2x10x17x256xf32, #tpu.memory_space<vmem>>, vector<2x10x17x256xf32>
    tpu.vector_store %arg5[%c0, %c0_0, %c0_1, %c0_2], %0 {strides = array<i32>} : memref<2x10x17x256xf32, #tpu.memory_space<vmem>>, vector<2x10x17x256xf32>,
    %c0_3 = arith.constant 0 : index
    %c0_4 = arith.constant 0 : index
    %c0_5 = arith.constant 0 : index
    %c0_6 = arith.constant 0 : index
    %2 = vector.load %arg1[%c0_3, %c0_4, %c0_5, %c0_6] : memref<2x8x8x256xf32, #tpu.memory_space<vmem>>, vector<2x8x8x256xf32>
    %c0_7 = arith.constant 0 : index
    %c1 = arith.constant 1 : index
    %c8 = arith.constant 8 : index
    %c0_8 = arith.constant 0 : index
    %3 = vector.load %arg5[%c0_7, %c1, %c8, %c0_8] : memref<2x10x17x256xf32, #tpu.memory_space<vmem>>, vector<2x8x8x256xf32>
    tpu.vector_store %arg5[%c0_7, %c1, %c8, %c0_8], %2 {strides = array<i32>} : memref<2x10x17x256xf32, #tpu.memory_space<vmem>>, vector<2x8x8x256xf32>,
    %cst_9 = arith.constant 0.000000e+00 : f32
    %4 = vector.broadcast %cst_9 : f32 to vector<2x8x8x256xf32>
    %c0_10 = arith.constant 0 : index
    %c0_11 = arith.constant 0 : index
    %5 = vector.load %arg2[%c0_10, %c0_11] : memref<9x256xf32, #tpu.memory_space<vmem>>, vector<1x256xf32>
    %6 = vector.shape_cast %5 : vector<1x256xf32> to vector<1x1x1x256xf32>
    %c0_12 = arith.constant 0 : index
    %c0_13 = arith.constant 0 : index
    %c7 = arith.constant 7 : index
    %c0_14 = arith.constant 0 : index
    %7 = vector.load %arg5[%c0_12, %c0_13, %c7, %c0_14] : memref<2x10x17x256xf32, #tpu.memory_space<vmem>>, vector<2x8x8x256xf32>
    %8 = vector.broadcast %6 : vector<1x1x1x256xf32> to vector<2x8x8x256xf32>
    %9 = arith.mulf %7, %8 : vector<2x8x8x256xf32>
    %10 = arith.addf %4, %9 : vector<2x8x8x256xf32>
    %c1_15 = arith.constant 1 : index
    %c0_16 = arith.constant 0 : index
    %11 = vector.load %arg2[%c1_15, %c0_16] : memref<9x256xf32, #tpu.memory_space<vmem>>, vector<1x256xf32>
    %12 = vector.shape_cast %11 : vector<1x256xf32> to vector<1x1x1x256xf32>
    %c0_17 = arith.constant 0 : index
    %c0_18 = arith.constant 0 : index
    %c8_19 = arith.constant 8 : index
    %c0_20 = arith.constant 0 : index
    %13 = vector.load %arg5[%c0_17, %c0_18, %c8_19, %c0_20] : memref<2x10x17x256xf32, #tpu.memory_space<vmem>>, vector<2x8x8x256xf32>
    %14 = vector.broadcast %12 : vector<1x1x1x256xf32> to vector<2x8x8x256xf32>
    %15 = arith.mulf %13, %14 : vector<2x8x8x256xf32>
    %16 = arith.addf %10, %15 : vector<2x8x8x256xf32>
    %c2 = arith.constant 2 : index
    %c0_21 = arith.constant 0 : index
    %17 = vector.load %arg2[%c2, %c0_21] : memref<9x256xf32, #tpu.memory_space<vmem>>, vector<1x256xf32>
    %18 = vector.shape_cast %17 : vector<1x256xf32> to vector<1x1x1x256xf32>
    %c0_22 = arith.constant 0 : index
    %c0_23 = arith.constant 0 : index
    %c9 = arith.constant 9 : index
    %c0_24 = arith.constant 0 : index
    %19 = vector.load %arg5[%c0_22, %c0_23, %c9, %c0_24] : memref<2x10x17x256xf32, #tpu.memory_space<vmem>>, vector<2x8x8x256xf32>
    %20 = vector.broadcast %18 : vector<1x1x1x256xf32> to vector<2x8x8x256xf32>
    %21 = arith.mulf %19, %20 : vector<2x8x8x256xf32>
    %22 = arith.addf %16, %21 : vector<2x8x8x256xf32>
    %c3 = arith.constant 3 : index
    %c0_25 = arith.constant 0 : index
    %23 = vector.load %arg2[%c3, %c0_25] : memref<9x256xf32, #tpu.memory_space<vmem>>, vector<1x256xf32>
    %24 = vector.shape_cast %23 : vector<1x256xf32> to vector<1x1x1x256xf32>
    %c0_26 = arith.constant 0 : index
    %c1_27 = arith.constant 1 : index
    %c7_28 = arith.constant 7 : index
    %c0_29 = arith.constant 0 : index
    %25 = vector.load %arg5[%c0_26, %c1_27, %c7_28, %c0_29] : memref<2x10x17x256xf32, #tpu.memory_space<vmem>>, vector<2x8x8x256xf32>
    %26 = vector.broadcast %24 : vector<1x1x1x256xf32> to vector<2x8x8x256xf32>
    %27 = arith.mulf %25, %26 : vector<2x8x8x256xf32>
    %28 = arith.addf %22, %27 : vector<2x8x8x256xf32>
    %c4 = arith.constant 4 : index
    %c0_30 = arith.constant 0 : index
    %29 = vector.load %arg2[%c4, %c0_30] : memref<9x256xf32, #tpu.memory_space<vmem>>, vector<1x256xf32>
    %30 = vector.shape_cast %29 : vector<1x256xf32> to vector<1x1x1x256xf32>
    %c0_31 = arith.constant 0 : index
    %c1_32 = arith.constant 1 : index
    %c8_33 = arith.constant 8 : index
    %c0_34 = arith.constant 0 : index
    %31 = vector.load %arg5[%c0_31, %c1_32, %c8_33, %c0_34] : memref<2x10x17x256xf32, #tpu.memory_space<vmem>>, vector<2x8x8x256xf32>
    %32 = vector.broadcast %30 : vector<1x1x1x256xf32> to vector<2x8x8x256xf32>
    %33 = arith.mulf %31, %32 : vector<2x8x8x256xf32>
    %34 = arith.addf %28, %33 : vector<2x8x8x256xf32>
    %c5 = arith.constant 5 : index
    %c0_35 = arith.constant 0 : index
    %35 = vector.load %arg2[%c5, %c0_35] : memref<9x256xf32, #tpu.memory_space<vmem>>, vector<1x256xf32>
    %36 = vector.shape_cast %35 : vector<1x256xf32> to vector<1x1x1x256xf32>
    %c0_36 = arith.constant 0 : index
    %c1_37 = arith.constant 1 : index
    %c9_38 = arith.constant 9 : index
    %c0_39 = arith.constant 0 : index
    %37 = vector.load %arg5[%c0_36, %c1_37, %c9_38, %c0_39] : memref<2x10x17x256xf32, #tpu.memory_space<vmem>>, vector<2x8x8x256xf32>
    %38 = vector.broadcast %36 : vector<1x1x1x256xf32> to vector<2x8x8x256xf32>
    %39 = arith.mulf %37, %38 : vector<2x8x8x256xf32>
    %40 = arith.addf %34, %39 : vector<2x8x8x256xf32>
    %c6 = arith.constant 6 : index
    %c0_40 = arith.constant 0 : index
    %41 = vector.load %arg2[%c6, %c0_40] : memref<9x256xf32, #tpu.memory_space<vmem>>, vector<1x256xf32>
    %42 = vector.shape_cast %41 : vector<1x256xf32> to vector<1x1x1x256xf32>
    %c0_41 = arith.constant 0 : index
    %c2_42 = arith.constant 2 : index
    %c7_43 = arith.constant 7 : index
    %c0_44 = arith.constant 0 : index
    %43 = vector.load %arg5[%c0_41, %c2_42, %c7_43, %c0_44] : memref<2x10x17x256xf32, #tpu.memory_space<vmem>>, vector<2x8x8x256xf32>
    %44 = vector.broadcast %42 : vector<1x1x1x256xf32> to vector<2x8x8x256xf32>
    %45 = arith.mulf %43, %44 : vector<2x8x8x256xf32>
    %46 = arith.addf %40, %45 : vector<2x8x8x256xf32>
    %c7_45 = arith.constant 7 : index
    %c0_46 = arith.constant 0 : index
    %47 = vector.load %arg2[%c7_45, %c0_46] : memref<9x256xf32, #tpu.memory_space<vmem>>, vector<1x256xf32>
    %48 = vector.shape_cast %47 : vector<1x256xf32> to vector<1x1x1x256xf32>
    %c0_47 = arith.constant 0 : index
    %c2_48 = arith.constant 2 : index
    %c8_49 = arith.constant 8 : index
    %c0_50 = arith.constant 0 : index
    %49 = vector.load %arg5[%c0_47, %c2_48, %c8_49, %c0_50] : memref<2x10x17x256xf32, #tpu.memory_space<vmem>>, vector<2x8x8x256xf32>
    %50 = vector.broadcast %48 : vector<1x1x1x256xf32> to vector<2x8x8x256xf32>
    %51 = arith.mulf %49, %50 : vector<2x8x8x256xf32>
    %52 = arith.addf %46, %51 : vector<2x8x8x256xf32>
    %c8_51 = arith.constant 8 : index
    %c0_52 = arith.constant 0 : index
    %53 = vector.load %arg2[%c8_51, %c0_52] : memref<9x256xf32, #tpu.memory_space<vmem>>, vector<1x256xf32>
    %54 = vector.shape_cast %53 : vector<1x256xf32> to vector<1x1x1x256xf32>
    %c0_53 = arith.constant 0 : index
    %c2_54 = arith.constant 2 : index
    %c9_55 = arith.constant 9 : index
    %c0_56 = arith.constant 0 : index
    %55 = vector.load %arg5[%c0_53, %c2_54, %c9_55, %c0_56] : memref<2x10x17x256xf32, #tpu.memory_space<vmem>>, vector<2x8x8x256xf32>
    %56 = vector.broadcast %54 : vector<1x1x1x256xf32> to vector<2x8x8x256xf32>
    %57 = arith.mulf %55, %56 : vector<2x8x8x256xf32>
    %58 = arith.addf %52, %57 : vector<2x8x8x256xf32>
    %c0_57 = arith.constant 0 : index
    %c0_58 = arith.constant 0 : index
    %59 = vector.load %arg3[%c0_57, %c0_58] : memref<1x256xf32, #tpu.memory_space<vmem>>, vector<1x256xf32>
    %60 = vector.shape_cast %59 : vector<1x256xf32> to vector<1x1x1x256xf32>
    %61 = vector.broadcast %60 : vector<1x1x1x256xf32> to vector<2x8x8x256xf32>
    %62 = arith.addf %58, %61 : vector<2x8x8x256xf32>
    %63 = vector.shape_cast %62 : vector<2x8x8x256xf32> to vector<128x256xf32>
    %64 = arith.truncf %63 : vector<128x256xf32> to vector<128x256xbf16>
    %c0_59 = arith.constant 0 : index
    %c0_60 = arith.constant 0 : index
    %65 = vector.load %arg4[%c0_59, %c0_60] : memref<128x256xbf16, #tpu.memory_space<vmem>>, vector<128x256xbf16>
    tpu.vector_store %arg4[%c0_59, %c0_60], %64 {strides = array<i32>} : memref<128x256xbf16, #tpu.memory_space<vmem>>, vector<128x256xbf16>,
    return
  }
  func.func @transform_0(%arg0: i32) -> (i32, i32, i32, i32) {
    %c0_i32 = arith.constant 0 : i32
    %c0_i32_0 = arith.constant 0 : i32
    %c0_i32_1 = arith.constant 0 : i32
    %c0_i32_2 = arith.constant 0 : i32
    return %c0_i32, %c0_i32_0, %c0_i32_1, %arg0 : i32, i32, i32, i32
  }
  func.func @transform_1(%arg0: i32) -> (i32, i32) {
    %c0_i32 = arith.constant 0 : i32
    %c0_i32_0 = arith.constant 0 : i32
    return %c0_i32, %arg0 : i32, i32
  }
  func.func @transform_2(%arg0: i32) -> (i32, i32) {
    %c0_i32 = arith.constant 0 : i32
    %c0_i32_0 = arith.constant 0 : i32
    return %c0_i32, %arg0 : i32, i32
  }
  func.func @transform_3(%arg0: i32) -> (i32, i32) {
    %c0_i32 = arith.constant 0 : i32
    %c0_i32_0 = arith.constant 0 : i32
    return %c0_i32, %arg0 : i32, i32
  }
}

module attributes {stable_mosaic.version = 11 : i64} {
  func.func @kernel(%arg0: i32, %arg1: memref<2x8x8x256xbf16, #tpu.memory_space<vmem>>, %arg2: memref<9x256xf32, #tpu.memory_space<vmem>>, %arg3: memref<1x256xf32, #tpu.memory_space<vmem>>, %arg4: memref<128x256xbf16, #tpu.memory_space<vmem>>, %arg5: memref<2x10x17x256xf32, #tpu.memory_space<vmem>>) attributes {dimension_semantics = [#tpu.dimension_semantics<parallel>], iteration_bounds = array<i64: 1>, scalar_prefetch = 0 : i64, scratch_operands = 1 : i64, tpu.core_type = #tpu.core_type<tc>, window_params = [{transform_indices = @transform_0, window_bounds = array<i64: 2, 8, 8, 256>}, {transform_indices = @transform_1, window_bounds = array<i64: 9, 256>}, {transform_indices = @transform_2, window_bounds = array<i64: 1, 256>}, {transform_indices = @transform_3, window_bounds = array<i64: 128, 256>}]} {
    %cst = arith.constant 0.000000e+00 : f32
    %0 = vector.broadcast %cst : f32 to vector<2x10x17x256xf32>
    %c0 = arith.constant 0 : index
    %c0_0 = arith.constant 0 : index
    %c0_1 = arith.constant 0 : index
    %c0_2 = arith.constant 0 : index
    %1 = vector.load %arg5[%c0, %c0_0, %c0_1, %c0_2] : memref<2x10x17x256xf32, #tpu.memory_space<vmem>>, vector<2x10x17x256xf32>
    tpu.vector_store %arg5[%c0, %c0_0, %c0_1, %c0_2], %0 {strides = array<i32>} : memref<2x10x17x256xf32, #tpu.memory_space<vmem>>, vector<2x10x17x256xf32>,
    %c0_3 = arith.constant 0 : index
    %c0_4 = arith.constant 0 : index
    %c0_5 = arith.constant 0 : index
    %c0_6 = arith.constant 0 : index
    %2 = vector.load %arg1[%c0_3, %c0_4, %c0_5, %c0_6] : memref<2x8x8x256xbf16, #tpu.memory_space<vmem>>, vector<2x8x8x256xbf16>
    %3 = arith.extf %2 : vector<2x8x8x256xbf16> to vector<2x8x8x256xf32>
    %c0_7 = arith.constant 0 : index
    %c1 = arith.constant 1 : index
    %c8 = arith.constant 8 : index
    %c0_8 = arith.constant 0 : index
    %4 = vector.load %arg5[%c0_7, %c1, %c8, %c0_8] : memref<2x10x17x256xf32, #tpu.memory_space<vmem>>, vector<2x8x8x256xf32>
    tpu.vector_store %arg5[%c0_7, %c1, %c8, %c0_8], %3 {strides = array<i32>} : memref<2x10x17x256xf32, #tpu.memory_space<vmem>>, vector<2x8x8x256xf32>,
    %cst_9 = arith.constant 0.000000e+00 : f32
    %5 = vector.broadcast %cst_9 : f32 to vector<2x8x8x256xf32>
    %c0_10 = arith.constant 0 : index
    %c0_11 = arith.constant 0 : index
    %6 = vector.load %arg2[%c0_10, %c0_11] : memref<9x256xf32, #tpu.memory_space<vmem>>, vector<1x256xf32>
    %7 = vector.shape_cast %6 : vector<1x256xf32> to vector<1x1x1x256xf32>
    %c0_12 = arith.constant 0 : index
    %c0_13 = arith.constant 0 : index
    %c7 = arith.constant 7 : index
    %c0_14 = arith.constant 0 : index
    %8 = vector.load %arg5[%c0_12, %c0_13, %c7, %c0_14] : memref<2x10x17x256xf32, #tpu.memory_space<vmem>>, vector<2x8x8x256xf32>
    %9 = vector.broadcast %7 : vector<1x1x1x256xf32> to vector<2x8x8x256xf32>
    %10 = arith.mulf %8, %9 : vector<2x8x8x256xf32>
    %11 = arith.addf %5, %10 : vector<2x8x8x256xf32>
    %c1_15 = arith.constant 1 : index
    %c0_16 = arith.constant 0 : index
    %12 = vector.load %arg2[%c1_15, %c0_16] : memref<9x256xf32, #tpu.memory_space<vmem>>, vector<1x256xf32>
    %13 = vector.shape_cast %12 : vector<1x256xf32> to vector<1x1x1x256xf32>
    %c0_17 = arith.constant 0 : index
    %c0_18 = arith.constant 0 : index
    %c8_19 = arith.constant 8 : index
    %c0_20 = arith.constant 0 : index
    %14 = vector.load %arg5[%c0_17, %c0_18, %c8_19, %c0_20] : memref<2x10x17x256xf32, #tpu.memory_space<vmem>>, vector<2x8x8x256xf32>
    %15 = vector.broadcast %13 : vector<1x1x1x256xf32> to vector<2x8x8x256xf32>
    %16 = arith.mulf %14, %15 : vector<2x8x8x256xf32>
    %17 = arith.addf %11, %16 : vector<2x8x8x256xf32>
    %c2 = arith.constant 2 : index
    %c0_21 = arith.constant 0 : index
    %18 = vector.load %arg2[%c2, %c0_21] : memref<9x256xf32, #tpu.memory_space<vmem>>, vector<1x256xf32>
    %19 = vector.shape_cast %18 : vector<1x256xf32> to vector<1x1x1x256xf32>
    %c0_22 = arith.constant 0 : index
    %c0_23 = arith.constant 0 : index
    %c9 = arith.constant 9 : index
    %c0_24 = arith.constant 0 : index
    %20 = vector.load %arg5[%c0_22, %c0_23, %c9, %c0_24] : memref<2x10x17x256xf32, #tpu.memory_space<vmem>>, vector<2x8x8x256xf32>
    %21 = vector.broadcast %19 : vector<1x1x1x256xf32> to vector<2x8x8x256xf32>
    %22 = arith.mulf %20, %21 : vector<2x8x8x256xf32>
    %23 = arith.addf %17, %22 : vector<2x8x8x256xf32>
    %c3 = arith.constant 3 : index
    %c0_25 = arith.constant 0 : index
    %24 = vector.load %arg2[%c3, %c0_25] : memref<9x256xf32, #tpu.memory_space<vmem>>, vector<1x256xf32>
    %25 = vector.shape_cast %24 : vector<1x256xf32> to vector<1x1x1x256xf32>
    %c0_26 = arith.constant 0 : index
    %c1_27 = arith.constant 1 : index
    %c7_28 = arith.constant 7 : index
    %c0_29 = arith.constant 0 : index
    %26 = vector.load %arg5[%c0_26, %c1_27, %c7_28, %c0_29] : memref<2x10x17x256xf32, #tpu.memory_space<vmem>>, vector<2x8x8x256xf32>
    %27 = vector.broadcast %25 : vector<1x1x1x256xf32> to vector<2x8x8x256xf32>
    %28 = arith.mulf %26, %27 : vector<2x8x8x256xf32>
    %29 = arith.addf %23, %28 : vector<2x8x8x256xf32>
    %c4 = arith.constant 4 : index
    %c0_30 = arith.constant 0 : index
    %30 = vector.load %arg2[%c4, %c0_30] : memref<9x256xf32, #tpu.memory_space<vmem>>, vector<1x256xf32>
    %31 = vector.shape_cast %30 : vector<1x256xf32> to vector<1x1x1x256xf32>
    %c0_31 = arith.constant 0 : index
    %c1_32 = arith.constant 1 : index
    %c8_33 = arith.constant 8 : index
    %c0_34 = arith.constant 0 : index
    %32 = vector.load %arg5[%c0_31, %c1_32, %c8_33, %c0_34] : memref<2x10x17x256xf32, #tpu.memory_space<vmem>>, vector<2x8x8x256xf32>
    %33 = vector.broadcast %31 : vector<1x1x1x256xf32> to vector<2x8x8x256xf32>
    %34 = arith.mulf %32, %33 : vector<2x8x8x256xf32>
    %35 = arith.addf %29, %34 : vector<2x8x8x256xf32>
    %c5 = arith.constant 5 : index
    %c0_35 = arith.constant 0 : index
    %36 = vector.load %arg2[%c5, %c0_35] : memref<9x256xf32, #tpu.memory_space<vmem>>, vector<1x256xf32>
    %37 = vector.shape_cast %36 : vector<1x256xf32> to vector<1x1x1x256xf32>
    %c0_36 = arith.constant 0 : index
    %c1_37 = arith.constant 1 : index
    %c9_38 = arith.constant 9 : index
    %c0_39 = arith.constant 0 : index
    %38 = vector.load %arg5[%c0_36, %c1_37, %c9_38, %c0_39] : memref<2x10x17x256xf32, #tpu.memory_space<vmem>>, vector<2x8x8x256xf32>
    %39 = vector.broadcast %37 : vector<1x1x1x256xf32> to vector<2x8x8x256xf32>
    %40 = arith.mulf %38, %39 : vector<2x8x8x256xf32>
    %41 = arith.addf %35, %40 : vector<2x8x8x256xf32>
    %c6 = arith.constant 6 : index
    %c0_40 = arith.constant 0 : index
    %42 = vector.load %arg2[%c6, %c0_40] : memref<9x256xf32, #tpu.memory_space<vmem>>, vector<1x256xf32>
    %43 = vector.shape_cast %42 : vector<1x256xf32> to vector<1x1x1x256xf32>
    %c0_41 = arith.constant 0 : index
    %c2_42 = arith.constant 2 : index
    %c7_43 = arith.constant 7 : index
    %c0_44 = arith.constant 0 : index
    %44 = vector.load %arg5[%c0_41, %c2_42, %c7_43, %c0_44] : memref<2x10x17x256xf32, #tpu.memory_space<vmem>>, vector<2x8x8x256xf32>
    %45 = vector.broadcast %43 : vector<1x1x1x256xf32> to vector<2x8x8x256xf32>
    %46 = arith.mulf %44, %45 : vector<2x8x8x256xf32>
    %47 = arith.addf %41, %46 : vector<2x8x8x256xf32>
    %c7_45 = arith.constant 7 : index
    %c0_46 = arith.constant 0 : index
    %48 = vector.load %arg2[%c7_45, %c0_46] : memref<9x256xf32, #tpu.memory_space<vmem>>, vector<1x256xf32>
    %49 = vector.shape_cast %48 : vector<1x256xf32> to vector<1x1x1x256xf32>
    %c0_47 = arith.constant 0 : index
    %c2_48 = arith.constant 2 : index
    %c8_49 = arith.constant 8 : index
    %c0_50 = arith.constant 0 : index
    %50 = vector.load %arg5[%c0_47, %c2_48, %c8_49, %c0_50] : memref<2x10x17x256xf32, #tpu.memory_space<vmem>>, vector<2x8x8x256xf32>
    %51 = vector.broadcast %49 : vector<1x1x1x256xf32> to vector<2x8x8x256xf32>
    %52 = arith.mulf %50, %51 : vector<2x8x8x256xf32>
    %53 = arith.addf %47, %52 : vector<2x8x8x256xf32>
    %c8_51 = arith.constant 8 : index
    %c0_52 = arith.constant 0 : index
    %54 = vector.load %arg2[%c8_51, %c0_52] : memref<9x256xf32, #tpu.memory_space<vmem>>, vector<1x256xf32>
    %55 = vector.shape_cast %54 : vector<1x256xf32> to vector<1x1x1x256xf32>
    %c0_53 = arith.constant 0 : index
    %c2_54 = arith.constant 2 : index
    %c9_55 = arith.constant 9 : index
    %c0_56 = arith.constant 0 : index
    %56 = vector.load %arg5[%c0_53, %c2_54, %c9_55, %c0_56] : memref<2x10x17x256xf32, #tpu.memory_space<vmem>>, vector<2x8x8x256xf32>
    %57 = vector.broadcast %55 : vector<1x1x1x256xf32> to vector<2x8x8x256xf32>
    %58 = arith.mulf %56, %57 : vector<2x8x8x256xf32>
    %59 = arith.addf %53, %58 : vector<2x8x8x256xf32>
    %c0_57 = arith.constant 0 : index
    %c0_58 = arith.constant 0 : index
    %60 = vector.load %arg3[%c0_57, %c0_58] : memref<1x256xf32, #tpu.memory_space<vmem>>, vector<1x256xf32>
    %61 = vector.shape_cast %60 : vector<1x256xf32> to vector<1x1x1x256xf32>
    %62 = vector.broadcast %61 : vector<1x1x1x256xf32> to vector<2x8x8x256xf32>
    %63 = arith.addf %59, %62 : vector<2x8x8x256xf32>
    %64 = vector.shape_cast %63 : vector<2x8x8x256xf32> to vector<128x256xf32>
    %65 = arith.truncf %64 : vector<128x256xf32> to vector<128x256xbf16>
    %c0_59 = arith.constant 0 : index
    %c0_60 = arith.constant 0 : index
    %66 = vector.load %arg4[%c0_59, %c0_60] : memref<128x256xbf16, #tpu.memory_space<vmem>>, vector<128x256xbf16>
    tpu.vector_store %arg4[%c0_59, %c0_60], %65 {strides = array<i32>} : memref<128x256xbf16, #tpu.memory_space<vmem>>, vector<128x256xbf16>,
    return
  }
  func.func @transform_0(%arg0: i32) -> (i32, i32, i32, i32) {
    %c0_i32 = arith.constant 0 : i32
    %c0_i32_0 = arith.constant 0 : i32
    %c0_i32_1 = arith.constant 0 : i32
    %c0_i32_2 = arith.constant 0 : i32
    return %c0_i32, %c0_i32_0, %c0_i32_1, %arg0 : i32, i32, i32, i32
  }
  func.func @transform_1(%arg0: i32) -> (i32, i32) {
    %c0_i32 = arith.constant 0 : i32
    %c0_i32_0 = arith.constant 0 : i32
    return %c0_i32, %arg0 : i32, i32
  }
  func.func @transform_2(%arg0: i32) -> (i32, i32) {
    %c0_i32 = arith.constant 0 : i32
    %c0_i32_0 = arith.constant 0 : i32
    return %c0_i32, %arg0 : i32, i32
  }
  func.func @transform_3(%arg0: i32) -> (i32, i32) {
    %c0_i32 = arith.constant 0 : i32
    %c0_i32_0 = arith.constant 0 : i32
    return %c0_i32, %arg0 : i32, i32
  }
}

module attributes {stable_mosaic.version = 11 : i64} {
  func.func @_pw_kernel(%arg0: i32, %arg1: memref<128x256xbf16, #tpu.memory_space<vmem>>, %arg2: memref<256x256xbf16, #tpu.memory_space<vmem>>, %arg3: memref<1x256xf32, #tpu.memory_space<vmem>>, %arg4: memref<1x256xf32, #tpu.memory_space<vmem>>, %arg5: memref<128x256xbf16, #tpu.memory_space<vmem>>) attributes {dimension_semantics = [#tpu.dimension_semantics<parallel>], iteration_bounds = array<i64: 1>, scalar_prefetch = 0 : i64, scratch_operands = 0 : i64, tpu.core_type = #tpu.core_type<tc>, window_params = [{pipeline_mode = #tpu.pipeline_mode<synchronous>, transform_indices = @transform_0, window_bounds = array<i64: 128, 256>}, {transform_indices = @transform_1, window_bounds = array<i64: 256, 256>}, {transform_indices = @transform_2, window_bounds = array<i64: 1, 256>}, {transform_indices = @transform_3, window_bounds = array<i64: 1, 256>}, {transform_indices = @transform_4, window_bounds = array<i64: 128, 256>}]} {
    %c0 = arith.constant 0 : index
    %c0_0 = arith.constant 0 : index
    %0 = vector.load %arg1[%c0, %c0_0] : memref<128x256xbf16, #tpu.memory_space<vmem>>, vector<128x256xbf16>
    %c0_1 = arith.constant 0 : index
    %c0_2 = arith.constant 0 : index
    %1 = vector.load %arg2[%c0_1, %c0_2] : memref<256x256xbf16, #tpu.memory_space<vmem>>, vector<256x256xbf16>
    %cst = arith.constant dense<0.000000e+00> : vector<128x256xf32>
    %2 = tpu.matmul %0, %1, %cst {dimension_numbers = #tpu.dot_dimension_numbers<[1], [0], [0], [1], [0, 0, 1, 1], [], []>} : vector<128x256xbf16>, vector<256x256xbf16>, vector<128x256xf32> -> vector<128x256xf32>
    %c0_3 = arith.constant 0 : index
    %c0_4 = arith.constant 0 : index
    %3 = vector.load %arg3[%c0_3, %c0_4] : memref<1x256xf32, #tpu.memory_space<vmem>>, vector<1x256xf32>
    %4 = vector.broadcast %3 : vector<1x256xf32> to vector<128x256xf32>
    %5 = arith.mulf %2, %4 : vector<128x256xf32>
    %c0_5 = arith.constant 0 : index
    %c0_6 = arith.constant 0 : index
    %6 = vector.load %arg4[%c0_5, %c0_6] : memref<1x256xf32, #tpu.memory_space<vmem>>, vector<1x256xf32>
    %7 = vector.broadcast %6 : vector<1x256xf32> to vector<128x256xf32>
    %8 = arith.addf %5, %7 : vector<128x256xf32>
    %cst_7 = arith.constant 0.000000e+00 : f32
    %9 = vector.broadcast %cst_7 : f32 to vector<128x256xf32>
    %10 = arith.maximumf %8, %9 : vector<128x256xf32>
    %11 = arith.truncf %10 : vector<128x256xf32> to vector<128x256xbf16>
    %c0_8 = arith.constant 0 : index
    %c0_9 = arith.constant 0 : index
    %12 = vector.load %arg5[%c0_8, %c0_9] : memref<128x256xbf16, #tpu.memory_space<vmem>>, vector<128x256xbf16>
    tpu.vector_store %arg5[%c0_8, %c0_9], %11 {strides = array<i32>} : memref<128x256xbf16, #tpu.memory_space<vmem>>, vector<128x256xbf16>,
    return
  }
  func.func @transform_0(%arg0: i32) -> (i32, i32) {
    %c0_i32 = arith.constant 0 : i32
    %c0_i32_0 = arith.constant 0 : i32
    %c0_i32_1 = arith.constant 0 : i32
    return %c0_i32, %c0_i32_0 : i32, i32
  }
  func.func @transform_1(%arg0: i32) -> (i32, i32) {
    %c0_i32 = arith.constant 0 : i32
    %c0_i32_0 = arith.constant 0 : i32
    return %c0_i32, %arg0 : i32, i32
  }
  func.func @transform_2(%arg0: i32) -> (i32, i32) {
    %c0_i32 = arith.constant 0 : i32
    %c0_i32_0 = arith.constant 0 : i32
    return %c0_i32, %arg0 : i32, i32
  }
  func.func @transform_3(%arg0: i32) -> (i32, i32) {
    %c0_i32 = arith.constant 0 : i32
    %c0_i32_0 = arith.constant 0 : i32
    return %c0_i32, %arg0 : i32, i32
  }
  func.func @transform_4(%arg0: i32) -> (i32, i32) {
    %c0_i32 = arith.constant 0 : i32
    %c0_i32_0 = arith.constant 0 : i32
    return %c0_i32, %arg0 : i32, i32
  }
}

module attributes {stable_mosaic.version = 11 : i64} {
  func.func @kernel(%arg0: i32, %arg1: memref<2x8x8x128xbf16, #tpu.memory_space<vmem>>, %arg2: memref<9x128xf32, #tpu.memory_space<vmem>>, %arg3: memref<1x128xf32, #tpu.memory_space<vmem>>, %arg4: memref<128x128xbf16, #tpu.memory_space<vmem>>, %arg5: memref<2x10x17x128xf32, #tpu.memory_space<vmem>>) attributes {dimension_semantics = [#tpu.dimension_semantics<parallel>], iteration_bounds = array<i64: 1>, scalar_prefetch = 0 : i64, scratch_operands = 1 : i64, tpu.core_type = #tpu.core_type<tc>, window_params = [{transform_indices = @transform_0, window_bounds = array<i64: 2, 8, 8, 128>}, {transform_indices = @transform_1, window_bounds = array<i64: 9, 128>}, {transform_indices = @transform_2, window_bounds = array<i64: 1, 128>}, {transform_indices = @transform_3, window_bounds = array<i64: 128, 128>}]} {
    %cst = arith.constant 0.000000e+00 : f32
    %0 = vector.broadcast %cst : f32 to vector<2x10x17x128xf32>
    %c0 = arith.constant 0 : index
    %c0_0 = arith.constant 0 : index
    %c0_1 = arith.constant 0 : index
    %c0_2 = arith.constant 0 : index
    %1 = vector.load %arg5[%c0, %c0_0, %c0_1, %c0_2] : memref<2x10x17x128xf32, #tpu.memory_space<vmem>>, vector<2x10x17x128xf32>
    tpu.vector_store %arg5[%c0, %c0_0, %c0_1, %c0_2], %0 {strides = array<i32>} : memref<2x10x17x128xf32, #tpu.memory_space<vmem>>, vector<2x10x17x128xf32>,
    %c0_3 = arith.constant 0 : index
    %c0_4 = arith.constant 0 : index
    %c0_5 = arith.constant 0 : index
    %c0_6 = arith.constant 0 : index
    %2 = vector.load %arg1[%c0_3, %c0_4, %c0_5, %c0_6] : memref<2x8x8x128xbf16, #tpu.memory_space<vmem>>, vector<2x8x8x128xbf16>
    %3 = arith.extf %2 : vector<2x8x8x128xbf16> to vector<2x8x8x128xf32>
    %c0_7 = arith.constant 0 : index
    %c1 = arith.constant 1 : index
    %c8 = arith.constant 8 : index
    %c0_8 = arith.constant 0 : index
    %4 = vector.load %arg5[%c0_7, %c1, %c8, %c0_8] : memref<2x10x17x128xf32, #tpu.memory_space<vmem>>, vector<2x8x8x128xf32>
    tpu.vector_store %arg5[%c0_7, %c1, %c8, %c0_8], %3 {strides = array<i32>} : memref<2x10x17x128xf32, #tpu.memory_space<vmem>>, vector<2x8x8x128xf32>,
    %cst_9 = arith.constant 0.000000e+00 : f32
    %5 = vector.broadcast %cst_9 : f32 to vector<2x8x8x128xf32>
    %c0_10 = arith.constant 0 : index
    %c0_11 = arith.constant 0 : index
    %6 = vector.load %arg2[%c0_10, %c0_11] : memref<9x128xf32, #tpu.memory_space<vmem>>, vector<1x128xf32>
    %7 = vector.shape_cast %6 : vector<1x128xf32> to vector<1x1x1x128xf32>
    %c0_12 = arith.constant 0 : index
    %c0_13 = arith.constant 0 : index
    %c7 = arith.constant 7 : index
    %c0_14 = arith.constant 0 : index
    %8 = vector.load %arg5[%c0_12, %c0_13, %c7, %c0_14] : memref<2x10x17x128xf32, #tpu.memory_space<vmem>>, vector<2x8x8x128xf32>
    %9 = vector.broadcast %7 : vector<1x1x1x128xf32> to vector<2x8x8x128xf32>
    %10 = arith.mulf %8, %9 : vector<2x8x8x128xf32>
    %11 = arith.addf %5, %10 : vector<2x8x8x128xf32>
    %c1_15 = arith.constant 1 : index
    %c0_16 = arith.constant 0 : index
    %12 = vector.load %arg2[%c1_15, %c0_16] : memref<9x128xf32, #tpu.memory_space<vmem>>, vector<1x128xf32>
    %13 = vector.shape_cast %12 : vector<1x128xf32> to vector<1x1x1x128xf32>
    %c0_17 = arith.constant 0 : index
    %c0_18 = arith.constant 0 : index
    %c8_19 = arith.constant 8 : index
    %c0_20 = arith.constant 0 : index
    %14 = vector.load %arg5[%c0_17, %c0_18, %c8_19, %c0_20] : memref<2x10x17x128xf32, #tpu.memory_space<vmem>>, vector<2x8x8x128xf32>
    %15 = vector.broadcast %13 : vector<1x1x1x128xf32> to vector<2x8x8x128xf32>
    %16 = arith.mulf %14, %15 : vector<2x8x8x128xf32>
    %17 = arith.addf %11, %16 : vector<2x8x8x128xf32>
    %c2 = arith.constant 2 : index
    %c0_21 = arith.constant 0 : index
    %18 = vector.load %arg2[%c2, %c0_21] : memref<9x128xf32, #tpu.memory_space<vmem>>, vector<1x128xf32>
    %19 = vector.shape_cast %18 : vector<1x128xf32> to vector<1x1x1x128xf32>
    %c0_22 = arith.constant 0 : index
    %c0_23 = arith.constant 0 : index
    %c9 = arith.constant 9 : index
    %c0_24 = arith.constant 0 : index
    %20 = vector.load %arg5[%c0_22, %c0_23, %c9, %c0_24] : memref<2x10x17x128xf32, #tpu.memory_space<vmem>>, vector<2x8x8x128xf32>
    %21 = vector.broadcast %19 : vector<1x1x1x128xf32> to vector<2x8x8x128xf32>
    %22 = arith.mulf %20, %21 : vector<2x8x8x128xf32>
    %23 = arith.addf %17, %22 : vector<2x8x8x128xf32>
    %c3 = arith.constant 3 : index
    %c0_25 = arith.constant 0 : index
    %24 = vector.load %arg2[%c3, %c0_25] : memref<9x128xf32, #tpu.memory_space<vmem>>, vector<1x128xf32>
    %25 = vector.shape_cast %24 : vector<1x128xf32> to vector<1x1x1x128xf32>
    %c0_26 = arith.constant 0 : index
    %c1_27 = arith.constant 1 : index
    %c7_28 = arith.constant 7 : index
    %c0_29 = arith.constant 0 : index
    %26 = vector.load %arg5[%c0_26, %c1_27, %c7_28, %c0_29] : memref<2x10x17x128xf32, #tpu.memory_space<vmem>>, vector<2x8x8x128xf32>
    %27 = vector.broadcast %25 : vector<1x1x1x128xf32> to vector<2x8x8x128xf32>
    %28 = arith.mulf %26, %27 : vector<2x8x8x128xf32>
    %29 = arith.addf %23, %28 : vector<2x8x8x128xf32>
    %c4 = arith.constant 4 : index
    %c0_30 = arith.constant 0 : index
    %30 = vector.load %arg2[%c4, %c0_30] : memref<9x128xf32, #tpu.memory_space<vmem>>, vector<1x128xf32>
    %31 = vector.shape_cast %30 : vector<1x128xf32> to vector<1x1x1x128xf32>
    %c0_31 = arith.constant 0 : index
    %c1_32 = arith.constant 1 : index
    %c8_33 = arith.constant 8 : index
    %c0_34 = arith.constant 0 : index
    %32 = vector.load %arg5[%c0_31, %c1_32, %c8_33, %c0_34] : memref<2x10x17x128xf32, #tpu.memory_space<vmem>>, vector<2x8x8x128xf32>
    %33 = vector.broadcast %31 : vector<1x1x1x128xf32> to vector<2x8x8x128xf32>
    %34 = arith.mulf %32, %33 : vector<2x8x8x128xf32>
    %35 = arith.addf %29, %34 : vector<2x8x8x128xf32>
    %c5 = arith.constant 5 : index
    %c0_35 = arith.constant 0 : index
    %36 = vector.load %arg2[%c5, %c0_35] : memref<9x128xf32, #tpu.memory_space<vmem>>, vector<1x128xf32>
    %37 = vector.shape_cast %36 : vector<1x128xf32> to vector<1x1x1x128xf32>
    %c0_36 = arith.constant 0 : index
    %c1_37 = arith.constant 1 : index
    %c9_38 = arith.constant 9 : index
    %c0_39 = arith.constant 0 : index
    %38 = vector.load %arg5[%c0_36, %c1_37, %c9_38, %c0_39] : memref<2x10x17x128xf32, #tpu.memory_space<vmem>>, vector<2x8x8x128xf32>
    %39 = vector.broadcast %37 : vector<1x1x1x128xf32> to vector<2x8x8x128xf32>
    %40 = arith.mulf %38, %39 : vector<2x8x8x128xf32>
    %41 = arith.addf %35, %40 : vector<2x8x8x128xf32>
    %c6 = arith.constant 6 : index
    %c0_40 = arith.constant 0 : index
    %42 = vector.load %arg2[%c6, %c0_40] : memref<9x128xf32, #tpu.memory_space<vmem>>, vector<1x128xf32>
    %43 = vector.shape_cast %42 : vector<1x128xf32> to vector<1x1x1x128xf32>
    %c0_41 = arith.constant 0 : index
    %c2_42 = arith.constant 2 : index
    %c7_43 = arith.constant 7 : index
    %c0_44 = arith.constant 0 : index
    %44 = vector.load %arg5[%c0_41, %c2_42, %c7_43, %c0_44] : memref<2x10x17x128xf32, #tpu.memory_space<vmem>>, vector<2x8x8x128xf32>
    %45 = vector.broadcast %43 : vector<1x1x1x128xf32> to vector<2x8x8x128xf32>
    %46 = arith.mulf %44, %45 : vector<2x8x8x128xf32>
    %47 = arith.addf %41, %46 : vector<2x8x8x128xf32>
    %c7_45 = arith.constant 7 : index
    %c0_46 = arith.constant 0 : index
    %48 = vector.load %arg2[%c7_45, %c0_46] : memref<9x128xf32, #tpu.memory_space<vmem>>, vector<1x128xf32>
    %49 = vector.shape_cast %48 : vector<1x128xf32> to vector<1x1x1x128xf32>
    %c0_47 = arith.constant 0 : index
    %c2_48 = arith.constant 2 : index
    %c8_49 = arith.constant 8 : index
    %c0_50 = arith.constant 0 : index
    %50 = vector.load %arg5[%c0_47, %c2_48, %c8_49, %c0_50] : memref<2x10x17x128xf32, #tpu.memory_space<vmem>>, vector<2x8x8x128xf32>
    %51 = vector.broadcast %49 : vector<1x1x1x128xf32> to vector<2x8x8x128xf32>
    %52 = arith.mulf %50, %51 : vector<2x8x8x128xf32>
    %53 = arith.addf %47, %52 : vector<2x8x8x128xf32>
    %c8_51 = arith.constant 8 : index
    %c0_52 = arith.constant 0 : index
    %54 = vector.load %arg2[%c8_51, %c0_52] : memref<9x128xf32, #tpu.memory_space<vmem>>, vector<1x128xf32>
    %55 = vector.shape_cast %54 : vector<1x128xf32> to vector<1x1x1x128xf32>
    %c0_53 = arith.constant 0 : index
    %c2_54 = arith.constant 2 : index
    %c9_55 = arith.constant 9 : index
    %c0_56 = arith.constant 0 : index
    %56 = vector.load %arg5[%c0_53, %c2_54, %c9_55, %c0_56] : memref<2x10x17x128xf32, #tpu.memory_space<vmem>>, vector<2x8x8x128xf32>
    %57 = vector.broadcast %55 : vector<1x1x1x128xf32> to vector<2x8x8x128xf32>
    %58 = arith.mulf %56, %57 : vector<2x8x8x128xf32>
    %59 = arith.addf %53, %58 : vector<2x8x8x128xf32>
    %c0_57 = arith.constant 0 : index
    %c0_58 = arith.constant 0 : index
    %60 = vector.load %arg3[%c0_57, %c0_58] : memref<1x128xf32, #tpu.memory_space<vmem>>, vector<1x128xf32>
    %61 = vector.shape_cast %60 : vector<1x128xf32> to vector<1x1x1x128xf32>
    %62 = vector.broadcast %61 : vector<1x1x1x128xf32> to vector<2x8x8x128xf32>
    %63 = arith.addf %59, %62 : vector<2x8x8x128xf32>
    %64 = vector.shape_cast %63 : vector<2x8x8x128xf32> to vector<128x128xf32>
    %65 = arith.truncf %64 : vector<128x128xf32> to vector<128x128xbf16>
    %c0_59 = arith.constant 0 : index
    %c0_60 = arith.constant 0 : index
    %66 = vector.load %arg4[%c0_59, %c0_60] : memref<128x128xbf16, #tpu.memory_space<vmem>>, vector<128x128xbf16>
    tpu.vector_store %arg4[%c0_59, %c0_60], %65 {strides = array<i32>} : memref<128x128xbf16, #tpu.memory_space<vmem>>, vector<128x128xbf16>,
    return
  }
  func.func @transform_0(%arg0: i32) -> (i32, i32, i32, i32) {
    %c0_i32 = arith.constant 0 : i32
    %c0_i32_0 = arith.constant 0 : i32
    %c0_i32_1 = arith.constant 0 : i32
    %c0_i32_2 = arith.constant 0 : i32
    return %c0_i32, %c0_i32_0, %c0_i32_1, %arg0 : i32, i32, i32, i32
  }
  func.func @transform_1(%arg0: i32) -> (i32, i32) {
    %c0_i32 = arith.constant 0 : i32
    %c0_i32_0 = arith.constant 0 : i32
    return %c0_i32, %arg0 : i32, i32
  }
  func.func @transform_2(%arg0: i32) -> (i32, i32) {
    %c0_i32 = arith.constant 0 : i32
    %c0_i32_0 = arith.constant 0 : i32
    return %c0_i32, %arg0 : i32, i32
  }
  func.func @transform_3(%arg0: i32) -> (i32, i32) {
    %c0_i32 = arith.constant 0 : i32
    %c0_i32_0 = arith.constant 0 : i32
    return %c0_i32, %arg0 : i32, i32
  }
}

module attributes {stable_mosaic.version = 11 : i64} {
  func.func @_pw_kernel(%arg0: i32, %arg1: memref<128x256xbf16, #tpu.memory_space<vmem>>, %arg2: memref<256x128xbf16, #tpu.memory_space<vmem>>, %arg3: memref<1x128xf32, #tpu.memory_space<vmem>>, %arg4: memref<1x128xf32, #tpu.memory_space<vmem>>, %arg5: memref<128x128xbf16, #tpu.memory_space<vmem>>) attributes {dimension_semantics = [#tpu.dimension_semantics<parallel>], iteration_bounds = array<i64: 1>, scalar_prefetch = 0 : i64, scratch_operands = 0 : i64, tpu.core_type = #tpu.core_type<tc>, window_params = [{pipeline_mode = #tpu.pipeline_mode<synchronous>, transform_indices = @transform_0, window_bounds = array<i64: 128, 256>}, {transform_indices = @transform_1, window_bounds = array<i64: 256, 128>}, {transform_indices = @transform_2, window_bounds = array<i64: 1, 128>}, {transform_indices = @transform_3, window_bounds = array<i64: 1, 128>}, {transform_indices = @transform_4, window_bounds = array<i64: 128, 128>}]} {
    %c0 = arith.constant 0 : index
    %c0_0 = arith.constant 0 : index
    %0 = vector.load %arg1[%c0, %c0_0] : memref<128x256xbf16, #tpu.memory_space<vmem>>, vector<128x256xbf16>
    %c0_1 = arith.constant 0 : index
    %c0_2 = arith.constant 0 : index
    %1 = vector.load %arg2[%c0_1, %c0_2] : memref<256x128xbf16, #tpu.memory_space<vmem>>, vector<256x128xbf16>
    %cst = arith.constant dense<0.000000e+00> : vector<128x128xf32>
    %2 = tpu.matmul %0, %1, %cst {dimension_numbers = #tpu.dot_dimension_numbers<[1], [0], [0], [1], [0, 0, 1, 1], [], []>} : vector<128x256xbf16>, vector<256x128xbf16>, vector<128x128xf32> -> vector<128x128xf32>
    %c0_3 = arith.constant 0 : index
    %c0_4 = arith.constant 0 : index
    %3 = vector.load %arg3[%c0_3, %c0_4] : memref<1x128xf32, #tpu.memory_space<vmem>>, vector<1x128xf32>
    %4 = vector.broadcast %3 : vector<1x128xf32> to vector<128x128xf32>
    %5 = arith.mulf %2, %4 : vector<128x128xf32>
    %c0_5 = arith.constant 0 : index
    %c0_6 = arith.constant 0 : index
    %6 = vector.load %arg4[%c0_5, %c0_6] : memref<1x128xf32, #tpu.memory_space<vmem>>, vector<1x128xf32>
    %7 = vector.broadcast %6 : vector<1x128xf32> to vector<128x128xf32>
    %8 = arith.addf %5, %7 : vector<128x128xf32>
    %cst_7 = arith.constant 0.000000e+00 : f32
    %9 = vector.broadcast %cst_7 : f32 to vector<128x128xf32>
    %10 = arith.maximumf %8, %9 : vector<128x128xf32>
    %11 = arith.truncf %10 : vector<128x128xf32> to vector<128x128xbf16>
    %c0_8 = arith.constant 0 : index
    %c0_9 = arith.constant 0 : index
    %12 = vector.load %arg5[%c0_8, %c0_9] : memref<128x128xbf16, #tpu.memory_space<vmem>>, vector<128x128xbf16>
    tpu.vector_store %arg5[%c0_8, %c0_9], %11 {strides = array<i32>} : memref<128x128xbf16, #tpu.memory_space<vmem>>, vector<128x128xbf16>,
    return
  }
  func.func @transform_0(%arg0: i32) -> (i32, i32) {
    %c0_i32 = arith.constant 0 : i32
    %c0_i32_0 = arith.constant 0 : i32
    %c0_i32_1 = arith.constant 0 : i32
    return %c0_i32, %c0_i32_0 : i32, i32
  }
  func.func @transform_1(%arg0: i32) -> (i32, i32) {
    %c0_i32 = arith.constant 0 : i32
    %c0_i32_0 = arith.constant 0 : i32
    return %c0_i32, %arg0 : i32, i32
  }
  func.func @transform_2(%arg0: i32) -> (i32, i32) {
    %c0_i32 = arith.constant 0 : i32
    %c0_i32_0 = arith.constant 0 : i32
    return %c0_i32, %arg0 : i32, i32
  }
  func.func @transform_3(%arg0: i32) -> (i32, i32) {
    %c0_i32 = arith.constant 0 : i32
    %c0_i32_0 = arith.constant 0 : i32
    return %c0_i32, %arg0 : i32, i32
  }
  func.func @transform_4(%arg0: i32) -> (i32, i32) {
    %c0_i32 = arith.constant 0 : i32
    %c0_i32_0 = arith.constant 0 : i32
    return %c0_i32, %arg0 : i32, i32
  }
}

module attributes {stable_mosaic.version = 11 : i64} {
  func.func @_pw_kernel(%arg0: i32, %arg1: memref<128x128xbf16, #tpu.memory_space<vmem>>, %arg2: memref<128x128xbf16, #tpu.memory_space<vmem>>, %arg3: memref<1x128xf32, #tpu.memory_space<vmem>>, %arg4: memref<1x128xf32, #tpu.memory_space<vmem>>, %arg5: memref<128x128xbf16, #tpu.memory_space<vmem>>) attributes {dimension_semantics = [#tpu.dimension_semantics<parallel>], iteration_bounds = array<i64: 1>, scalar_prefetch = 0 : i64, scratch_operands = 0 : i64, tpu.core_type = #tpu.core_type<tc>, window_params = [{pipeline_mode = #tpu.pipeline_mode<synchronous>, transform_indices = @transform_0, window_bounds = array<i64: 128, 128>}, {transform_indices = @transform_1, window_bounds = array<i64: 128, 128>}, {transform_indices = @transform_2, window_bounds = array<i64: 1, 128>}, {transform_indices = @transform_3, window_bounds = array<i64: 1, 128>}, {transform_indices = @transform_4, window_bounds = array<i64: 128, 128>}]} {
    %c0 = arith.constant 0 : index
    %c0_0 = arith.constant 0 : index
    %0 = vector.load %arg1[%c0, %c0_0] : memref<128x128xbf16, #tpu.memory_space<vmem>>, vector<128x128xbf16>
    %c0_1 = arith.constant 0 : index
    %c0_2 = arith.constant 0 : index
    %1 = vector.load %arg2[%c0_1, %c0_2] : memref<128x128xbf16, #tpu.memory_space<vmem>>, vector<128x128xbf16>
    %cst = arith.constant dense<0.000000e+00> : vector<128x128xf32>
    %2 = tpu.matmul %0, %1, %cst {dimension_numbers = #tpu.dot_dimension_numbers<[1], [0], [0], [1], [0, 0, 1, 1], [], []>} : vector<128x128xbf16>, vector<128x128xbf16>, vector<128x128xf32> -> vector<128x128xf32>
    %c0_3 = arith.constant 0 : index
    %c0_4 = arith.constant 0 : index
    %3 = vector.load %arg3[%c0_3, %c0_4] : memref<1x128xf32, #tpu.memory_space<vmem>>, vector<1x128xf32>
    %4 = vector.broadcast %3 : vector<1x128xf32> to vector<128x128xf32>
    %5 = arith.mulf %2, %4 : vector<128x128xf32>
    %c0_5 = arith.constant 0 : index
    %c0_6 = arith.constant 0 : index
    %6 = vector.load %arg4[%c0_5, %c0_6] : memref<1x128xf32, #tpu.memory_space<vmem>>, vector<1x128xf32>
    %7 = vector.broadcast %6 : vector<1x128xf32> to vector<128x128xf32>
    %8 = arith.addf %5, %7 : vector<128x128xf32>
    %cst_7 = arith.constant 0.000000e+00 : f32
    %9 = vector.broadcast %cst_7 : f32 to vector<128x128xf32>
    %10 = arith.maximumf %8, %9 : vector<128x128xf32>
    %11 = arith.truncf %10 : vector<128x128xf32> to vector<128x128xbf16>
    %c0_8 = arith.constant 0 : index
    %c0_9 = arith.constant 0 : index
    %12 = vector.load %arg5[%c0_8, %c0_9] : memref<128x128xbf16, #tpu.memory_space<vmem>>, vector<128x128xbf16>
    tpu.vector_store %arg5[%c0_8, %c0_9], %11 {strides = array<i32>} : memref<128x128xbf16, #tpu.memory_space<vmem>>, vector<128x128xbf16>,
    return
  }
  func.func @transform_0(%arg0: i32) -> (i32, i32) {
    %c0_i32 = arith.constant 0 : i32
    %c0_i32_0 = arith.constant 0 : i32
    %c0_i32_1 = arith.constant 0 : i32
    return %c0_i32, %c0_i32_0 : i32, i32
  }
  func.func @transform_1(%arg0: i32) -> (i32, i32) {
    %c0_i32 = arith.constant 0 : i32
    %c0_i32_0 = arith.constant 0 : i32
    return %c0_i32, %arg0 : i32, i32
  }
  func.func @transform_2(%arg0: i32) -> (i32, i32) {
    %c0_i32 = arith.constant 0 : i32
    %c0_i32_0 = arith.constant 0 : i32
    return %c0_i32, %arg0 : i32, i32
  }
  func.func @transform_3(%arg0: i32) -> (i32, i32) {
    %c0_i32 = arith.constant 0 : i32
    %c0_i32_0 = arith.constant 0 : i32
    return %c0_i32, %arg0 : i32, i32
  }
  func.func @transform_4(%arg0: i32) -> (i32, i32) {
    %c0_i32 = arith.constant 0 : i32
    %c0_i32_0 = arith.constant 0 : i32
    return %c0_i32, %arg0 : i32, i32
  }
}

module attributes {stable_mosaic.version = 11 : i64} {
  func.func @kernel(%arg0: i32, %arg1: memref<128x128xbf16, #tpu.memory_space<vmem>>, %arg2: memref<128x128xbf16, #tpu.memory_space<vmem>>, %arg3: memref<1x128xf32, #tpu.memory_space<vmem>>, %arg4: memref<1x128xf32, #tpu.memory_space<vmem>>, %arg5: memref<128x128xf32, #tpu.memory_space<vmem>>, %arg6: memref<1x2x128xf32, #tpu.memory_space<vmem>>) attributes {dimension_semantics = [#tpu.dimension_semantics<parallel>], iteration_bounds = array<i64: 1>, scalar_prefetch = 0 : i64, scratch_operands = 0 : i64, tpu.core_type = #tpu.core_type<tc>, window_params = [{pipeline_mode = #tpu.pipeline_mode<synchronous>, transform_indices = @transform_0, window_bounds = array<i64: 128, 128>}, {transform_indices = @transform_1, window_bounds = array<i64: 128, 128>}, {transform_indices = @transform_2, window_bounds = array<i64: 1, 128>}, {transform_indices = @transform_3, window_bounds = array<i64: 1, 128>}, {transform_indices = @transform_4, window_bounds = array<i64: 128, 128>}, {transform_indices = @transform_5, window_bounds = array<i64: 1, 2, 128>}]} {
    %c0 = arith.constant 0 : index
    %c0_0 = arith.constant 0 : index
    %0 = vector.load %arg1[%c0, %c0_0] : memref<128x128xbf16, #tpu.memory_space<vmem>>, vector<128x128xbf16>
    %c0_1 = arith.constant 0 : index
    %c0_2 = arith.constant 0 : index
    %1 = vector.load %arg2[%c0_1, %c0_2] : memref<128x128xbf16, #tpu.memory_space<vmem>>, vector<128x128xbf16>
    %cst = arith.constant dense<0.000000e+00> : vector<128x128xf32>
    %2 = tpu.matmul %0, %1, %cst {dimension_numbers = #tpu.dot_dimension_numbers<[1], [0], [0], [1], [0, 0, 1, 1], [], []>} : vector<128x128xbf16>, vector<128x128xbf16>, vector<128x128xf32> -> vector<128x128xf32>
    %c0_3 = arith.constant 0 : index
    %c0_4 = arith.constant 0 : index
    %3 = vector.load %arg3[%c0_3, %c0_4] : memref<1x128xf32, #tpu.memory_space<vmem>>, vector<1x128xf32>
    %4 = vector.broadcast %3 : vector<1x128xf32> to vector<128x128xf32>
    %5 = arith.mulf %2, %4 : vector<128x128xf32>
    %c0_5 = arith.constant 0 : index
    %c0_6 = arith.constant 0 : index
    %6 = vector.load %arg4[%c0_5, %c0_6] : memref<1x128xf32, #tpu.memory_space<vmem>>, vector<1x128xf32>
    %7 = vector.broadcast %6 : vector<1x128xf32> to vector<128x128xf32>
    %8 = arith.addf %5, %7 : vector<128x128xf32>
    %cst_7 = arith.constant 0.000000e+00 : f32
    %9 = vector.broadcast %cst_7 : f32 to vector<128x128xf32>
    %10 = arith.maximumf %8, %9 : vector<128x128xf32>
    %11 = vector.shape_cast %10 : vector<128x128xf32> to vector<2x64x128xf32>
    %cst_8 = arith.constant dense<0.000000e+00> : vector<2x128xf32>
    %12 = vector.multi_reduction <add>, %11, %cst_8 [1] : vector<2x64x128xf32> to vector<2x128xf32>
    %cst_9 = arith.constant 1.562500e-02 : f32
    %13 = vector.broadcast %cst_9 : f32 to vector<2x128xf32>
    %14 = arith.mulf %12, %13 : vector<2x128xf32>
    %c0_10 = arith.constant 0 : index
    %c0_11 = arith.constant 0 : index
    %15 = vector.load %arg5[%c0_10, %c0_11] : memref<128x128xf32, #tpu.memory_space<vmem>>, vector<128x128xf32>
    %cst_12 = arith.constant dense<0.000000e+00> : vector<2x128xf32>
    %16 = tpu.matmul %14, %15, %cst_12 {dimension_numbers = #tpu.dot_dimension_numbers<[1], [0], [0], [1], [0, 0, 1, 1], [], []>} : vector<2x128xf32>, vector<128x128xf32>, vector<2x128xf32> -> vector<2x128xf32>
    %c0_13 = arith.constant 0 : index
    %c0_14 = arith.constant 0 : index
    %c0_15 = arith.constant 0 : index
    %17 = vector.load %arg6[%c0_13, %c0_14, %c0_15] : memref<1x2x128xf32, #tpu.memory_space<vmem>>, vector<1x2x128xf32>
    %18 = vector.shape_cast %17 : vector<1x2x128xf32> to vector<2x128xf32>
    %19 = vector.shape_cast %16 : vector<2x128xf32> to vector<1x2x128xf32>
    tpu.vector_store %arg6[%c0_13, %c0_14, %c0_15], %19 {strides = array<i32>} : memref<1x2x128xf32, #tpu.memory_space<vmem>>, vector<1x2x128xf32>,
    return
  }
  func.func @transform_0(%arg0: i32) -> (i32, i32) {
    %c0_i32 = arith.constant 0 : i32
    %c0_i32_0 = arith.constant 0 : i32
    %c0_i32_1 = arith.constant 0 : i32
    return %c0_i32, %c0_i32_0 : i32, i32
  }
  func.func @transform_1(%arg0: i32) -> (i32, i32) {
    %c0_i32 = arith.constant 0 : i32
    %c0_i32_0 = arith.constant 0 : i32
    return %c0_i32, %arg0 : i32, i32
  }
  func.func @transform_2(%arg0: i32) -> (i32, i32) {
    %c0_i32 = arith.constant 0 : i32
    %c0_i32_0 = arith.constant 0 : i32
    return %c0_i32, %arg0 : i32, i32
  }
  func.func @transform_3(%arg0: i32) -> (i32, i32) {
    %c0_i32 = arith.constant 0 : i32
    %c0_i32_0 = arith.constant 0 : i32
    return %c0_i32, %arg0 : i32, i32
  }
  func.func @transform_4(%arg0: i32) -> (i32, i32) {
    %c0_i32 = arith.constant 0 : i32
    %c0_i32_0 = arith.constant 0 : i32
    return %arg0, %c0_i32 : i32, i32
  }
  func.func @transform_5(%arg0: i32) -> (i32, i32, i32) {
    %c0_i32 = arith.constant 0 : i32
    %c0_i32_0 = arith.constant 0 : i32
    %c0_i32_1 = arith.constant 0 : i32
    return %arg0, %c0_i32, %c0_i32_0 : i32, i32, i32
  }
}

</mosaic_0001>

<bundles_post_ra>
// kernel: classifier_forward.9
= control target key start
LH: loop header
LB: loop body
LE: loop exit
PB: predicated region body
PF: predicated region fallthrough
CT: control target
= control target key end

     0   :  { %v420_v48 = vlaneseq  ;;  %s1133_s1 = inlined_call_operand.vmem [shape: bf16[256,256], index: 1, kind: input, shape index: {}]   ;;  %s1134_s0 = inlined_call_operand.vmem [shape: bf16[128,256], index: 0, kind: input, shape index: {}]   ;;  %s1135_s2 = inlined_call_operand.vmem [shape: f32[1,256], index: 2, kind: input, shape index: {}]   ;;  %s1136_s3 = inlined_call_operand.vmem [shape: f32[1,256], index: 3, kind: input, shape index: {}]   ;;  %s1137_s4 = inlined_call_operand.vmem [shape: bf16[128,256], index: 4, kind: output, shape index: {}]  }
   0x1   :  { %v766_v0 = vld [vmem:[%s1133_s1 + $0x74] ss:$8 sps:$4 sm:$0xff]   ;;  %v768_v1 = vld [vmem:[%s1133_s1 + $0x70] ss:$8 sps:$4 sm:$0xff]   ;;  %v769_v2 = vld [vmem:[%s1133_s1 + $0x64] ss:$8 sps:$4 sm:$0xff]  }
   0x2   :  { %305 = vmatprep.subr.bf16.mxu0 %v766_v0  ;;  %734 = vmatprep.subr.bf16.mxu1 %v766_v0  ;;  %v771_v3 = vld [vmem:[%s1133_s1 + $0x60] ss:$8 sps:$4 sm:$0xff]   ;;  %v772_v4 = vld [vmem:[%s1133_s1 + $0x54] ss:$8 sps:$4 sm:$0xff]   ;;  %v774_v5 = vld [vmem:[%s1133_s1 + $0x50] ss:$8 sps:$4 sm:$0xff]  }
   0x3   :  { %306 = vmatpush1.bf16.msra.mxu0 %v768_v1  ;;  %750 = vmatpush1.bf16.msra.mxu1 %v768_v1  ;;  %v775_v6 = vld [vmem:[%s1133_s1 + $0x44] ss:$8 sps:$4 sm:$0xff]   ;;  %v777_v7 = vld [vmem:[%s1133_s1 + $0x40] ss:$8 sps:$4 sm:$0xff]   ;;  %v778_v8 = vld [vmem:[%s1133_s1 + $0x34] ss:$8 sps:$4 sm:$0xff]  }
   0x4   :  { %307 = vmatprep.subr.bf16.mxu0 %v769_v2  ;;  %735 = vmatprep.subr.bf16.mxu1 %v769_v2  ;;  %v780_v9 = vld [vmem:[%s1133_s1 + $0x30] ss:$8 sps:$4 sm:$0xff]   ;;  %v781_v10 = vld [vmem:[%s1133_s1 + $0x24] ss:$8 sps:$4 sm:$0xff]   ;;  %v783_v11 = vld [vmem:[%s1133_s1 + $0x20] ss:$8 sps:$4 sm:$0xff]  }
   0x5   :  { %v784_v12 = vld [vmem:[%s1133_s1 + $0x14] ss:$8 sps:$4 sm:$0xff]   ;;  %v816_v13 = vld [vmem:[%s1134_s0 + $0x4] ss:$8 sps:$4 sm:$0xff]   ;;  %v786_v14 = vld [vmem:[%s1133_s1 + $0x10] ss:$8 sps:$4 sm:$0xff]  }
   0x6   :  { %v819_v15 = vld [vmem:[%s1134_s0 + $0x44] ss:$8 sps:$4 sm:$0xff]   ;;  %337 = vmatprep.mubr.bf16.mxu0 %v816_v13  ;;  %v789_v17 = vld [vmem:[%s1133_s1] ss:$8 sps:$4 sm:$0xff]   ;;  %v790_v18 = vld [vmem:[%s1133_s1 + $0xf4] ss:$8 sps:$4 sm:$0xff]  }
   0x7   :  { %308 = vmatpush1.bf16.msra.mxu0 %v771_v3  ;;  %751 = vmatpush1.bf16.msra.mxu1 %v771_v3  ;;  %v787_v16 = vld [vmem:[%s1133_s1 + $0x4] ss:$8 sps:$4 sm:$0xff]   ;;  %v792_v19 = vld [vmem:[%s1133_s1 + $0xf0] ss:$8 sps:$4 sm:$0xff]   ;;  %v795_v21 = vld [vmem:[%s1133_s1 + $0xe0] ss:$8 sps:$4 sm:$0xff]  }
   0x8   :  { %309 = vmatprep.subr.bf16.mxu0 %v772_v4  ;;  %736 = vmatprep.subr.bf16.mxu1 %v772_v4  ;;  %v793_v20 = vld [vmem:[%s1133_s1 + $0xe4] ss:$8 sps:$4 sm:$0xff]   ;;  %v796_v22 = vld [vmem:[%s1133_s1 + $0xd4] ss:$8 sps:$4 sm:$0xff]   ;;  %v798_v23 = vld [vmem:[%s1133_s1 + $0xd0] ss:$8 sps:$4 sm:$0xff]  }
   0x9   :  { %377 = vmatprep.mubr.bf16.mxu1 %v819_v15  ;;  %v799_v24 = vld [vmem:[%s1133_s1 + $0xc4] ss:$8 sps:$4 sm:$0xff]   ;;  %v801_v25 = vld [vmem:[%s1133_s1 + $0xc0] ss:$8 sps:$4 sm:$0xff]   ;;  %v802_v26 = vld [vmem:[%s1133_s1 + $0xb4] ss:$8 sps:$4 sm:$0xff]  }
   0xa   :  { %v804_v27 = vld [vmem:[%s1133_s1 + $0xb0] ss:$8 sps:$4 sm:$0xff]   ;;  %v805_v28 = vld [vmem:[%s1133_s1 + $0xa4] ss:$8 sps:$4 sm:$0xff]   ;;  %v807_v29 = vld [vmem:[%s1133_s1 + $0xa0] ss:$8 sps:$4 sm:$0xff]  }
   0xb   :  { %310 = vmatpush1.bf16.msra.mxu0 %v774_v5  ;;  %752 = vmatpush1.bf16.msra.mxu1 %v774_v5  ;;  %v808_v30 = vld [vmem:[%s1133_s1 + $0x94] ss:$8 sps:$4 sm:$0xff]   ;;  %v810_v31 = vld [vmem:[%s1133_s1 + $0x90] ss:$8 sps:$4 sm:$0xff]   ;;  %v811_v32 = vld [vmem:[%s1133_s1 + $0x84] ss:$8 sps:$4 sm:$0xff]  }
   0xc   :  { %311 = vmatprep.subr.bf16.mxu0 %v775_v6  ;;  %737 = vmatprep.subr.bf16.mxu1 %v775_v6  ;;  %v813_v33 = vld [vmem:[%s1133_s1 + $0x80] ss:$8 sps:$4 sm:$0xff]   ;;  %v820_v36 = vld [vmem:[%s1134_s0 + $0x14] ss:$8 sps:$4 sm:$0xff]   ;;  %v824_v38 = vld [vmem:[%s1134_s0 + $0x10] ss:$8 sps:$4 sm:$0xff]  }
   0xd   :  { %v814_v34 = vld [vmem:[%s1134_s0] ss:$8 sps:$4 sm:$0xff]   ;;  %v822_v37 = vld [vmem:[%s1134_s0 + $0x54] ss:$8 sps:$4 sm:$0xff]   ;;  %v825_v39 = vld [vmem:[%s1134_s0 + $0x50] ss:$8 sps:$4 sm:$0xff]  }
   0xe   :  { %v817_v35 = vld [vmem:[%s1134_s0 + $0x40] ss:$8 sps:$4 sm:$0xff]   ;;  %v826_v40 = vld [vmem:[%s1134_s0 + $0x24] ss:$8 sps:$4 sm:$0xff]   ;;  %v832_v44 = vld [vmem:[%s1134_s0 + $0x34] ss:$8 sps:$4 sm:$0xff]  }
   0xf   :  { %312 = vmatpush1.bf16.msra.mxu0 %v777_v7  ;;  %753 = vmatpush1.bf16.msra.mxu1 %v777_v7  ;;  %v828_v41 = vld [vmem:[%s1134_s0 + $0x64] ss:$8 sps:$4 sm:$0xff]   ;;  %v830_v42 = vld [vmem:[%s1134_s0 + $0x20] ss:$8 sps:$4 sm:$0xff]   ;;  %v834_v45 = vld [vmem:[%s1134_s0 + $0x74] ss:$8 sps:$4 sm:$0xff]  }
  0x10   :  { %313 = vmatprep.subr.bf16.mxu0 %v778_v8  ;;  %738 = vmatprep.subr.bf16.mxu1 %v778_v8  ;;  %v831_v43 = vld [vmem:[%s1134_s0 + $0x60] ss:$8 sps:$4 sm:$0xff]   ;;  %v836_v46 = vld [vmem:[%s1134_s0 + $0x30] ss:$8 sps:$4 sm:$0xff]   ;;  %v421_v49 = vshrl.u32 %v420_v48, 7 }
  0x11   :  { %v837_v47 = vld [vmem:[%s1134_s0 + $0x70] ss:$8 sps:$4 sm:$0xff]   ;;  %v418_v51 = vld [vmem:[%s1135_s2] sm:$0x3] }
  0x12   :  { %v422_v50 = vsub.s32 0, %v421_v49  ;;  %v426_v52 = vsub.s32 1, %v421_v49  ;;  %v462_v53 = vld [vmem:[%s1136_s3] sm:$0x3] }
  0x13   :  { %314 = vmatpush1.bf16.msra.mxu0 %v780_v9  ;;  %754 = vmatpush1.bf16.msra.mxu1 %v780_v9 }
  0x14   :  { %315 = vmatprep.subr.bf16.mxu0 %v781_v10  ;;  %739 = vmatprep.subr.bf16.mxu1 %v781_v10  ;;  %v1013_v54 = vrot.slane %v418_v51, %v422_v50  ;;  %v1015_v55 = vrot.slane %v462_v53, %v422_v50  ;;  %v1017_v56 = vrot.slane %v418_v51, %v426_v52 }
  0x15   :  { %v1021_v61 = vrot.slane %v462_v53, %v426_v52 }
  0x17   :  { %316 = vmatpush1.bf16.msra.mxu0 %v783_v11  ;;  %755 = vmatpush1.bf16.msra.mxu1 %v783_v11 }
  0x18   :  { %317 = vmatprep.subr.bf16.mxu0 %v784_v12  ;;  %740 = vmatprep.subr.bf16.mxu1 %v784_v12 }
  0x1b   :  { %318 = vmatpush1.bf16.msra.mxu0 %v786_v14  ;;  %756 = vmatpush1.bf16.msra.mxu1 %v786_v14 }
  0x1c   :  { %319 = vmatprep.subr.bf16.mxu0 %v787_v16  ;;  %741 = vmatprep.subr.bf16.mxu1 %v787_v16 }
  0x1f   :  { %320 = vmatpush1.bf16.msra.mxu0 %v789_v17  ;;  %757 = vmatpush1.bf16.msra.mxu1 %v789_v17 }
  0x20   :  { %321 = vmatprep.subr.bf16.mxu0 %v790_v18  ;;  %742 = vmatprep.subr.bf16.mxu1 %v790_v18 }
  0x23   :  { %322 = vmatpush2.bf16.msra.mxu0 %v792_v19  ;;  %758 = vmatpush2.bf16.msra.mxu1 %v792_v19 }
  0x24   :  { %323 = vmatprep.subr.bf16.mxu0 %v793_v20  ;;  %743 = vmatprep.subr.bf16.mxu1 %v793_v20 }
  0x27   :  { %324 = vmatpush2.bf16.msra.mxu0 %v795_v21  ;;  %759 = vmatpush2.bf16.msra.mxu1 %v795_v21 }
  0x28   :  { %325 = vmatprep.subr.bf16.mxu0 %v796_v22  ;;  %744 = vmatprep.subr.bf16.mxu1 %v796_v22 }
  0x2b   :  { %326 = vmatpush2.bf16.msra.mxu0 %v798_v23  ;;  %760 = vmatpush2.bf16.msra.mxu1 %v798_v23 }
  0x2c   :  { %327 = vmatprep.subr.bf16.mxu0 %v799_v24  ;;  %745 = vmatprep.subr.bf16.mxu1 %v799_v24 }
  0x2f   :  { %328 = vmatpush2.bf16.msra.mxu0 %v801_v25  ;;  %761 = vmatpush2.bf16.msra.mxu1 %v801_v25 }
  0x30   :  { %329 = vmatprep.subr.bf16.mxu0 %v802_v26  ;;  %746 = vmatprep.subr.bf16.mxu1 %v802_v26 }
  0x33   :  { %330 = vmatpush2.bf16.msra.mxu0 %v804_v27  ;;  %762 = vmatpush2.bf16.msra.mxu1 %v804_v27 }
  0x34   :  { %331 = vmatprep.subr.bf16.mxu0 %v805_v28  ;;  %747 = vmatprep.subr.bf16.mxu1 %v805_v28 }
  0x37   :  { %332 = vmatpush2.bf16.msra.mxu0 %v807_v29  ;;  %763 = vmatpush2.bf16.msra.mxu1 %v807_v29 }
  0x38   :  { %333 = vmatprep.subr.bf16.mxu0 %v808_v30  ;;  %748 = vmatprep.subr.bf16.mxu1 %v808_v30 }
  0x3b   :  { %334 = vmatpush2.bf16.msra.mxu0 %v810_v31  ;;  %764 = vmatpush2.bf16.msra.mxu1 %v810_v31 }
  0x3c   :  { %335 = vmatprep.subr.bf16.mxu0 %v811_v32  ;;  %749 = vmatprep.subr.bf16.mxu1 %v811_v32 }
  0x3f   :  { %336 = vmatpush2.bf16.msra.mxu0 %v813_v33  ;;  %765 = vmatpush2.bf16.msra.mxu1 %v813_v33 }
  0x42   :  { %338 = vmatmul.mubr.bf16.vlgmr.msra.gmra.mxu0 %v814_v34  ;;  %378 = vmatmul.mubr.bf16.vlgmr.msra.gmra.mxu1 %v817_v35 }
  0x43   :  { %347 = vmatprep.mubr.bf16.mxu0 %v820_v36  ;;  %387 = vmatprep.mubr.bf16.mxu1 %v822_v37 }
  0x4a   :  { %348 = vmatmul.mubr.bf16.gmra.mxu0 %v824_v38  ;;  %388 = vmatmul.mubr.bf16.gmra.mxu1 %v825_v39 }
  0x4b   :  { %357 = vmatprep.mubr.bf16.mxu0 %v826_v40  ;;  %397 = vmatprep.mubr.bf16.mxu1 %v828_v41 }
  0x52   :  { %358 = vmatmul.mubr.bf16.gmra.mxu0 %v830_v42  ;;  %398 = vmatmul.mubr.bf16.gmra.mxu1 %v831_v43 }
  0x53   :  { %367 = vmatprep.mubr.bf16.mxu0 %v832_v44  ;;  %407 = vmatprep.mubr.bf16.mxu1 %v834_v45 }
  0x5a   :  { %368 = vmatmul.mubr.bf16.gmra.mxu0 %v836_v46  ;;  %408 = vmatmul.mubr.bf16.gmra.mxu1 %v837_v47 }
 0x102   :  { %v339_v57 = vpop.f32.mrf.mxu0  ;;  %v379_v58 = vpop.f32.mrf.mxu1 }
 0x103   :  { %v430_v59 = vmul.f32 %v1013_v54, %v339_v57  ;;  %v446_v60 = vmul.f32 %v1013_v54, %v379_v58 }
 0x104   :  { %v341_v62 = vpop.f32.mrf.mxu0  ;;  %v381_v63 = vpop.f32.mrf.mxu1 }
 0x105   :  { %v474_v0 = vadd.f32 %v1015_v55, %v430_v59  ;;  %v490_v1 = vadd.f32 %v1015_v55, %v446_v60  ;;  %v431_v2 = vmul.f32 %v1017_v56, %v341_v62  ;;  %v447_v3 = vmul.f32 %v1017_v56, %v381_v63 }
 0x106   :  { %v343_v4 = vpop.f32.mrf.mxu0  ;;  %v383_v5 = vpop.f32.mrf.mxu1 }
 0x107   :  { %v475_v6 = vadd.f32 %v1021_v61, %v431_v2  ;;  %v491_v7 = vadd.f32 %v1021_v61, %v447_v3  ;;  %v506_v8 = vmax.f32 %v474_v0, 0.0  ;;  %v522_v9 = vmax.f32 %v490_v1, 0.0 }
 0x108   :  { %v432_v10 = vmul.f32 %v1013_v54, %v343_v4  ;;  %v448_v11 = vmul.f32 %v1013_v54, %v383_v5  ;;  %v345_v12 = vpop.f32.mrf.mxu0  ;;  %v385_v13 = vpop.f32.mrf.mxu1 }
 0x109   :  { %v507_v14 = vmax.f32 %v475_v6, 0.0  ;;  %v523_v15 = vmax.f32 %v491_v7, 0.0  ;;  %v433_v16 = vmul.f32 %v1017_v56, %v345_v12  ;;  %v449_v17 = vmul.f32 %v1017_v56, %v385_v13 }
 0x10a   :  { %v476_v18 = vadd.f32 %v1015_v55, %v432_v10  ;;  %v492_v19 = vadd.f32 %v1015_v55, %v448_v11  ;;  %v349_v20 = vpop.f32.mrf.mxu0  ;;  %v389_v21 = vpop.f32.mrf.mxu1 }
 0x10b   :  { %v718_v22 = vpack.c.bf16 %v507_v14, %v506_v8  ;;  %v726_v23 = vpack.c.bf16 %v523_v15, %v522_v9  ;;  %v477_v24 = vadd.f32 %v1021_v61, %v433_v16  ;;  %v493_v25 = vadd.f32 %v1021_v61, %v449_v17 }
 0x10c   :  { %v508_v26 = vmax.f32 %v476_v18, 0.0  ;;  %v524_v27 = vmax.f32 %v492_v19, 0.0  ;;  %v434_v28 = vmul.f32 %v1013_v54, %v349_v20  ;;  %v450_v29 = vmul.f32 %v1013_v54, %v389_v21  ;;  %v351_v30 = vpop.f32.mrf.mxu0  ;;  %v391_v31 = vpop.f32.mrf.mxu1 }
 0x10d   :  { %634 = vst [vmem:[%s1137_s4] sm:$0xff] %v718_v22  ;;  %642 = vst [vmem:[%s1137_s4 + $0x40] sm:$0xff] %v726_v23  ;;  %v509_v32 = vmax.f32 %v477_v24, 0.0  ;;  %v525_v33 = vmax.f32 %v493_v25, 0.0  ;;  %v435_v34 = vmul.f32 %v1017_v56, %v351_v30  ;;  %v451_v35 = vmul.f32 %v1017_v56, %v391_v31 }
 0x10e   :  { %v478_v36 = vadd.f32 %v1015_v55, %v434_v28  ;;  %v494_v37 = vadd.f32 %v1015_v55, %v450_v29  ;;  %v353_v38 = vpop.f32.mrf.mxu0  ;;  %v393_v39 = vpop.f32.mrf.mxu1 }
 0x10f   :  { %v719_v40 = vpack.c.bf16 %v509_v32, %v508_v26  ;;  %v727_v41 = vpack.c.bf16 %v525_v33, %v524_v27  ;;  %v479_v42 = vadd.f32 %v1021_v61, %v435_v34  ;;  %v495_v43 = vadd.f32 %v1021_v61, %v451_v35 }
 0x110   :  { %v510_v44 = vmax.f32 %v478_v36, 0.0  ;;  %v526_v45 = vmax.f32 %v494_v37, 0.0  ;;  %v436_v46 = vmul.f32 %v1013_v54, %v353_v38  ;;  %v452_v47 = vmul.f32 %v1013_v54, %v393_v39  ;;  %v355_v48 = vpop.f32.mrf.mxu0  ;;  %v395_v49 = vpop.f32.mrf.mxu1 }
 0x111   :  { %635 = vst [vmem:[%s1137_s4 + $0x8] sm:$0xff] %v719_v40  ;;  %643 = vst [vmem:[%s1137_s4 + $0x48] sm:$0xff] %v727_v41  ;;  %v511_v50 = vmax.f32 %v479_v42, 0.0  ;;  %v527_v51 = vmax.f32 %v495_v43, 0.0  ;;  %v437_v52 = vmul.f32 %v1017_v56, %v355_v48  ;;  %v453_v53 = vmul.f32 %v1017_v56, %v395_v49 }
 0x112   :  { %v480_v57 = vadd.f32 %v1015_v55, %v436_v46  ;;  %v496_v58 = vadd.f32 %v1015_v55, %v452_v47  ;;  %v359_v59 = vpop.f32.mrf.mxu0  ;;  %v399_v60 = vpop.f32.mrf.mxu1 }
 0x113   :  { %v720_v62 = vpack.c.bf16 %v511_v50, %v510_v44  ;;  %v728_v63 = vpack.c.bf16 %v527_v51, %v526_v45  ;;  %v481_v0 = vadd.f32 %v1021_v61, %v437_v52  ;;  %v497_v1 = vadd.f32 %v1021_v61, %v453_v53 }
 0x114   :  { %v512_v2 = vmax.f32 %v480_v57, 0.0  ;;  %v528_v3 = vmax.f32 %v496_v58, 0.0  ;;  %v438_v4 = vmul.f32 %v1013_v54, %v359_v59  ;;  %v454_v5 = vmul.f32 %v1013_v54, %v399_v60  ;;  %v361_v6 = vpop.f32.mrf.mxu0  ;;  %v401_v7 = vpop.f32.mrf.mxu1 }
 0x115   :  { %636 = vst [vmem:[%s1137_s4 + $0x10] sm:$0xff] %v720_v62  ;;  %644 = vst [vmem:[%s1137_s4 + $0x50] sm:$0xff] %v728_v63  ;;  %v513_v8 = vmax.f32 %v481_v0, 0.0  ;;  %v529_v9 = vmax.f32 %v497_v1, 0.0  ;;  %v439_v10 = vmul.f32 %v1017_v56, %v361_v6  ;;  %v455_v11 = vmul.f32 %v1017_v56, %v401_v7 }
 0x116   :  { %v482_v12 = vadd.f32 %v1015_v55, %v438_v4  ;;  %v498_v13 = vadd.f32 %v1015_v55, %v454_v5  ;;  %v363_v14 = vpop.f32.mrf.mxu0  ;;  %v403_v15 = vpop.f32.mrf.mxu1 }
 0x117   :  { %v721_v16 = vpack.c.bf16 %v513_v8, %v512_v2  ;;  %v729_v17 = vpack.c.bf16 %v529_v9, %v528_v3  ;;  %v483_v18 = vadd.f32 %v1021_v61, %v439_v10  ;;  %v499_v19 = vadd.f32 %v1021_v61, %v455_v11 }
 0x118   :  { %v514_v20 = vmax.f32 %v482_v12, 0.0  ;;  %v530_v21 = vmax.f32 %v498_v13, 0.0  ;;  %v440_v22 = vmul.f32 %v1013_v54, %v363_v14  ;;  %v456_v23 = vmul.f32 %v1013_v54, %v403_v15  ;;  %v365_v24 = vpop.f32.mrf.mxu0  ;;  %v405_v25 = vpop.f32.mrf.mxu1 }
 0x119   :  { %637 = vst [vmem:[%s1137_s4 + $0x18] sm:$0xff] %v721_v16  ;;  %645 = vst [vmem:[%s1137_s4 + $0x58] sm:$0xff] %v729_v17  ;;  %v515_v26 = vmax.f32 %v483_v18, 0.0  ;;  %v531_v27 = vmax.f32 %v499_v19, 0.0  ;;  %v441_v28 = vmul.f32 %v1017_v56, %v365_v24  ;;  %v457_v29 = vmul.f32 %v1017_v56, %v405_v25 }
 0x11a   :  { %v484_v30 = vadd.f32 %v1015_v55, %v440_v22  ;;  %v500_v31 = vadd.f32 %v1015_v55, %v456_v23  ;;  %v369_v32 = vpop.f32.mrf.mxu0  ;;  %v409_v33 = vpop.f32.mrf.mxu1 }
 0x11b   :  { %v722_v34 = vpack.c.bf16 %v515_v26, %v514_v20  ;;  %v730_v35 = vpack.c.bf16 %v531_v27, %v530_v21  ;;  %v485_v36 = vadd.f32 %v1021_v61, %v441_v28  ;;  %v501_v37 = vadd.f32 %v1021_v61, %v457_v29 }
 0x11c   :  { %v516_v38 = vmax.f32 %v484_v30, 0.0  ;;  %v532_v39 = vmax.f32 %v500_v31, 0.0  ;;  %v442_v40 = vmul.f32 %v1013_v54, %v369_v32  ;;  %v458_v41 = vmul.f32 %v1013_v54, %v409_v33  ;;  %v371_v42 = vpop.f32.mrf.mxu0  ;;  %v411_v43 = vpop.f32.mrf.mxu1 }
 0x11d   :  { %638 = vst [vmem:[%s1137_s4 + $0x20] sm:$0xff] %v722_v34  ;;  %646 = vst [vmem:[%s1137_s4 + $0x60] sm:$0xff] %v730_v35  ;;  %v517_v44 = vmax.f32 %v485_v36, 0.0  ;;  %v533_v45 = vmax.f32 %v501_v37, 0.0  ;;  %v443_v46 = vmul.f32 %v1017_v56, %v371_v42  ;;  %v459_v47 = vmul.f32 %v1017_v56, %v411_v43 }
 0x11e   :  { %v486_v48 = vadd.f32 %v1015_v55, %v442_v40  ;;  %v502_v49 = vadd.f32 %v1015_v55, %v458_v41  ;;  %v373_v50 = vpop.f32.mrf.mxu0  ;;  %v413_v51 = vpop.f32.mrf.mxu1 }
 0x11f   :  { %v723_v52 = vpack.c.bf16 %v517_v44, %v516_v38  ;;  %v731_v53 = vpack.c.bf16 %v533_v45, %v532_v39  ;;  %v487_v57 = vadd.f32 %v1021_v61, %v443_v46  ;;  %v503_v58 = vadd.f32 %v1021_v61, %v459_v47 }
 0x120   :  { %v518_v59 = vmax.f32 %v486_v48, 0.0  ;;  %v534_v60 = vmax.f32 %v502_v49, 0.0  ;;  %v444_v62 = vmul.f32 %v1013_v54, %v373_v50  ;;  %v460_v63 = vmul.f32 %v1013_v54, %v413_v51  ;;  %v375_v0 = vpop.f32.mrf.mxu0  ;;  %v415_v1 = vpop.f32.mrf.mxu1 }
 0x121   :  { %639 = vst [vmem:[%s1137_s4 + $0x28] sm:$0xff] %v723_v52  ;;  %647 = vst [vmem:[%s1137_s4 + $0x68] sm:$0xff] %v731_v53  ;;  %v519_v2 = vmax.f32 %v487_v57, 0.0  ;;  %v535_v3 = vmax.f32 %v503_v58, 0.0  ;;  %v445_v4 = vmul.f32 %v1017_v56, %v375_v0  ;;  %v461_v5 = vmul.f32 %v1017_v56, %v415_v1 }
 0x122   :  { %v488_v6 = vadd.f32 %v1015_v55, %v444_v62  ;;  %v504_v54 = vadd.f32 %v1015_v55, %v460_v63 }
 0x123   :  { %v724_v7 = vpack.c.bf16 %v519_v2, %v518_v59  ;;  %v732_v8 = vpack.c.bf16 %v535_v3, %v534_v60  ;;  %v489_v9 = vadd.f32 %v1021_v61, %v445_v4  ;;  %v505_v10 = vadd.f32 %v1021_v61, %v461_v5 }
 0x124   :  { %v520_v11 = vmax.f32 %v488_v6, 0.0  ;;  %v536_v56 = vmax.f32 %v504_v54, 0.0 }
 0x125   :  { %640 = vst [vmem:[%s1137_s4 + $0x30] sm:$0xff] %v724_v7  ;;  %648 = vst [vmem:[%s1137_s4 + $0x70] sm:$0xff] %v732_v8  ;;  %v521_v12 = vmax.f32 %v489_v9, 0.0  ;;  %v537_v13 = vmax.f32 %v505_v10, 0.0 }
 0x127   :  { %v725_v14 = vpack.c.bf16 %v521_v12, %v520_v11  ;;  %v733_v55 = vpack.c.bf16 %v537_v13, %v536_v56 }
 0x129   :  { %641 = vst [vmem:[%s1137_s4 + $0x38] sm:$0xff] %v725_v14  ;;  %649 = vst [vmem:[%s1137_s4 + $0x78] sm:$0xff] %v733_v55 }

// kernel: classifier_forward.12
= control target key start
LH: loop header
LB: loop body
LE: loop exit
PB: predicated region body
PF: predicated region fallthrough
CT: control target
= control target key end

     0   :  { %v837_v0 = vmov 0.0   ;;  %s1233_s0 = inlined_call_operand.vmem [shape: bf16[2,8,8,128], index: 0, kind: input, shape index: {}]   ;;  %s1234_s1 = inlined_call_operand.vmem [shape: f32[9,128], index: 1, kind: input, shape index: {}]   ;;  %s1235_s2 = inlined_call_operand.vmem [shape: f32[1,128], index: 2, kind: input, shape index: {}]   ;;  %s1236_s3 = inlined_call_operand.vmem [shape: bf16[128,128], index: 3, kind: output, shape index: {}]  }
   0x1   :  { %14 = vst [vmem:[#allocation2] sm:$0xff] %v837_v0  ;;  %15 = vst [vmem:[#allocation2 + $0x8] sm:$0xff] %v837_v0  ;;  %v751_v1 = vld [vmem:[%s1233_s0] sm:$0xff]   ;;  %v822_v2 = vld [vmem:[%s1233_s0 + $0x8] sm:$0xff]  }
   0x2   :  { %16 = vst [vmem:[#allocation2 + $0x10] sm:$0x1] %v837_v0  ;;  %17 = vst [vmem:[#allocation2 + $0x18] sm:$0xff] %v837_v0  ;;  %v823_v3 = vld [vmem:[%s1233_s0 + $0x10] sm:$0xff]   ;;  %v752_v4 = vunpack.c.l.bf16 %v751_v1  ;;  %v753_v5 = vunpack.c.h.bf16 %v751_v1  ;;  %v756_v6 = vunpack.c.l.bf16 %v822_v2  ;;  %v757_v7 = vunpack.c.h.bf16 %v822_v2  ;;  %v824_v8 = vld [vmem:[%s1233_s0 + $0x18] sm:$0xff]  }
   0x3   :  { %19 = vst [vmem:[#allocation2 + $0x28] sm:$0x1] %v837_v0  ;;  %20 = vst [vmem:[#allocation2 + $0x30] sm:$0xff] %v837_v0  ;;  %v825_v9 = vld [vmem:[%s1233_s0 + $0x20] sm:$0xff]   ;;  %v826_v10 = vld [vmem:[%s1233_s0 + $0x28] sm:$0xff]   ;;  %v760_v11 = vunpack.c.l.bf16 %v823_v3  ;;  %v876_v12 = vunpack.c.h.bf16 %v823_v3  ;;  %v878_v13 = vunpack.c.l.bf16 %v824_v8  ;;  %v908_v24 = vunpack.c.h.bf16 %v824_v8 }
   0x4   :  { %22 = vst [vmem:[#allocation2 + $0x40] sm:$0x1] %v837_v0  ;;  %23 = vst [vmem:[#allocation2 + $0x48] sm:$0xff] %v837_v0  ;;  %v880_v14 = vunpack.c.l.bf16 %v825_v9  ;;  %v827_v15 = vld [vmem:[%s1233_s0 + $0x30] sm:$0xff]   ;;  %v828_v16 = vld [vmem:[%s1233_s0 + $0x38] sm:$0xff]   ;;  %v888_v17 = vunpack.c.h.bf16 %v825_v9  ;;  %v890_v18 = vunpack.c.l.bf16 %v826_v10  ;;  %v892_v19 = vunpack.c.h.bf16 %v826_v10 }
   0x5   :  { %25 = vst [vmem:[#allocation2 + $0x58] sm:$0x1] %v837_v0  ;;  %26 = vst [vmem:[#allocation2 + $0x60] sm:$0xff] %v837_v0  ;;  %v894_v20 = vunpack.c.l.bf16 %v827_v15  ;;  %v899_v21 = vld [vmem:[%s1234_s1 + $0x1] ss:$0 sm:$0xff]  ;;  %v904_v22 = vunpack.c.h.bf16 %v827_v15  ;;  %v906_v23 = vunpack.c.l.bf16 %v828_v16  ;;  %v910_v25 = vunpack.c.h.bf16 %v828_v16 }
   0x6   :  { %28 = vst [vmem:[#allocation2 + $0x70] sm:$0x1] %v837_v0  ;;  %29 = vst [vmem:[#allocation2 + $0x78] sm:$0xff] %v837_v0  ;;  %v915_v26 = vld [vmem:[%s1234_s1 + $0x4] ss:$0 sm:$0xff]  ;;  %v927_v28 = vmul.f32 0.0, %v899_v21  ;;  %v198_v29 = vmul.f32 %v752_v4, %v899_v21  ;;  %v199_v36 = vmul.f32 %v753_v5, %v899_v21  ;;  %v200_v37 = vmul.f32 %v756_v6, %v899_v21 }
   0x7   :  { %31 = vst [vmem:[#allocation2 + $0x88] sm:$0x1] %v837_v0  ;;  %32 = vst [vmem:[#allocation2 + $0x90] sm:$0xff] %v837_v0  ;;  %v924_v27 = vld [vmem:[%s1234_s1] ss:$0 sm:$0xff]  ;;  %v356_v31 = vmul.f32 %v752_v4, %v915_v26  ;;  %v937_v32 = vmul.f32 %v753_v5, %v915_v26  ;;  %v957_v40 = vmul.f32 %v756_v6, %v915_v26 }
   0x8   :  { %34 = vst [vmem:[#allocation2 + $0xa0] sm:$0x1] %v837_v0  ;;  %35 = vst [vmem:[#allocation2 + $0xa8] sm:$0xff] %v837_v0  ;;  %v933_v30 = vld [vmem:[%s1234_s1 + $0x2] ss:$0 sm:$0xff]  ;;  %v124_v38 = vld [vmem:[#allocation2 + $0x7] sm:$0xff]  ;;  %v960_v41 = vmul.f32 %v757_v7, %v915_v26  ;;  %v976_v47 = vmul.f32 %v757_v7, %v899_v21  ;;  %v979_v48 = vmul.f32 %v760_v11, %v899_v21 }
   0x9   :  { %37 = vst [vmem:[#allocation2 + $0xb8] sm:$0x1] %v837_v0  ;;  %38 = vst [vmem:[#allocation2 + $0xc0] sm:$0xff] %v837_v0  ;;  %v942_v33 = vld [vmem:[%s1234_s1 + $0x7] ss:$0 sm:$0xff]  ;;  %v230_v39 = vld [vmem:[#allocation2 + $0x9] sm:$0xff]  ;;  %v144_v44 = vmul.f32 %v924_v27, %v124_v38  ;;  %v997_v52 = vmul.f32 %v760_v11, %v915_v26  ;;  %v1001_v53 = vmul.f32 %v876_v12, %v915_v26 }
   0xa   :  { %40 = vst [vmem:[#allocation2 + $0xd0] sm:$0x1] %v837_v0  ;;  %41 = vst [vmem:[#allocation2 + $0xd8] sm:$0xff] %v837_v0  ;;  %v949_v34 = vmul.f32 %v753_v5, %v942_v33  ;;  %v952_v35 = vmul.f32 %v756_v6, %v942_v33  ;;  %v963_v42 = vmul.f32 %v757_v7, %v942_v33  ;;  %v973_v46 = vld [vmem:[%s1234_s1 + $0x3] ss:$0 sm:$0xff] }
   0xb   :  { %42 = vst [vmem:[#allocation2 + $0xe0] sm:$0xff] %v837_v0  ;;  %43 = vst [vmem:[#allocation2 + $0xe8] sm:$0x1] %v837_v0  ;;  %v966_v43 = vmul.f32 %v760_v11, %v942_v33  ;;  %v250_v45 = vmul.f32 %v933_v30, %v230_v39  ;;  %v984_v49 = vld [vmem:[%s1234_s1 + $0x5] ss:$0 sm:$0xff]  ;;  %v1005_v54 = vmul.f32 %v876_v12, %v942_v33 }
   0xc   :  { %44 = vst [vmem:[#allocation2 + $0xf0] sm:$0xff] %v837_v0  ;;  %45 = vst [vmem:[#allocation2 + $0xf8] sm:$0xff] %v837_v0  ;;  %v989_v50 = vld [vmem:[%s1234_s1 + $0x6] ss:$0 sm:$0xff]  ;;  %v994_v51 = vld [vmem:[%s1234_s1 + $0x8] ss:$0 sm:$0xff]  ;;  %v1009_v55 = vmul.f32 %v878_v13, %v942_v33  ;;  %v213_v57 = vadd.f32 %v927_v28, %v144_v44  ;;  %v1014_v60 = vmul.f32 %v876_v12, %v899_v21 }
   0xd   :  { %46 = vst [vmem:[#allocation2 + $0x100] sm:$0x1] %v837_v0  ;;  %47 = vst [vmem:[#allocation2 + $0x108] sm:$0xff] %v837_v0  ;;  %v1018_v61 = vmul.f32 %v878_v13, %v899_v21  ;;  %v1022_v62 = vmul.f32 %v878_v13, %v915_v26 }
   0xe   :  { %49 = vst [vmem:[#allocation2 + $0x118] sm:$0x1] %v837_v0  ;;  %50 = vst [vmem:[#allocation2 + $0x120] sm:$0xff] %v837_v0 }
   0xf   :  { %52 = vst [vmem:[#allocation2 + $0x130] sm:$0x1] %v837_v0  ;;  %53 = vst [vmem:[#allocation2 + $0x138] sm:$0xff] %v837_v0 }
  0x10   :  { %55 = vst [vmem:[#allocation2 + $0x148] sm:$0x1] %v837_v0  ;;  %56 = vst [vmem:[#allocation2 + $0x150] sm:$0xff] %v837_v0 }
  0x11   :  { %58 = vst [vmem:[#allocation2 + $0x160] sm:$0x1] %v837_v0  ;;  %59 = vst [vmem:[#allocation2 + $0x168] sm:$0xff] %v837_v0 }
  0x12   :  { %61 = vst [vmem:[#allocation2 + $0x178] sm:$0x1] %v837_v0  ;;  %62 = vst [vmem:[#allocation2 + $0x180] sm:$0xff] %v837_v0 }
  0x13   :  { %64 = vst [vmem:[#allocation2 + $0x190] sm:$0x1] %v837_v0  ;;  %65 = vst [vmem:[#allocation2 + $0x198] sm:$0xff] %v837_v0 }
  0x14   :  { %67 = vst [vmem:[#allocation2 + $0x1a8] sm:$0x1] %v837_v0  ;;  %68 = vst [vmem:[#allocation2 + $0x1b0] sm:$0xff] %v837_v0 }
  0x15   :  { %70 = vst [vmem:[#allocation2 + $0x1c0] sm:$0x1] %v837_v0  ;;  %71 = vst [vmem:[#allocation2 + $0x1c8] sm:$0xff] %v837_v0 }
  0x16   :  { %72 = vst [vmem:[#allocation2 + $0x1d0] sm:$0xff] %v837_v0  ;;  %73 = vst [vmem:[#allocation2 + $0x1d8] sm:$0x1] %v837_v0 }
  0x17   :  { %107 = vst [vmem:[#allocation2 + $0x20] sm:$0xff] %v752_v4  ;;  %108 = vst [vmem:[#allocation2 + $0x38] sm:$0xff] %v753_v5 }
  0x18   :  { %109 = vst [vmem:[#allocation2 + $0x50] sm:$0xff] %v756_v6  ;;  %110 = vst [vmem:[#allocation2 + $0x68] sm:$0xff] %v757_v7  ;;  %v266_v6 = vadd.f32 %v250_v45, %v213_v57 }
  0x19   :  { %1251 = vst [vmem:[#allocation3_spill] sm:$0xff] %v888_v17  ;;  %1252 = vst [vmem:[#allocation4_spill] sm:$0xff] %v890_v18 }
  0x1a   :  { %1253 = vst [vmem:[#allocation5_spill] sm:$0xff] %v892_v19  ;;  %1254 = vst [vmem:[#allocation6_spill] sm:$0xff] %v894_v20 }
  0x1b   :  { %111 = vst [vmem:[#allocation2 + $0x80] sm:$0xff] %v760_v11  ;;  %112 = vst [vmem:[#allocation2 + $0x98] sm:$0xff] %v876_v12 }
  0x1c   :  { %113 = vst [vmem:[#allocation2 + $0xb0] sm:$0xff] %v878_v13  ;;  %115 = vst [vmem:[#allocation2 + $0x110] sm:$0xff] %v880_v14 }
  0x1d   :  { %1255 = vst [vmem:[#allocation7_spill] sm:$0xff] %v904_v22  ;;  %1256 = vst [vmem:[#allocation8_spill] sm:$0xff] %v906_v23 }
  0x1e   :  { %1257 = vst [vmem:[#allocation9_spill] sm:$0xff] %v910_v25  ;;  %116 = vst [vmem:[#allocation2 + $0x128] sm:$0xff] %v888_v17  ;;  %v125_v56 = vld [vmem:[#allocation2 + $0x1f] sm:$0xff]  ;;  %v284_v59 = vld [vmem:[#allocation2 + $0x37] sm:$0xff] }
  0x1f   :  { %117 = vst [vmem:[#allocation2 + $0x140] sm:$0xff] %v890_v18  ;;  %118 = vst [vmem:[#allocation2 + $0x158] sm:$0xff] %v892_v19  ;;  %v231_v58 = vld [vmem:[#allocation2 + $0x21] sm:$0xff]  ;;  %v145_v63 = vmul.f32 %v924_v27, %v125_v56  ;;  %v303_v1 = vmul.f32 %v973_v46, %v125_v56  ;;  %v304_v2 = vmul.f32 %v973_v46, %v284_v59  ;;  %v390_v3 = vld [vmem:[#allocation2 + $0x39] sm:$0xff] }
  0x20   :  { %119 = vst [vmem:[#allocation2 + $0x170] sm:$0xff] %v894_v20  ;;  %120 = vst [vmem:[#allocation2 + $0x188] sm:$0xff] %v904_v22  ;;  %v251_v0 = vmul.f32 %v933_v30, %v231_v58  ;;  %v444_v4 = vld [vmem:[#allocation2 + $0x4f] sm:$0xff]  ;;  %v409_v7 = vmul.f32 %v984_v49, %v231_v58  ;;  %v410_v8 = vmul.f32 %v984_v49, %v390_v3  ;;  %v286_v10 = vld [vmem:[#allocation2 + $0x67] sm:$0xff] }
  0x21   :  { %121 = vst [vmem:[#allocation2 + $0x1a0] sm:$0xff] %v906_v23  ;;  %114 = vst [vmem:[#allocation2 + $0xc8] sm:$0xff] %v908_v24  ;;  %v550_v5 = vld [vmem:[#allocation2 + $0x51] sm:$0xff]  ;;  %v463_v9 = vmul.f32 %v989_v50, %v284_v59  ;;  %v214_v11 = vadd.f32 %v198_v29, %v145_v63  ;;  %v464_v12 = vmul.f32 %v989_v50, %v444_v4  ;;  %v392_v45 = vld [vmem:[#allocation2 + $0x69] sm:$0xff] }
  0x22   :  { %122 = vst [vmem:[#allocation2 + $0x1b8] sm:$0xff] %v910_v25  ;;  %v569_v13 = vmul.f32 %v994_v51, %v390_v3  ;;  %v570_v15 = vmul.f32 %v994_v51, %v550_v5  ;;  %v319_v16 = vadd.f32 %v303_v1, %v266_v6  ;;  %v146_v38 = vmul.f32 %v924_v27, %v284_v59  ;;  %v446_v56 = vld [vmem:[#allocation2 + $0x7f] sm:$0xff] }
  0x23   :  { %v147_v39 = vmul.f32 %v924_v27, %v444_v4  ;;  %v252_v44 = vmul.f32 %v933_v30, %v390_v3  ;;  %v267_v57 = vadd.f32 %v251_v0, %v214_v11  ;;  %v253_v58 = vmul.f32 %v933_v30, %v550_v5  ;;  %v552_v6 = vld [vmem:[#allocation2 + $0x81] sm:$0xff] }
  0x24   :  { %v305_v29 = vmul.f32 %v973_v46, %v444_v4  ;;  %v306_v63 = vmul.f32 %v973_v46, %v286_v10  ;;  %v372_v25 = vadd.f32 %v356_v31, %v319_v16  ;;  %v215_v23 = vadd.f32 %v199_v36, %v146_v38 }
  0x25   :  { %v216_v22 = vadd.f32 %v200_v37, %v147_v39  ;;  %v411_v1 = vmul.f32 %v984_v49, %v550_v5  ;;  %v320_v59 = vadd.f32 %v304_v2, %v267_v57  ;;  %v412_v20 = vmul.f32 %v984_v49, %v392_v45  ;;  %v288_v39 = vld [vmem:[#allocation2 + $0x97] sm:$0xff] }
  0x26   :  { %v465_v3 = vmul.f32 %v989_v50, %v286_v10  ;;  %v466_v19 = vmul.f32 %v989_v50, %v446_v56  ;;  %v425_v0 = vadd.f32 %v409_v7, %v372_v25  ;;  %v268_v11 = vadd.f32 %v252_v44, %v215_v23  ;;  %v394_v44 = vld [vmem:[#allocation2 + $0x99] sm:$0xff] }
  0x27   :  { %v269_v18 = vadd.f32 %v253_v58, %v216_v22  ;;  %v571_v4 = vmul.f32 %v994_v51, %v392_v45  ;;  %v373_v17 = vadd.f32 %v937_v32, %v320_v59  ;;  %v572_v31 = vmul.f32 %v994_v51, %v552_v6  ;;  %v554_v59 = vld [vmem:[#allocation2 + $0xb1] sm:$0xff] }
  0x28   :  { %v148_v36 = vmul.f32 %v924_v27, %v286_v10  ;;  %v149_v37 = vmul.f32 %v924_v27, %v446_v56  ;;  %v479_v2 = vadd.f32 %v463_v9, %v425_v0  ;;  %v321_v5 = vadd.f32 %v305_v29, %v268_v11  ;;  %v448_v29 = vld [vmem:[#allocation2 + $0xaf] sm:$0xff] }
  0x29   :  { %v322_v16 = vadd.f32 %v306_v63, %v269_v18  ;;  %v254_v38 = vmul.f32 %v933_v30, %v392_v45  ;;  %v426_v57 = vadd.f32 %v410_v8, %v373_v17  ;;  %v255_v25 = vmul.f32 %v933_v30, %v552_v6  ;;  %v1060_v17 = vld [vmem:[%s1235_s2] ss:$0 sm:$0xff] }
  0x2a   :  { %v217_v23 = vadd.f32 %v976_v47, %v148_v36  ;;  %v218_v22 = vadd.f32 %v979_v48, %v149_v37  ;;  %v532_v32 = vadd.f32 %v949_v34, %v479_v2  ;;  %v374_v7 = vadd.f32 %v957_v40, %v321_v5 }
  0x2b   :  { %v375_v10 = vadd.f32 %v960_v41, %v322_v16  ;;  %v307_v9 = vmul.f32 %v973_v46, %v446_v56  ;;  %v480_v18 = vadd.f32 %v464_v12, %v426_v57  ;;  %v308_v48 = vmul.f32 %v973_v46, %v288_v39 }
  0x2c   :  { %v270_v47 = vadd.f32 %v254_v38, %v217_v23  ;;  %v271_v8 = vadd.f32 %v255_v25, %v218_v22  ;;  %v585_v45 = vadd.f32 %v569_v13, %v532_v32  ;;  %v427_v58 = vadd.f32 %v411_v1, %v374_v7  ;;  %v290_v32 = vld [vmem:[#allocation2 + $0xc7] sm:$0xff] }
  0x2d   :  { %v428_v34 = vadd.f32 %v412_v20, %v375_v10  ;;  %v413_v40 = vmul.f32 %v984_v49, %v552_v6  ;;  %v533_v41 = vadd.f32 %v952_v35, %v480_v18  ;;  %v414_v12 = vmul.f32 %v984_v49, %v394_v44  ;;  %v396_v18 = vld [vmem:[#allocation2 + $0xc9] sm:$0xff] }
  0x2e   :  { %v323_v56 = vadd.f32 %v307_v9, %v270_v47  ;;  %v324_v63 = vadd.f32 %v308_v48, %v271_v8  ;;  %v608_v0 = vadd.f32 %v1060_v17, %v585_v45  ;;  %v481_v11 = vadd.f32 %v465_v3, %v427_v58  ;;  %v450_v45 = vld [vmem:[#allocation2 + $0xdf] sm:$0xff] }
  0x2f   :  { %v482_v36 = vadd.f32 %v466_v19, %v428_v34  ;;  %v467_v37 = vmul.f32 %v989_v50, %v288_v39  ;;  %v586_v2 = vadd.f32 %v570_v15, %v533_v41  ;;  %v468_v1 = vmul.f32 %v989_v50, %v448_v29 }
  0x30   :  { %v376_v13 = vadd.f32 %v997_v52, %v323_v56  ;;  %v377_v20 = vadd.f32 %v1001_v53, %v324_v63  ;;  %v534_v35 = vadd.f32 %v963_v42, %v481_v11  ;;  %v573_v5 = vmul.f32 %v994_v51, %v394_v44  ;;  %v132_v56 = vld [vmem:[#allocation2 + $0xf7] sm:$0xff]  ;;  %v133_v63 = vld [vmem:[#allocation2 + $0x10f] sm:$0xff] }
  0x31   :  { %v535_v6 = vadd.f32 %v966_v43, %v482_v36  ;;  %v574_v16 = vmul.f32 %v994_v51, %v554_v59  ;;  %v609_v3 = vadd.f32 %v1060_v17, %v586_v2  ;;  %v150_v15 = vmul.f32 %v924_v27, %v288_v39  ;;  %v238_v2 = vld [vmem:[#allocation2 + $0xf9] sm:$0xff] }
  0x32   :  { %v429_v19 = vadd.f32 %v413_v40, %v376_v13  ;;  %v430_v38 = vadd.f32 %v414_v12, %v377_v20  ;;  %v587_v57 = vadd.f32 %v571_v4, %v534_v35  ;;  %v151_v53 = vmul.f32 %v924_v27, %v448_v29  ;;  %v239_v35 = vld [vmem:[#allocation2 + $0x111] sm:$0xff] }
  0x33   :  { %v588_v52 = vadd.f32 %v572_v31, %v535_v6  ;;  %v256_v23 = vmul.f32 %v933_v30, %v394_v44  ;;  %v785_v22 = vpack.c.bf16 %v609_v3, %v608_v0  ;;  %v219_v43 = vadd.f32 %v1014_v60, %v150_v15  ;;  %v292_v3 = vld [vmem:[#allocation2 + $0x127] sm:$0xff] }
  0x34   :  { %v483_v42 = vadd.f32 %v467_v37, %v429_v19  ;;  %v484_v25 = vadd.f32 %v468_v1, %v430_v38  ;;  %v610_v7 = vadd.f32 %v1060_v17, %v587_v57  ;;  %v220_v9 = vadd.f32 %v1018_v61, %v151_v53  ;;  %v556_v37 = vld [vmem:[#allocation2 + $0xe1] sm:$0xff] }
  0x35   :  { %v611_v10 = vadd.f32 %v1060_v17, %v588_v52  ;;  %v257_v39 = vmul.f32 %v933_v30, %v554_v59  ;;  %786 = vst [vmem:[%s1236_s3] sm:$0xff] %v785_v22   ;;  %v272_v44 = vadd.f32 %v256_v23, %v219_v43  ;;  %v309_v60 = vmul.f32 %v973_v46, %v448_v29  ;;  %v398_v22 = vld [vmem:[#allocation2 + $0x129] sm:$0xff] }
  0x36   :  { %v536_v4 = vadd.f32 %v1005_v54, %v483_v42  ;;  %v537_v31 = vadd.f32 %v1009_v55, %v484_v25  ;;  %v310_v48 = vmul.f32 %v973_v46, %v290_v32  ;;  %v363_v61 = vmul.f32 %v908_v24, %v915_v26 }
  0x37   :  { %v790_v47 = vpack.c.bf16 %v611_v10, %v610_v7  ;;  %v273_v8 = vadd.f32 %v257_v39, %v220_v9  ;;  %v325_v40 = vadd.f32 %v309_v60, %v272_v44  ;;  %v415_v55 = vmul.f32 %v984_v49, %v554_v59  ;;  %v452_v7 = vld [vmem:[#allocation2 + $0x13f] sm:$0xff] }
  0x38   :  { %v589_v58 = vadd.f32 %v573_v5, %v536_v4  ;;  %v590_v34 = vadd.f32 %v574_v16, %v537_v31  ;;  %v416_v29 = vmul.f32 %v984_v49, %v396_v18  ;;  %v469_v41 = vmul.f32 %v989_v50, %v290_v32  ;;  %v1258_v39 = vld [vmem:[#allocation3_spill] sm:$0xff] }
  0x39   :  { %829 = vst [vmem:[%s1236_s3 + $0x8] sm:$0xff] %v790_v47   ;;  %v326_v54 = vadd.f32 %v310_v48, %v273_v8  ;;  %v378_v11 = vadd.f32 %v1022_v62, %v325_v40  ;;  %v470_v36 = vmul.f32 %v989_v50, %v450_v45  ;;  %v522_v59 = vmul.f32 %v908_v24, %v942_v33  ;;  %v558_v40 = vld [vmem:[#allocation2 + $0x141] sm:$0xff] }
  0x3a   :  { %v612_v12 = vadd.f32 %v1060_v17, %v589_v58  ;;  %v613_v0 = vadd.f32 %v1060_v17, %v590_v34  ;;  %v1106_v20 = vmul.f32 0.0, %v942_v33  ;;  %v575_v1 = vmul.f32 %v994_v51, %v396_v18  ;;  %v1259_v58 = vld [vmem:[#allocation4_spill] sm:$0xff] }
  0x3b   :  { %v379_v13 = vadd.f32 %v363_v61, %v326_v54  ;;  %v431_v5 = vadd.f32 %v415_v55, %v378_v11  ;;  %v152_v16 = vmul.f32 %v924_v27, %v132_v56  ;;  %v153_v62 = vmul.f32 %v924_v27, %v133_v63 }
  0x3c   :  { %v795_v6 = vpack.c.bf16 %v613_v0, %v612_v12  ;;  %v576_v38 = vmul.f32 %v994_v51, %v556_v37  ;;  %v206_v15 = vmul.f32 %v880_v14, %v899_v21  ;;  %v258_v24 = vmul.f32 %v933_v30, %v238_v2 }
  0x3d   :  { %v432_v19 = vadd.f32 %v416_v29, %v379_v13  ;;  %v485_v57 = vadd.f32 %v469_v41, %v431_v5  ;;  %v221_v52 = vadd.f32 %v927_v28, %v152_v16  ;;  %v259_v53 = vmul.f32 %v933_v30, %v239_v35  ;;  %v400_v16 = vld [vmem:[#allocation2 + $0x159] sm:$0xff] }
  0x3e   :  { %830 = vst [vmem:[%s1236_s3 + $0x10] sm:$0xff] %v795_v6   ;;  %v311_v23 = vmul.f32 %v973_v46, %v133_v63  ;;  %v222_v25 = vadd.f32 %v206_v15, %v153_v62  ;;  %v312_v43 = vmul.f32 %v973_v46, %v292_v3  ;;  %v364_v32 = vmul.f32 %v880_v14, %v915_v26  ;;  %v454_v15 = vld [vmem:[#allocation2 + $0x16f] sm:$0xff] }
  0x3f   :  { %v486_v42 = vadd.f32 %v470_v36, %v432_v19  ;;  %v538_v10 = vadd.f32 %v522_v59, %v485_v57  ;;  %v274_v9 = vadd.f32 %v258_v24, %v221_v52  ;;  %v365_v4 = vmul.f32 %v1258_v39, %v915_v26  ;;  %v294_v36 = vld [vmem:[#allocation2 + $0x157] sm:$0xff] }
  0x40   :  { %v417_v28 = vmul.f32 %v984_v49, %v239_v35  ;;  %v275_v44 = vadd.f32 %v259_v53, %v222_v25  ;;  %v418_v60 = vmul.f32 %v984_v49, %v398_v22  ;;  %v471_v18 = vmul.f32 %v989_v50, %v292_v3  ;;  %v1260_v53 = vld [vmem:[#allocation5_spill] sm:$0xff] }
  0x41   :  { %v539_v31 = vadd.f32 %v1106_v20, %v486_v42  ;;  %v591_v47 = vadd.f32 %v575_v1, %v538_v10  ;;  %v327_v8 = vadd.f32 %v311_v23, %v274_v9  ;;  %v472_v48 = vmul.f32 %v989_v50, %v452_v7 }
  0x42   :  { %v524_v14 = vmul.f32 %v1258_v39, %v942_v33  ;;  %v328_v45 = vadd.f32 %v312_v43, %v275_v44  ;;  %v525_v34 = vmul.f32 %v1259_v58, %v942_v33  ;;  %v577_v54 = vmul.f32 %v994_v51, %v398_v22 }
  0x43   :  { %v592_v61 = vadd.f32 %v576_v38, %v539_v31  ;;  %v614_v55 = vadd.f32 %v1060_v17, %v591_v47  ;;  %v380_v29 = vadd.f32 %v364_v32, %v327_v8  ;;  %v154_v41 = vmul.f32 %v924_v27, %v292_v3  ;;  %v560_v8 = vld [vmem:[#allocation2 + $0x171] sm:$0xff] }
  0x44   :  { %v155_v56 = vmul.f32 %v924_v27, %v452_v7  ;;  %v381_v12 = vadd.f32 %v365_v4, %v328_v45  ;;  %v207_v0 = vmul.f32 %v1258_v39, %v899_v21  ;;  %v208_v11 = vmul.f32 %v1259_v58, %v899_v21 }
  0x45   :  { %v615_v63 = vadd.f32 %v1060_v17, %v592_v61  ;;  %v433_v37 = vadd.f32 %v417_v28, %v380_v29  ;;  %v578_v2 = vmul.f32 %v994_v51, %v558_v40  ;;  %v260_v13 = vmul.f32 %v933_v30, %v398_v22  ;;  %v1261_v28 = vld [vmem:[#allocation6_spill] sm:$0xff] }
  0x46   :  { %v261_v59 = vmul.f32 %v933_v30, %v558_v40  ;;  %v434_v35 = vadd.f32 %v418_v60, %v381_v12  ;;  %v223_v6 = vadd.f32 %v207_v0, %v154_v41  ;;  %v224_v5 = vadd.f32 %v208_v11, %v155_v56 }
  0x47   :  { %v800_v1 = vpack.c.bf16 %v615_v63, %v614_v55  ;;  %v487_v62 = vadd.f32 %v471_v18, %v433_v37  ;;  %v313_v3 = vmul.f32 %v973_v46, %v452_v7  ;;  %v314_v19 = vmul.f32 %v973_v46, %v294_v36 }
  0x48   :  { %v366_v38 = vmul.f32 %v1259_v58, %v915_v26  ;;  %v488_v24 = vadd.f32 %v472_v48, %v434_v35  ;;  %v276_v57 = vadd.f32 %v260_v13, %v223_v6  ;;  %v277_v52 = vadd.f32 %v261_v59, %v224_v5  ;;  %v1262_v35 = vld [vmem:[#allocation7_spill] sm:$0xff] }
  0x49   :  { %831 = vst [vmem:[%s1236_s3 + $0x18] sm:$0xff] %v800_v1   ;;  %v367_v23 = vmul.f32 %v1260_v53, %v915_v26  ;;  %v540_v22 = vadd.f32 %v524_v14, %v487_v62  ;;  %v419_v42 = vmul.f32 %v984_v49, %v558_v40  ;;  %v420_v25 = vmul.f32 %v984_v49, %v400_v16  ;;  %v456_v5 = vld [vmem:[#allocation2 + $0x19f] sm:$0xff] }
  0x4a   :  { %v473_v43 = vmul.f32 %v989_v50, %v294_v36  ;;  %v541_v32 = vadd.f32 %v525_v34, %v488_v24  ;;  %v329_v7 = vadd.f32 %v313_v3, %v276_v57  ;;  %v330_v10 = vadd.f32 %v314_v19, %v277_v52  ;;  %v296_v34 = vld [vmem:[#allocation2 + $0x187] sm:$0xff] }
  0x4b   :  { %v474_v9 = vmul.f32 %v989_v50, %v454_v15  ;;  %v593_v39 = vadd.f32 %v577_v54, %v540_v22  ;;  %v526_v4 = vmul.f32 %v1260_v53, %v942_v33  ;;  %v527_v31 = vmul.f32 %v1261_v28, %v942_v33 }
  0x4c   :  { %v579_v44 = vmul.f32 %v994_v51, %v400_v16  ;;  %v594_v60 = vadd.f32 %v578_v2, %v541_v32  ;;  %v382_v18 = vadd.f32 %v366_v38, %v329_v7  ;;  %v383_v47 = vadd.f32 %v367_v23, %v330_v10  ;;  %v402_v2 = vld [vmem:[#allocation2 + $0x189] sm:$0xff]  ;;  %v562_v7 = vld [vmem:[#allocation2 + $0x1a1] sm:$0xff] }
  0x4d   :  { %v156_v48 = vmul.f32 %v924_v27, %v294_v36  ;;  %v616_v14 = vadd.f32 %v1060_v17, %v593_v39  ;;  %v157_v61 = vmul.f32 %v924_v27, %v454_v15  ;;  %v209_v45 = vmul.f32 %v1260_v53, %v899_v21 }
  0x4e   :  { %v210_v58 = vmul.f32 %v1261_v28, %v899_v21  ;;  %v617_v40 = vadd.f32 %v1060_v17, %v594_v60  ;;  %v435_v54 = vadd.f32 %v419_v42, %v382_v18  ;;  %v436_v55 = vadd.f32 %v420_v25, %v383_v47  ;;  %v298_v47 = vld [vmem:[#allocation2 + $0x1b7] sm:$0xff] }
  0x4f   :  { %v262_v29 = vmul.f32 %v933_v30, %v400_v16  ;;  %v225_v41 = vadd.f32 %v209_v45, %v156_v48  ;;  %v263_v63 = vmul.f32 %v933_v30, %v560_v8  ;;  %v315_v12 = vmul.f32 %v973_v46, %v454_v15 }
  0x50   :  { %v226_v56 = vadd.f32 %v210_v58, %v157_v61  ;;  %v805_v0 = vpack.c.bf16 %v617_v40, %v616_v14  ;;  %v489_v11 = vadd.f32 %v473_v43, %v435_v54  ;;  %v490_v36 = vadd.f32 %v474_v9, %v436_v55  ;;  %v1263_v43 = vld [vmem:[#allocation8_spill] sm:$0xff]  ;;  %v1264_v55 = vld [vmem:[#allocation9_spill] sm:$0xff] }
  0x51   :  { %v316_v37 = vmul.f32 %v973_v46, %v296_v34  ;;  %v278_v13 = vadd.f32 %v262_v29, %v225_v41  ;;  %v368_v1 = vmul.f32 %v1261_v28, %v915_v26  ;;  %v369_v6 = vmul.f32 %v1262_v35, %v915_v26 }
  0x52   :  { %v279_v59 = vadd.f32 %v263_v63, %v226_v56  ;;  %832 = vst [vmem:[%s1236_s3 + $0x20] sm:$0xff] %v805_v0   ;;  %v542_v16 = vadd.f32 %v526_v4, %v489_v11  ;;  %v543_v62 = vadd.f32 %v527_v31, %v490_v36  ;;  %v580_v3 = vmul.f32 %v994_v51, %v560_v8  ;;  %v458_v0 = vld [vmem:[#allocation2 + $0x1cf] sm:$0xff] }
  0x53   :  { %v421_v19 = vmul.f32 %v984_v49, %v560_v8  ;;  %v331_v38 = vadd.f32 %v315_v12, %v278_v13  ;;  %v422_v24 = vmul.f32 %v984_v49, %v402_v2  ;;  %v475_v57 = vmul.f32 %v989_v50, %v296_v34  ;;  %v404_v12 = vld [vmem:[#allocation2 + $0x1b9] sm:$0xff] }
  0x54   :  { %v332_v15 = vadd.f32 %v316_v37, %v279_v59  ;;  %v595_v52 = vadd.f32 %v579_v44, %v542_v16  ;;  %v596_v53 = vadd.f32 %v580_v3, %v543_v62  ;;  %v476_v23 = vmul.f32 %v989_v50, %v456_v5 }
  0x55   :  { %v528_v22 = vmul.f32 %v1262_v35, %v942_v33  ;;  %v384_v42 = vadd.f32 %v368_v1, %v331_v38  ;;  %v529_v32 = vmul.f32 %v1263_v43, %v942_v33  ;;  %v581_v10 = vmul.f32 %v994_v51, %v402_v2  ;;  %v564_v38 = vld [vmem:[#allocation2 + $0x1d1] sm:$0xff] }
  0x56   :  { %v385_v25 = vadd.f32 %v369_v6, %v332_v15  ;;  %v618_v9 = vadd.f32 %v1060_v17, %v595_v52  ;;  %v619_v39 = vadd.f32 %v1060_v17, %v596_v53  ;;  %v158_v4 = vmul.f32 %v924_v27, %v296_v34 }
  0x57   :  { %v159_v28 = vmul.f32 %v924_v27, %v456_v5  ;;  %v437_v31 = vadd.f32 %v421_v19, %v384_v42  ;;  %v211_v60 = vmul.f32 %v1262_v35, %v899_v21  ;;  %v212_v18 = vmul.f32 %v1263_v43, %v899_v21 }
  0x58   :  { %v438_v44 = vadd.f32 %v422_v24, %v385_v25  ;;  %v810_v8 = vpack.c.bf16 %v619_v39, %v618_v9  ;;  %v582_v48 = vmul.f32 %v994_v51, %v562_v7  ;;  %v264_v14 = vmul.f32 %v933_v30, %v402_v2 }
  0x59   :  { %v265_v61 = vmul.f32 %v933_v30, %v562_v7  ;;  %v491_v45 = vadd.f32 %v475_v57, %v437_v31  ;;  %v227_v34 = vadd.f32 %v211_v60, %v158_v4  ;;  %v228_v27 = vadd.f32 %v212_v18, %v159_v28 }
  0x5a   :  { %v492_v58 = vadd.f32 %v476_v23, %v438_v44  ;;  %833 = vst [vmem:[%s1236_s3 + $0x28] sm:$0xff] %v810_v8   ;;  %v317_v40 = vmul.f32 %v973_v46, %v456_v5  ;;  %v318_v21 = vmul.f32 %v973_v46, %v298_v47  ;;  %v370_v54 = vmul.f32 %v1263_v43, %v915_v26 }
  0x5b   :  { %v371_v29 = vmul.f32 %v1264_v55, %v915_v26  ;;  %v544_v41 = vadd.f32 %v528_v22, %v491_v45  ;;  %v280_v56 = vadd.f32 %v264_v14, %v227_v34  ;;  %v281_v63 = vadd.f32 %v265_v61, %v228_v27 }
  0x5c   :  { %v545_v30 = vadd.f32 %v529_v32, %v492_v58  ;;  %v423_v13 = vmul.f32 %v984_v49, %v562_v7  ;;  %v424_v46 = vmul.f32 %v984_v49, %v404_v12  ;;  %v478_v59 = vmul.f32 %v989_v50, %v458_v0 }
  0x5d   :  { %v597_v11 = vadd.f32 %v581_v10, %v544_v41  ;;  %v333_v37 = vadd.f32 %v317_v40, %v280_v56  ;;  %v334_v2 = vadd.f32 %v318_v21, %v281_v63  ;;  %v477_v5 = vmul.f32 %v989_v50, %v298_v47 }
  0x5e   :  { %v598_v36 = vadd.f32 %v582_v48, %v545_v30  ;;  %v530_v19 = vmul.f32 %v1264_v55, %v942_v33  ;;  %v583_v52 = vmul.f32 %v994_v51, %v404_v12  ;;  %v584_v50 = vmul.f32 %v994_v51, %v564_v38 }
  0x5f   :  { %v620_v1 = vadd.f32 %v1060_v17, %v597_v11  ;;  %v386_v35 = vadd.f32 %v370_v54, %v333_v37  ;;  %v387_v6 = vadd.f32 %v371_v29, %v334_v2 }
  0x60   :  { %v621_v26 = vadd.f32 %v1060_v17, %v598_v36 }
  0x61   :  { %v439_v62 = vadd.f32 %v423_v13, %v386_v35  ;;  %v440_v3 = vadd.f32 %v424_v46, %v387_v6 }
  0x62   :  { %v815_v16 = vpack.c.bf16 %v621_v26, %v620_v1 }
  0x63   :  { %v493_v49 = vadd.f32 %v477_v5, %v439_v62  ;;  %v494_v15 = vadd.f32 %v478_v59, %v440_v3 }
  0x64   :  { %834 = vst [vmem:[%s1236_s3 + $0x30] sm:$0xff] %v815_v16  }
  0x65   :  { %v546_v24 = vadd.f32 %v530_v19, %v493_v49  ;;  %v547_v57 = vadd.f32 %v1106_v20, %v494_v15 }
  0x67   :  { %v599_v53 = vadd.f32 %v583_v52, %v546_v24  ;;  %v600_v23 = vadd.f32 %v584_v50, %v547_v57 }
  0x69   :  { %v622_v22 = vadd.f32 %v1060_v17, %v599_v53  ;;  %v623_v33 = vadd.f32 %v1060_v17, %v600_v23 }
  0x6b   :  { %v820_v42 = vpack.c.bf16 %v623_v33, %v622_v22 }
  0x6d   :  { %835 = vst [vmem:[%s1236_s3 + $0x38] sm:$0xff] %v820_v42  }

// kernel: classifier_forward.11
= control target key start
LH: loop header
LB: loop body
LE: loop exit
PB: predicated region body
PF: predicated region fallthrough
CT: control target
= control target key end

     0   :  { %s905_s1 = inlined_call_operand.vmem [shape: bf16[256,128], index: 1, kind: input, shape index: {}]   ;;  %s906_s0 = inlined_call_operand.vmem [shape: bf16[128,256], index: 0, kind: input, shape index: {}]   ;;  %s907_s2 = inlined_call_operand.vmem [shape: f32[1,128], index: 2, kind: input, shape index: {}]   ;;  %s908_s3 = inlined_call_operand.vmem [shape: f32[1,128], index: 3, kind: input, shape index: {}]   ;;  %s909_s4 = inlined_call_operand.vmem [shape: bf16[128,128], index: 4, kind: output, shape index: {}]  }
   0x1   :  { %v678_v0 = vld [vmem:[%s905_s1 + $0x78] sm:$0xff]   ;;  %v680_v2 = vld [vmem:[%s905_s1 + $0x70] sm:$0xff]   ;;  %v682_v4 = vld [vmem:[%s905_s1 + $0x68] sm:$0xff]  }
   0x2   :  { %v679_v1 = vld [vmem:[%s905_s1 + $0x38] sm:$0xff]   ;;  %598 = vmatprep.subr.bf16.mxu0 %v678_v0  ;;  %662 = vmatprep.subr.bf16.mxu1 %v678_v0  ;;  %v681_v3 = vld [vmem:[%s905_s1 + $0x30] sm:$0xff]   ;;  %v683_v5 = vld [vmem:[%s905_s1 + $0x28] sm:$0xff]  }
   0x3   :  { %599 = vmatpush3.bf16.msra.mxu0 %v679_v1  ;;  %670 = vmatpush3.bf16.msra.mxu1 %v679_v1  ;;  %v684_v6 = vld [vmem:[%s905_s1 + $0x60] sm:$0xff]   ;;  %v686_v8 = vld [vmem:[%s905_s1 + $0x58] sm:$0xff]   ;;  %v688_v10 = vld [vmem:[%s905_s1 + $0x50] sm:$0xff]  }
   0x4   :  { %600 = vmatprep.subr.bf16.mxu0 %v680_v2  ;;  %663 = vmatprep.subr.bf16.mxu1 %v680_v2  ;;  %v685_v7 = vld [vmem:[%s905_s1 + $0x20] sm:$0xff]   ;;  %v687_v9 = vld [vmem:[%s905_s1 + $0x18] sm:$0xff]   ;;  %v689_v13 = vld [vmem:[%s905_s1 + $0x10] sm:$0xff]  }
   0x5   :  { %v696_v11 = vld [vmem:[%s906_s0 + $0x4] ss:$8 sps:$4 sm:$0xff]   ;;  %v694_v18 = vld [vmem:[%s906_s0] ss:$8 sps:$4 sm:$0xff]   ;;  %v700_v20 = vld [vmem:[%s906_s0 + $0x14] ss:$8 sps:$4 sm:$0xff]  }
   0x6   :  { %v699_v12 = vld [vmem:[%s906_s0 + $0x44] ss:$8 sps:$4 sm:$0xff]   ;;  %274 = vmatprep.mubr.bf16.mxu0 %v696_v11  ;;  %v697_v19 = vld [vmem:[%s906_s0 + $0x40] ss:$8 sps:$4 sm:$0xff]   ;;  %v702_v21 = vld [vmem:[%s906_s0 + $0x54] ss:$8 sps:$4 sm:$0xff]  }
   0x7   :  { %601 = vmatpush3.bf16.msra.mxu0 %v681_v3  ;;  %671 = vmatpush3.bf16.msra.mxu1 %v681_v3  ;;  %v690_v14 = vld [vmem:[%s905_s1 + $0x48] sm:$0xff]   ;;  %v692_v16 = vld [vmem:[%s905_s1 + $0x40] sm:$0xff]   ;;  %v704_v22 = vld [vmem:[%s906_s0 + $0x10] ss:$8 sps:$4 sm:$0xff]  }
   0x8   :  { %602 = vmatprep.subr.bf16.mxu0 %v682_v4  ;;  %664 = vmatprep.subr.bf16.mxu1 %v682_v4  ;;  %v691_v15 = vld [vmem:[%s905_s1 + $0x8] sm:$0xff]   ;;  %v693_v17 = vld [vmem:[%s905_s1] sm:$0xff]   ;;  %v705_v23 = vld [vmem:[%s906_s0 + $0x50] ss:$8 sps:$4 sm:$0xff]  }
   0x9   :  { %306 = vmatprep.mubr.bf16.mxu1 %v699_v12  ;;  %v706_v24 = vld [vmem:[%s906_s0 + $0x24] ss:$8 sps:$4 sm:$0xff]   ;;  %v710_v26 = vld [vmem:[%s906_s0 + $0x20] ss:$8 sps:$4 sm:$0xff]   ;;  %v712_v28 = vld [vmem:[%s906_s0 + $0x34] ss:$8 sps:$4 sm:$0xff]  }
   0xa   :  { %v708_v25 = vld [vmem:[%s906_s0 + $0x64] ss:$8 sps:$4 sm:$0xff]   ;;  %v711_v27 = vld [vmem:[%s906_s0 + $0x60] ss:$8 sps:$4 sm:$0xff]   ;;  %v714_v29 = vld [vmem:[%s906_s0 + $0x74] ss:$8 sps:$4 sm:$0xff]  }
   0xb   :  { %603 = vmatpush3.bf16.msra.mxu0 %v683_v5  ;;  %672 = vmatpush3.bf16.msra.mxu1 %v683_v5  ;;  %v716_v30 = vld [vmem:[%s906_s0 + $0x30] ss:$8 sps:$4 sm:$0xff]   ;;  %v842_v35 = vld [vmem:[%s907_s2] ss:$0 sm:$0xff] }
   0xc   :  { %604 = vmatprep.subr.bf16.mxu0 %v684_v6  ;;  %665 = vmatprep.subr.bf16.mxu1 %v684_v6  ;;  %v717_v31 = vld [vmem:[%s906_s0 + $0x70] ss:$8 sps:$4 sm:$0xff]   ;;  %v849_v43 = vld [vmem:[%s908_s3] ss:$0 sm:$0xff] }
   0xf   :  { %605 = vmatpush3.bf16.msra.mxu0 %v685_v7  ;;  %673 = vmatpush3.bf16.msra.mxu1 %v685_v7 }
  0x10   :  { %606 = vmatprep.subr.bf16.mxu0 %v686_v8  ;;  %666 = vmatprep.subr.bf16.mxu1 %v686_v8 }
  0x13   :  { %607 = vmatpush3.bf16.msra.mxu0 %v687_v9  ;;  %674 = vmatpush3.bf16.msra.mxu1 %v687_v9 }
  0x14   :  { %608 = vmatprep.subr.bf16.mxu0 %v688_v10  ;;  %667 = vmatprep.subr.bf16.mxu1 %v688_v10 }
  0x17   :  { %609 = vmatpush3.bf16.msra.mxu0 %v689_v13  ;;  %675 = vmatpush3.bf16.msra.mxu1 %v689_v13 }
  0x18   :  { %610 = vmatprep.subr.bf16.mxu0 %v690_v14  ;;  %668 = vmatprep.subr.bf16.mxu1 %v690_v14 }
  0x1b   :  { %611 = vmatpush3.bf16.msra.mxu0 %v691_v15  ;;  %676 = vmatpush3.bf16.msra.mxu1 %v691_v15 }
  0x1c   :  { %612 = vmatprep.subr.bf16.mxu0 %v692_v16  ;;  %669 = vmatprep.subr.bf16.mxu1 %v692_v16 }
  0x1f   :  { %613 = vmatpush3.bf16.msra.mxu0 %v693_v17  ;;  %677 = vmatpush3.bf16.msra.mxu1 %v693_v17 }
  0x22   :  { %275 = vmatmul.mubr.bf16.vlgmr.msra.gmra.mxu0 %v694_v18  ;;  %307 = vmatmul.mubr.bf16.vlgmr.msra.gmra.mxu1 %v697_v19 }
  0x23   :  { %282 = vmatprep.mubr.bf16.mxu0 %v700_v20  ;;  %314 = vmatprep.mubr.bf16.mxu1 %v702_v21 }
  0x2a   :  { %283 = vmatmul.mubr.bf16.gmra.mxu0 %v704_v22  ;;  %315 = vmatmul.mubr.bf16.gmra.mxu1 %v705_v23 }
  0x2b   :  { %290 = vmatprep.mubr.bf16.mxu0 %v706_v24  ;;  %322 = vmatprep.mubr.bf16.mxu1 %v708_v25 }
  0x32   :  { %291 = vmatmul.mubr.bf16.gmra.mxu0 %v710_v26  ;;  %323 = vmatmul.mubr.bf16.gmra.mxu1 %v711_v27 }
  0x33   :  { %298 = vmatprep.mubr.bf16.mxu0 %v712_v28  ;;  %330 = vmatprep.mubr.bf16.mxu1 %v714_v29 }
  0x3a   :  { %299 = vmatmul.mubr.bf16.gmra.mxu0 %v716_v30  ;;  %331 = vmatmul.mubr.bf16.gmra.mxu1 %v717_v31 }
  0xe2   :  { %v614_v32 = vpop.f32.mrf.mxu0  ;;  %v638_v33 = vpop.f32.mrf.mxu1 }
  0xe4   :  { %v615_v34 = vpop.f32.mrf.mxu0  ;;  %v639_v36 = vpop.f32.mrf.mxu1 }
  0xe5   :  { %v616_v37 = vadd.f32 %v615_v34, %v614_v32  ;;  %v640_v38 = vadd.f32 %v639_v36, %v638_v33 }
  0xe6   :  { %v617_v39 = vpop.f32.mrf.mxu0  ;;  %v641_v40 = vpop.f32.mrf.mxu1 }
  0xe7   :  { %v346_v41 = vmul.f32 %v616_v37, %v842_v35  ;;  %v354_v42 = vmul.f32 %v640_v38, %v842_v35 }
  0xe8   :  { %v618_v44 = vpop.f32.mrf.mxu0  ;;  %v642_v45 = vpop.f32.mrf.mxu1 }
  0xe9   :  { %v619_v46 = vadd.f32 %v618_v44, %v617_v39  ;;  %v643_v47 = vadd.f32 %v642_v45, %v641_v40  ;;  %v369_v50 = vadd.f32 %v849_v43, %v346_v41  ;;  %v377_v51 = vadd.f32 %v849_v43, %v354_v42 }
  0xea   :  { %v620_v48 = vpop.f32.mrf.mxu0  ;;  %v644_v49 = vpop.f32.mrf.mxu1 }
  0xeb   :  { %v347_v52 = vmul.f32 %v619_v46, %v842_v35  ;;  %v355_v53 = vmul.f32 %v643_v47, %v842_v35  ;;  %v385_v62 = vmax.f32 %v369_v50, 0.0  ;;  %v393_v63 = vmax.f32 %v377_v51, 0.0 }
  0xec   :  { %v621_v54 = vpop.f32.mrf.mxu0  ;;  %v645_v55 = vpop.f32.mrf.mxu1 }
  0xed   :  { %v370_v56 = vadd.f32 %v849_v43, %v347_v52  ;;  %v378_v57 = vadd.f32 %v849_v43, %v355_v53  ;;  %v622_v58 = vadd.f32 %v621_v54, %v620_v48  ;;  %v646_v59 = vadd.f32 %v645_v55, %v644_v49 }
  0xee   :  { %v623_v60 = vpop.f32.mrf.mxu0  ;;  %v647_v61 = vpop.f32.mrf.mxu1 }
  0xef   :  { %v386_v0 = vmax.f32 %v370_v56, 0.0  ;;  %v394_v1 = vmax.f32 %v378_v57, 0.0  ;;  %v348_v2 = vmul.f32 %v622_v58, %v842_v35  ;;  %v356_v3 = vmul.f32 %v646_v59, %v842_v35 }
  0xf0   :  { %v624_v4 = vpop.f32.mrf.mxu0  ;;  %v648_v5 = vpop.f32.mrf.mxu1 }
  0xf1   :  { %v554_v6 = vpack.c.bf16 %v386_v0, %v385_v62  ;;  %v574_v7 = vpack.c.bf16 %v394_v1, %v393_v63  ;;  %v625_v8 = vadd.f32 %v624_v4, %v623_v60  ;;  %v649_v9 = vadd.f32 %v648_v5, %v647_v61 }
  0xf2   :  { %v626_v10 = vpop.f32.mrf.mxu0  ;;  %v650_v11 = vpop.f32.mrf.mxu1  ;;  %v371_v12 = vadd.f32 %v849_v43, %v348_v2  ;;  %v379_v13 = vadd.f32 %v849_v43, %v356_v3 }
  0xf3   :  { %555 = vst [vmem:[%s909_s4] sm:$0xff] %v554_v6   ;;  %594 = vst [vmem:[%s909_s4 + $0x20] sm:$0xff] %v574_v7   ;;  %v349_v14 = vmul.f32 %v625_v8, %v842_v35  ;;  %v357_v15 = vmul.f32 %v649_v9, %v842_v35 }
  0xf4   :  { %v627_v16 = vpop.f32.mrf.mxu0  ;;  %v651_v17 = vpop.f32.mrf.mxu1  ;;  %v387_v26 = vmax.f32 %v371_v12, 0.0  ;;  %v395_v27 = vmax.f32 %v379_v13, 0.0 }
  0xf5   :  { %v628_v18 = vadd.f32 %v627_v16, %v626_v10  ;;  %v652_v19 = vadd.f32 %v651_v17, %v650_v11  ;;  %v372_v20 = vadd.f32 %v849_v43, %v349_v14  ;;  %v380_v21 = vadd.f32 %v849_v43, %v357_v15 }
  0xf6   :  { %v629_v22 = vpop.f32.mrf.mxu0  ;;  %v653_v23 = vpop.f32.mrf.mxu1 }
  0xf7   :  { %v350_v24 = vmul.f32 %v628_v18, %v842_v35  ;;  %v358_v25 = vmul.f32 %v652_v19, %v842_v35  ;;  %v388_v28 = vmax.f32 %v372_v20, 0.0  ;;  %v396_v29 = vmax.f32 %v380_v21, 0.0 }
  0xf8   :  { %v630_v30 = vpop.f32.mrf.mxu0  ;;  %v654_v31 = vpop.f32.mrf.mxu1 }
  0xf9   :  { %v631_v32 = vadd.f32 %v630_v30, %v629_v22  ;;  %v655_v33 = vadd.f32 %v654_v31, %v653_v23  ;;  %v559_v34 = vpack.c.bf16 %v388_v28, %v387_v26  ;;  %v579_v36 = vpack.c.bf16 %v396_v29, %v395_v27 }
  0xfa   :  { %v632_v37 = vpop.f32.mrf.mxu0  ;;  %v656_v38 = vpop.f32.mrf.mxu1  ;;  %v373_v39 = vadd.f32 %v849_v43, %v350_v24  ;;  %v381_v40 = vadd.f32 %v849_v43, %v358_v25 }
  0xfb   :  { %v351_v41 = vmul.f32 %v631_v32, %v842_v35  ;;  %v359_v42 = vmul.f32 %v655_v33, %v842_v35  ;;  %591 = vst [vmem:[%s909_s4 + $0x8] sm:$0xff] %v559_v34   ;;  %595 = vst [vmem:[%s909_s4 + $0x28] sm:$0xff] %v579_v36  }
  0xfc   :  { %v633_v44 = vpop.f32.mrf.mxu0  ;;  %v657_v45 = vpop.f32.mrf.mxu1  ;;  %v389_v52 = vmax.f32 %v373_v39, 0.0  ;;  %v397_v53 = vmax.f32 %v381_v40, 0.0 }
  0xfd   :  { %v374_v46 = vadd.f32 %v849_v43, %v351_v41  ;;  %v382_v47 = vadd.f32 %v849_v43, %v359_v42  ;;  %v634_v48 = vadd.f32 %v633_v44, %v632_v37  ;;  %v658_v49 = vadd.f32 %v657_v45, %v656_v38 }
  0xfe   :  { %v635_v50 = vpop.f32.mrf.mxu0  ;;  %v659_v51 = vpop.f32.mrf.mxu1 }
  0xff   :  { %v390_v54 = vmax.f32 %v374_v46, 0.0  ;;  %v398_v55 = vmax.f32 %v382_v47, 0.0  ;;  %v352_v56 = vmul.f32 %v634_v48, %v842_v35  ;;  %v360_v57 = vmul.f32 %v658_v49, %v842_v35 }
 0x100   :  { %v636_v58 = vpop.f32.mrf.mxu0  ;;  %v660_v59 = vpop.f32.mrf.mxu1 }
 0x101   :  { %v564_v60 = vpack.c.bf16 %v390_v54, %v389_v52  ;;  %v584_v61 = vpack.c.bf16 %v398_v55, %v397_v53  ;;  %v637_v62 = vadd.f32 %v636_v58, %v635_v50  ;;  %v661_v63 = vadd.f32 %v660_v59, %v659_v51 }
 0x102   :  { %v375_v0 = vadd.f32 %v849_v43, %v352_v56  ;;  %v383_v1 = vadd.f32 %v849_v43, %v360_v57 }
 0x103   :  { %592 = vst [vmem:[%s909_s4 + $0x10] sm:$0xff] %v564_v60   ;;  %596 = vst [vmem:[%s909_s4 + $0x30] sm:$0xff] %v584_v61   ;;  %v353_v2 = vmul.f32 %v637_v62, %v842_v35  ;;  %v361_v3 = vmul.f32 %v661_v63, %v842_v35 }
 0x104   :  { %v391_v6 = vmax.f32 %v375_v0, 0.0  ;;  %v399_v7 = vmax.f32 %v383_v1, 0.0 }
 0x105   :  { %v376_v4 = vadd.f32 %v849_v43, %v353_v2  ;;  %v384_v5 = vadd.f32 %v849_v43, %v361_v3 }
 0x107   :  { %v392_v8 = vmax.f32 %v376_v4, 0.0  ;;  %v400_v9 = vmax.f32 %v384_v5, 0.0 }
 0x109   :  { %v569_v10 = vpack.c.bf16 %v392_v8, %v391_v6  ;;  %v589_v11 = vpack.c.bf16 %v400_v9, %v399_v7 }
 0x10b   :  { %593 = vst [vmem:[%s909_s4 + $0x18] sm:$0xff] %v569_v10   ;;  %597 = vst [vmem:[%s909_s4 + $0x38] sm:$0xff] %v589_v11  }

// kernel: classifier_forward.10
= control target key start
LH: loop header
LB: loop body
LE: loop exit
PB: predicated region body
PF: predicated region fallthrough
CT: control target
= control target key end

     0   :  { %v3257_v0 = vmov 0.0   ;;  %v281_v4 = vlaneseq  ;;  %vm861_vm0 = vcmask 1045504   ;;  %vm2969_vm1 = vcmask 1040384   ;;  %s4419_s0 = inlined_call_operand.vmem [shape: bf16[2,8,8,256], index: 0, kind: input, shape index: {}]   ;;  %s4420_s1 = inlined_call_operand.vmem [shape: f32[9,256], index: 1, kind: input, shape index: {}]   ;;  %s4421_s2 = inlined_call_operand.vmem [shape: f32[1,256], index: 2, kind: input, shape index: {}]   ;;  %s4422_s3 = inlined_call_operand.vmem [shape: bf16[128,256], index: 3, kind: output, shape index: {}]  }
   0x1   :  { %16 = vst [vmem:[#allocation2 + $0xd8] sm:$0xff] %v3257_v0  ;;  %14 = vst [vmem:[#allocation2 + $0x2b0] sm:$0xff] %v3257_v0  ;;  %v134_v1 = vld [vmem:[%s4419_s0] sm:$0xff]  ;;  %v135_v2 = vld [vmem:[%s4419_s0 + $0x8] sm:$0xff] }
   0x2   :  { %15 = vst [vmem:[#allocation2 + $0x3b0] sm:$0xff] %v3257_v0  ;;  %17 = vst [vmem:[#allocation2 + $0x18] sm:$0xff] %v3257_v0  ;;  %v3375_v3 = vld [vmem:[%s4419_s0 + $0x10] sm:$0xff]  ;;  %v3377_v5 = vunpack.c.l.bf16 %v134_v1  ;;  %v3379_v6 = vunpack.c.h.bf16 %v134_v1  ;;  %v3381_v7 = vunpack.c.l.bf16 %v135_v2  ;;  %v3383_v8 = vunpack.c.h.bf16 %v135_v2  ;;  %v137_v9 = vld [vmem:[%s4419_s0 + $0x18] sm:$0xff] }
   0x3   :  { %18 = vst [vmem:[#allocation2 + $0x50] sm:$0x1] %v3257_v0  ;;  %19 = vst [vmem:[#allocation2 + $0x368] sm:$0x1] %v3257_v0  ;;  %v138_v10 = vld [vmem:[%s4419_s0 + $0x20] sm:$0xff]  ;;  %v139_v11 = vld [vmem:[%s4419_s0 + $0x28] sm:$0xff]  ;;  %v154_v12 = vunpack.c.l.bf16 %v3375_v3  ;;  %v155_v13 = vunpack.c.h.bf16 %v3375_v3  ;;  %v156_v14 = vunpack.c.l.bf16 %v137_v9  ;;  %v157_v15 = vunpack.c.h.bf16 %v137_v9 }
   0x4   :  { %20 = vst [vmem:[#allocation2 + $0x330] sm:$0xff] %v3257_v0  ;;  %21 = vst [vmem:[#allocation2 + $0x48] sm:$0xff] %v3257_v0  ;;  %v140_v16 = vld [vmem:[%s4419_s0 + $0x30] sm:$0xff]  ;;  %v3402_v17 = vld [vmem:[%s4419_s0 + $0x40] sm:$0xff]  ;;  %v158_v19 = vunpack.c.l.bf16 %v138_v10  ;;  %v159_v20 = vunpack.c.h.bf16 %v138_v10  ;;  %v160_v21 = vunpack.c.l.bf16 %v139_v11  ;;  %v161_v22 = vunpack.c.h.bf16 %v139_v11 }
   0x5   :  { %24 = vst [vmem:[#allocation2 + $0x118] sm:$0x1] %v3257_v0  ;;  %25 = vst [vmem:[#allocation2 + $0x98] sm:$0x1] %v3257_v0  ;;  %v3407_v18 = vld [vmem:[%s4419_s0 + $0x48] sm:$0xff]  ;;  %v144_v23 = vld [vmem:[%s4419_s0 + $0x50] sm:$0xff]  ;;  %v162_v26 = vunpack.c.l.bf16 %v140_v16  ;;  %v163_v27 = vunpack.c.h.bf16 %v140_v16  ;;  %v166_v28 = vunpack.c.l.bf16 %v3402_v17  ;;  %v167_v29 = vunpack.c.h.bf16 %v3402_v17 }
   0x6   :  { %26 = vst [vmem:[#allocation2 + $0x320] sm:$0xff] %v3257_v0  ;;  %27 = vst [vmem:[#allocation2 + $0x150] sm:$0xff] %v3257_v0  ;;  %v145_v24 = vld [vmem:[%s4419_s0 + $0x58] sm:$0xff]  ;;  %v146_v25 = vld [vmem:[%s4419_s0 + $0x60] sm:$0xff]  ;;  %v168_v32 = vunpack.c.l.bf16 %v3407_v18  ;;  %v169_v33 = vunpack.c.h.bf16 %v3407_v18  ;;  %v170_v34 = vunpack.c.l.bf16 %v144_v23  ;;  %v171_v35 = vunpack.c.h.bf16 %v144_v23 }
   0x7   :  { %30 = vst [vmem:[#allocation2 + $0x2e0] sm:$0x1] %v3257_v0  ;;  %31 = vst [vmem:[#allocation2 + $0x388] sm:$0x1] %v3257_v0  ;;  %v147_v30 = vld [vmem:[%s4419_s0 + $0x68] sm:$0xff]  ;;  %v148_v31 = vld [vmem:[%s4419_s0 + $0x70] sm:$0xff]  ;;  %v172_v38 = vunpack.c.l.bf16 %v145_v24  ;;  %v173_v39 = vunpack.c.h.bf16 %v145_v24  ;;  %v174_v40 = vunpack.c.l.bf16 %v146_v25  ;;  %v175_v41 = vunpack.c.h.bf16 %v146_v25 }
   0x8   :  { %32 = vst [vmem:[#allocation2 + $0x338] sm:$0xff] %v3257_v0  ;;  %33 = vst [vmem:[#allocation2 + $0x340] sm:$0xff] %v3257_v0  ;;  %v141_v36 = vld [vmem:[%s4419_s0 + $0x38] sm:$0xff]  ;;  %v176_v42 = vunpack.c.l.bf16 %v147_v30  ;;  %v177_v43 = vunpack.c.h.bf16 %v147_v30  ;;  %v178_v44 = vunpack.c.l.bf16 %v148_v31  ;;  %v179_v45 = vunpack.c.h.bf16 %v148_v31  ;;  %v215_v50 = vld [vmem:[%s4420_s1] ss:$8 sm:$0x3] }
   0x9   :  { %36 = vst [vmem:[#allocation2 + $0x1b8] sm:$0x1] %v3257_v0  ;;  %37 = vst [vmem:[#allocation2 + $0x168] sm:$0x1] %v3257_v0  ;;  %v149_v37 = vld [vmem:[%s4419_s0 + $0x78] sm:$0xff]  ;;  %v164_v46 = vunpack.c.l.bf16 %v141_v36  ;;  %v165_v47 = vunpack.c.h.bf16 %v141_v36  ;;  %v282_v51 = vshrl.u32 %v281_v4, 7 }
   0xa   :  { %38 = vst [vmem:[#allocation2 + $0x2f0] sm:$0xff] %v3257_v0  ;;  %39 = vst [vmem:[#allocation2 + $0x288] sm:$0xff] %v3257_v0  ;;  %v180_v48 = vunpack.c.l.bf16 %v149_v37  ;;  %v181_v49 = vunpack.c.h.bf16 %v149_v37  ;;  %v3214_v52 = vld [vmem:[%s4420_s1 + $0x1] ss:$8 sm:$0x3] }
   0xb   :  { %42 = vst [vmem:[#allocation2 + $0x1b0] sm:$0x1] %v3257_v0  ;;  %43 = vst [vmem:[#allocation2 + $0x270] sm:$0x1] %v3257_v0  ;;  %v216_v53 = vld [vmem:[#allocation2 + $0x2b0] sm:$0x80] }
   0xc   :  { %44 = vst [vmem:[#allocation2 + $0xf0] sm:$0xff] %v3257_v0  ;;  %45 = vst [vmem:[#allocation2 + $0x8] sm:$0xff] %v3257_v0  ;;  %v3215_v54 = vld [vmem:[%s4420_s1 + $0x2] ss:$8 sm:$0x3]  ;;  %v3460_v55 = vsub.s32 0, %v282_v51 }
   0xd   :  { %48 = vst [vmem:[#allocation2 + $0x390] sm:$0x1] %v3257_v0  ;;  %49 = vst [vmem:[#allocation2 + $0x278] sm:$0x1] %v3257_v0  ;;  %v3462_v56 = vsub.s32 1, %v282_v51 }
   0xe   :  { %50 = vst [vmem:[#allocation2] sm:$0xff] %v3257_v0  ;;  %51 = vst [vmem:[#allocation2 + $0x290] sm:$0xff] %v3257_v0  ;;  %v3216_v57 = vld [vmem:[%s4420_s1 + $0x3] ss:$8 sm:$0x3]  ;;  %v3468_v61 = vrot.slane %v215_v50, %v3460_v55  ;;  %v3474_v63 = vrot.slane %v3214_v52, %v3460_v55  ;;  %v3480_v10 = vrot.slane %v3215_v54, %v3460_v55 }
   0xf   :  { %54 = vst [vmem:[#allocation2 + $0x1c0] sm:$0x1] %v3257_v0  ;;  %55 = vst [vmem:[#allocation2 + $0x90] sm:$0x1] %v3257_v0  ;;  %v217_v58 = vld [vmem:[#allocation2 + $0x3b0] sm:$0x80]  ;;  %v3471_v62 = vrot.slane %v215_v50, %v3462_v56  ;;  %v3483_v11 = vrot.slane %v3215_v54, %v3462_v56  ;;  %v3486_v16 = vrot.slane %v3216_v57, %v3460_v55 }
  0x10   :  { %56 = vst [vmem:[#allocation2 + $0x70] sm:$0xff] %v3257_v0  ;;  %57 = vst [vmem:[#allocation2 + $0x210] sm:$0xff] %v3257_v0  ;;  %v218_v59 = vld [vmem:[#allocation2 + $0xd8] sm:$0x7f]  ;;  %v660_v4 = vld [vmem:[#allocation2 + $0x50] sm:$0x1] }
  0x11   :  { %60 = vst [vmem:[#allocation2 + $0x1d8] sm:$0x1] %v3257_v0  ;;  %61 = vst [vmem:[#allocation2 + $0x260] sm:$0x1] %v3257_v0  ;;  %v219_v60 = vld [vmem:[#allocation2 + $0x18] sm:$0x7f] }
  0x12   :  { %62 = vst [vmem:[#allocation2 + $0x358] sm:$0xff] %v3257_v0  ;;  %63 = vst [vmem:[#allocation2 + $0x2c0] sm:$0xff] %v3257_v0  ;;  %v658_v1 = vld [vmem:[#allocation2 + $0xd8] sm:$0xfe]  ;;  %v661_v9 = vld [vmem:[#allocation2 + $0x368] sm:$0x1]  ;;  %v294_v23 = vmul.f32 %v3471_v62, %v219_v60 }
  0x13   :  { %66 = vst [vmem:[#allocation2 + $0x78] sm:$0x1] %v3257_v0  ;;  %67 = vst [vmem:[#allocation2 + $0x158] sm:$0x1] %v3257_v0  ;;  %v659_v2 = vld [vmem:[#allocation2 + $0x18] sm:$0xfe] }
  0x14   :  { %68 = vst [vmem:[#allocation2 + $0xa8] sm:$0xff] %v3257_v0  ;;  %69 = vst [vmem:[#allocation2 + $0x300] sm:$0xff] %v3257_v0  ;;  %v464_v24 = vmul.f32 0.0, %v3474_v63  ;;  %v3218_v51 = vld [vmem:[%s4420_s1 + $0x5] ss:$8 sm:$0x3] }
  0x15   :  { %70 = vst [vmem:[#allocation2 + $0xe8] sm:$0xff] %v3257_v0  ;;  %71 = vst [vmem:[#allocation2 + $0x20] sm:$0xff] %v3257_v0 }
  0x16   :  { %72 = vst [vmem:[#allocation2 + $0x40] sm:$0x1] %v3257_v0  ;;  %73 = vst [vmem:[#allocation2 + $0x1d0] sm:$0x1] %v3257_v0 }
  0x17   :  { %74 = vst [vmem:[#allocation2 + $0x2e8] sm:$0xff] %v3257_v0  ;;  %75 = vst [vmem:[#allocation2 + $0x1f0] sm:$0xff] %v3257_v0 }
  0x18   :  { %76 = vst [vmem:[#allocation2 + $0x38] sm:$0xff] %v3257_v0  ;;  %77 = vst [vmem:[#allocation2 + $0x2d0] sm:$0xff] %v3257_v0 }
  0x19   :  { %78 = vst [vmem:[#allocation2 + $0x30] sm:$0x1] %v3257_v0  ;;  %79 = vst [vmem:[#allocation2 + $0xc0] sm:$0x1] %v3257_v0 }
  0x1a   :  { %80 = vst [vmem:[#allocation2 + $0x228] sm:$0xff] %v3257_v0  ;;  %81 = vst [vmem:[#allocation2 + $0x170] sm:$0xff] %v3257_v0 }
  0x1b   :  { %84 = vst [vmem:[#allocation2 + $0x348] sm:$0x1] %v3257_v0  ;;  %85 = vst [vmem:[#allocation2 + $0x3a8] sm:$0x1] %v3257_v0 }
  0x1c   :  { %86 = vst [vmem:[#allocation2 + $0xf8] sm:$0xff] %v3257_v0  ;;  %87 = vst [vmem:[#allocation2 + $0x250] sm:$0xff] %v3257_v0 }
  0x1d   :  { %90 = vst [vmem:[#allocation2 + $0x2b8] sm:$0x1] %v3257_v0  ;;  %91 = vst [vmem:[#allocation2 + $0x128] sm:$0x1] %v3257_v0 }
  0x1e   :  { %92 = vst [vmem:[#allocation2 + $0xa0] sm:$0xff] %v3257_v0  ;;  %93 = vst [vmem:[#allocation2 + $0x3a0] sm:$0xff] %v3257_v0 }
  0x1f   :  { %96 = vst [vmem:[#allocation2 + $0x230] sm:$0x1] %v3257_v0  ;;  %97 = vst [vmem:[#allocation2 + $0x298] sm:$0x1] %v3257_v0 }
  0x20   :  { %98 = vst [vmem:[#allocation2 + $0x318] sm:$0xff] %v3257_v0  ;;  %99 = vst [vmem:[#allocation2 + $0x160] sm:$0xff] %v3257_v0 }
  0x21   :  { %102 = vst [vmem:[#allocation2 + $0x120] sm:$0x1] %v3257_v0  ;;  %103 = vst [vmem:[#allocation2 + $0x140] sm:$0x1] %v3257_v0 }
  0x22   :  { %104 = vst [vmem:[#allocation2 + $0x68] sm:$0xff] %v3257_v0  ;;  %105 = vst [vmem:[#allocation2 + $0xd0] sm:$0xff] %v3257_v0 }
  0x23   :  { %108 = vst [vmem:[#allocation2 + $0x258] sm:$0x1] %v3257_v0  ;;  %109 = vst [vmem:[#allocation2 + $0x220] sm:$0x1] %v3257_v0 }
  0x24   :  { %110 = vst [vmem:[#allocation2 + $0x2a0] sm:$0xff] %v3257_v0  ;;  %111 = vst [vmem:[#allocation2 + $0x1a0] sm:$0xff] %v3257_v0 }
  0x25   :  { %114 = vst [vmem:[#allocation2 + $0x1e0] sm:$0x1] %v3257_v0  ;;  %115 = vst [vmem:[#allocation2 + $0x100] sm:$0x1] %v3257_v0 }
  0x26   :  { %116 = vst [vmem:[#allocation2 + $0x10] sm:$0xff] %v3257_v0  ;;  %117 = vst [vmem:[#allocation2 + $0x268] sm:$0xff] %v3257_v0 }
  0x27   :  { %120 = vst [vmem:[#allocation2 + $0x1f8] sm:$0x1] %v3257_v0  ;;  %121 = vst [vmem:[#allocation2 + $0x218] sm:$0x1] %v3257_v0 }
  0x28   :  { %122 = vst [vmem:[#allocation2 + $0x198] sm:$0xff] %v3257_v0  ;;  %123 = vst [vmem:[#allocation2 + $0x2a8] sm:$0xff] %v3257_v0 }
  0x29   :  { %126 = vst [vmem:[#allocation2 + $0x240] sm:$0x1] %v3257_v0  ;;  %127 = vst [vmem:[#allocation2 + $0x178] sm:$0x1] %v3257_v0 }
  0x2a   :  { %128 = vst [vmem:[#allocation2 + $0xb0] sm:$0xff] %v3257_v0  ;;  %129 = vst [vmem:[#allocation2 + $0x398] sm:$0xff] %v3257_v0 }
  0x2b   :  { %130 = vst [vmem:[#allocation2 + $0x2d8] sm:$0xff] %v3257_v0  ;;  %131 = vst [vmem:[#allocation2 + $0x1c8] sm:$0xff] %v3257_v0 }
  0x2c   :  { %132 = vst [vmem:[#allocation2 + $0x2c8] sm:$0x1] %v3257_v0  ;;  %133 = vst [vmem:[#allocation2 + $0x310] sm:$0x1] %v3257_v0  ;;  %v3477_v0 = vrot.slane %v3214_v52, %v3462_v56 }
  0x2d   :  { %183 = vst [vmem:[#allocation2 + $0x380] sm:$0xff] %v3377_v5  ;;  %184 = vst [vmem:[#allocation2 + $0x110] sm:$0xff] %v3379_v6 }
  0x2e   :  { %185 = vst [vmem:[#allocation2 + $0x108] sm:$0xff] %v3381_v7  ;;  %186 = vst [vmem:[#allocation2 + $0x60] sm:$0xff] %v3383_v8  ;;  %v465_v25 = vmul.f32 0.0, %v3477_v0 }
  0x2f   :  { %187 = vst [vmem:[#allocation2 + $0x80] sm:$0xff] %v154_v12  ;;  %188 = vst [vmem:[#allocation2 + $0x1a8] sm:$0xff] %v155_v13 }
  0x30   :  { %189 = vst [vmem:[#allocation2 + $0x360] sm:$0xff] %v156_v14  ;;  %190 = vst [vmem:[#allocation2 + $0x130] sm:$0xff] %v157_v15  ;;  %v1088_v14 = vld [vmem:[#allocation2 + $0x330] sm:$0x80]  ;;  %v1089_v15 = vld [vmem:[#allocation2 + $0x48] sm:$0x80] }
  0x31   :  { %191 = vst [vmem:[#allocation2 + $0x148] sm:$0xff] %v158_v19  ;;  %192 = vst [vmem:[#allocation2 + $0x200] sm:$0xff] %v159_v20  ;;  %v3489_v19 = vrot.slane %v3216_v57, %v3462_v56  ;;  %v291_v20 = vmul.f32 %v3468_v61, %v216_v53  ;;  %v1163_v36 = vmul.f32 %v3486_v16, %v1088_v14 }
  0x32   :  { %193 = vst [vmem:[#allocation2 + $0x188] sm:$0xff] %v160_v21  ;;  %194 = vst [vmem:[#allocation2 + $0xe0] sm:$0xff] %v161_v22  ;;  %v292_v21 = vmul.f32 %v3471_v62, %v217_v58  ;;  %v293_v22 = vmul.f32 %v3468_v61, %v218_v59 }
  0x33   :  { %195 = vst [vmem:[#allocation2 + $0x308] sm:$0xff] %v162_v26  ;;  %196 = vst [vmem:[#allocation2 + $0x370] sm:$0xff] %v163_v27  ;;  %v733_v26 = vmul.f32 %v3480_v10, %v658_v1  ;;  %v734_v27 = vmul.f32 %v3483_v11, %v659_v2  ;;  %v1164_v37 = vmul.f32 %v3489_v19, %v1089_v15 }
  0x34   :  { %199 = vst [vmem:[#allocation2 + $0x280] sm:$0xff] %v166_v28  ;;  %200 = vst [vmem:[#allocation2 + $0x138] sm:$0xff] %v167_v29  ;;  %v1090_v30 = vld [vmem:[#allocation2 + $0x380] sm:$0x7f]  ;;  %v1091_v31 = vld [vmem:[#allocation2 + $0x110] sm:$0x7f] }
  0x35   :  { %201 = vst [vmem:[#allocation2 + $0xb8] sm:$0xff] %v168_v32  ;;  %202 = vst [vmem:[#allocation2 + $0x1e8] sm:$0xff] %v169_v33  ;;  %v1530_v2 = vld [vmem:[#allocation2 + $0x380] sm:$0xfe] }
  0x36   :  { %203 = vst [vmem:[#allocation2 + $0x2f8] sm:$0xff] %v170_v34  ;;  %204 = vst [vmem:[#allocation2 + $0x350] sm:$0xff] %v171_v35  ;;  %v735_v34 = vmul.f32 %v3480_v10, %v660_v4  ;;  %v736_v35 = vmul.f32 %v3483_v11, %v661_v9  ;;  %v1531_v4 = vld [vmem:[#allocation2 + $0x110] sm:$0xfe]  ;;  %v1532_v9 = vld [vmem:[#allocation2 + $0x118] sm:$0x1] }
  0x37   :  { %205 = vst [vmem:[#allocation2 + $0x88] sm:$0xff] %v172_v38  ;;  %206 = vst [vmem:[#allocation2 + $0x28] sm:$0xff] %v173_v39  ;;  %v3217_v38 = vld [vmem:[%s4420_s1 + $0x4] ss:$8 sm:$0x3]  ;;  %v3506_v39 = vrot.slane %v464_v24, 1 }
  0x38   :  { %207 = vst [vmem:[#allocation2 + $0x180] sm:$0xff] %v174_v40  ;;  %208 = vst [vmem:[#allocation2 + $0x378] sm:$0xff] %v175_v41  ;;  %v3508_v40 = vrot.slane %v465_v25, 1  ;;  %v862_v41 = vrot.slane %v733_v26, 2  ;;  %v3522_v54 = vrot.slane %v3217_v38, %v3460_v55  ;;  %v3525_v57 = vrot.slane %v3217_v38, %v3462_v56  ;;  %v1960_v38 = vld [vmem:[#allocation2 + $0x320] sm:$0x80] }
  0x39   :  { %209 = vst [vmem:[#allocation2 + $0x58] sm:$0xff] %v176_v42  ;;  %210 = vst [vmem:[#allocation2 + $0x208] sm:$0xff] %v177_v43  ;;  %v863_v42 = vrot.slane %v734_v27, 2  ;;  %v864_v43 = vrot.slane %v735_v34, 2 }
  0x3a   :  { %211 = vst [vmem:[#allocation2 + $0x248] sm:$0xff] %v178_v44  ;;  %212 = vst [vmem:[#allocation2 + $0x190] sm:$0xff] %v179_v45  ;;  %v866_v44 = vrot.slane %v736_v35, 2  ;;  %v1165_v45 = vmul.f32 %v3486_v16, %v1090_v30  ;;  %v595_v50 = vadd.f32 %v3508_v40, %v294_v23  ;;  %v1336_v14 = vmul.f32 %v3522_v54, %v3377_v5  ;;  %v3219_v23 = vld [vmem:[%s4420_s1 + $0x6] ss:$8 sm:$0x3] }
  0x3b   :  { %197 = vst [vmem:[#allocation2 + $0x328] sm:$0xff] %v164_v46  ;;  %198 = vst [vmem:[#allocation2 + $0x238] sm:$0xff] %v165_v47  ;;  %v1166_v46 = vmul.f32 %v3489_v19, %v1091_v31  ;;  %v592_v47 = vadd.f32 %v3506_v39, %v291_v20  ;;  %v865_v52 = vsel %vm861_vm0, %v862_v41, %v864_v43  ;;  %v1533_v20 = vld [vmem:[#allocation2 + $0x98] sm:$0x1]  ;;  %v1961_v43 = vld [vmem:[#allocation2 + $0x150] sm:$0x80] }
  0x3c   :  { %213 = vst [vmem:[#allocation2 + $0xc8] sm:$0xff] %v180_v48  ;;  %214 = vst [vmem:[#allocation2 + $0x3b8] sm:$0xff] %v181_v49  ;;  %v593_v48 = vadd.f32 %v3508_v40, %v292_v21  ;;  %v594_v49 = vadd.f32 %v3506_v39, %v293_v22  ;;  %v867_v53 = vsel %vm861_vm0, %v863_v42, %v866_v44  ;;  %v1400_v30 = vrot.slane %v1336_v14, 1  ;;  %v1962_v44 = vld [vmem:[#allocation2 + $0x108] sm:$0x7f] }
  0x3d   :  { %v1022_v58 = vadd.f32 %v862_v41, %v592_v47  ;;  %v1025_v1 = vadd.f32 %v867_v53, %v595_v50  ;;  %v1337_v15 = vmul.f32 %v3525_v57, %v3379_v6  ;;  %v3532_v21 = vrot.slane %v3218_v51, %v3460_v55  ;;  %v1963_v47 = vld [vmem:[#allocation2 + $0x60] sm:$0x7f]  ;;  %v3220_v50 = vld [vmem:[%s4420_s1 + $0x7] ss:$8 sm:$0x3] }
  0x3e   :  { %v1023_v59 = vadd.f32 %v863_v42, %v593_v48  ;;  %v1024_v60 = vadd.f32 %v865_v52, %v594_v49  ;;  %v3535_v22 = vrot.slane %v3218_v51, %v3462_v56  ;;  %v3545_v48 = vrot.slane %v3219_v23, %v3460_v55 }
  0x3f   :  { %v1227_v24 = vadd.f32 %v1163_v36, %v1022_v58  ;;  %v1230_v27 = vadd.f32 %v1166_v46, %v1025_v1  ;;  %v1401_v31 = vrot.slane %v1337_v15, 1  ;;  %v1605_v34 = vmul.f32 %v3532_v21, %v1530_v2 }
  0x40   :  { %v1228_v25 = vadd.f32 %v1164_v37, %v1023_v59  ;;  %v1229_v26 = vadd.f32 %v1165_v45, %v1024_v60  ;;  %v1606_v35 = vmul.f32 %v3535_v22, %v1531_v4  ;;  %v1607_v41 = vmul.f32 %v3532_v21, %v1532_v9  ;;  %v3221_v4 = vld [vmem:[%s4420_s1 + $0x10] ss:$8 sm:$0x3] }
  0x41   :  { %v1608_v42 = vmul.f32 %v3535_v22, %v1533_v20  ;;  %v3548_v36 = vrot.slane %v3219_v23, %v3462_v56  ;;  %v1464_v37 = vadd.f32 %v1400_v30, %v1227_v24  ;;  %v1467_v49 = vadd.f32 %v1401_v31, %v1230_v27  ;;  %v2402_v23 = vld [vmem:[#allocation2 + $0x108] sm:$0xfe] }
  0x42   :  { %v1465_v45 = vadd.f32 %v1401_v31, %v1228_v25  ;;  %v1466_v46 = vadd.f32 %v1400_v30, %v1229_v26  ;;  %v1733_v51 = vrot.slane %v1605_v34, 2  ;;  %v1734_v52 = vrot.slane %v1606_v35, 2  ;;  %v2403_v30 = vld [vmem:[#allocation2 + $0x60] sm:$0xfe]  ;;  %v2404_v31 = vld [vmem:[#allocation2 + $0x2e0] sm:$0x1] }
  0x43   :  { %v1735_v53 = vrot.slane %v1607_v41, 2  ;;  %v1737_v58 = vrot.slane %v1608_v42, 2  ;;  %v2035_v59 = vmul.f32 %v3545_v48, %v1960_v38  ;;  %v2036_v60 = vmul.f32 %v3548_v36, %v1961_v43  ;;  %v2405_v34 = vld [vmem:[#allocation2 + $0x388] sm:$0x1]  ;;  %v2829_v43 = vld [vmem:[%s4421_s2] sm:$0x3] }
  0x44   :  { %v2037_v1 = vmul.f32 %v3545_v48, %v1962_v44  ;;  %v2038_v2 = vmul.f32 %v3548_v36, %v1963_v47  ;;  %v1893_v15 = vadd.f32 %v1733_v51, %v1464_v37  ;;  %v1894_v20 = vadd.f32 %v1734_v52, %v1465_v45 }
  0x45   :  { %v1736_v9 = vsel %vm861_vm0, %v1733_v51, %v1735_v53  ;;  %v1738_v14 = vsel %vm861_vm0, %v1734_v52, %v1737_v58  ;;  %v3563_v26 = vrot.slane %v3220_v50, %v3460_v55  ;;  %v3566_v27 = vrot.slane %v3220_v50, %v3462_v56 }
  0x46   :  { %v1895_v24 = vadd.f32 %v1736_v9, %v1466_v46  ;;  %v1896_v25 = vadd.f32 %v1738_v14, %v1467_v49  ;;  %v2099_v35 = vadd.f32 %v2035_v59, %v1893_v15  ;;  %v2100_v38 = vadd.f32 %v2036_v60, %v1894_v20  ;;  %v248_v60 = vld [vmem:[#allocation2 + $0x2e8] sm:$0x80] }
  0x47   :  { %v3569_v41 = vrot.slane %v3221_v4, %v3460_v55  ;;  %v3572_v42 = vrot.slane %v3221_v4, %v3462_v56  ;;  %v2208_v37 = vmul.f32 %v3563_v26, %v3381_v7  ;;  %v2209_v45 = vmul.f32 %v3566_v27, %v3383_v8 }
  0x48   :  { %v2101_v44 = vadd.f32 %v2037_v1, %v1895_v24  ;;  %v2102_v47 = vadd.f32 %v2038_v2, %v1896_v25  ;;  %v3586_v58 = vrot.slane %v2829_v43, %v3460_v55  ;;  %v3589_v59 = vrot.slane %v2829_v43, %v3462_v56  ;;  %v249_v1 = vld [vmem:[#allocation2 + $0x1f0] sm:$0x80]  ;;  %v250_v25 = vld [vmem:[#allocation2 + $0x38] sm:$0x7f] }
  0x49   :  { %v2477_v46 = vmul.f32 %v3569_v41, %v2402_v23  ;;  %v2478_v49 = vmul.f32 %v3572_v42, %v2403_v30  ;;  %v2479_v50 = vmul.f32 %v3569_v41, %v2404_v31  ;;  %v2480_v51 = vmul.f32 %v3572_v42, %v2405_v34  ;;  %v251_v30 = vld [vmem:[#allocation2 + $0x2d0] sm:$0x7f] }
  0x4a   :  { %v2272_v52 = vrot.slane %v2208_v37, 1  ;;  %v2273_v53 = vrot.slane %v2209_v45, 1  ;;  %v323_v34 = vmul.f32 %v3468_v61, %v248_v60  ;;  %v324_v56 = vmul.f32 %v3471_v62, %v249_v1  ;;  %v692_v1 = vld [vmem:[#allocation2 + $0x30] sm:$0x1] }
  0x4b   :  { %v2605_v2 = vrot.slane %v2477_v46, 2  ;;  %v2606_v4 = vrot.slane %v2478_v49, 2  ;;  %v2607_v9 = vrot.slane %v2479_v50, 2  ;;  %v2609_v14 = vrot.slane %v2480_v51, 2  ;;  %v690_v49 = vld [vmem:[#allocation2 + $0x38] sm:$0xfe] }
  0x4c   :  { %v2336_v15 = vadd.f32 %v2272_v52, %v2099_v35  ;;  %v2337_v20 = vadd.f32 %v2273_v53, %v2100_v38  ;;  %v2338_v23 = vadd.f32 %v2272_v52, %v2101_v44  ;;  %v2339_v24 = vadd.f32 %v2273_v53, %v2102_v47  ;;  %v691_v50 = vld [vmem:[#allocation2 + $0x2d0] sm:$0xfe] }
  0x4d   :  { %v2608_v31 = vsel %vm861_vm0, %v2605_v2, %v2607_v9  ;;  %v2610_v55 = vsel %vm861_vm0, %v2606_v4, %v2609_v14  ;;  %v325_v35 = vmul.f32 %v3468_v61, %v250_v25  ;;  %v326_v38 = vmul.f32 %v3471_v62, %v251_v30 }
  0x4e   :  { %v2765_v43 = vadd.f32 %v2605_v2, %v2336_v15  ;;  %v2766_v37 = vadd.f32 %v2606_v4, %v2337_v20  ;;  %v2767_v45 = vadd.f32 %v2608_v31, %v2338_v23  ;;  %v2768_v46 = vadd.f32 %v2610_v55, %v2339_v24  ;;  %v693_v2 = vld [vmem:[#allocation2 + $0xc0] sm:$0x1]  ;;  %v1120_v20 = vld [vmem:[#allocation2 + $0x228] sm:$0x80]  ;;  %v1121_v23 = vld [vmem:[#allocation2 + $0x170] sm:$0x80] }
  0x4f   :  { %v624_v44 = vadd.f32 %v3506_v39, %v323_v34  ;;  %v625_v47 = vadd.f32 %v3508_v40, %v324_v56  ;;  %v626_v4 = vadd.f32 %v3506_v39, %v325_v35  ;;  %v627_v9 = vadd.f32 %v3508_v40, %v326_v38  ;;  %v1123_v39 = vld [vmem:[#allocation2 + $0x138] sm:$0x7f] }
  0x50   :  { %v2841_v51 = vadd.f32 %v3586_v58, %v2765_v43  ;;  %v2842_v52 = vadd.f32 %v3589_v59, %v2766_v37  ;;  %v2843_v53 = vadd.f32 %v3586_v58, %v2767_v45  ;;  %v2844_v60 = vadd.f32 %v3589_v59, %v2768_v46  ;;  %v1122_v37 = vld [vmem:[#allocation2 + $0x280] sm:$0x7f] }
  0x51   :  { %v765_v14 = vmul.f32 %v3480_v10, %v690_v49  ;;  %v766_v15 = vmul.f32 %v3483_v11, %v691_v50  ;;  %v767_v55 = vmul.f32 %v3480_v10, %v692_v1  ;;  %v768_v34 = vmul.f32 %v3483_v11, %v693_v2  ;;  %v1562_v2 = vld [vmem:[#allocation2 + $0x280] sm:$0xfe] }
  0x52   :  { %v2970_v24 = vrot.slane %v2841_v51, 7  ;;  %v2971_v25 = vrot.slane %v2843_v53, 7  ;;  %v2973_v30 = vrot.slane %v2842_v52, 7  ;;  %v2974_v31 = vrot.slane %v2844_v60, 7 }
  0x53   :  { %v910_v56 = vrot.slane %v765_v14, 2  ;;  %v911_v43 = vrot.slane %v766_v15, 2  ;;  %v1195_v46 = vmul.f32 %v3486_v16, %v1120_v20  ;;  %v1196_v49 = vmul.f32 %v3489_v19, %v1121_v23  ;;  %v1563_v14 = vld [vmem:[#allocation2 + $0x138] sm:$0xfe]  ;;  %v1564_v15 = vld [vmem:[#allocation2 + $0x348] sm:$0x1] }
  0x54   :  { %v2972_v40 = vsel %vm2969_vm1, %v2970_v24, %v2971_v25  ;;  %v2975_v45 = vsel %vm2969_vm1, %v2973_v30, %v2974_v31  ;;  %v912_v35 = vrot.slane %v767_v55, 2  ;;  %v914_v38 = vrot.slane %v768_v34, 2  ;;  %v1565_v24 = vld [vmem:[#allocation2 + $0x3a8] sm:$0x1] }
  0x55   :  { %v3238_v50 = vpack.c.bf16 %v2975_v45, %v2972_v40  ;;  %v1054_v51 = vadd.f32 %v910_v56, %v624_v44  ;;  %v1055_v52 = vadd.f32 %v911_v43, %v625_v47  ;;  %v1197_v53 = vmul.f32 %v3486_v16, %v1122_v37 }
  0x56   :  { %v1198_v60 = vmul.f32 %v3489_v19, %v1123_v39  ;;  %v1352_v1 = vmul.f32 %v3522_v54, %v166_v28  ;;  %v913_v20 = vsel %vm861_vm0, %v910_v56, %v912_v35  ;;  %v915_v44 = vsel %vm861_vm0, %v911_v43, %v914_v38  ;;  %v1992_v56 = vld [vmem:[#allocation2 + $0xf8] sm:$0x80]  ;;  %v1995_v35 = vld [vmem:[#allocation2 + $0x1e8] sm:$0x7f] }
  0x57   :  { %3194 = vst [vmem:[%s4422_s3] sm:$0xff] %v3238_v50  ;;  %v1259_v47 = vadd.f32 %v1195_v46, %v1054_v51  ;;  %v1353_v23 = vmul.f32 %v3525_v57, %v167_v29  ;;  %v1056_v25 = vadd.f32 %v913_v20, %v626_v4  ;;  %v1057_v30 = vadd.f32 %v915_v44, %v627_v9  ;;  %v1993_v46 = vld [vmem:[#allocation2 + $0x250] sm:$0x80]  ;;  %v1994_v29 = vld [vmem:[#allocation2 + $0xb8] sm:$0x7f]  ;;  %v2435_v20 = vld [vmem:[#allocation2 + $0x1e8] sm:$0xfe] }
  0x58   :  { %v1260_v28 = vadd.f32 %v1196_v49, %v1055_v52  ;;  %v1416_v31 = vrot.slane %v1352_v1, 1  ;;  %v1637_v34 = vmul.f32 %v3532_v21, %v1562_v2  ;;  %v1638_v37 = vmul.f32 %v3535_v22, %v1563_v14 }
  0x59   :  { %v1417_v55 = vrot.slane %v1353_v23, 1  ;;  %v1639_v39 = vmul.f32 %v3532_v21, %v1564_v15  ;;  %v1261_v40 = vadd.f32 %v1197_v53, %v1056_v25  ;;  %v1262_v43 = vadd.f32 %v1198_v60, %v1057_v30  ;;  %v2434_v15 = vld [vmem:[#allocation2 + $0xb8] sm:$0xfe]  ;;  %v2436_v25 = vld [vmem:[#allocation2 + $0x2b8] sm:$0x1] }
  0x5a   :  { %v1496_v45 = vadd.f32 %v1416_v31, %v1259_v47  ;;  %v1640_v17 = vmul.f32 %v3535_v22, %v1565_v24  ;;  %v1781_v4 = vrot.slane %v1637_v34, 2  ;;  %v1782_v9 = vrot.slane %v1638_v37, 2  ;;  %v2437_v30 = vld [vmem:[#allocation2 + $0x128] sm:$0x1]  ;;  %v220_v37 = vld [vmem:[#allocation2 + $0x330] sm:$0x80] }
  0x5b   :  { %v1497_v50 = vadd.f32 %v1417_v55, %v1260_v28  ;;  %v1783_v49 = vrot.slane %v1639_v39, 2  ;;  %v1498_v38 = vadd.f32 %v1416_v31, %v1261_v40  ;;  %v1499_v51 = vadd.f32 %v1417_v55, %v1262_v43 }
  0x5c   :  { %v1785_v52 = vrot.slane %v1640_v17, 2  ;;  %v2067_v1 = vmul.f32 %v3545_v48, %v1992_v56  ;;  %v1925_v14 = vadd.f32 %v1781_v4, %v1496_v45  ;;  %v2068_v60 = vmul.f32 %v3548_v36, %v1993_v46 }
  0x5d   :  { %v1784_v2 = vsel %vm861_vm0, %v1781_v4, %v1783_v49  ;;  %v1926_v53 = vadd.f32 %v1782_v9, %v1497_v50  ;;  %v2069_v23 = vmul.f32 %v3545_v48, %v1994_v29  ;;  %v2070_v24 = vmul.f32 %v3548_v36, %v1995_v35  ;;  %v221_v50 = vld [vmem:[#allocation2 + $0x48] sm:$0x80]  ;;  %v222_v4 = vld [vmem:[#allocation2 + $0x380] sm:$0x7f]  ;;  %v223_v35 = vld [vmem:[#allocation2 + $0x110] sm:$0x7f] }
  0x5e   :  { %v1786_v44 = vsel %vm861_vm0, %v1782_v9, %v1785_v52  ;;  %v1927_v47 = vadd.f32 %v1784_v2, %v1498_v38  ;;  %v2131_v31 = vadd.f32 %v2067_v1, %v1925_v14  ;;  %v2224_v34 = vmul.f32 %v3563_v26, %v168_v32 }
  0x5f   :  { %v1928_v28 = vadd.f32 %v1786_v44, %v1499_v51  ;;  %v2132_v55 = vadd.f32 %v2068_v60, %v1926_v53  ;;  %v2225_v56 = vmul.f32 %v3566_v27, %v169_v33  ;;  %v2509_v40 = vmul.f32 %v3569_v41, %v2434_v15  ;;  %v662_v60 = vld [vmem:[#allocation2 + $0x380] sm:$0xfe]  ;;  %v663_v15 = vld [vmem:[#allocation2 + $0x110] sm:$0xfe] }
  0x60   :  { %v2133_v39 = vadd.f32 %v2069_v23, %v1927_v47  ;;  %v2510_v43 = vmul.f32 %v3572_v42, %v2435_v20  ;;  %v2288_v17 = vrot.slane %v2224_v34, 1  ;;  %v2511_v46 = vmul.f32 %v3569_v41, %v2436_v25 }
  0x61   :  { %v2134_v45 = vadd.f32 %v2070_v24, %v1928_v28  ;;  %v2512_v29 = vmul.f32 %v3572_v42, %v2437_v30  ;;  %v2289_v9 = vrot.slane %v2225_v56, 1  ;;  %v2653_v32 = vrot.slane %v2509_v40, 2 }
  0x62   :  { %v2654_v49 = vrot.slane %v2510_v43, 2  ;;  %v295_v18 = vmul.f32 %v3468_v61, %v220_v37  ;;  %v2368_v38 = vadd.f32 %v2288_v17, %v2131_v31  ;;  %v2370_v33 = vadd.f32 %v2288_v17, %v2133_v39  ;;  %v664_v31 = vld [vmem:[#allocation2 + $0x118] sm:$0x1] }
  0x63   :  { %v2655_v51 = vrot.slane %v2511_v46, 2  ;;  %v2657_v52 = vrot.slane %v2512_v29, 2  ;;  %v2369_v1 = vadd.f32 %v2289_v9, %v2132_v55  ;;  %v2371_v2 = vadd.f32 %v2289_v9, %v2134_v45  ;;  %v665_v55 = vld [vmem:[#allocation2 + $0x98] sm:$0x1] }
  0x64   :  { %v296_v14 = vmul.f32 %v3471_v62, %v221_v50  ;;  %v297_v53 = vmul.f32 %v3468_v61, %v222_v4  ;;  %v2797_v47 = vadd.f32 %v2653_v32, %v2368_v38  ;;  %v298_v23 = vmul.f32 %v3471_v62, %v223_v35 }
  0x65   :  { %v2656_v20 = vsel %vm861_vm0, %v2653_v32, %v2655_v51  ;;  %v2658_v44 = vsel %vm861_vm0, %v2654_v49, %v2657_v52  ;;  %v2798_v24 = vadd.f32 %v2654_v49, %v2369_v1  ;;  %v466_v28 = vmul.f32 %v3474_v63, %v3377_v5  ;;  %v1092_v49 = vld [vmem:[#allocation2 + $0x320] sm:$0x80]  ;;  %v1093_v52 = vld [vmem:[#allocation2 + $0x150] sm:$0x80]  ;;  %v1094_v1 = vld [vmem:[#allocation2 + $0x108] sm:$0x7f] }
  0x66   :  { %v2799_v25 = vadd.f32 %v2656_v20, %v2370_v33  ;;  %v2800_v30 = vadd.f32 %v2658_v44, %v2371_v2  ;;  %v2873_v34 = vadd.f32 %v3586_v58, %v2797_v47  ;;  %v467_v37 = vmul.f32 %v3477_v0, %v3379_v6  ;;  %v1095_v44 = vld [vmem:[#allocation2 + $0x60] sm:$0x7f] }
  0x67   :  { %v737_v39 = vmul.f32 %v3480_v10, %v662_v60  ;;  %v738_v56 = vmul.f32 %v3483_v11, %v663_v15  ;;  %v2874_v40 = vadd.f32 %v3589_v59, %v2798_v24  ;;  %v530_v17 = vrot.slane %v466_v28, 1  ;;  %v1534_v28 = vld [vmem:[#allocation2 + $0x108] sm:$0xfe] }
  0x68   :  { %v2875_v43 = vadd.f32 %v3586_v58, %v2799_v25  ;;  %v2876_v45 = vadd.f32 %v3589_v59, %v2800_v30  ;;  %v3018_v46 = vrot.slane %v2873_v34, 7  ;;  %v531_v5 = vrot.slane %v467_v37, 1 }
  0x69   :  { %v739_v29 = vmul.f32 %v3480_v10, %v664_v31  ;;  %v740_v50 = vmul.f32 %v3483_v11, %v665_v55  ;;  %v3021_v9 = vrot.slane %v2874_v40, 7  ;;  %v596_v32 = vadd.f32 %v530_v17, %v295_v18  ;;  %v1535_v31 = vld [vmem:[#allocation2 + $0x60] sm:$0xfe]  ;;  %v1536_v55 = vld [vmem:[#allocation2 + $0x2e0] sm:$0x1] }
  0x6a   :  { %v3019_v4 = vrot.slane %v2875_v43, 7  ;;  %v3022_v6 = vrot.slane %v2876_v45, 7  ;;  %v597_v35 = vadd.f32 %v531_v5, %v296_v14  ;;  %v598_v38 = vadd.f32 %v530_v17, %v297_v53  ;;  %v1537_v40 = vld [vmem:[#allocation2 + $0x388] sm:$0x1] }
  0x6b   :  { %v599_v33 = vadd.f32 %v531_v5, %v298_v23  ;;  %v868_v51 = vrot.slane %v737_v39, 2  ;;  %v869_v15 = vrot.slane %v738_v56, 2  ;;  %v870_v20 = vrot.slane %v739_v29, 2  ;;  %v1964_v5 = vld [vmem:[#allocation2 + $0x338] sm:$0x80] }
  0x6c   :  { %v3020_v2 = vsel %vm2969_vm1, %v3018_v46, %v3019_v4  ;;  %v3023_v60 = vsel %vm2969_vm1, %v3021_v9, %v3022_v6  ;;  %v872_v24 = vrot.slane %v740_v50, 2  ;;  %v1167_v30 = vmul.f32 %v3486_v16, %v1092_v49 }
  0x6d   :  { %v3246_v47 = vpack.c.bf16 %v3023_v60, %v3020_v2  ;;  %v1026_v25 = vadd.f32 %v868_v51, %v596_v32  ;;  %v871_v18 = vsel %vm861_vm0, %v868_v51, %v870_v20  ;;  %v1027_v14 = vadd.f32 %v869_v15, %v597_v35  ;;  %v1967_v2 = vld [vmem:[#allocation2 + $0x1a8] sm:$0x7f] }
  0x6e   :  { %v1168_v53 = vmul.f32 %v3489_v19, %v1093_v52  ;;  %v1169_v23 = vmul.f32 %v3486_v16, %v1094_v1  ;;  %v873_v34 = vsel %vm861_vm0, %v869_v15, %v872_v24  ;;  %v1028_v37 = vadd.f32 %v871_v18, %v598_v38  ;;  %v1965_v38 = vld [vmem:[#allocation2 + $0x340] sm:$0x80] }
  0x6f   :  { %3202 = vst [vmem:[%s4422_s3 + $0x40] sm:$0xff] %v3246_v47  ;;  %v1170_v39 = vmul.f32 %v3489_v19, %v1095_v44  ;;  %v1231_v56 = vadd.f32 %v1167_v30, %v1026_v25  ;;  %v1029_v43 = vadd.f32 %v873_v34, %v599_v33  ;;  %v1338_v17 = vmul.f32 %v3522_v54, %v3381_v7  ;;  %v1966_v33 = vld [vmem:[#allocation2 + $0x80] sm:$0x7f]  ;;  %v2408_v34 = vld [vmem:[#allocation2 + $0x1b8] sm:$0x1] }
  0x70   :  { %v1232_v45 = vadd.f32 %v1168_v53, %v1027_v14  ;;  %v1339_v46 = vmul.f32 %v3525_v57, %v3383_v8  ;;  %v1233_v29 = vadd.f32 %v1169_v23, %v1028_v37  ;;  %v1609_v50 = vmul.f32 %v3532_v21, %v1534_v28  ;;  %v2406_v24 = vld [vmem:[#allocation2 + $0x80] sm:$0xfe] }
  0x71   :  { %v1610_v4 = vmul.f32 %v3535_v22, %v1535_v31  ;;  %v1611_v9 = vmul.f32 %v3532_v21, %v1536_v55  ;;  %v1234_v6 = vadd.f32 %v1170_v39, %v1029_v43  ;;  %v1402_v32 = vrot.slane %v1338_v17, 1  ;;  %v2407_v55 = vld [vmem:[#allocation2 + $0x1a8] sm:$0xfe] }
  0x72   :  { %v1403_v49 = vrot.slane %v1339_v46, 1  ;;  %v1612_v35 = vmul.f32 %v3535_v22, %v1537_v40  ;;  %v1739_v51 = vrot.slane %v1609_v50, 2  ;;  %v2039_v60 = vmul.f32 %v3545_v48, %v1964_v5  ;;  %v2409_v40 = vld [vmem:[#allocation2 + $0x168] sm:$0x1] }
  0x73   :  { %v1740_v52 = vrot.slane %v1610_v4, 2  ;;  %v1741_v1 = vrot.slane %v1611_v9, 2  ;;  %v1468_v15 = vadd.f32 %v1402_v32, %v1231_v56  ;;  %v1470_v44 = vadd.f32 %v1402_v32, %v1233_v29  ;;  %v225_v32 = vld [vmem:[#allocation2 + $0x150] sm:$0x80] }
  0x74   :  { %v1469_v20 = vadd.f32 %v1403_v49, %v1232_v45  ;;  %v1471_v47 = vadd.f32 %v1403_v49, %v1234_v6  ;;  %v1743_v30 = vrot.slane %v1612_v35, 2  ;;  %v2040_v18 = vmul.f32 %v3548_v36, %v1965_v38  ;;  %v224_v45 = vld [vmem:[#allocation2 + $0x320] sm:$0x80]  ;;  %v227_v35 = vld [vmem:[#allocation2 + $0x60] sm:$0x7f] }
  0x75   :  { %v1742_v25 = vsel %vm861_vm0, %v1739_v51, %v1741_v1  ;;  %v2041_v14 = vmul.f32 %v3545_v48, %v1966_v33  ;;  %v1897_v53 = vadd.f32 %v1739_v51, %v1468_v15  ;;  %v2042_v31 = vmul.f32 %v3548_v36, %v1967_v2 }
  0x76   :  { %v1898_v23 = vadd.f32 %v1740_v52, %v1469_v20  ;;  %v1899_v28 = vadd.f32 %v1742_v25, %v1470_v44  ;;  %v1744_v37 = vsel %vm861_vm0, %v1740_v52, %v1743_v30  ;;  %v2210_v39 = vmul.f32 %v3563_v26, %v154_v12  ;;  %v666_v30 = vld [vmem:[#allocation2 + $0x108] sm:$0xfe] }
  0x77   :  { %v2211_v56 = vmul.f32 %v3566_v27, %v155_v13  ;;  %v2481_v43 = vmul.f32 %v3569_v41, %v2406_v24  ;;  %v1900_v17 = vadd.f32 %v1744_v37, %v1471_v47  ;;  %v2103_v46 = vadd.f32 %v2039_v60, %v1897_v53  ;;  %v226_v13 = vld [vmem:[#allocation2 + $0x108] sm:$0x7f] }
  0x78   :  { %v2104_v5 = vadd.f32 %v2040_v18, %v1898_v23  ;;  %v2105_v29 = vadd.f32 %v2041_v14, %v1899_v28  ;;  %v2274_v50 = vrot.slane %v2210_v39, 1  ;;  %v2482_v9 = vmul.f32 %v3572_v42, %v2407_v55  ;;  %v667_v18 = vld [vmem:[#allocation2 + $0x60] sm:$0xfe] }
  0x79   :  { %v2275_v4 = vrot.slane %v2211_v56, 1  ;;  %v2483_v6 = vmul.f32 %v3569_v41, %v2408_v34  ;;  %v2106_v12 = vadd.f32 %v2042_v31, %v1900_v17  ;;  %v2484_v3 = vmul.f32 %v3572_v42, %v2409_v40  ;;  %v668_v40 = vld [vmem:[#allocation2 + $0x2e0] sm:$0x1] }
  0x7a   :  { %v2611_v49 = vrot.slane %v2481_v43, 2  ;;  %v299_v38 = vmul.f32 %v3468_v61, %v224_v45  ;;  %v2340_v33 = vadd.f32 %v2274_v50, %v2103_v46  ;;  %v2342_v52 = vadd.f32 %v2274_v50, %v2105_v29  ;;  %v669_v43 = vld [vmem:[#allocation2 + $0x388] sm:$0x1]  ;;  %v1096_v29 = vld [vmem:[#allocation2 + $0x338] sm:$0x80] }
  0x7b   :  { %v2341_v51 = vadd.f32 %v2275_v4, %v2104_v5  ;;  %v2612_v1 = vrot.slane %v2482_v9, 2  ;;  %v2343_v2 = vadd.f32 %v2275_v4, %v2106_v12  ;;  %v2613_v60 = vrot.slane %v2483_v6, 2  ;;  %v1097_v50 = vld [vmem:[#allocation2 + $0x340] sm:$0x80] }
  0x7c   :  { %v2615_v15 = vrot.slane %v2484_v3, 2  ;;  %v300_v20 = vmul.f32 %v3471_v62, %v225_v32  ;;  %v2769_v44 = vadd.f32 %v2611_v49, %v2340_v33  ;;  %v301_v24 = vmul.f32 %v3468_v61, %v226_v13 }
  0x7d   :  { %v2770_v47 = vadd.f32 %v2612_v1, %v2341_v51  ;;  %v302_v25 = vmul.f32 %v3471_v62, %v227_v35  ;;  %v2614_v14 = vsel %vm861_vm0, %v2611_v49, %v2613_v60  ;;  %v468_v23 = vmul.f32 %v3474_v63, %v3381_v7  ;;  %v1098_v35 = vld [vmem:[#allocation2 + $0x80] sm:$0x7f] }
  0x7e   :  { %v2616_v53 = vsel %vm861_vm0, %v2612_v1, %v2615_v15  ;;  %v469_v28 = vmul.f32 %v3477_v0, %v3383_v8  ;;  %v2771_v31 = vadd.f32 %v2614_v14, %v2342_v52  ;;  %v2845_v34 = vadd.f32 %v3586_v58, %v2769_v44  ;;  %v1099_v52 = vld [vmem:[#allocation2 + $0x1a8] sm:$0x7f]  ;;  %v3719_v60 = vld [vmem:[#allocation2 + $0x80] sm:$0xff] }
  0x7f   :  { %v2772_v55 = vadd.f32 %v2616_v53, %v2343_v2  ;;  %v2846_v37 = vadd.f32 %v3589_v59, %v2770_v47  ;;  %v532_v39 = vrot.slane %v468_v23, 1  ;;  %v741_v45 = vmul.f32 %v3480_v10, %v666_v30  ;;  %v1538_v14 = vld [vmem:[#allocation2 + $0x80] sm:$0xfe]  ;;  %v1539_v53 = vld [vmem:[#allocation2 + $0x1a8] sm:$0xfe] }
  0x80   :  { %v533_v56 = vrot.slane %v469_v28, 1  ;;  %v742_v17 = vmul.f32 %v3483_v11, %v667_v18  ;;  %v2847_v46 = vadd.f32 %v3586_v58, %v2771_v31  ;;  %v2976_v5 = vrot.slane %v2845_v34, 7  ;;  %v3724_v18 = vld [vmem:[#allocation2 + $0x1a8] sm:$0xff]  ;;  %v1540_v34 = vld [vmem:[#allocation2 + $0x1b8] sm:$0x1] }
  0x81   :  { %v2848_v7 = vadd.f32 %v3589_v59, %v2772_v55  ;;  %v2979_v8 = vrot.slane %v2846_v37, 7  ;;  %v600_v4 = vadd.f32 %v532_v39, %v299_v38  ;;  %v602_v6 = vadd.f32 %v532_v39, %v301_v24  ;;  %v1541_v37 = vld [vmem:[#allocation2 + $0x168] sm:$0x1] }
  0x82   :  { %v601_v9 = vadd.f32 %v533_v56, %v300_v20  ;;  %v603_v32 = vadd.f32 %v533_v56, %v302_v25  ;;  %v2977_v12 = vrot.slane %v2847_v46, 7  ;;  %v743_v49 = vmul.f32 %v3480_v10, %v668_v40 }
  0x83   :  { %v2980_v3 = vrot.slane %v2848_v7, 7  ;;  %v744_v13 = vmul.f32 %v3483_v11, %v669_v43  ;;  %v874_v33 = vrot.slane %v741_v45, 2  ;;  %v875_v51 = vrot.slane %v742_v17, 2 }
  0x84   :  { %v1171_v1 = vmul.f32 %v3486_v16, %v1096_v29  ;;  %v1172_v2 = vmul.f32 %v3489_v19, %v1097_v50  ;;  %v2978_v38 = vsel %vm2969_vm1, %v2976_v5, %v2977_v12  ;;  %v876_v20 = vrot.slane %v743_v49, 2  ;;  %v1968_v5 = vld [vmem:[#allocation2 + $0x2f0] sm:$0x80] }
  0x85   :  { %v2981_v15 = vsel %vm2969_vm1, %v2979_v8, %v2980_v3  ;;  %v878_v44 = vrot.slane %v744_v13, 2  ;;  %v1030_v24 = vadd.f32 %v874_v33, %v600_v4  ;;  %v1031_v25 = vadd.f32 %v875_v51, %v601_v9  ;;  %v1969_v9 = vld [vmem:[#allocation2 + $0x288] sm:$0x80]  ;;  %v1971_v13 = vld [vmem:[#allocation2 + $0x130] sm:$0x7f] }
  0x86   :  { %v3239_v47 = vpack.c.bf16 %v2981_v15, %v2978_v38  ;;  %v1173_v30 = vmul.f32 %v3486_v16, %v1098_v35  ;;  %v877_v23 = vsel %vm861_vm0, %v874_v33, %v876_v20  ;;  %v1174_v31 = vmul.f32 %v3489_v19, %v1099_v52 }
  0x87   :  { %v879_v28 = vsel %vm861_vm0, %v875_v51, %v878_v44  ;;  %v1340_v55 = vmul.f32 %v3522_v54, %v3719_v60  ;;  %v1032_v39 = vadd.f32 %v877_v23, %v602_v6  ;;  %v1235_v40 = vadd.f32 %v1171_v1, %v1030_v24  ;;  %v1970_v6 = vld [vmem:[#allocation2 + $0x360] sm:$0x7f]  ;;  %v3744_v44 = vld [vmem:[#allocation2 + $0x130] sm:$0xff] }
  0x88   :  { %3195 = vst [vmem:[%s4422_s3 + $0x8] sm:$0xff] %v3239_v47  ;;  %v1033_v56 = vadd.f32 %v879_v28, %v603_v32  ;;  %v1236_v43 = vadd.f32 %v1172_v2, %v1031_v25  ;;  %v1341_v45 = vmul.f32 %v3525_v57, %v3724_v18  ;;  %v1613_v46 = vmul.f32 %v3532_v21, %v1538_v14  ;;  %v3741_v1 = vld [vmem:[#allocation2 + $0x360] sm:$0xff]  ;;  %v2411_v24 = vld [vmem:[#allocation2 + $0x130] sm:$0xfe]  ;;  %v2412_v23 = vld [vmem:[#allocation2 + $0x1b0] sm:$0x1] }
  0x89   :  { %v1404_v17 = vrot.slane %v1340_v55, 1  ;;  %v1614_v7 = vmul.f32 %v3535_v22, %v1539_v53  ;;  %v1237_v8 = vadd.f32 %v1173_v30, %v1032_v39  ;;  %v1615_v50 = vmul.f32 %v3532_v21, %v1540_v34  ;;  %v2410_v47 = vld [vmem:[#allocation2 + $0x360] sm:$0xfe] }
  0x8a   :  { %v1238_v29 = vadd.f32 %v1174_v31, %v1033_v56  ;;  %v1616_v4 = vmul.f32 %v3535_v22, %v1541_v37  ;;  %v1405_v32 = vrot.slane %v1341_v45, 1  ;;  %v1745_v3 = vrot.slane %v1613_v46, 2  ;;  %v2413_v37 = vld [vmem:[#allocation2 + $0x270] sm:$0x1]  ;;  %v228_v45 = vld [vmem:[#allocation2 + $0x338] sm:$0x80] }
  0x8b   :  { %v1472_v12 = vadd.f32 %v1404_v17, %v1235_v40  ;;  %v1746_v49 = vrot.slane %v1614_v7, 2  ;;  %v1474_v35 = vadd.f32 %v1404_v17, %v1237_v8  ;;  %v1747_v33 = vrot.slane %v1615_v50, 2  ;;  %v229_v17 = vld [vmem:[#allocation2 + $0x340] sm:$0x80] }
  0x8c   :  { %v1749_v51 = vrot.slane %v1616_v4, 2  ;;  %v2043_v52 = vmul.f32 %v3545_v48, %v1968_v5  ;;  %v1473_v2 = vadd.f32 %v1405_v32, %v1236_v43  ;;  %v1475_v38 = vadd.f32 %v1405_v32, %v1238_v29  ;;  %v230_v29 = vld [vmem:[#allocation2 + $0x80] sm:$0x7f]  ;;  %v231_v32 = vld [vmem:[#allocation2 + $0x1a8] sm:$0x7f] }
  0x8d   :  { %v1901_v15 = vadd.f32 %v1745_v3, %v1472_v12  ;;  %v2044_v20 = vmul.f32 %v3548_v36, %v1969_v9  ;;  %v1748_v25 = vsel %vm861_vm0, %v1745_v3, %v1747_v33  ;;  %v2045_v14 = vmul.f32 %v3545_v48, %v1970_v6 }
  0x8e   :  { %v1750_v30 = vsel %vm861_vm0, %v1746_v49, %v1749_v51  ;;  %v2046_v53 = vmul.f32 %v3548_v36, %v1971_v13  ;;  %v1902_v28 = vadd.f32 %v1746_v49, %v1473_v2  ;;  %v1903_v31 = vadd.f32 %v1748_v25, %v1474_v35  ;;  %v670_v2 = vld [vmem:[#allocation2 + $0x80] sm:$0xfe] }
  0x8f   :  { %v1904_v55 = vadd.f32 %v1750_v30, %v1475_v38  ;;  %v2107_v34 = vadd.f32 %v2043_v52, %v1901_v15  ;;  %v2212_v39 = vmul.f32 %v3563_v26, %v3741_v1  ;;  %v2213_v56 = vmul.f32 %v3566_v27, %v3744_v44  ;;  %v671_v38 = vld [vmem:[#allocation2 + $0x1a8] sm:$0xfe] }
  0x90   :  { %v2485_v40 = vmul.f32 %v3569_v41, %v2410_v47  ;;  %v2486_v43 = vmul.f32 %v3572_v42, %v2411_v24  ;;  %v2108_v46 = vadd.f32 %v2044_v20, %v1902_v28  ;;  %v2109_v7 = vadd.f32 %v2045_v14, %v1903_v31  ;;  %v673_v28 = vld [vmem:[#allocation2 + $0x168] sm:$0x1] }
  0x91   :  { %v2110_v5 = vadd.f32 %v2046_v53, %v1904_v55  ;;  %v2487_v8 = vmul.f32 %v3569_v41, %v2412_v23  ;;  %v2276_v50 = vrot.slane %v2212_v39, 1  ;;  %v2277_v4 = vrot.slane %v2213_v56, 1  ;;  %v672_v23 = vld [vmem:[#allocation2 + $0x1b8] sm:$0x1] }
  0x92   :  { %v2488_v9 = vmul.f32 %v3572_v42, %v2413_v37  ;;  %v2617_v6 = vrot.slane %v2485_v40, 2  ;;  %v2618_v12 = vrot.slane %v2486_v43, 2  ;;  %v303_v49 = vmul.f32 %v3468_v61, %v228_v45 }
  0x93   :  { %v2619_v3 = vrot.slane %v2487_v8, 2  ;;  %v304_v13 = vmul.f32 %v3471_v62, %v229_v17  ;;  %v2344_v35 = vadd.f32 %v2276_v50, %v2107_v34  ;;  %v2345_v33 = vadd.f32 %v2277_v4, %v2108_v46 }
  0x94   :  { %v2346_v51 = vadd.f32 %v2276_v50, %v2109_v7  ;;  %v2347_v52 = vadd.f32 %v2277_v4, %v2110_v5  ;;  %v2621_v20 = vrot.slane %v2488_v9, 2  ;;  %v305_v47 = vmul.f32 %v3468_v61, %v230_v29  ;;  %v1100_v7 = vld [vmem:[#allocation2 + $0x2f0] sm:$0x80]  ;;  %v1101_v50 = vld [vmem:[#allocation2 + $0x288] sm:$0x80] }
  0x95   :  { %v2620_v15 = vsel %vm861_vm0, %v2617_v6, %v2619_v3  ;;  %v306_v24 = vmul.f32 %v3471_v62, %v231_v32  ;;  %v2773_v25 = vadd.f32 %v2617_v6, %v2344_v35  ;;  %v2774_v30 = vadd.f32 %v2618_v12, %v2345_v33 }
  0x96   :  { %v2775_v14 = vadd.f32 %v2620_v15, %v2346_v51  ;;  %v470_v53 = vmul.f32 %v3719_v60, %v3474_v63  ;;  %v2622_v31 = vsel %vm861_vm0, %v2618_v12, %v2621_v20  ;;  %v471_v55 = vmul.f32 %v3724_v18, %v3477_v0  ;;  %v1102_v12 = vld [vmem:[#allocation2 + $0x360] sm:$0x7f] }
  0x97   :  { %v745_v34 = vmul.f32 %v3480_v10, %v670_v2  ;;  %v746_v37 = vmul.f32 %v3483_v11, %v671_v38  ;;  %v2776_v39 = vadd.f32 %v2622_v31, %v2347_v52  ;;  %v2849_v56 = vadd.f32 %v3586_v58, %v2773_v25  ;;  %v1103_v52 = vld [vmem:[#allocation2 + $0x130] sm:$0x7f] }
  0x98   :  { %v2850_v40 = vadd.f32 %v3589_v59, %v2774_v30  ;;  %v2851_v43 = vadd.f32 %v3586_v58, %v2775_v14  ;;  %v534_v45 = vrot.slane %v470_v53, 1  ;;  %v535_v60 = vrot.slane %v471_v55, 1  ;;  %v1544_v31 = vld [vmem:[#allocation2 + $0x1b0] sm:$0x1] }
  0x99   :  { %v747_v17 = vmul.f32 %v3480_v10, %v672_v23  ;;  %v748_v46 = vmul.f32 %v3483_v11, %v673_v28  ;;  %v2852_v18 = vadd.f32 %v3589_v59, %v2776_v39  ;;  %v2982_v5 = vrot.slane %v2849_v56, 7  ;;  %v1545_v55 = vld [vmem:[#allocation2 + $0x270] sm:$0x1] }
  0x9a   :  { %v2983_v8 = vrot.slane %v2851_v43, 7  ;;  %v2985_v29 = vrot.slane %v2850_v40, 7  ;;  %v604_v4 = vadd.f32 %v534_v45, %v303_v49  ;;  %v605_v9 = vadd.f32 %v535_v60, %v304_v13 }
  0x9b   :  { %v606_v6 = vadd.f32 %v534_v45, %v305_v47  ;;  %v607_v32 = vadd.f32 %v535_v60, %v306_v24  ;;  %v2986_v35 = vrot.slane %v2852_v18, 7  ;;  %v880_v33 = vrot.slane %v745_v34, 2  ;;  %v1542_v47 = vld [vmem:[#allocation2 + $0x360] sm:$0xfe]  ;;  %v1543_v24 = vld [vmem:[#allocation2 + $0x130] sm:$0xfe] }
  0x9c   :  { %v2984_v3 = vsel %vm2969_vm1, %v2982_v5, %v2983_v8  ;;  %v881_v51 = vrot.slane %v746_v37, 2  ;;  %v882_v2 = vrot.slane %v747_v17, 2  ;;  %v884_v38 = vrot.slane %v748_v46, 2  ;;  %v1972_v17 = vld [vmem:[#allocation2 + $0xf0] sm:$0x80] }
  0x9d   :  { %v1175_v15 = vmul.f32 %v3486_v16, %v1100_v7  ;;  %v1176_v20 = vmul.f32 %v3489_v19, %v1101_v50  ;;  %v2987_v25 = vsel %vm2969_vm1, %v2985_v29, %v2986_v35  ;;  %v1034_v30 = vadd.f32 %v880_v33, %v604_v4  ;;  %v1973_v46 = vld [vmem:[#allocation2 + $0x8] sm:$0x80]  ;;  %v1974_v29 = vld [vmem:[#allocation2 + $0x148] sm:$0x7f] }
  0x9e   :  { %v1035_v49 = vadd.f32 %v881_v51, %v605_v9  ;;  %v1177_v13 = vmul.f32 %v3486_v16, %v1102_v12  ;;  %v3240_v14 = vpack.c.bf16 %v2987_v25, %v2984_v3  ;;  %v883_v53 = vsel %vm861_vm0, %v880_v33, %v882_v2  ;;  %v2414_v25 = vld [vmem:[#allocation2 + $0x148] sm:$0xfe] }
  0x9f   :  { %v885_v23 = vsel %vm861_vm0, %v881_v51, %v884_v38  ;;  %v1178_v28 = vmul.f32 %v3489_v19, %v1103_v52  ;;  %v1036_v34 = vadd.f32 %v883_v53, %v606_v6  ;;  %v1239_v39 = vadd.f32 %v1175_v15, %v1034_v30  ;;  %v3797_v51 = vld [vmem:[#allocation2 + $0x148] sm:$0xff]  ;;  %v2415_v30 = vld [vmem:[#allocation2 + $0x200] sm:$0xfe] }
  0xa0   :  { %v1037_v37 = vadd.f32 %v885_v23, %v607_v32  ;;  %v1240_v56 = vadd.f32 %v1176_v20, %v1035_v49  ;;  %3196 = vst [vmem:[%s4422_s3 + $0x10] sm:$0xff] %v3240_v14  ;;  %v1342_v40 = vmul.f32 %v3741_v1, %v3522_v54  ;;  %v1343_v43 = vmul.f32 %v3744_v44, %v3525_v57  ;;  %v1975_v32 = vld [vmem:[#allocation2 + $0x200] sm:$0x7f] }
  0xa1   :  { %v1617_v45 = vmul.f32 %v3532_v21, %v1542_v47  ;;  %v1618_v60 = vmul.f32 %v3535_v22, %v1543_v24  ;;  %v1241_v7 = vadd.f32 %v1177_v13, %v1036_v34  ;;  %v1619_v5 = vmul.f32 %v3532_v21, %v1544_v31  ;;  %v3799_v20 = vld [vmem:[#allocation2 + $0x200] sm:$0xff]  ;;  %v2416_v31 = vld [vmem:[#allocation2 + $0x390] sm:$0x1] }
  0xa2   :  { %v1242_v18 = vadd.f32 %v1178_v28, %v1037_v37  ;;  %v1620_v8 = vmul.f32 %v3535_v22, %v1545_v55  ;;  %v1406_v50 = vrot.slane %v1342_v40, 1  ;;  %v1407_v4 = vrot.slane %v1343_v43, 1  ;;  %v2417_v55 = vld [vmem:[#allocation2 + $0x278] sm:$0x1]  ;;  %v232_v40 = vld [vmem:[#allocation2 + $0x2f0] sm:$0x80] }
  0xa3   :  { %v1751_v9 = vrot.slane %v1617_v45, 2  ;;  %v1752_v6 = vrot.slane %v1618_v60, 2  ;;  %v1753_v12 = vrot.slane %v1619_v5, 2  ;;  %v2047_v35 = vmul.f32 %v3545_v48, %v1972_v17  ;;  %v233_v43 = vld [vmem:[#allocation2 + $0x288] sm:$0x80] }
  0xa4   :  { %v1755_v3 = vrot.slane %v1620_v8, 2  ;;  %v2048_v33 = vmul.f32 %v3548_v36, %v1973_v46  ;;  %v1476_v52 = vadd.f32 %v1406_v50, %v1239_v39  ;;  %v1477_v2 = vadd.f32 %v1407_v4, %v1240_v56 }
  0xa5   :  { %v1478_v38 = vadd.f32 %v1406_v50, %v1241_v7  ;;  %v1479_v15 = vadd.f32 %v1407_v4, %v1242_v18  ;;  %v1754_v49 = vsel %vm861_vm0, %v1751_v9, %v1753_v12  ;;  %v2049_v47 = vmul.f32 %v3545_v48, %v1974_v29  ;;  %v234_v29 = vld [vmem:[#allocation2 + $0x360] sm:$0x7f]  ;;  %v235_v50 = vld [vmem:[#allocation2 + $0x130] sm:$0x7f] }
  0xa6   :  { %v1756_v13 = vsel %vm861_vm0, %v1752_v6, %v1755_v3  ;;  %v2050_v24 = vmul.f32 %v3548_v36, %v1975_v32  ;;  %v1905_v14 = vadd.f32 %v1751_v9, %v1476_v52  ;;  %v1906_v53 = vadd.f32 %v1752_v6, %v1477_v2  ;;  %v674_v52 = vld [vmem:[#allocation2 + $0x360] sm:$0xfe]  ;;  %v675_v2 = vld [vmem:[#allocation2 + $0x130] sm:$0xfe] }
  0xa7   :  { %v1907_v23 = vadd.f32 %v1754_v49, %v1478_v38  ;;  %v1908_v28 = vadd.f32 %v1756_v13, %v1479_v15  ;;  %v2214_v34 = vmul.f32 %v3563_v26, %v3797_v51  ;;  %v2215_v37 = vmul.f32 %v3566_v27, %v3799_v20 }
  0xa8   :  { %v2489_v39 = vmul.f32 %v3569_v41, %v2414_v25  ;;  %v2490_v56 = vmul.f32 %v3572_v42, %v2415_v30  ;;  %v2111_v45 = vadd.f32 %v2047_v35, %v1905_v14  ;;  %v2112_v60 = vadd.f32 %v2048_v33, %v1906_v53  ;;  %v676_v14 = vld [vmem:[#allocation2 + $0x1b0] sm:$0x1] }
  0xa9   :  { %v2113_v17 = vadd.f32 %v2049_v47, %v1907_v23  ;;  %v2114_v46 = vadd.f32 %v2050_v24, %v1908_v28  ;;  %v2278_v7 = vrot.slane %v2214_v34, 1  ;;  %v2279_v18 = vrot.slane %v2215_v37, 1  ;;  %v677_v53 = vld [vmem:[#allocation2 + $0x270] sm:$0x1] }
  0xaa   :  { %v2491_v5 = vmul.f32 %v3569_v41, %v2416_v31  ;;  %v2492_v8 = vmul.f32 %v3572_v42, %v2417_v55  ;;  %v2623_v4 = vrot.slane %v2489_v39, 2  ;;  %v2624_v9 = vrot.slane %v2490_v56, 2 }
  0xab   :  { %v307_v6 = vmul.f32 %v3468_v61, %v232_v40  ;;  %v308_v32 = vmul.f32 %v3471_v62, %v233_v43  ;;  %v2348_v12 = vadd.f32 %v2278_v7, %v2111_v45  ;;  %v2349_v3 = vadd.f32 %v2279_v18, %v2112_v60 }
  0xac   :  { %v2350_v35 = vadd.f32 %v2278_v7, %v2113_v17  ;;  %v2351_v33 = vadd.f32 %v2279_v18, %v2114_v46  ;;  %v2625_v38 = vrot.slane %v2491_v5, 2  ;;  %v2627_v15 = vrot.slane %v2492_v8, 2  ;;  %v1104_v7 = vld [vmem:[#allocation2 + $0xf0] sm:$0x80]  ;;  %v1105_v18 = vld [vmem:[#allocation2 + $0x8] sm:$0x80] }
  0xad   :  { %v309_v25 = vmul.f32 %v3468_v61, %v234_v29  ;;  %v310_v30 = vmul.f32 %v3471_v62, %v235_v50  ;;  %v2777_v49 = vadd.f32 %v2623_v4, %v2348_v12  ;;  %v2778_v13 = vadd.f32 %v2624_v9, %v2349_v3 }
  0xae   :  { %v472_v47 = vmul.f32 %v3741_v1, %v3474_v63  ;;  %v473_v24 = vmul.f32 %v3744_v44, %v3477_v0  ;;  %v2626_v23 = vsel %vm861_vm0, %v2623_v4, %v2625_v38  ;;  %v2628_v28 = vsel %vm861_vm0, %v2624_v9, %v2627_v15 }
  0xaf   :  { %v749_v31 = vmul.f32 %v3480_v10, %v674_v52  ;;  %v750_v55 = vmul.f32 %v3483_v11, %v675_v2  ;;  %v2779_v34 = vadd.f32 %v2626_v23, %v2350_v35  ;;  %v2780_v37 = vadd.f32 %v2628_v28, %v2351_v33  ;;  %v1106_v35 = vld [vmem:[#allocation2 + $0x148] sm:$0x7f]  ;;  %v1107_v2 = vld [vmem:[#allocation2 + $0x200] sm:$0x7f]  ;;  %v1548_v23 = vld [vmem:[#allocation2 + $0x390] sm:$0x1] }
  0xb0   :  { %v2853_v39 = vadd.f32 %v3586_v58, %v2777_v49  ;;  %v2854_v56 = vadd.f32 %v3589_v59, %v2778_v13  ;;  %v536_v1 = vrot.slane %v472_v47, 1  ;;  %v537_v40 = vrot.slane %v473_v24, 1 }
  0xb1   :  { %v751_v44 = vmul.f32 %v3480_v10, %v676_v14  ;;  %v752_v43 = vmul.f32 %v3483_v11, %v677_v53  ;;  %v2855_v45 = vadd.f32 %v3586_v58, %v2779_v34  ;;  %v2856_v60 = vadd.f32 %v3589_v59, %v2780_v37  ;;  %v1547_v53 = vld [vmem:[#allocation2 + $0x200] sm:$0xfe]  ;;  %v1549_v37 = vld [vmem:[#allocation2 + $0x278] sm:$0x1] }
  0xb2   :  { %v2988_v17 = vrot.slane %v2853_v39, 7  ;;  %v2991_v46 = vrot.slane %v2854_v56, 7  ;;  %v608_v5 = vadd.f32 %v536_v1, %v307_v6  ;;  %v609_v8 = vadd.f32 %v537_v40, %v308_v32 }
  0xb3   :  { %v610_v29 = vadd.f32 %v536_v1, %v309_v25  ;;  %v611_v50 = vadd.f32 %v537_v40, %v310_v30  ;;  %v2989_v4 = vrot.slane %v2855_v45, 7  ;;  %v2992_v9 = vrot.slane %v2856_v60, 7  ;;  %v1546_v25 = vld [vmem:[#allocation2 + $0x148] sm:$0xfe] }
  0xb4   :  { %v886_v12 = vrot.slane %v749_v31, 2  ;;  %v887_v3 = vrot.slane %v750_v55, 2  ;;  %v888_v33 = vrot.slane %v751_v44, 2  ;;  %v890_v52 = vrot.slane %v752_v43, 2  ;;  %v1976_v44 = vld [vmem:[#allocation2] sm:$0x80] }
  0xb5   :  { %v1179_v38 = vmul.f32 %v3486_v16, %v1104_v7  ;;  %v1180_v15 = vmul.f32 %v3489_v19, %v1105_v18  ;;  %v2990_v49 = vsel %vm2969_vm1, %v2988_v17, %v2989_v4  ;;  %v2993_v13 = vsel %vm2969_vm1, %v2991_v46, %v2992_v9  ;;  %v1977_v43 = vld [vmem:[#allocation2 + $0x290] sm:$0x80]  ;;  %v1978_v7 = vld [vmem:[#allocation2 + $0x188] sm:$0x7f] }
  0xb6   :  { %v1038_v6 = vadd.f32 %v886_v12, %v608_v5  ;;  %v1039_v32 = vadd.f32 %v887_v3, %v609_v8  ;;  %v3241_v30 = vpack.c.bf16 %v2993_v13, %v2990_v49  ;;  %v889_v47 = vsel %vm861_vm0, %v886_v12, %v888_v33  ;;  %v2418_v49 = vld [vmem:[#allocation2 + $0x188] sm:$0xfe]  ;;  %v2419_v13 = vld [vmem:[#allocation2 + $0xe0] sm:$0xfe] }
  0xb7   :  { %v891_v24 = vsel %vm861_vm0, %v887_v3, %v890_v52  ;;  %v1181_v14 = vmul.f32 %v3486_v16, %v1106_v35  ;;  %v1040_v28 = vadd.f32 %v889_v47, %v610_v29  ;;  %v1182_v55 = vmul.f32 %v3489_v19, %v1107_v2  ;;  %v3852_v35 = vld [vmem:[#allocation2 + $0x188] sm:$0xff] }
  0xb8   :  { %v1041_v31 = vadd.f32 %v891_v24, %v611_v50  ;;  %v1243_v34 = vadd.f32 %v1179_v38, %v1038_v6  ;;  %3197 = vst [vmem:[%s4422_s3 + $0x18] sm:$0xff] %v3241_v30  ;;  %v1244_v39 = vadd.f32 %v1180_v15, %v1039_v32  ;;  %v1344_v56 = vmul.f32 %v3797_v51, %v3522_v54  ;;  %v1979_v50 = vld [vmem:[#allocation2 + $0xe0] sm:$0x7f] }
  0xb9   :  { %v1345_v1 = vmul.f32 %v3799_v20, %v3525_v57  ;;  %v1621_v40 = vmul.f32 %v3532_v21, %v1546_v25  ;;  %v1245_v45 = vadd.f32 %v1181_v14, %v1040_v28  ;;  %v1622_v17 = vmul.f32 %v3535_v22, %v1547_v53  ;;  %v3854_v15 = vld [vmem:[#allocation2 + $0xe0] sm:$0xff]  ;;  %v2421_v28 = vld [vmem:[#allocation2 + $0x90] sm:$0x1] }
  0xba   :  { %v1246_v60 = vadd.f32 %v1182_v55, %v1041_v31  ;;  %v1623_v46 = vmul.f32 %v3532_v21, %v1548_v23  ;;  %v1408_v18 = vrot.slane %v1344_v56, 1  ;;  %v1624_v8 = vmul.f32 %v3535_v22, %v1549_v37  ;;  %v2420_v23 = vld [vmem:[#allocation2 + $0x1c0] sm:$0x1] }
  0xbb   :  { %v1409_v5 = vrot.slane %v1345_v1, 1  ;;  %v1757_v29 = vrot.slane %v1621_v40, 2  ;;  %v1758_v4 = vrot.slane %v1622_v17, 2  ;;  %v2051_v12 = vmul.f32 %v3545_v48, %v1976_v44 }
  0xbc   :  { %v1759_v9 = vrot.slane %v1623_v46, 2  ;;  %v2052_v3 = vmul.f32 %v3548_v36, %v1977_v43  ;;  %v1480_v33 = vadd.f32 %v1408_v18, %v1243_v34  ;;  %v1482_v2 = vadd.f32 %v1408_v18, %v1245_v45  ;;  %v237_v46 = vld [vmem:[#allocation2 + $0x8] sm:$0x80] }
  0xbd   :  { %v1481_v52 = vadd.f32 %v1409_v5, %v1244_v39  ;;  %v1483_v38 = vadd.f32 %v1409_v5, %v1246_v60  ;;  %v1761_v32 = vrot.slane %v1624_v8, 2  ;;  %v2053_v25 = vmul.f32 %v3545_v48, %v1978_v7  ;;  %v236_v39 = vld [vmem:[#allocation2 + $0xf0] sm:$0x80]  ;;  %v238_v7 = vld [vmem:[#allocation2 + $0x148] sm:$0x7f] }
  0xbe   :  { %v1760_v6 = vsel %vm861_vm0, %v1757_v29, %v1759_v9  ;;  %v2054_v30 = vmul.f32 %v3548_v36, %v1979_v50  ;;  %v1909_v47 = vadd.f32 %v1757_v29, %v1480_v33  ;;  %v2216_v53 = vmul.f32 %v3563_v26, %v3852_v35  ;;  %v239_v29 = vld [vmem:[#allocation2 + $0x200] sm:$0x7f] }
  0xbf   :  { %v1910_v24 = vadd.f32 %v1758_v4, %v1481_v52  ;;  %v1911_v14 = vadd.f32 %v1760_v6, %v1482_v2  ;;  %v1762_v31 = vsel %vm861_vm0, %v1758_v4, %v1761_v32  ;;  %v2217_v55 = vmul.f32 %v3566_v27, %v3854_v15 }
  0xc0   :  { %v2493_v34 = vmul.f32 %v3569_v41, %v2418_v49  ;;  %v2494_v37 = vmul.f32 %v3572_v42, %v2419_v13  ;;  %v1912_v56 = vadd.f32 %v1762_v31, %v1483_v38  ;;  %v2115_v1 = vadd.f32 %v2051_v12, %v1909_v47  ;;  %v678_v49 = vld [vmem:[#allocation2 + $0x148] sm:$0xfe] }
  0xc1   :  { %v2116_v40 = vadd.f32 %v2052_v3, %v1910_v24  ;;  %v2117_v44 = vadd.f32 %v2053_v25, %v1911_v14  ;;  %v2280_v43 = vrot.slane %v2216_v53, 1  ;;  %v2281_v45 = vrot.slane %v2217_v55, 1 }
  0xc2   :  { %v2495_v60 = vmul.f32 %v3569_v41, %v2420_v23  ;;  %v2496_v17 = vmul.f32 %v3572_v42, %v2421_v28  ;;  %v2118_v18 = vadd.f32 %v2054_v30, %v1912_v56  ;;  %v2629_v5 = vrot.slane %v2493_v34, 2  ;;  %v679_v30 = vld [vmem:[#allocation2 + $0x200] sm:$0xfe]  ;;  %v680_v23 = vld [vmem:[#allocation2 + $0x390] sm:$0x1] }
  0xc3   :  { %v2630_v8 = vrot.slane %v2494_v37, 2  ;;  %v311_v50 = vmul.f32 %v3468_v61, %v236_v39  ;;  %v2352_v4 = vadd.f32 %v2280_v43, %v2115_v1  ;;  %v2353_v9 = vadd.f32 %v2281_v45, %v2116_v40  ;;  %v681_v1 = vld [vmem:[#allocation2 + $0x278] sm:$0x1] }
  0xc4   :  { %v2354_v33 = vadd.f32 %v2280_v43, %v2117_v44  ;;  %v2631_v12 = vrot.slane %v2495_v60, 2  ;;  %v2355_v3 = vadd.f32 %v2281_v45, %v2118_v18  ;;  %v2633_v52 = vrot.slane %v2496_v17, 2  ;;  %v1108_v45 = vld [vmem:[#allocation2] sm:$0x80]  ;;  %v1109_v18 = vld [vmem:[#allocation2 + $0x290] sm:$0x80] }
  0xc5   :  { %v312_v2 = vmul.f32 %v3471_v62, %v237_v46  ;;  %v313_v38 = vmul.f32 %v3468_v61, %v238_v7  ;;  %v2781_v6 = vadd.f32 %v2629_v5, %v2352_v4  ;;  %v2782_v32 = vadd.f32 %v2630_v8, %v2353_v9  ;;  %v1110_v9 = vld [vmem:[#allocation2 + $0x188] sm:$0x7f] }
  0xc6   :  { %v2632_v13 = vsel %vm861_vm0, %v2629_v5, %v2631_v12  ;;  %v314_v25 = vmul.f32 %v3471_v62, %v239_v29  ;;  %v2634_v47 = vsel %vm861_vm0, %v2630_v8, %v2633_v52  ;;  %v474_v14 = vmul.f32 %v3797_v51, %v3474_v63  ;;  %v1111_v52 = vld [vmem:[#allocation2 + $0xe0] sm:$0x7f] }
  0xc7   :  { %v2783_v24 = vadd.f32 %v2632_v13, %v2354_v33  ;;  %v475_v53 = vmul.f32 %v3799_v20, %v3477_v0  ;;  %v2784_v28 = vadd.f32 %v2634_v47, %v2355_v3  ;;  %v2857_v31 = vadd.f32 %v3586_v58, %v2781_v6  ;;  %v1550_v47 = vld [vmem:[#allocation2 + $0x188] sm:$0xfe] }
  0xc8   :  { %v2858_v55 = vadd.f32 %v3589_v59, %v2782_v32  ;;  %v753_v34 = vmul.f32 %v3480_v10, %v678_v49  ;;  %v538_v39 = vrot.slane %v474_v14, 1  ;;  %v754_v40 = vmul.f32 %v3483_v11, %v679_v30  ;;  %v1552_v14 = vld [vmem:[#allocation2 + $0x1c0] sm:$0x1] }
  0xc9   :  { %v2859_v37 = vadd.f32 %v3586_v58, %v2783_v24  ;;  %v539_v56 = vrot.slane %v475_v53, 1  ;;  %v2860_v51 = vadd.f32 %v3589_v59, %v2784_v28  ;;  %v2994_v44 = vrot.slane %v2857_v31, 7  ;;  %v1551_v24 = vld [vmem:[#allocation2 + $0xe0] sm:$0xfe] }
  0xca   :  { %v2997_v43 = vrot.slane %v2858_v55, 7  ;;  %v755_v20 = vmul.f32 %v3480_v10, %v680_v23  ;;  %v612_v17 = vadd.f32 %v538_v39, %v311_v50  ;;  %v614_v7 = vadd.f32 %v538_v39, %v313_v38  ;;  %v1553_v55 = vld [vmem:[#allocation2 + $0x90] sm:$0x1] }
  0xcb   :  { %v2995_v60 = vrot.slane %v2859_v37, 7  ;;  %v613_v46 = vadd.f32 %v539_v56, %v312_v2  ;;  %v2998_v5 = vrot.slane %v2860_v51, 7  ;;  %v615_v8 = vadd.f32 %v539_v56, %v314_v25 }
  0xcc   :  { %v756_v29 = vmul.f32 %v3483_v11, %v681_v1  ;;  %v892_v4 = vrot.slane %v753_v34, 2  ;;  %v893_v12 = vrot.slane %v754_v40, 2  ;;  %v894_v3 = vrot.slane %v755_v20, 2  ;;  %v1980_v1 = vld [vmem:[#allocation2 + $0x70] sm:$0x80] }
  0xcd   :  { %v2996_v33 = vsel %vm2969_vm1, %v2994_v44, %v2995_v60  ;;  %v1183_v49 = vmul.f32 %v3486_v16, %v1108_v45  ;;  %v2999_v13 = vsel %vm2969_vm1, %v2997_v43, %v2998_v5  ;;  %v1184_v2 = vmul.f32 %v3489_v19, %v1109_v18 }
  0xce   :  { %v896_v6 = vrot.slane %v756_v29, 2  ;;  %v1042_v50 = vadd.f32 %v892_v4, %v612_v17  ;;  %v3242_v38 = vpack.c.bf16 %v2999_v13, %v2996_v33  ;;  %v895_v32 = vsel %vm861_vm0, %v892_v4, %v894_v3  ;;  %v1983_v29 = vld [vmem:[#allocation2 + $0x370] sm:$0x7f]  ;;  %v2422_v13 = vld [vmem:[#allocation2 + $0x308] sm:$0xfe] }
  0xcf   :  { %v1043_v25 = vadd.f32 %v893_v12, %v613_v46  ;;  %v1185_v30 = vmul.f32 %v3486_v16, %v1110_v9  ;;  %v1044_v23 = vadd.f32 %v895_v32, %v614_v7  ;;  %v1186_v28 = vmul.f32 %v3489_v19, %v1111_v52  ;;  %v1981_v46 = vld [vmem:[#allocation2 + $0x210] sm:$0x80]  ;;  %v1982_v7 = vld [vmem:[#allocation2 + $0x308] sm:$0x7f] }
  0xd0   :  { %v897_v53 = vsel %vm861_vm0, %v893_v12, %v896_v6  ;;  %v1247_v31 = vadd.f32 %v1183_v49, %v1042_v50  ;;  %3198 = vst [vmem:[%s4422_s3 + $0x20] sm:$0xff] %v3242_v38  ;;  %v1346_v39 = vmul.f32 %v3852_v35, %v3522_v54  ;;  %v1347_v56 = vmul.f32 %v3854_v15, %v3525_v57  ;;  %v3906_v52 = vld [vmem:[#allocation2 + $0x308] sm:$0xff]  ;;  %v3908_v49 = vld [vmem:[#allocation2 + $0x370] sm:$0xff] }
  0xd1   :  { %v1045_v34 = vadd.f32 %v897_v53, %v615_v8  ;;  %v1248_v37 = vadd.f32 %v1184_v2, %v1043_v25  ;;  %v1249_v40 = vadd.f32 %v1185_v30, %v1044_v23  ;;  %v1625_v51 = vmul.f32 %v3532_v21, %v1550_v47 }
  0xd2   :  { %v1626_v44 = vmul.f32 %v3535_v22, %v1551_v24  ;;  %v1627_v43 = vmul.f32 %v3532_v21, %v1552_v14  ;;  %v1410_v45 = vrot.slane %v1346_v39, 1  ;;  %v1411_v60 = vrot.slane %v1347_v56, 1  ;;  %v2423_v24 = vld [vmem:[#allocation2 + $0x370] sm:$0xfe]  ;;  %v2424_v14 = vld [vmem:[#allocation2 + $0x1d8] sm:$0x1] }
  0xd3   :  { %v1250_v20 = vadd.f32 %v1186_v28, %v1045_v34  ;;  %v1628_v17 = vmul.f32 %v3535_v22, %v1553_v55  ;;  %v1763_v18 = vrot.slane %v1625_v51, 2  ;;  %v2055_v4 = vmul.f32 %v3545_v48, %v1980_v1  ;;  %v240_v34 = vld [vmem:[#allocation2] sm:$0x80] }
  0xd4   :  { %v1764_v5 = vrot.slane %v1626_v44, 2  ;;  %v1765_v8 = vrot.slane %v1627_v43, 2  ;;  %v1484_v9 = vadd.f32 %v1410_v45, %v1247_v31  ;;  %v1485_v33 = vadd.f32 %v1411_v60, %v1248_v37  ;;  %v2425_v31 = vld [vmem:[#allocation2 + $0x260] sm:$0x1] }
  0xd5   :  { %v1486_v12 = vadd.f32 %v1410_v45, %v1249_v40  ;;  %v1487_v3 = vadd.f32 %v1411_v60, %v1250_v20  ;;  %v1767_v50 = vrot.slane %v1628_v17, 2  ;;  %v2056_v2 = vmul.f32 %v3548_v36, %v1981_v46  ;;  %v241_v20 = vld [vmem:[#allocation2 + $0x290] sm:$0x80]  ;;  %v242_v46 = vld [vmem:[#allocation2 + $0x188] sm:$0x7f] }
  0xd6   :  { %v1766_v6 = vsel %vm861_vm0, %v1763_v18, %v1765_v8  ;;  %v2057_v38 = vmul.f32 %v3545_v48, %v1982_v7  ;;  %v1913_v32 = vadd.f32 %v1763_v18, %v1484_v9  ;;  %v1914_v25 = vadd.f32 %v1764_v5, %v1485_v33  ;;  %v243_v7 = vld [vmem:[#allocation2 + $0xe0] sm:$0x7f] }
  0xd7   :  { %v1915_v30 = vadd.f32 %v1766_v6, %v1486_v12  ;;  %v2058_v47 = vmul.f32 %v3548_v36, %v1983_v29  ;;  %v1768_v53 = vsel %vm861_vm0, %v1764_v5, %v1767_v50  ;;  %v2218_v23 = vmul.f32 %v3563_v26, %v3906_v52 }
  0xd8   :  { %v2219_v28 = vmul.f32 %v3566_v27, %v3908_v49  ;;  %v2497_v55 = vmul.f32 %v3569_v41, %v2422_v13  ;;  %v1916_v37 = vadd.f32 %v1768_v53, %v1487_v3  ;;  %v2119_v39 = vadd.f32 %v2055_v4, %v1913_v32  ;;  %v683_v32 = vld [vmem:[#allocation2 + $0xe0] sm:$0xfe] }
  0xd9   :  { %v2120_v56 = vadd.f32 %v2056_v2, %v1914_v25  ;;  %v2121_v1 = vadd.f32 %v2057_v38, %v1915_v30  ;;  %v2282_v40 = vrot.slane %v2218_v23, 1  ;;  %v2498_v44 = vmul.f32 %v3572_v42, %v2423_v24  ;;  %v682_v38 = vld [vmem:[#allocation2 + $0x188] sm:$0xfe] }
  0xda   :  { %v2283_v51 = vrot.slane %v2219_v28, 1  ;;  %v2499_v43 = vmul.f32 %v3569_v41, %v2424_v14  ;;  %v2122_v45 = vadd.f32 %v2058_v47, %v1916_v37  ;;  %v2500_v60 = vmul.f32 %v3572_v42, %v2425_v31  ;;  %v685_v37 = vld [vmem:[#allocation2 + $0x90] sm:$0x1] }
  0xdb   :  { %v2635_v17 = vrot.slane %v2497_v55, 2  ;;  %v315_v18 = vmul.f32 %v3468_v61, %v240_v34  ;;  %v2356_v5 = vadd.f32 %v2282_v40, %v2119_v39  ;;  %v2358_v29 = vadd.f32 %v2282_v40, %v2121_v1  ;;  %v684_v34 = vld [vmem:[#allocation2 + $0x1c0] sm:$0x1] }
  0xdc   :  { %v2357_v8 = vadd.f32 %v2283_v51, %v2120_v56  ;;  %v2636_v4 = vrot.slane %v2498_v44, 2  ;;  %v2359_v9 = vadd.f32 %v2283_v51, %v2122_v45  ;;  %v2637_v33 = vrot.slane %v2499_v43, 2  ;;  %v1112_v51 = vld [vmem:[#allocation2 + $0x70] sm:$0x80] }
  0xdd   :  { %v2639_v12 = vrot.slane %v2500_v60, 2  ;;  %v316_v3 = vmul.f32 %v3471_v62, %v241_v20  ;;  %v2785_v13 = vadd.f32 %v2635_v17, %v2356_v5  ;;  %v317_v50 = vmul.f32 %v3468_v61, %v242_v46  ;;  %v1113_v44 = vld [vmem:[#allocation2 + $0x210] sm:$0x80] }
  0xde   :  { %v2786_v6 = vadd.f32 %v2636_v4, %v2357_v8  ;;  %v318_v2 = vmul.f32 %v3471_v62, %v243_v7  ;;  %v2638_v25 = vsel %vm861_vm0, %v2635_v17, %v2637_v33  ;;  %v476_v47 = vmul.f32 %v3852_v35, %v3474_v63  ;;  %v1114_v8 = vld [vmem:[#allocation2 + $0x308] sm:$0x7f] }
  0xdf   :  { %v2640_v30 = vsel %vm861_vm0, %v2636_v4, %v2639_v12  ;;  %v477_v24 = vmul.f32 %v3854_v15, %v3477_v0  ;;  %v2787_v14 = vadd.f32 %v2638_v25, %v2358_v29  ;;  %v2861_v23 = vadd.f32 %v3586_v58, %v2785_v13  ;;  %v1554_v25 = vld [vmem:[#allocation2 + $0x308] sm:$0xfe] }
  0xe0   :  { %v2788_v53 = vadd.f32 %v2640_v30, %v2359_v9  ;;  %v2862_v28 = vadd.f32 %v3589_v59, %v2786_v6  ;;  %v540_v31 = vrot.slane %v476_v47, 1  ;;  %v757_v39 = vmul.f32 %v3480_v10, %v682_v38  ;;  %v1115_v9 = vld [vmem:[#allocation2 + $0x370] sm:$0x7f] }
  0xe1   :  { %v541_v55 = vrot.slane %v477_v24, 1  ;;  %v758_v56 = vmul.f32 %v3483_v11, %v683_v32  ;;  %v2863_v1 = vadd.f32 %v3586_v58, %v2787_v14  ;;  %v3000_v40 = vrot.slane %v2861_v23, 7  ;;  %v1555_v30 = vld [vmem:[#allocation2 + $0x370] sm:$0xfe]  ;;  %v1556_v23 = vld [vmem:[#allocation2 + $0x1d8] sm:$0x1] }
  0xe2   :  { %v2864_v35 = vadd.f32 %v3589_v59, %v2788_v53  ;;  %v3003_v15 = vrot.slane %v2862_v28, 7  ;;  %v616_v43 = vadd.f32 %v540_v31, %v315_v18  ;;  %v618_v45 = vadd.f32 %v540_v31, %v317_v50  ;;  %v1557_v28 = vld [vmem:[#allocation2 + $0x260] sm:$0x1] }
  0xe3   :  { %v617_v20 = vadd.f32 %v541_v55, %v316_v3  ;;  %v619_v60 = vadd.f32 %v541_v55, %v318_v2  ;;  %v3001_v17 = vrot.slane %v2863_v1, 7  ;;  %v759_v7 = vmul.f32 %v3480_v10, %v684_v34 }
  0xe4   :  { %v3004_v46 = vrot.slane %v2864_v35, 7  ;;  %v760_v5 = vmul.f32 %v3483_v11, %v685_v37  ;;  %v898_v29 = vrot.slane %v757_v39, 2  ;;  %v899_v4 = vrot.slane %v758_v56, 2 }
  0xe5   :  { %v1187_v33 = vmul.f32 %v3486_v16, %v1112_v51  ;;  %v1188_v12 = vmul.f32 %v3489_v19, %v1113_v44  ;;  %v3002_v13 = vsel %vm2969_vm1, %v3000_v40, %v3001_v17  ;;  %v900_v3 = vrot.slane %v759_v7, 2  ;;  %v1984_v40 = vld [vmem:[#allocation2 + $0x358] sm:$0x80] }
  0xe6   :  { %v3005_v18 = vsel %vm2969_vm1, %v3003_v15, %v3004_v46  ;;  %v902_v6 = vrot.slane %v760_v5, 2  ;;  %v1046_v2 = vadd.f32 %v898_v29, %v616_v43  ;;  %v1047_v38 = vadd.f32 %v899_v4, %v617_v20  ;;  %v1985_v20 = vld [vmem:[#allocation2 + $0x2c0] sm:$0x80]  ;;  %v1987_v5 = vld [vmem:[#allocation2 + $0x238] sm:$0x7f] }
  0xe7   :  { %v3243_v50 = vpack.c.bf16 %v3005_v18, %v3002_v13  ;;  %v1189_v32 = vmul.f32 %v3486_v16, %v1114_v8  ;;  %v901_v47 = vsel %vm861_vm0, %v898_v29, %v900_v3  ;;  %v1190_v14 = vmul.f32 %v3489_v19, %v1115_v9 }
  0xe8   :  { %v903_v24 = vsel %vm861_vm0, %v899_v4, %v902_v6  ;;  %v1348_v53 = vmul.f32 %v3906_v52, %v3522_v54  ;;  %v1048_v31 = vadd.f32 %v901_v47, %v618_v45  ;;  %v1251_v34 = vadd.f32 %v1187_v33, %v1046_v2  ;;  %v1986_v45 = vld [vmem:[#allocation2 + $0x328] sm:$0x7f]  ;;  %v3964_v6 = vld [vmem:[#allocation2 + $0x238] sm:$0xff] }
  0xe9   :  { %3199 = vst [vmem:[%s4422_s3 + $0x28] sm:$0xff] %v3243_v50  ;;  %v1049_v55 = vadd.f32 %v903_v24, %v619_v60  ;;  %v1252_v37 = vadd.f32 %v1188_v12, %v1047_v38  ;;  %v1349_v39 = vmul.f32 %v3908_v49, %v3525_v57  ;;  %v1629_v1 = vmul.f32 %v3532_v21, %v1554_v25  ;;  %v3961_v33 = vld [vmem:[#allocation2 + $0x328] sm:$0xff]  ;;  %v2427_v2 = vld [vmem:[#allocation2 + $0x238] sm:$0xfe]  ;;  %v2428_v47 = vld [vmem:[#allocation2 + $0x78] sm:$0x1] }
  0xea   :  { %v1412_v56 = vrot.slane %v1348_v53, 1  ;;  %v1630_v35 = vmul.f32 %v3535_v22, %v1555_v30  ;;  %v1253_v15 = vadd.f32 %v1189_v32, %v1048_v31  ;;  %v1631_v44 = vmul.f32 %v3532_v21, %v1556_v23  ;;  %v2426_v50 = vld [vmem:[#allocation2 + $0x328] sm:$0xfe] }
  0xeb   :  { %v1254_v51 = vadd.f32 %v1190_v14, %v1049_v55  ;;  %v1632_v43 = vmul.f32 %v3535_v22, %v1557_v28  ;;  %v1413_v60 = vrot.slane %v1349_v39, 1  ;;  %v1769_v46 = vrot.slane %v1629_v1, 2  ;;  %v2429_v28 = vld [vmem:[#allocation2 + $0x158] sm:$0x1]  ;;  %v244_v39 = vld [vmem:[#allocation2 + $0x70] sm:$0x80] }
  0xec   :  { %v1488_v17 = vadd.f32 %v1412_v56, %v1251_v34  ;;  %v1770_v7 = vrot.slane %v1630_v35, 2  ;;  %v1490_v8 = vadd.f32 %v1412_v56, %v1253_v15  ;;  %v1771_v29 = vrot.slane %v1631_v44, 2  ;;  %v245_v56 = vld [vmem:[#allocation2 + $0x210] sm:$0x80] }
  0xed   :  { %v1773_v4 = vrot.slane %v1632_v43, 2  ;;  %v2059_v9 = vmul.f32 %v3545_v48, %v1984_v40  ;;  %v1489_v12 = vadd.f32 %v1413_v60, %v1252_v37  ;;  %v1491_v13 = vadd.f32 %v1413_v60, %v1254_v51  ;;  %v246_v51 = vld [vmem:[#allocation2 + $0x308] sm:$0x7f]  ;;  %v247_v60 = vld [vmem:[#allocation2 + $0x370] sm:$0x7f] }
  0xee   :  { %v1917_v18 = vadd.f32 %v1769_v46, %v1488_v17  ;;  %v2060_v3 = vmul.f32 %v3548_v36, %v1985_v20  ;;  %v1772_v38 = vsel %vm861_vm0, %v1769_v46, %v1771_v29  ;;  %v2061_v25 = vmul.f32 %v3545_v48, %v1986_v45 }
  0xef   :  { %v1774_v32 = vsel %vm861_vm0, %v1770_v7, %v1773_v4  ;;  %v2062_v30 = vmul.f32 %v3548_v36, %v1987_v5  ;;  %v1918_v24 = vadd.f32 %v1770_v7, %v1489_v12  ;;  %v1919_v14 = vadd.f32 %v1772_v38, %v1490_v8  ;;  %v686_v12 = vld [vmem:[#allocation2 + $0x308] sm:$0xfe] }
  0xf0   :  { %v1920_v53 = vadd.f32 %v1774_v32, %v1491_v13  ;;  %v2123_v23 = vadd.f32 %v2059_v9, %v1917_v18  ;;  %v2220_v31 = vmul.f32 %v3563_v26, %v3961_v33  ;;  %v2221_v55 = vmul.f32 %v3566_v27, %v3964_v6  ;;  %v687_v13 = vld [vmem:[#allocation2 + $0x370] sm:$0xfe] }
  0xf1   :  { %v2501_v34 = vmul.f32 %v3569_v41, %v2426_v50  ;;  %v2502_v37 = vmul.f32 %v3572_v42, %v2427_v2  ;;  %v2124_v1 = vadd.f32 %v2060_v3, %v1918_v24  ;;  %v2125_v35 = vadd.f32 %v2061_v25, %v1919_v14  ;;  %v689_v24 = vld [vmem:[#allocation2 + $0x260] sm:$0x1] }
  0xf2   :  { %v2126_v40 = vadd.f32 %v2062_v30, %v1920_v53  ;;  %v2503_v15 = vmul.f32 %v3569_v41, %v2428_v47  ;;  %v2284_v44 = vrot.slane %v2220_v31, 1  ;;  %v2285_v43 = vrot.slane %v2221_v55, 1  ;;  %v688_v47 = vld [vmem:[#allocation2 + $0x1d8] sm:$0x1] }
  0xf3   :  { %v2504_v20 = vmul.f32 %v3572_v42, %v2429_v28  ;;  %v2641_v45 = vrot.slane %v2501_v34, 2  ;;  %v2642_v17 = vrot.slane %v2502_v37, 2  ;;  %v319_v7 = vmul.f32 %v3468_v61, %v244_v39 }
  0xf4   :  { %v2643_v46 = vrot.slane %v2503_v15, 2  ;;  %v320_v5 = vmul.f32 %v3471_v62, %v245_v56  ;;  %v2360_v8 = vadd.f32 %v2284_v44, %v2123_v23  ;;  %v2361_v29 = vadd.f32 %v2285_v43, %v2124_v1 }
  0xf5   :  { %v2362_v4 = vadd.f32 %v2284_v44, %v2125_v35  ;;  %v2363_v9 = vadd.f32 %v2285_v43, %v2126_v40  ;;  %v2645_v3 = vrot.slane %v2504_v20, 2  ;;  %v321_v50 = vmul.f32 %v3468_v61, %v246_v51  ;;  %v1116_v35 = vld [vmem:[#allocation2 + $0x358] sm:$0x80]  ;;  %v1117_v44 = vld [vmem:[#allocation2 + $0x2c0] sm:$0x80] }
  0xf6   :  { %v2644_v18 = vsel %vm861_vm0, %v2641_v45, %v2643_v46  ;;  %v322_v2 = vmul.f32 %v3471_v62, %v247_v60  ;;  %v2789_v38 = vadd.f32 %v2641_v45, %v2360_v8  ;;  %v2790_v32 = vadd.f32 %v2642_v17, %v2361_v29 }
  0xf7   :  { %v2791_v25 = vadd.f32 %v2644_v18, %v2362_v4  ;;  %v478_v30 = vmul.f32 %v3906_v52, %v3474_v63  ;;  %v2646_v14 = vsel %vm861_vm0, %v2642_v17, %v2645_v3  ;;  %v479_v53 = vmul.f32 %v3908_v49, %v3477_v0  ;;  %v1118_v17 = vld [vmem:[#allocation2 + $0x328] sm:$0x7f] }
  0xf8   :  { %v761_v23 = vmul.f32 %v3480_v10, %v686_v12  ;;  %v762_v28 = vmul.f32 %v3483_v11, %v687_v13  ;;  %v2792_v31 = vadd.f32 %v2646_v14, %v2363_v9  ;;  %v2865_v55 = vadd.f32 %v3586_v58, %v2789_v38  ;;  %v1119_v9 = vld [vmem:[#allocation2 + $0x238] sm:$0x7f] }
  0xf9   :  { %v2866_v34 = vadd.f32 %v3589_v59, %v2790_v32  ;;  %v2867_v37 = vadd.f32 %v3586_v58, %v2791_v25  ;;  %v542_v39 = vrot.slane %v478_v30, 1  ;;  %v543_v52 = vrot.slane %v479_v53, 1  ;;  %v1560_v14 = vld [vmem:[#allocation2 + $0x78] sm:$0x1] }
  0xfa   :  { %v763_v56 = vmul.f32 %v3480_v10, %v688_v47  ;;  %v764_v1 = vmul.f32 %v3483_v11, %v689_v24  ;;  %v2868_v49 = vadd.f32 %v3589_v59, %v2792_v31  ;;  %v3006_v40 = vrot.slane %v2865_v55, 7  ;;  %v1561_v53 = vld [vmem:[#allocation2 + $0x158] sm:$0x1] }
  0xfb   :  { %v3007_v15 = vrot.slane %v2867_v37, 7  ;;  %v3009_v51 = vrot.slane %v2866_v34, 7  ;;  %v620_v43 = vadd.f32 %v542_v39, %v319_v7  ;;  %v621_v20 = vadd.f32 %v543_v52, %v320_v5 }
  0xfc   :  { %v622_v45 = vadd.f32 %v542_v39, %v321_v50  ;;  %v623_v60 = vadd.f32 %v543_v52, %v322_v2  ;;  %v3010_v8 = vrot.slane %v2868_v49, 7  ;;  %v904_v29 = vrot.slane %v761_v23, 2  ;;  %v1558_v50 = vld [vmem:[#allocation2 + $0x328] sm:$0xfe]  ;;  %v1559_v2 = vld [vmem:[#allocation2 + $0x238] sm:$0xfe] }
  0xfd   :  { %v3008_v46 = vsel %vm2969_vm1, %v3006_v40, %v3007_v15  ;;  %v905_v4 = vrot.slane %v762_v28, 2  ;;  %v906_v12 = vrot.slane %v763_v56, 2  ;;  %v908_v13 = vrot.slane %v764_v1, 2  ;;  %v1988_v56 = vld [vmem:[#allocation2 + $0xa8] sm:$0x80] }
  0xfe   :  { %v1191_v18 = vmul.f32 %v3486_v16, %v1116_v35  ;;  %v1192_v3 = vmul.f32 %v3489_v19, %v1117_v44  ;;  %v3011_v38 = vsel %vm2969_vm1, %v3009_v51, %v3010_v8  ;;  %v1050_v32 = vadd.f32 %v904_v29, %v620_v43  ;;  %v1989_v1 = vld [vmem:[#allocation2 + $0x300] sm:$0x80]  ;;  %v1990_v51 = vld [vmem:[#allocation2 + $0xe8] sm:$0x7f] }
  0xff   :  { %v1051_v7 = vadd.f32 %v905_v4, %v621_v20  ;;  %v1193_v5 = vmul.f32 %v3486_v16, %v1118_v17  ;;  %v3244_v25 = vpack.c.bf16 %v3011_v38, %v3008_v46  ;;  %v907_v30 = vsel %vm861_vm0, %v904_v29, %v906_v12  ;;  %v2430_v12 = vld [vmem:[#allocation2 + $0xe8] sm:$0xfe] }
 0x100   :  { %v909_v47 = vsel %vm861_vm0, %v905_v4, %v908_v13  ;;  %v1194_v24 = vmul.f32 %v3489_v19, %v1119_v9  ;;  %v1052_v23 = vadd.f32 %v907_v30, %v622_v45  ;;  %v1255_v31 = vadd.f32 %v1191_v18, %v1050_v32  ;;  %v1991_v45 = vld [vmem:[#allocation2 + $0x20] sm:$0x7f]  ;;  %v2433_v30 = vld [vmem:[#allocation2 + $0x1d0] sm:$0x1] }
 0x101   :  { %v1053_v28 = vadd.f32 %v909_v47, %v623_v60  ;;  %v1256_v55 = vadd.f32 %v1192_v3, %v1051_v7  ;;  %3200 = vst [vmem:[%s4422_s3 + $0x30] sm:$0xff] %v3244_v25  ;;  %v1350_v34 = vmul.f32 %v3961_v33, %v3522_v54  ;;  %v1351_v37 = vmul.f32 %v3964_v6, %v3525_v57  ;;  %v2431_v13 = vld [vmem:[#allocation2 + $0x20] sm:$0xfe]  ;;  %v2432_v25 = vld [vmem:[#allocation2 + $0x40] sm:$0x1]  ;;  %v3255_v47 = vld [vmem:[#allocation2 + $0xd8] sm:$0xff] }
 0x102   :  { %v1633_v39 = vmul.f32 %v3532_v21, %v1558_v50  ;;  %v1634_v52 = vmul.f32 %v3535_v22, %v1559_v2  ;;  %v1257_v35 = vadd.f32 %v1193_v5, %v1052_v23  ;;  %v1635_v40 = vmul.f32 %v3532_v21, %v1560_v14 }
 0x103   :  { %v1258_v49 = vadd.f32 %v1194_v24, %v1053_v28  ;;  %v1636_v15 = vmul.f32 %v3535_v22, %v1561_v53  ;;  %v1414_v44 = vrot.slane %v1350_v34, 1  ;;  %v1415_v43 = vrot.slane %v1351_v37, 1  ;;  %v252_v28 = vld [vmem:[#allocation2 + $0x228] sm:$0x80] }
 0x104   :  { %v1775_v20 = vrot.slane %v1633_v39, 2  ;;  %v1776_v33 = vrot.slane %v1634_v52, 2  ;;  %v1777_v60 = vrot.slane %v1635_v40, 2  ;;  %v2063_v17 = vmul.f32 %v3545_v48, %v1988_v56  ;;  %v255_v40 = vld [vmem:[#allocation2 + $0x138] sm:$0x7f] }
 0x105   :  { %v1779_v6 = vrot.slane %v1636_v15, 2  ;;  %v2064_v46 = vmul.f32 %v3548_v36, %v1989_v1  ;;  %v1492_v8 = vadd.f32 %v1414_v44, %v1255_v31  ;;  %v1493_v29 = vadd.f32 %v1415_v43, %v1256_v55  ;;  %v253_v31 = vld [vmem:[#allocation2 + $0x170] sm:$0x80] }
 0x106   :  { %v1494_v4 = vadd.f32 %v1414_v44, %v1257_v35  ;;  %v1495_v9 = vadd.f32 %v1415_v43, %v1258_v49  ;;  %v1778_v18 = vsel %vm861_vm0, %v1775_v20, %v1777_v60  ;;  %v2065_v38 = vmul.f32 %v3545_v48, %v1990_v51  ;;  %v254_v49 = vld [vmem:[#allocation2 + $0x280] sm:$0x7f] }
 0x107   :  { %v1780_v3 = vsel %vm861_vm0, %v1776_v33, %v1779_v6  ;;  %v2066_v32 = vmul.f32 %v3548_v36, %v1991_v45  ;;  %v1921_v7 = vadd.f32 %v1775_v20, %v1492_v8  ;;  %v1922_v5 = vadd.f32 %v1776_v33, %v1493_v29  ;;  %v439_v20 = vld [vmem:[#allocation2 + $0x280] sm:$0xff]  ;;  %v440_v33 = vld [vmem:[#allocation2 + $0x138] sm:$0xff] }
 0x108   :  { %v1923_v50 = vadd.f32 %v1778_v18, %v1494_v4  ;;  %v1924_v2 = vadd.f32 %v1780_v3, %v1495_v9  ;;  %v2222_v24 = vmul.f32 %v3255_v47, %v3563_v26  ;;  %v2223_v14 = vmul.f32 %v3255_v47, %v3566_v27  ;;  %v695_v8 = vld [vmem:[#allocation2 + $0x138] sm:$0xfe] }
 0x109   :  { %v2505_v53 = vmul.f32 %v3569_v41, %v2430_v12  ;;  %v2506_v23 = vmul.f32 %v3572_v42, %v2431_v13  ;;  %v2127_v55 = vadd.f32 %v2063_v17, %v1921_v7  ;;  %v2128_v34 = vadd.f32 %v2064_v46, %v1922_v5  ;;  %v694_v46 = vld [vmem:[#allocation2 + $0x280] sm:$0xfe]  ;;  %v697_v7 = vld [vmem:[#allocation2 + $0x3a8] sm:$0x1] }
 0x10a   :  { %v2129_v37 = vadd.f32 %v2065_v38, %v1923_v50  ;;  %v2130_v39 = vadd.f32 %v2066_v32, %v1924_v2  ;;  %v2286_v52 = vrot.slane %v2222_v24, 1  ;;  %v2287_v56 = vrot.slane %v2223_v14, 1  ;;  %v696_v32 = vld [vmem:[#allocation2 + $0x348] sm:$0x1] }
 0x10b   :  { %v2507_v1 = vmul.f32 %v3569_v41, %v2432_v25  ;;  %v2508_v35 = vmul.f32 %v3572_v42, %v2433_v30  ;;  %v2647_v15 = vrot.slane %v2505_v53, 2  ;;  %v2648_v51 = vrot.slane %v2506_v23, 2 }
 0x10c   :  { %v327_v44 = vmul.f32 %v3468_v61, %v252_v28  ;;  %v328_v43 = vmul.f32 %v3471_v62, %v253_v31  ;;  %v2364_v45 = vadd.f32 %v2286_v52, %v2127_v55  ;;  %v2365_v60 = vadd.f32 %v2287_v56, %v2128_v34 }
 0x10d   :  { %v2366_v6 = vadd.f32 %v2286_v52, %v2129_v37  ;;  %v2367_v17 = vadd.f32 %v2287_v56, %v2130_v39  ;;  %v2649_v29 = vrot.slane %v2507_v1, 2  ;;  %v2651_v4 = vrot.slane %v2508_v35, 2  ;;  %v1124_v52 = vld [vmem:[#allocation2 + $0xf8] sm:$0x80]  ;;  %v1125_v56 = vld [vmem:[#allocation2 + $0x250] sm:$0x80] }
 0x10e   :  { %v329_v9 = vmul.f32 %v3468_v61, %v254_v49  ;;  %v330_v12 = vmul.f32 %v3471_v62, %v255_v40  ;;  %v2793_v13 = vadd.f32 %v2647_v15, %v2364_v45  ;;  %v2794_v18 = vadd.f32 %v2648_v51, %v2365_v60  ;;  %v1126_v45 = vld [vmem:[#allocation2 + $0xb8] sm:$0x7f] }
 0x10f   :  { %v482_v3 = vmul.f32 %v3474_v63, %v439_v20  ;;  %v483_v38 = vmul.f32 %v3477_v0, %v440_v33  ;;  %v2650_v5 = vsel %vm861_vm0, %v2647_v15, %v2649_v29  ;;  %v2652_v50 = vsel %vm861_vm0, %v2648_v51, %v2651_v4 }
 0x110   :  { %v769_v2 = vmul.f32 %v3480_v10, %v694_v46  ;;  %v770_v25 = vmul.f32 %v3483_v11, %v695_v8  ;;  %v2795_v30 = vadd.f32 %v2650_v5, %v2366_v6  ;;  %v2796_v47 = vadd.f32 %v2652_v50, %v2367_v17  ;;  %v1127_v17 = vld [vmem:[#allocation2 + $0x1e8] sm:$0x7f]  ;;  %v1568_v5 = vld [vmem:[#allocation2 + $0x2b8] sm:$0x1] }
 0x111   :  { %v2869_v24 = vadd.f32 %v3586_v58, %v2793_v13  ;;  %v2870_v14 = vadd.f32 %v3589_v59, %v2794_v18  ;;  %v546_v53 = vrot.slane %v482_v3, 1  ;;  %v547_v23 = vrot.slane %v483_v38, 1  ;;  %v1566_v13 = vld [vmem:[#allocation2 + $0xb8] sm:$0xfe] }
 0x112   :  { %v771_v28 = vmul.f32 %v3480_v10, %v696_v32  ;;  %v772_v31 = vmul.f32 %v3483_v11, %v697_v7  ;;  %v2871_v55 = vadd.f32 %v3586_v58, %v2795_v30  ;;  %v2872_v34 = vadd.f32 %v3589_v59, %v2796_v47  ;;  %v1567_v7 = vld [vmem:[#allocation2 + $0x1e8] sm:$0xfe]  ;;  %v1569_v47 = vld [vmem:[#allocation2 + $0x128] sm:$0x1] }
 0x113   :  { %v3012_v37 = vrot.slane %v2869_v24, 7  ;;  %v3015_v39 = vrot.slane %v2870_v14, 7  ;;  %v628_v1 = vadd.f32 %v546_v53, %v327_v44  ;;  %v629_v35 = vadd.f32 %v547_v23, %v328_v43 }
 0x114   :  { %v630_v49 = vadd.f32 %v546_v53, %v329_v9  ;;  %v631_v40 = vadd.f32 %v547_v23, %v330_v12  ;;  %v3013_v15 = vrot.slane %v2871_v55, 7  ;;  %v3016_v51 = vrot.slane %v2872_v34, 7  ;;  %v4047_v9 = vld [vmem:[#allocation2 + $0xb8] sm:$0xff]  ;;  %v4049_v12 = vld [vmem:[#allocation2 + $0x1e8] sm:$0xff] }
 0x115   :  { %v916_v20 = vrot.slane %v769_v2, 2  ;;  %v917_v33 = vrot.slane %v770_v25, 2  ;;  %v918_v60 = vrot.slane %v771_v28, 2  ;;  %v920_v6 = vrot.slane %v772_v31, 2  ;;  %v1996_v28 = vld [vmem:[#allocation2 + $0xa0] sm:$0x80] }
 0x116   :  { %v1199_v46 = vmul.f32 %v3486_v16, %v1124_v52  ;;  %v1200_v8 = vmul.f32 %v3489_v19, %v1125_v56  ;;  %v3014_v29 = vsel %vm2969_vm1, %v3012_v37, %v3013_v15  ;;  %v3017_v4 = vsel %vm2969_vm1, %v3015_v39, %v3016_v51  ;;  %v1997_v31 = vld [vmem:[#allocation2 + $0x3a0] sm:$0x80]  ;;  %v1998_v52 = vld [vmem:[#allocation2 + $0x2f8] sm:$0x7f] }
 0x117   :  { %v1058_v44 = vadd.f32 %v916_v20, %v628_v1  ;;  %v1059_v43 = vadd.f32 %v917_v33, %v629_v35  ;;  %v3245_v18 = vpack.c.bf16 %v3017_v4, %v3014_v29  ;;  %v919_v3 = vsel %vm861_vm0, %v916_v20, %v918_v60  ;;  %v2438_v29 = vld [vmem:[#allocation2 + $0x2f8] sm:$0xfe]  ;;  %v2439_v4 = vld [vmem:[#allocation2 + $0x350] sm:$0xfe] }
 0x118   :  { %v921_v38 = vsel %vm861_vm0, %v917_v33, %v920_v6  ;;  %v1201_v32 = vmul.f32 %v3486_v16, %v1126_v45  ;;  %v1060_v50 = vadd.f32 %v919_v3, %v630_v49  ;;  %v1202_v25 = vmul.f32 %v3489_v19, %v1127_v17  ;;  %v4068_v45 = vld [vmem:[#allocation2 + $0x2f8] sm:$0xff] }
 0x119   :  { %v1061_v2 = vadd.f32 %v921_v38, %v631_v40  ;;  %v1263_v30 = vadd.f32 %v1199_v46, %v1058_v44  ;;  %3201 = vst [vmem:[%s4422_s3 + $0x38] sm:$0xff] %v3245_v18  ;;  %v1264_v24 = vadd.f32 %v1200_v8, %v1059_v43  ;;  %v1354_v14 = vmul.f32 %v3522_v54, %v4047_v9  ;;  %v1999_v40 = vld [vmem:[#allocation2 + $0x350] sm:$0x7f] }
 0x11a   :  { %v1355_v53 = vmul.f32 %v3525_v57, %v4049_v12  ;;  %v1641_v23 = vmul.f32 %v3532_v21, %v1566_v13  ;;  %v1265_v55 = vadd.f32 %v1201_v32, %v1060_v50  ;;  %v1642_v37 = vmul.f32 %v3535_v22, %v1567_v7  ;;  %v4070_v8 = vld [vmem:[#allocation2 + $0x350] sm:$0xff]  ;;  %v2441_v50 = vld [vmem:[#allocation2 + $0x298] sm:$0x1] }
 0x11b   :  { %v1266_v34 = vadd.f32 %v1202_v25, %v1061_v2  ;;  %v1643_v39 = vmul.f32 %v3532_v21, %v1568_v5  ;;  %v1418_v56 = vrot.slane %v1354_v14, 1  ;;  %v1644_v35 = vmul.f32 %v3535_v22, %v1569_v47  ;;  %v2440_v5 = vld [vmem:[#allocation2 + $0x230] sm:$0x1] }
 0x11c   :  { %v1419_v1 = vrot.slane %v1355_v53, 1  ;;  %v1787_v49 = vrot.slane %v1641_v23, 2  ;;  %v1788_v15 = vrot.slane %v1642_v37, 2  ;;  %v2071_v20 = vmul.f32 %v3545_v48, %v1996_v28 }
 0x11d   :  { %v1789_v51 = vrot.slane %v1643_v39, 2  ;;  %v2072_v33 = vmul.f32 %v3548_v36, %v1997_v31  ;;  %v1500_v60 = vadd.f32 %v1418_v56, %v1263_v30  ;;  %v1502_v17 = vadd.f32 %v1418_v56, %v1265_v55  ;;  %v257_v39 = vld [vmem:[#allocation2 + $0x250] sm:$0x80] }
 0x11e   :  { %v1501_v6 = vadd.f32 %v1419_v1, %v1264_v24  ;;  %v1503_v46 = vadd.f32 %v1419_v1, %v1266_v34  ;;  %v1791_v43 = vrot.slane %v1644_v35, 2  ;;  %v2073_v13 = vmul.f32 %v3545_v48, %v1998_v52  ;;  %v256_v24 = vld [vmem:[#allocation2 + $0xf8] sm:$0x80]  ;;  %v258_v52 = vld [vmem:[#allocation2 + $0xb8] sm:$0x7f] }
 0x11f   :  { %v1790_v44 = vsel %vm861_vm0, %v1787_v49, %v1789_v51  ;;  %v2074_v18 = vmul.f32 %v3548_v36, %v1999_v40  ;;  %v1929_v3 = vadd.f32 %v1787_v49, %v1500_v60  ;;  %v2226_v7 = vmul.f32 %v3563_v26, %v4068_v45  ;;  %v259_v49 = vld [vmem:[#allocation2 + $0x1e8] sm:$0x7f] }
 0x120   :  { %v1930_v38 = vadd.f32 %v1788_v15, %v1501_v6  ;;  %v1931_v32 = vadd.f32 %v1790_v44, %v1502_v17  ;;  %v1792_v2 = vsel %vm861_vm0, %v1788_v15, %v1791_v43  ;;  %v2227_v25 = vmul.f32 %v3566_v27, %v4070_v8 }
 0x121   :  { %v2513_v30 = vmul.f32 %v3569_v41, %v2438_v29  ;;  %v2514_v47 = vmul.f32 %v3572_v42, %v2439_v4  ;;  %v1932_v14 = vadd.f32 %v1792_v2, %v1503_v46  ;;  %v2135_v53 = vadd.f32 %v2071_v20, %v1929_v3  ;;  %v698_v29 = vld [vmem:[#allocation2 + $0xb8] sm:$0xfe] }
 0x122   :  { %v2136_v23 = vadd.f32 %v2072_v33, %v1930_v38  ;;  %v2137_v28 = vadd.f32 %v2073_v13, %v1931_v32  ;;  %v2290_v31 = vrot.slane %v2226_v7, 1  ;;  %v2291_v55 = vrot.slane %v2227_v25, 1 }
 0x123   :  { %v2515_v34 = vmul.f32 %v3569_v41, %v2440_v5  ;;  %v2516_v37 = vmul.f32 %v3572_v42, %v2441_v50  ;;  %v2138_v56 = vadd.f32 %v2074_v18, %v1932_v14  ;;  %v2659_v1 = vrot.slane %v2513_v30, 2  ;;  %v699_v18 = vld [vmem:[#allocation2 + $0x1e8] sm:$0xfe]  ;;  %v700_v5 = vld [vmem:[#allocation2 + $0x2b8] sm:$0x1] }
 0x124   :  { %v2660_v35 = vrot.slane %v2514_v47, 2  ;;  %v331_v40 = vmul.f32 %v3468_v61, %v256_v24  ;;  %v2372_v15 = vadd.f32 %v2290_v31, %v2135_v53  ;;  %v2373_v51 = vadd.f32 %v2291_v55, %v2136_v23  ;;  %v701_v53 = vld [vmem:[#allocation2 + $0x128] sm:$0x1] }
 0x125   :  { %v2374_v60 = vadd.f32 %v2290_v31, %v2137_v28  ;;  %v2661_v20 = vrot.slane %v2515_v34, 2  ;;  %v2375_v33 = vadd.f32 %v2291_v55, %v2138_v56  ;;  %v2663_v6 = vrot.slane %v2516_v37, 2  ;;  %v1128_v55 = vld [vmem:[#allocation2 + $0xa0] sm:$0x80] }
 0x126   :  { %v332_v17 = vmul.f32 %v3471_v62, %v257_v39  ;;  %v333_v46 = vmul.f32 %v3468_v61, %v258_v52  ;;  %v2801_v44 = vadd.f32 %v2659_v1, %v2372_v15  ;;  %v2802_v43 = vadd.f32 %v2660_v35, %v2373_v51  ;;  %v1129_v56 = vld [vmem:[#allocation2 + $0x3a0] sm:$0x80]  ;;  %v1130_v51 = vld [vmem:[#allocation2 + $0x2f8] sm:$0x7f] }
 0x127   :  { %v2662_v4 = vsel %vm861_vm0, %v2659_v1, %v2661_v20  ;;  %v334_v13 = vmul.f32 %v3471_v62, %v259_v49  ;;  %v2664_v3 = vsel %vm861_vm0, %v2660_v35, %v2663_v6  ;;  %v484_v32 = vmul.f32 %v4047_v9, %v3474_v63  ;;  %v1131_v6 = vld [vmem:[#allocation2 + $0x350] sm:$0x7f] }
 0x128   :  { %v2803_v38 = vadd.f32 %v2662_v4, %v2374_v60  ;;  %v485_v7 = vmul.f32 %v4049_v12, %v3477_v0  ;;  %v2804_v50 = vadd.f32 %v2664_v3, %v2375_v33  ;;  %v2877_v2 = vadd.f32 %v3586_v58, %v2801_v44  ;;  %v1570_v3 = vld [vmem:[#allocation2 + $0x2f8] sm:$0xfe] }
 0x129   :  { %v2878_v25 = vadd.f32 %v3589_v59, %v2802_v43  ;;  %v773_v30 = vmul.f32 %v3480_v10, %v698_v29  ;;  %v548_v24 = vrot.slane %v484_v32, 1  ;;  %v774_v23 = vmul.f32 %v3483_v11, %v699_v18  ;;  %v1572_v32 = vld [vmem:[#allocation2 + $0x230] sm:$0x1] }
 0x12a   :  { %v2879_v47 = vadd.f32 %v3586_v58, %v2803_v38  ;;  %v549_v14 = vrot.slane %v485_v7, 1  ;;  %v2880_v9 = vadd.f32 %v3589_v59, %v2804_v50  ;;  %v3024_v28 = vrot.slane %v2877_v2, 7  ;;  %v1571_v38 = vld [vmem:[#allocation2 + $0x350] sm:$0xfe] }
 0x12b   :  { %v3027_v31 = vrot.slane %v2878_v25, 7  ;;  %v775_v12 = vmul.f32 %v3480_v10, %v700_v5  ;;  %v632_v37 = vadd.f32 %v548_v24, %v331_v40  ;;  %v634_v52 = vadd.f32 %v548_v24, %v333_v46  ;;  %v1573_v25 = vld [vmem:[#allocation2 + $0x298] sm:$0x1] }
 0x12c   :  { %v3025_v34 = vrot.slane %v2879_v47, 7  ;;  %v633_v39 = vadd.f32 %v549_v14, %v332_v17  ;;  %v3028_v1 = vrot.slane %v2880_v9, 7  ;;  %v635_v35 = vadd.f32 %v549_v14, %v334_v13 }
 0x12d   :  { %v776_v49 = vmul.f32 %v3483_v11, %v701_v53  ;;  %v922_v15 = vrot.slane %v773_v30, 2  ;;  %v923_v20 = vrot.slane %v774_v23, 2  ;;  %v924_v33 = vrot.slane %v775_v12, 2  ;;  %v2000_v53 = vld [vmem:[#allocation2 + $0x318] sm:$0x80] }
 0x12e   :  { %v3026_v60 = vsel %vm2969_vm1, %v3024_v28, %v3025_v34  ;;  %v1203_v29 = vmul.f32 %v3486_v16, %v1128_v55  ;;  %v3029_v4 = vsel %vm2969_vm1, %v3027_v31, %v3028_v1  ;;  %v1204_v17 = vmul.f32 %v3489_v19, %v1129_v56 }
 0x12f   :  { %v926_v44 = vrot.slane %v776_v49, 2  ;;  %v1062_v40 = vadd.f32 %v922_v15, %v632_v37  ;;  %v3247_v46 = vpack.c.bf16 %v3029_v4, %v3026_v60  ;;  %v925_v43 = vsel %vm861_vm0, %v922_v15, %v924_v33  ;;  %v2003_v49 = vld [vmem:[#allocation2 + $0x28] sm:$0x7f] }
 0x130   :  { %v1063_v13 = vadd.f32 %v923_v20, %v633_v39  ;;  %v1205_v18 = vmul.f32 %v3486_v16, %v1130_v51  ;;  %v1064_v5 = vadd.f32 %v925_v43, %v634_v52  ;;  %v1206_v50 = vmul.f32 %v3489_v19, %v1131_v6  ;;  %v2001_v39 = vld [vmem:[#allocation2 + $0x160] sm:$0x80]  ;;  %v2002_v52 = vld [vmem:[#allocation2 + $0x88] sm:$0x7f] }
 0x131   :  { %v927_v7 = vsel %vm861_vm0, %v923_v20, %v926_v44  ;;  %v1267_v2 = vadd.f32 %v1203_v29, %v1062_v40  ;;  %3203 = vst [vmem:[%s4422_s3 + $0x48] sm:$0xff] %v3247_v46  ;;  %v1356_v24 = vmul.f32 %v4068_v45, %v3522_v54  ;;  %v1357_v14 = vmul.f32 %v4070_v8, %v3525_v57  ;;  %v4122_v6 = vld [vmem:[#allocation2 + $0x88] sm:$0xff] }
 0x132   :  { %v1065_v30 = vadd.f32 %v927_v7, %v635_v35  ;;  %v1268_v47 = vadd.f32 %v1204_v17, %v1063_v13  ;;  %v1269_v23 = vadd.f32 %v1205_v18, %v1064_v5  ;;  %v1645_v9 = vmul.f32 %v3532_v21, %v1570_v3  ;;  %v4124_v29 = vld [vmem:[#allocation2 + $0x28] sm:$0xff] }
 0x133   :  { %v1646_v28 = vmul.f32 %v3535_v22, %v1571_v38  ;;  %v1647_v31 = vmul.f32 %v3532_v21, %v1572_v32  ;;  %v1420_v55 = vrot.slane %v1356_v24, 1  ;;  %v1421_v34 = vrot.slane %v1357_v14, 1  ;;  %v2442_v4 = vld [vmem:[#allocation2 + $0x88] sm:$0xfe]  ;;  %v2444_v32 = vld [vmem:[#allocation2 + $0x120] sm:$0x1] }
 0x134   :  { %v1270_v12 = vadd.f32 %v1206_v50, %v1065_v30  ;;  %v1648_v37 = vmul.f32 %v3535_v22, %v1573_v25  ;;  %v1793_v56 = vrot.slane %v1645_v9, 2  ;;  %v2075_v15 = vmul.f32 %v3545_v48, %v2000_v53  ;;  %v2443_v38 = vld [vmem:[#allocation2 + $0x28] sm:$0xfe]  ;;  %v260_v30 = vld [vmem:[#allocation2 + $0xa0] sm:$0x80] }
 0x135   :  { %v1794_v1 = vrot.slane %v1646_v28, 2  ;;  %v1795_v35 = vrot.slane %v1647_v31, 2  ;;  %v1504_v51 = vadd.f32 %v1420_v55, %v1267_v2  ;;  %v1505_v60 = vadd.f32 %v1421_v34, %v1268_v47  ;;  %v2445_v2 = vld [vmem:[#allocation2 + $0x140] sm:$0x1] }
 0x136   :  { %v1506_v20 = vadd.f32 %v1420_v55, %v1269_v23  ;;  %v1507_v33 = vadd.f32 %v1421_v34, %v1270_v12  ;;  %v1797_v40 = vrot.slane %v1648_v37, 2  ;;  %v2076_v17 = vmul.f32 %v3548_v36, %v2001_v39  ;;  %v261_v12 = vld [vmem:[#allocation2 + $0x3a0] sm:$0x80]  ;;  %v262_v39 = vld [vmem:[#allocation2 + $0x2f8] sm:$0x7f] }
 0x137   :  { %v1796_v44 = vsel %vm861_vm0, %v1793_v56, %v1795_v35  ;;  %v2077_v46 = vmul.f32 %v3545_v48, %v2002_v52  ;;  %v1933_v43 = vadd.f32 %v1793_v56, %v1504_v51  ;;  %v1934_v13 = vadd.f32 %v1794_v1, %v1505_v60  ;;  %v263_v52 = vld [vmem:[#allocation2 + $0x350] sm:$0x7f] }
 0x138   :  { %v1935_v18 = vadd.f32 %v1796_v44, %v1506_v20  ;;  %v2078_v3 = vmul.f32 %v3548_v36, %v2003_v49  ;;  %v1798_v7 = vsel %vm861_vm0, %v1794_v1, %v1797_v40  ;;  %v2228_v5 = vmul.f32 %v3563_v26, %v4122_v6 }
 0x139   :  { %v2229_v50 = vmul.f32 %v3566_v27, %v4124_v29  ;;  %v2517_v25 = vmul.f32 %v3569_v41, %v2442_v4  ;;  %v1936_v47 = vadd.f32 %v1798_v7, %v1507_v33  ;;  %v2139_v24 = vadd.f32 %v2075_v15, %v1933_v43  ;;  %v703_v43 = vld [vmem:[#allocation2 + $0x350] sm:$0xfe] }
 0x13a   :  { %v2140_v14 = vadd.f32 %v2076_v17, %v1934_v13  ;;  %v2141_v53 = vadd.f32 %v2077_v46, %v1935_v18  ;;  %v2292_v23 = vrot.slane %v2228_v5, 1  ;;  %v2518_v28 = vmul.f32 %v3572_v42, %v2443_v38  ;;  %v702_v46 = vld [vmem:[#allocation2 + $0x2f8] sm:$0xfe] }
 0x13b   :  { %v2293_v9 = vrot.slane %v2229_v50, 1  ;;  %v2519_v31 = vmul.f32 %v3569_v41, %v2444_v32  ;;  %v2142_v55 = vadd.f32 %v2078_v3, %v1936_v47  ;;  %v2520_v34 = vmul.f32 %v3572_v42, %v2445_v2  ;;  %v705_v47 = vld [vmem:[#allocation2 + $0x298] sm:$0x1] }
 0x13c   :  { %v2665_v37 = vrot.slane %v2517_v25, 2  ;;  %v335_v56 = vmul.f32 %v3468_v61, %v260_v30  ;;  %v2376_v1 = vadd.f32 %v2292_v23, %v2139_v24  ;;  %v2378_v49 = vadd.f32 %v2292_v23, %v2141_v53  ;;  %v704_v30 = vld [vmem:[#allocation2 + $0x230] sm:$0x1] }
 0x13d   :  { %v2377_v35 = vadd.f32 %v2293_v9, %v2140_v14  ;;  %v2666_v15 = vrot.slane %v2518_v28, 2  ;;  %v2379_v51 = vadd.f32 %v2293_v9, %v2142_v55  ;;  %v2667_v60 = vrot.slane %v2519_v31, 2  ;;  %v1132_v9 = vld [vmem:[#allocation2 + $0x318] sm:$0x80]  ;;  %v1133_v28 = vld [vmem:[#allocation2 + $0x160] sm:$0x80] }
 0x13e   :  { %v2669_v20 = vrot.slane %v2520_v34, 2  ;;  %v336_v33 = vmul.f32 %v3471_v62, %v261_v12  ;;  %v2805_v4 = vadd.f32 %v2665_v37, %v2376_v1  ;;  %v337_v40 = vmul.f32 %v3468_v61, %v262_v39 }
 0x13f   :  { %v2806_v44 = vadd.f32 %v2666_v15, %v2377_v35  ;;  %v338_v17 = vmul.f32 %v3471_v62, %v263_v52  ;;  %v2668_v13 = vsel %vm861_vm0, %v2665_v37, %v2667_v60  ;;  %v486_v3 = vmul.f32 %v4068_v45, %v3474_v63  ;;  %v1134_v35 = vld [vmem:[#allocation2 + $0x88] sm:$0x7f] }
 0x140   :  { %v2670_v18 = vsel %vm861_vm0, %v2666_v15, %v2669_v20  ;;  %v487_v38 = vmul.f32 %v4070_v8, %v3477_v0  ;;  %v2807_v32 = vadd.f32 %v2668_v13, %v2378_v49  ;;  %v2881_v5 = vadd.f32 %v3586_v58, %v2805_v4  ;;  %v1574_v13 = vld [vmem:[#allocation2 + $0x88] sm:$0xfe] }
 0x141   :  { %v2808_v7 = vadd.f32 %v2670_v18, %v2379_v51  ;;  %v2882_v50 = vadd.f32 %v3589_v59, %v2806_v44  ;;  %v550_v2 = vrot.slane %v486_v3, 1  ;;  %v777_v24 = vmul.f32 %v3480_v10, %v702_v46  ;;  %v1135_v51 = vld [vmem:[#allocation2 + $0x28] sm:$0x7f] }
 0x142   :  { %v551_v25 = vrot.slane %v487_v38, 1  ;;  %v778_v14 = vmul.f32 %v3483_v11, %v703_v43  ;;  %v2883_v53 = vadd.f32 %v3586_v58, %v2807_v32  ;;  %v3030_v23 = vrot.slane %v2881_v5, 7  ;;  %v1575_v18 = vld [vmem:[#allocation2 + $0x28] sm:$0xfe]  ;;  %v1576_v5 = vld [vmem:[#allocation2 + $0x120] sm:$0x1] }
 0x143   :  { %v2884_v45 = vadd.f32 %v3589_v59, %v2808_v7  ;;  %v3033_v8 = vrot.slane %v2882_v50, 7  ;;  %v636_v31 = vadd.f32 %v550_v2, %v335_v56  ;;  %v638_v55 = vadd.f32 %v550_v2, %v337_v40  ;;  %v1577_v50 = vld [vmem:[#allocation2 + $0x140] sm:$0x1] }
 0x144   :  { %v637_v12 = vadd.f32 %v551_v25, %v336_v33  ;;  %v639_v34 = vadd.f32 %v551_v25, %v338_v17  ;;  %v3031_v37 = vrot.slane %v2883_v53, 7  ;;  %v779_v52 = vmul.f32 %v3480_v10, %v704_v30 }
 0x145   :  { %v3034_v39 = vrot.slane %v2884_v45, 7  ;;  %v780_v1 = vmul.f32 %v3483_v11, %v705_v47  ;;  %v928_v49 = vrot.slane %v777_v24, 2  ;;  %v929_v15 = vrot.slane %v778_v14, 2 }
 0x146   :  { %v1207_v60 = vmul.f32 %v3486_v16, %v1132_v9  ;;  %v1208_v20 = vmul.f32 %v3489_v19, %v1133_v28  ;;  %v3032_v4 = vsel %vm2969_vm1, %v3030_v23, %v3031_v37  ;;  %v930_v33 = vrot.slane %v779_v52, 2  ;;  %v2004_v23 = vld [vmem:[#allocation2 + $0x68] sm:$0x80] }
 0x147   :  { %v3035_v56 = vsel %vm2969_vm1, %v3033_v8, %v3034_v39  ;;  %v932_v44 = vrot.slane %v780_v1, 2  ;;  %v1066_v17 = vadd.f32 %v928_v49, %v636_v31  ;;  %v1067_v46 = vadd.f32 %v929_v15, %v637_v12  ;;  %v2005_v12 = vld [vmem:[#allocation2 + $0xd0] sm:$0x80]  ;;  %v2007_v1 = vld [vmem:[#allocation2 + $0x378] sm:$0x7f] }
 0x148   :  { %v3248_v40 = vpack.c.bf16 %v3035_v56, %v3032_v4  ;;  %v1209_v43 = vmul.f32 %v3486_v16, %v1134_v35  ;;  %v931_v3 = vsel %vm861_vm0, %v928_v49, %v930_v33  ;;  %v1210_v32 = vmul.f32 %v3489_v19, %v1135_v51 }
 0x149   :  { %v933_v38 = vsel %vm861_vm0, %v929_v15, %v932_v44  ;;  %v1358_v7 = vmul.f32 %v4122_v6, %v3522_v54  ;;  %v1068_v2 = vadd.f32 %v931_v3, %v638_v55  ;;  %v1271_v30 = vadd.f32 %v1207_v60, %v1066_v17  ;;  %v2006_v55 = vld [vmem:[#allocation2 + $0x180] sm:$0x7f]  ;;  %v4180_v44 = vld [vmem:[#allocation2 + $0x378] sm:$0xff] }
 0x14a   :  { %3204 = vst [vmem:[%s4422_s3 + $0x50] sm:$0xff] %v3248_v40  ;;  %v1069_v25 = vadd.f32 %v933_v38, %v639_v34  ;;  %v1272_v47 = vadd.f32 %v1208_v20, %v1067_v46  ;;  %v1359_v24 = vmul.f32 %v4124_v29, %v3525_v57  ;;  %v1649_v53 = vmul.f32 %v3532_v21, %v1574_v13  ;;  %v4177_v60 = vld [vmem:[#allocation2 + $0x180] sm:$0xff]  ;;  %v2447_v17 = vld [vmem:[#allocation2 + $0x378] sm:$0xfe]  ;;  %v2448_v3 = vld [vmem:[#allocation2 + $0x258] sm:$0x1] }
 0x14b   :  { %v1422_v14 = vrot.slane %v1358_v7, 1  ;;  %v1650_v45 = vmul.f32 %v3535_v22, %v1575_v18  ;;  %v1273_v8 = vadd.f32 %v1209_v43, %v1068_v2  ;;  %v1651_v28 = vmul.f32 %v3532_v21, %v1576_v5  ;;  %v2446_v40 = vld [vmem:[#allocation2 + $0x180] sm:$0xfe] }
 0x14c   :  { %v1274_v9 = vadd.f32 %v1210_v32, %v1069_v25  ;;  %v1652_v31 = vmul.f32 %v3535_v22, %v1577_v50  ;;  %v1423_v34 = vrot.slane %v1359_v24, 1  ;;  %v1799_v39 = vrot.slane %v1649_v53, 2  ;;  %v2449_v50 = vld [vmem:[#allocation2 + $0x220] sm:$0x1]  ;;  %v264_v24 = vld [vmem:[#allocation2 + $0x318] sm:$0x80] }
 0x14d   :  { %v1508_v37 = vadd.f32 %v1422_v14, %v1271_v30  ;;  %v1800_v52 = vrot.slane %v1650_v45, 2  ;;  %v1510_v35 = vadd.f32 %v1422_v14, %v1273_v8  ;;  %v1801_v49 = vrot.slane %v1651_v28, 2  ;;  %v265_v14 = vld [vmem:[#allocation2 + $0x160] sm:$0x80] }
 0x14e   :  { %v1803_v15 = vrot.slane %v1652_v31, 2  ;;  %v2079_v51 = vmul.f32 %v3545_v48, %v2004_v23  ;;  %v1509_v20 = vadd.f32 %v1423_v34, %v1272_v47  ;;  %v1511_v4 = vadd.f32 %v1423_v34, %v1274_v9  ;;  %v266_v9 = vld [vmem:[#allocation2 + $0x88] sm:$0x7f] }
 0x14f   :  { %v1937_v56 = vadd.f32 %v1799_v39, %v1508_v37  ;;  %v2080_v33 = vmul.f32 %v3548_v36, %v2005_v12  ;;  %v1802_v46 = vsel %vm861_vm0, %v1799_v39, %v1801_v49  ;;  %v2081_v13 = vmul.f32 %v3545_v48, %v2006_v55  ;;  %v267_v34 = vld [vmem:[#allocation2 + $0x28] sm:$0x7f] }
 0x150   :  { %v1804_v43 = vsel %vm861_vm0, %v1800_v52, %v1803_v15  ;;  %v2082_v18 = vmul.f32 %v3548_v36, %v2007_v1  ;;  %v1938_v38 = vadd.f32 %v1800_v52, %v1509_v20  ;;  %v1939_v32 = vadd.f32 %v1802_v46, %v1510_v35  ;;  %v706_v20 = vld [vmem:[#allocation2 + $0x88] sm:$0xfe] }
 0x151   :  { %v1940_v7 = vadd.f32 %v1804_v43, %v1511_v4  ;;  %v2143_v5 = vadd.f32 %v2079_v51, %v1937_v56  ;;  %v2230_v2 = vmul.f32 %v3563_v26, %v4177_v60  ;;  %v2231_v25 = vmul.f32 %v3566_v27, %v4180_v44  ;;  %v707_v4 = vld [vmem:[#allocation2 + $0x28] sm:$0xfe] }
 0x152   :  { %v2521_v30 = vmul.f32 %v3569_v41, %v2446_v40  ;;  %v2522_v47 = vmul.f32 %v3572_v42, %v2447_v17  ;;  %v2144_v53 = vadd.f32 %v2080_v33, %v1938_v38  ;;  %v2145_v45 = vadd.f32 %v2081_v13, %v1939_v32  ;;  %v709_v38 = vld [vmem:[#allocation2 + $0x140] sm:$0x1] }
 0x153   :  { %v2146_v23 = vadd.f32 %v2082_v18, %v1940_v7  ;;  %v2523_v8 = vmul.f32 %v3569_v41, %v2448_v3  ;;  %v2294_v28 = vrot.slane %v2230_v2, 1  ;;  %v2295_v31 = vrot.slane %v2231_v25, 1  ;;  %v708_v3 = vld [vmem:[#allocation2 + $0x120] sm:$0x1] }
 0x154   :  { %v2524_v12 = vmul.f32 %v3572_v42, %v2449_v50  ;;  %v2671_v55 = vrot.slane %v2521_v30, 2  ;;  %v2672_v37 = vrot.slane %v2522_v47, 2  ;;  %v339_v52 = vmul.f32 %v3468_v61, %v264_v24 }
 0x155   :  { %v2673_v39 = vrot.slane %v2523_v8, 2  ;;  %v340_v1 = vmul.f32 %v3471_v62, %v265_v14  ;;  %v2380_v35 = vadd.f32 %v2294_v28, %v2143_v5  ;;  %v2381_v49 = vadd.f32 %v2295_v31, %v2144_v53 }
 0x156   :  { %v2382_v15 = vadd.f32 %v2294_v28, %v2145_v45  ;;  %v2383_v51 = vadd.f32 %v2295_v31, %v2146_v23  ;;  %v2675_v33 = vrot.slane %v2524_v12, 2  ;;  %v341_v40 = vmul.f32 %v3468_v61, %v266_v9  ;;  %v1136_v45 = vld [vmem:[#allocation2 + $0x68] sm:$0x80]  ;;  %v1137_v28 = vld [vmem:[#allocation2 + $0xd0] sm:$0x80] }
 0x157   :  { %v2674_v56 = vsel %vm861_vm0, %v2671_v55, %v2673_v39  ;;  %v342_v17 = vmul.f32 %v3471_v62, %v267_v34  ;;  %v2809_v46 = vadd.f32 %v2671_v55, %v2380_v35  ;;  %v2810_v43 = vadd.f32 %v2672_v37, %v2381_v49 }
 0x158   :  { %v2811_v13 = vadd.f32 %v2674_v56, %v2382_v15  ;;  %v488_v18 = vmul.f32 %v4122_v6, %v3474_v63  ;;  %v2676_v32 = vsel %vm861_vm0, %v2672_v37, %v2675_v33  ;;  %v489_v7 = vmul.f32 %v4124_v29, %v3477_v0  ;;  %v1138_v37 = vld [vmem:[#allocation2 + $0x180] sm:$0x7f] }
 0x159   :  { %v781_v5 = vmul.f32 %v3480_v10, %v706_v20  ;;  %v782_v50 = vmul.f32 %v3483_v11, %v707_v4  ;;  %v2812_v2 = vadd.f32 %v2676_v32, %v2383_v51  ;;  %v2885_v25 = vadd.f32 %v3586_v58, %v2809_v46  ;;  %v1139_v51 = vld [vmem:[#allocation2 + $0x378] sm:$0x7f] }
 0x15a   :  { %v2886_v30 = vadd.f32 %v3589_v59, %v2810_v43  ;;  %v2887_v47 = vadd.f32 %v3586_v58, %v2811_v13  ;;  %v552_v24 = vrot.slane %v488_v18, 1  ;;  %v553_v6 = vrot.slane %v489_v7, 1  ;;  %v1580_v32 = vld [vmem:[#allocation2 + $0x258] sm:$0x1]  ;;  %v1581_v7 = vld [vmem:[#allocation2 + $0x220] sm:$0x1] }
 0x15b   :  { %v783_v14 = vmul.f32 %v3480_v10, %v708_v3  ;;  %v784_v53 = vmul.f32 %v3483_v11, %v709_v38  ;;  %v2888_v29 = vadd.f32 %v3589_v59, %v2812_v2  ;;  %v3036_v23 = vrot.slane %v2885_v25, 7 }
 0x15c   :  { %v3037_v8 = vrot.slane %v2887_v47, 7  ;;  %v3039_v9 = vrot.slane %v2886_v30, 7  ;;  %v640_v31 = vadd.f32 %v552_v24, %v339_v52  ;;  %v641_v12 = vadd.f32 %v553_v6, %v340_v1 }
 0x15d   :  { %v642_v55 = vadd.f32 %v552_v24, %v341_v40  ;;  %v643_v34 = vadd.f32 %v553_v6, %v342_v17  ;;  %v3040_v35 = vrot.slane %v2888_v29, 7  ;;  %v934_v49 = vrot.slane %v781_v5, 2  ;;  %v1578_v40 = vld [vmem:[#allocation2 + $0x180] sm:$0xfe]  ;;  %v1579_v17 = vld [vmem:[#allocation2 + $0x378] sm:$0xfe] }
 0x15e   :  { %v3038_v39 = vsel %vm2969_vm1, %v3036_v23, %v3037_v8  ;;  %v935_v15 = vrot.slane %v782_v50, 2  ;;  %v936_v20 = vrot.slane %v783_v14, 2  ;;  %v938_v4 = vrot.slane %v784_v53, 2  ;;  %v2008_v14 = vld [vmem:[#allocation2 + $0x2a0] sm:$0x80] }
 0x15f   :  { %v1211_v56 = vmul.f32 %v3486_v16, %v1136_v45  ;;  %v1212_v33 = vmul.f32 %v3489_v19, %v1137_v28  ;;  %v3041_v46 = vsel %vm2969_vm1, %v3039_v9, %v3040_v35  ;;  %v1070_v43 = vadd.f32 %v934_v49, %v640_v31  ;;  %v2009_v53 = vld [vmem:[#allocation2 + $0x1a0] sm:$0x80]  ;;  %v2010_v9 = vld [vmem:[#allocation2 + $0x58] sm:$0x7f] }
 0x160   :  { %v1071_v52 = vadd.f32 %v935_v15, %v641_v12  ;;  %v1213_v1 = vmul.f32 %v3486_v16, %v1138_v37  ;;  %v3249_v13 = vpack.c.bf16 %v3041_v46, %v3038_v39  ;;  %v937_v18 = vsel %vm861_vm0, %v934_v49, %v936_v20  ;;  %v2450_v46 = vld [vmem:[#allocation2 + $0x58] sm:$0xfe] }
 0x161   :  { %v939_v3 = vsel %vm861_vm0, %v935_v15, %v938_v4  ;;  %v1214_v38 = vmul.f32 %v3489_v19, %v1139_v51  ;;  %v1072_v5 = vadd.f32 %v937_v18, %v642_v55  ;;  %v1275_v2 = vadd.f32 %v1211_v56, %v1070_v43  ;;  %v4233_v15 = vld [vmem:[#allocation2 + $0x58] sm:$0xff]  ;;  %v2451_v43 = vld [vmem:[#allocation2 + $0x208] sm:$0xfe] }
 0x162   :  { %v1073_v50 = vadd.f32 %v939_v3, %v643_v34  ;;  %v1276_v25 = vadd.f32 %v1212_v33, %v1071_v52  ;;  %3205 = vst [vmem:[%s4422_s3 + $0x58] sm:$0xff] %v3249_v13  ;;  %v1360_v30 = vmul.f32 %v4177_v60, %v3522_v54  ;;  %v1361_v47 = vmul.f32 %v4180_v44, %v3525_v57  ;;  %v2011_v34 = vld [vmem:[#allocation2 + $0x208] sm:$0x7f] }
 0x163   :  { %v1653_v24 = vmul.f32 %v3532_v21, %v1578_v40  ;;  %v1654_v6 = vmul.f32 %v3535_v22, %v1579_v17  ;;  %v1277_v45 = vadd.f32 %v1213_v1, %v1072_v5  ;;  %v1655_v23 = vmul.f32 %v3532_v21, %v1580_v32  ;;  %v4235_v33 = vld [vmem:[#allocation2 + $0x208] sm:$0xff]  ;;  %v2452_v32 = vld [vmem:[#allocation2 + $0x1e0] sm:$0x1] }
 0x164   :  { %v1278_v29 = vadd.f32 %v1214_v38, %v1073_v50  ;;  %v1656_v8 = vmul.f32 %v3535_v22, %v1581_v7  ;;  %v1424_v28 = vrot.slane %v1360_v30, 1  ;;  %v1425_v31 = vrot.slane %v1361_v47, 1  ;;  %v2453_v7 = vld [vmem:[#allocation2 + $0x100] sm:$0x1]  ;;  %v268_v30 = vld [vmem:[#allocation2 + $0x68] sm:$0x80] }
 0x165   :  { %v1805_v12 = vrot.slane %v1653_v24, 2  ;;  %v1806_v55 = vrot.slane %v1654_v6, 2  ;;  %v1807_v37 = vrot.slane %v1655_v23, 2  ;;  %v2083_v35 = vmul.f32 %v3545_v48, %v2008_v14  ;;  %v269_v47 = vld [vmem:[#allocation2 + $0xd0] sm:$0x80] }
 0x166   :  { %v1809_v39 = vrot.slane %v1656_v8, 2  ;;  %v2084_v49 = vmul.f32 %v3548_v36, %v2009_v53  ;;  %v1512_v51 = vadd.f32 %v1424_v28, %v1275_v2  ;;  %v1513_v20 = vadd.f32 %v1425_v31, %v1276_v25 }
 0x167   :  { %v1514_v4 = vadd.f32 %v1424_v28, %v1277_v45  ;;  %v1515_v56 = vadd.f32 %v1425_v31, %v1278_v29  ;;  %v1808_v52 = vsel %vm861_vm0, %v1805_v12, %v1807_v37  ;;  %v2085_v40 = vmul.f32 %v3545_v48, %v2010_v9  ;;  %v270_v9 = vld [vmem:[#allocation2 + $0x180] sm:$0x7f]  ;;  %v271_v28 = vld [vmem:[#allocation2 + $0x378] sm:$0x7f] }
 0x168   :  { %v1810_v1 = vsel %vm861_vm0, %v1806_v55, %v1809_v39  ;;  %v2086_v17 = vmul.f32 %v3548_v36, %v2011_v34  ;;  %v1941_v13 = vadd.f32 %v1805_v12, %v1512_v51  ;;  %v1942_v18 = vadd.f32 %v1806_v55, %v1513_v20  ;;  %v710_v51 = vld [vmem:[#allocation2 + $0x180] sm:$0xfe]  ;;  %v711_v20 = vld [vmem:[#allocation2 + $0x378] sm:$0xfe] }
 0x169   :  { %v1943_v3 = vadd.f32 %v1808_v52, %v1514_v4  ;;  %v1944_v38 = vadd.f32 %v1810_v1, %v1515_v56  ;;  %v2232_v5 = vmul.f32 %v3563_v26, %v4233_v15  ;;  %v2233_v50 = vmul.f32 %v3566_v27, %v4235_v33 }
 0x16a   :  { %v2525_v2 = vmul.f32 %v3569_v41, %v2450_v46  ;;  %v2526_v25 = vmul.f32 %v3572_v42, %v2451_v43  ;;  %v2147_v24 = vadd.f32 %v2083_v35, %v1941_v13  ;;  %v2148_v6 = vadd.f32 %v2084_v49, %v1942_v18  ;;  %v712_v13 = vld [vmem:[#allocation2 + $0x258] sm:$0x1]  ;;  %v713_v18 = vld [vmem:[#allocation2 + $0x220] sm:$0x1] }
 0x16b   :  { %v2149_v14 = vadd.f32 %v2085_v40, %v1943_v3  ;;  %v2150_v53 = vadd.f32 %v2086_v17, %v1944_v38  ;;  %v2296_v45 = vrot.slane %v2232_v5, 1  ;;  %v2297_v29 = vrot.slane %v2233_v50, 1 }
 0x16c   :  { %v2527_v23 = vmul.f32 %v3569_v41, %v2452_v32  ;;  %v2528_v8 = vmul.f32 %v3572_v42, %v2453_v7  ;;  %v2677_v31 = vrot.slane %v2525_v2, 2  ;;  %v2678_v12 = vrot.slane %v2526_v25, 2 }
 0x16d   :  { %v343_v55 = vmul.f32 %v3468_v61, %v268_v30  ;;  %v344_v34 = vmul.f32 %v3471_v62, %v269_v47  ;;  %v2384_v37 = vadd.f32 %v2296_v45, %v2147_v24  ;;  %v2385_v39 = vadd.f32 %v2297_v29, %v2148_v6 }
 0x16e   :  { %v2386_v35 = vadd.f32 %v2296_v45, %v2149_v14  ;;  %v2387_v49 = vadd.f32 %v2297_v29, %v2150_v53  ;;  %v2679_v4 = vrot.slane %v2527_v23, 2  ;;  %v2681_v56 = vrot.slane %v2528_v8, 2  ;;  %v1140_v45 = vld [vmem:[#allocation2 + $0x2a0] sm:$0x80] }
 0x16f   :  { %v345_v46 = vmul.f32 %v3468_v61, %v270_v9  ;;  %v346_v43 = vmul.f32 %v3471_v62, %v271_v28  ;;  %v2813_v52 = vadd.f32 %v2677_v31, %v2384_v37  ;;  %v2814_v1 = vadd.f32 %v2678_v12, %v2385_v39  ;;  %v1141_v29 = vld [vmem:[#allocation2 + $0x1a0] sm:$0x80] }
 0x170   :  { %v490_v40 = vmul.f32 %v4177_v60, %v3474_v63  ;;  %v491_v17 = vmul.f32 %v4180_v44, %v3477_v0  ;;  %v2680_v3 = vsel %vm861_vm0, %v2677_v31, %v2679_v4  ;;  %v2682_v38 = vsel %vm861_vm0, %v2678_v12, %v2681_v56 }
 0x171   :  { %v785_v32 = vmul.f32 %v3480_v10, %v710_v51  ;;  %v786_v7 = vmul.f32 %v3483_v11, %v711_v20  ;;  %v2815_v5 = vadd.f32 %v2680_v3, %v2386_v35  ;;  %v2816_v50 = vadd.f32 %v2682_v38, %v2387_v49  ;;  %v1142_v35 = vld [vmem:[#allocation2 + $0x58] sm:$0x7f]  ;;  %v1143_v20 = vld [vmem:[#allocation2 + $0x208] sm:$0x7f]  ;;  %v1584_v3 = vld [vmem:[#allocation2 + $0x1e0] sm:$0x1] }
 0x172   :  { %v2889_v2 = vadd.f32 %v3586_v58, %v2813_v52  ;;  %v2890_v25 = vadd.f32 %v3589_v59, %v2814_v1  ;;  %v554_v60 = vrot.slane %v490_v40, 1  ;;  %v555_v30 = vrot.slane %v491_v17, 1 }
 0x173   :  { %v787_v44 = vmul.f32 %v3480_v10, %v712_v13  ;;  %v788_v47 = vmul.f32 %v3483_v11, %v713_v18  ;;  %v2891_v24 = vadd.f32 %v3586_v58, %v2815_v5  ;;  %v2892_v6 = vadd.f32 %v3589_v59, %v2816_v50  ;;  %v1583_v18 = vld [vmem:[#allocation2 + $0x208] sm:$0xfe]  ;;  %v1585_v50 = vld [vmem:[#allocation2 + $0x100] sm:$0x1] }
 0x174   :  { %v3042_v14 = vrot.slane %v2889_v2, 7  ;;  %v3045_v53 = vrot.slane %v2890_v25, 7  ;;  %v644_v23 = vadd.f32 %v554_v60, %v343_v55  ;;  %v645_v8 = vadd.f32 %v555_v30, %v344_v34 }
 0x175   :  { %v646_v9 = vadd.f32 %v554_v60, %v345_v46  ;;  %v647_v28 = vadd.f32 %v555_v30, %v346_v43  ;;  %v3043_v31 = vrot.slane %v2891_v24, 7  ;;  %v3046_v12 = vrot.slane %v2892_v6, 7  ;;  %v1582_v46 = vld [vmem:[#allocation2 + $0x58] sm:$0xfe] }
 0x176   :  { %v940_v37 = vrot.slane %v785_v32, 2  ;;  %v941_v39 = vrot.slane %v786_v7, 2  ;;  %v942_v49 = vrot.slane %v787_v44, 2  ;;  %v944_v51 = vrot.slane %v788_v47, 2  ;;  %v2012_v44 = vld [vmem:[#allocation2 + $0x10] sm:$0x80] }
 0x177   :  { %v1215_v4 = vmul.f32 %v3486_v16, %v1140_v45  ;;  %v1216_v56 = vmul.f32 %v3489_v19, %v1141_v29  ;;  %v3044_v52 = vsel %vm2969_vm1, %v3042_v14, %v3043_v31  ;;  %v3047_v1 = vsel %vm2969_vm1, %v3045_v53, %v3046_v12  ;;  %v2013_v47 = vld [vmem:[#allocation2 + $0x268] sm:$0x80]  ;;  %v2014_v45 = vld [vmem:[#allocation2 + $0x248] sm:$0x7f] }
 0x178   :  { %v1074_v55 = vadd.f32 %v940_v37, %v644_v23  ;;  %v1075_v34 = vadd.f32 %v941_v39, %v645_v8  ;;  %v3250_v43 = vpack.c.bf16 %v3047_v1, %v3044_v52  ;;  %v943_v40 = vsel %vm861_vm0, %v940_v37, %v942_v49  ;;  %v2454_v52 = vld [vmem:[#allocation2 + $0x248] sm:$0xfe]  ;;  %v2455_v1 = vld [vmem:[#allocation2 + $0x190] sm:$0xfe] }
 0x179   :  { %v945_v17 = vsel %vm861_vm0, %v941_v39, %v944_v51  ;;  %v1217_v13 = vmul.f32 %v3486_v16, %v1142_v35  ;;  %v1076_v38 = vadd.f32 %v943_v40, %v646_v9  ;;  %v1218_v7 = vmul.f32 %v3489_v19, %v1143_v20  ;;  %v4288_v35 = vld [vmem:[#allocation2 + $0x248] sm:$0xff] }
 0x17a   :  { %v1077_v32 = vadd.f32 %v945_v17, %v647_v28  ;;  %v1279_v5 = vadd.f32 %v1215_v4, %v1074_v55  ;;  %3206 = vst [vmem:[%s4422_s3 + $0x60] sm:$0xff] %v3250_v43  ;;  %v1280_v2 = vadd.f32 %v1216_v56, %v1075_v34  ;;  %v1362_v25 = vmul.f32 %v4233_v15, %v3522_v54  ;;  %v2015_v28 = vld [vmem:[#allocation2 + $0x190] sm:$0x7f] }
 0x17b   :  { %v1363_v60 = vmul.f32 %v4235_v33, %v3525_v57  ;;  %v1657_v30 = vmul.f32 %v3532_v21, %v1582_v46  ;;  %v1281_v24 = vadd.f32 %v1217_v13, %v1076_v38  ;;  %v1658_v14 = vmul.f32 %v3535_v22, %v1583_v18  ;;  %v4290_v56 = vld [vmem:[#allocation2 + $0x190] sm:$0xff]  ;;  %v2457_v38 = vld [vmem:[#allocation2 + $0x218] sm:$0x1] }
 0x17c   :  { %v1282_v6 = vadd.f32 %v1218_v7, %v1077_v32  ;;  %v1659_v53 = vmul.f32 %v3532_v21, %v1584_v3  ;;  %v1426_v29 = vrot.slane %v1362_v25, 1  ;;  %v1660_v8 = vmul.f32 %v3535_v22, %v1585_v50  ;;  %v2456_v3 = vld [vmem:[#allocation2 + $0x1f8] sm:$0x1] }
 0x17d   :  { %v1427_v23 = vrot.slane %v1363_v60, 1  ;;  %v1811_v9 = vrot.slane %v1657_v30, 2  ;;  %v1812_v31 = vrot.slane %v1658_v14, 2  ;;  %v2087_v37 = vmul.f32 %v3545_v48, %v2012_v44 }
 0x17e   :  { %v1813_v12 = vrot.slane %v1659_v53, 2  ;;  %v2088_v39 = vmul.f32 %v3548_v36, %v2013_v47  ;;  %v1516_v49 = vadd.f32 %v1426_v29, %v1279_v5  ;;  %v1518_v20 = vadd.f32 %v1426_v29, %v1281_v24  ;;  %v273_v53 = vld [vmem:[#allocation2 + $0x1a0] sm:$0x80] }
 0x17f   :  { %v1517_v51 = vadd.f32 %v1427_v23, %v1280_v2  ;;  %v1519_v4 = vadd.f32 %v1427_v23, %v1282_v6  ;;  %v1815_v34 = vrot.slane %v1660_v8, 2  ;;  %v2089_v46 = vmul.f32 %v3545_v48, %v2014_v45  ;;  %v272_v2 = vld [vmem:[#allocation2 + $0x2a0] sm:$0x80]  ;;  %v274_v45 = vld [vmem:[#allocation2 + $0x58] sm:$0x7f] }
 0x180   :  { %v1814_v55 = vsel %vm861_vm0, %v1811_v9, %v1813_v12  ;;  %v2090_v43 = vmul.f32 %v3548_v36, %v2015_v28  ;;  %v1945_v40 = vadd.f32 %v1811_v9, %v1516_v49  ;;  %v2234_v18 = vmul.f32 %v3563_v26, %v4288_v35  ;;  %v275_v9 = vld [vmem:[#allocation2 + $0x208] sm:$0x7f] }
 0x181   :  { %v1946_v17 = vadd.f32 %v1812_v31, %v1517_v51  ;;  %v1947_v13 = vadd.f32 %v1814_v55, %v1518_v20  ;;  %v1816_v32 = vsel %vm861_vm0, %v1812_v31, %v1815_v34  ;;  %v2235_v7 = vmul.f32 %v3566_v27, %v4290_v56 }
 0x182   :  { %v2529_v5 = vmul.f32 %v3569_v41, %v2454_v52  ;;  %v2530_v50 = vmul.f32 %v3572_v42, %v2455_v1  ;;  %v1948_v25 = vadd.f32 %v1816_v32, %v1519_v4  ;;  %v2151_v60 = vadd.f32 %v2087_v37, %v1945_v40  ;;  %v714_v52 = vld [vmem:[#allocation2 + $0x58] sm:$0xfe] }
 0x183   :  { %v2152_v30 = vadd.f32 %v2088_v39, %v1946_v17  ;;  %v2153_v44 = vadd.f32 %v2089_v46, %v1947_v13  ;;  %v2298_v47 = vrot.slane %v2234_v18, 1  ;;  %v2299_v24 = vrot.slane %v2235_v7, 1 }
 0x184   :  { %v2531_v6 = vmul.f32 %v3569_v41, %v2456_v3  ;;  %v2532_v14 = vmul.f32 %v3572_v42, %v2457_v38  ;;  %v2154_v29 = vadd.f32 %v2090_v43, %v1948_v25  ;;  %v2683_v23 = vrot.slane %v2529_v5, 2  ;;  %v715_v43 = vld [vmem:[#allocation2 + $0x208] sm:$0xfe]  ;;  %v716_v3 = vld [vmem:[#allocation2 + $0x1e0] sm:$0x1] }
 0x185   :  { %v2684_v8 = vrot.slane %v2530_v50, 2  ;;  %v347_v28 = vmul.f32 %v3468_v61, %v272_v2  ;;  %v2388_v31 = vadd.f32 %v2298_v47, %v2151_v60  ;;  %v2389_v12 = vadd.f32 %v2299_v24, %v2152_v30  ;;  %v717_v60 = vld [vmem:[#allocation2 + $0x100] sm:$0x1] }
 0x186   :  { %v2390_v49 = vadd.f32 %v2298_v47, %v2153_v44  ;;  %v2685_v37 = vrot.slane %v2531_v6, 2  ;;  %v2391_v39 = vadd.f32 %v2299_v24, %v2154_v29  ;;  %v2687_v51 = vrot.slane %v2532_v14, 2  ;;  %v1144_v24 = vld [vmem:[#allocation2 + $0x10] sm:$0x80]  ;;  %v1145_v29 = vld [vmem:[#allocation2 + $0x268] sm:$0x80] }
 0x187   :  { %v348_v20 = vmul.f32 %v3471_v62, %v273_v53  ;;  %v349_v4 = vmul.f32 %v3468_v61, %v274_v45  ;;  %v2817_v55 = vadd.f32 %v2683_v23, %v2388_v31  ;;  %v2818_v34 = vadd.f32 %v2684_v8, %v2389_v12  ;;  %v1146_v12 = vld [vmem:[#allocation2 + $0x248] sm:$0x7f] }
 0x188   :  { %v2686_v1 = vsel %vm861_vm0, %v2683_v23, %v2685_v37  ;;  %v350_v46 = vmul.f32 %v3471_v62, %v275_v9  ;;  %v2688_v40 = vsel %vm861_vm0, %v2684_v8, %v2687_v51  ;;  %v492_v13 = vmul.f32 %v4233_v15, %v3474_v63  ;;  %v1147_v51 = vld [vmem:[#allocation2 + $0x190] sm:$0x7f] }
 0x189   :  { %v2819_v17 = vadd.f32 %v2686_v1, %v2390_v49  ;;  %v493_v18 = vmul.f32 %v4235_v33, %v3477_v0  ;;  %v2820_v38 = vadd.f32 %v2688_v40, %v2391_v39  ;;  %v2893_v32 = vadd.f32 %v3586_v58, %v2817_v55  ;;  %v1586_v40 = vld [vmem:[#allocation2 + $0x248] sm:$0xfe] }
 0x18a   :  { %v2894_v7 = vadd.f32 %v3589_v59, %v2818_v34  ;;  %v789_v5 = vmul.f32 %v3480_v10, %v714_v52  ;;  %v556_v2 = vrot.slane %v492_v13, 1  ;;  %v790_v30 = vmul.f32 %v3483_v11, %v715_v43  ;;  %v1588_v13 = vld [vmem:[#allocation2 + $0x1f8] sm:$0x1] }
 0x18b   :  { %v2895_v50 = vadd.f32 %v3586_v58, %v2819_v17  ;;  %v557_v25 = vrot.slane %v493_v18, 1  ;;  %v2896_v15 = vadd.f32 %v3589_v59, %v2820_v38  ;;  %v3048_v44 = vrot.slane %v2893_v32, 7  ;;  %v1587_v17 = vld [vmem:[#allocation2 + $0x190] sm:$0xfe] }
 0x18c   :  { %v3051_v47 = vrot.slane %v2894_v7, 7  ;;  %v791_v33 = vmul.f32 %v3480_v10, %v716_v3  ;;  %v648_v14 = vadd.f32 %v556_v2, %v347_v28  ;;  %v650_v45 = vadd.f32 %v556_v2, %v349_v4  ;;  %v1589_v7 = vld [vmem:[#allocation2 + $0x218] sm:$0x1] }
 0x18d   :  { %v3049_v6 = vrot.slane %v2895_v50, 7  ;;  %v649_v53 = vadd.f32 %v557_v25, %v348_v20  ;;  %v3052_v23 = vrot.slane %v2896_v15, 7  ;;  %v651_v8 = vadd.f32 %v557_v25, %v350_v46 }
 0x18e   :  { %v792_v9 = vmul.f32 %v3483_v11, %v717_v60  ;;  %v946_v31 = vrot.slane %v789_v5, 2  ;;  %v947_v37 = vrot.slane %v790_v30, 2  ;;  %v948_v39 = vrot.slane %v791_v33, 2  ;;  %v2016_v60 = vld [vmem:[#allocation2 + $0x198] sm:$0x80] }
 0x18f   :  { %v3050_v49 = vsel %vm2969_vm1, %v3048_v44, %v3049_v6  ;;  %v1219_v52 = vmul.f32 %v3486_v16, %v1144_v24  ;;  %v3053_v1 = vsel %vm2969_vm1, %v3051_v47, %v3052_v23  ;;  %v1220_v20 = vmul.f32 %v3489_v19, %v1145_v29 }
 0x190   :  { %v950_v55 = vrot.slane %v792_v9, 2  ;;  %v1078_v28 = vadd.f32 %v946_v31, %v648_v14  ;;  %v3251_v4 = vpack.c.bf16 %v3053_v1, %v3050_v49  ;;  %v949_v34 = vsel %vm861_vm0, %v946_v31, %v948_v39  ;;  %v2019_v9 = vld [vmem:[#allocation2 + $0x3b8] sm:$0x7f]  ;;  %v2458_v1 = vld [vmem:[#allocation2 + $0xc8] sm:$0xfe] }
 0x191   :  { %v1079_v46 = vadd.f32 %v947_v37, %v649_v53  ;;  %v1221_v43 = vmul.f32 %v3486_v16, %v1146_v12  ;;  %v1080_v3 = vadd.f32 %v949_v34, %v650_v45  ;;  %v1222_v38 = vmul.f32 %v3489_v19, %v1147_v51  ;;  %v2017_v53 = vld [vmem:[#allocation2 + $0x2a8] sm:$0x80]  ;;  %v2018_v45 = vld [vmem:[#allocation2 + $0xc8] sm:$0x7f] }
 0x192   :  { %v951_v18 = vsel %vm861_vm0, %v947_v37, %v950_v55  ;;  %v1283_v32 = vadd.f32 %v1219_v52, %v1078_v28  ;;  %3207 = vst [vmem:[%s4422_s3 + $0x68] sm:$0xff] %v3251_v4  ;;  %v1364_v2 = vmul.f32 %v4288_v35, %v3522_v54  ;;  %v1365_v25 = vmul.f32 %v4290_v56, %v3525_v57  ;;  %v4342_v51 = vld [vmem:[#allocation2 + $0xc8] sm:$0xff]  ;;  %v4344_v52 = vld [vmem:[#allocation2 + $0x3b8] sm:$0xff] }
 0x193   :  { %v1081_v5 = vadd.f32 %v951_v18, %v651_v8  ;;  %v1284_v50 = vadd.f32 %v1220_v20, %v1079_v46  ;;  %v1285_v30 = vadd.f32 %v1221_v43, %v1080_v3  ;;  %v1661_v15 = vmul.f32 %v3532_v21, %v1586_v40 }
 0x194   :  { %v1662_v44 = vmul.f32 %v3535_v22, %v1587_v17  ;;  %v1663_v47 = vmul.f32 %v3532_v21, %v1588_v13  ;;  %v1428_v24 = vrot.slane %v1364_v2, 1  ;;  %v1429_v6 = vrot.slane %v1365_v25, 1  ;;  %v2459_v17 = vld [vmem:[#allocation2 + $0x3b8] sm:$0xfe]  ;;  %v2460_v13 = vld [vmem:[#allocation2 + $0x240] sm:$0x1] }
 0x195   :  { %v1286_v33 = vadd.f32 %v1222_v38, %v1081_v5  ;;  %v1664_v14 = vmul.f32 %v3535_v22, %v1589_v7  ;;  %v1817_v29 = vrot.slane %v1661_v15, 2  ;;  %v2091_v31 = vmul.f32 %v3545_v48, %v2016_v60  ;;  %v276_v5 = vld [vmem:[#allocation2 + $0x10] sm:$0x80] }
 0x196   :  { %v1818_v23 = vrot.slane %v1662_v44, 2  ;;  %v1819_v8 = vrot.slane %v1663_v47, 2  ;;  %v1520_v12 = vadd.f32 %v1428_v24, %v1283_v32  ;;  %v1521_v49 = vadd.f32 %v1429_v6, %v1284_v50  ;;  %v2461_v32 = vld [vmem:[#allocation2 + $0x178] sm:$0x1] }
 0x197   :  { %v1522_v37 = vadd.f32 %v1428_v24, %v1285_v30  ;;  %v1523_v39 = vadd.f32 %v1429_v6, %v1286_v33  ;;  %v1821_v28 = vrot.slane %v1664_v14, 2  ;;  %v2092_v20 = vmul.f32 %v3548_v36, %v2017_v53  ;;  %v277_v33 = vld [vmem:[#allocation2 + $0x268] sm:$0x80]  ;;  %v278_v53 = vld [vmem:[#allocation2 + $0x248] sm:$0x7f] }
 0x198   :  { %v1820_v55 = vsel %vm861_vm0, %v1817_v29, %v1819_v8  ;;  %v2093_v4 = vmul.f32 %v3545_v48, %v2018_v45  ;;  %v1949_v34 = vadd.f32 %v1817_v29, %v1520_v12  ;;  %v1950_v46 = vadd.f32 %v1818_v23, %v1521_v49  ;;  %v279_v45 = vld [vmem:[#allocation2 + $0x190] sm:$0x7f] }
 0x199   :  { %v1951_v43 = vadd.f32 %v1820_v55, %v1522_v37  ;;  %v2094_v40 = vmul.f32 %v3548_v36, %v2019_v9  ;;  %v1822_v18 = vsel %vm861_vm0, %v1818_v23, %v1821_v28  ;;  %v2236_v3 = vmul.f32 %v3563_v26, %v4342_v51 }
 0x19a   :  { %v2237_v38 = vmul.f32 %v3566_v27, %v4344_v52  ;;  %v2533_v7 = vmul.f32 %v3569_v41, %v2458_v1  ;;  %v1952_v50 = vadd.f32 %v1822_v18, %v1523_v39  ;;  %v2155_v2 = vadd.f32 %v2091_v31, %v1949_v34  ;;  %v719_v34 = vld [vmem:[#allocation2 + $0x190] sm:$0xfe] }
 0x19b   :  { %v2156_v25 = vadd.f32 %v2092_v20, %v1950_v46  ;;  %v2157_v60 = vadd.f32 %v2093_v4, %v1951_v43  ;;  %v2300_v30 = vrot.slane %v2236_v3, 1  ;;  %v2534_v44 = vmul.f32 %v3572_v42, %v2459_v17  ;;  %v718_v4 = vld [vmem:[#allocation2 + $0x248] sm:$0xfe] }
 0x19c   :  { %v2301_v15 = vrot.slane %v2237_v38, 1  ;;  %v2535_v47 = vmul.f32 %v3569_v41, %v2460_v13  ;;  %v2158_v24 = vadd.f32 %v2094_v40, %v1952_v50  ;;  %v2536_v6 = vmul.f32 %v3572_v42, %v2461_v32  ;;  %v720_v32 = vld [vmem:[#allocation2 + $0x1f8] sm:$0x1] }
 0x19d   :  { %v2689_v14 = vrot.slane %v2533_v7, 2  ;;  %v351_v29 = vmul.f32 %v3468_v61, %v276_v5  ;;  %v2392_v23 = vadd.f32 %v2300_v30, %v2155_v2  ;;  %v2394_v9 = vadd.f32 %v2300_v30, %v2157_v60  ;;  %v721_v7 = vld [vmem:[#allocation2 + $0x218] sm:$0x1] }
 0x19e   :  { %v2393_v8 = vadd.f32 %v2301_v15, %v2156_v25  ;;  %v2690_v31 = vrot.slane %v2534_v44, 2  ;;  %v2395_v12 = vadd.f32 %v2301_v15, %v2158_v24  ;;  %v2691_v49 = vrot.slane %v2535_v47, 2  ;;  %v1149_v25 = vld [vmem:[#allocation2 + $0x2a8] sm:$0x80] }
 0x19f   :  { %v2693_v37 = vrot.slane %v2536_v6, 2  ;;  %v352_v39 = vmul.f32 %v3471_v62, %v277_v33  ;;  %v2821_v1 = vadd.f32 %v2689_v14, %v2392_v23  ;;  %v353_v28 = vmul.f32 %v3468_v61, %v278_v53  ;;  %v1151_v23 = vld [vmem:[#allocation2 + $0x3b8] sm:$0x7f] }
 0x1a0   :  { %v2822_v55 = vadd.f32 %v2690_v31, %v2393_v8  ;;  %v354_v20 = vmul.f32 %v3471_v62, %v279_v45  ;;  %v2692_v46 = vsel %vm861_vm0, %v2689_v14, %v2691_v49  ;;  %v494_v40 = vmul.f32 %v4288_v35, %v3474_v63  ;;  %v1150_v14 = vld [vmem:[#allocation2 + $0xc8] sm:$0x7f] }
 0x1a1   :  { %v2694_v43 = vsel %vm861_vm0, %v2690_v31, %v2693_v37  ;;  %v495_v17 = vmul.f32 %v4290_v56, %v3477_v0  ;;  %v2823_v13 = vadd.f32 %v2692_v46, %v2394_v9  ;;  %v2897_v3 = vadd.f32 %v3586_v58, %v2821_v1  ;;  %v1148_v56 = vld [vmem:[#allocation2 + $0x198] sm:$0x80]  ;;  %v1592_v46 = vld [vmem:[#allocation2 + $0x240] sm:$0x1] }
 0x1a2   :  { %v2824_v18 = vadd.f32 %v2694_v43, %v2395_v12  ;;  %v2898_v61 = vadd.f32 %v3589_v59, %v2822_v55  ;;  %v558_v38 = vrot.slane %v494_v40, 1  ;;  %v793_v5 = vmul.f32 %v3480_v10, %v718_v4  ;;  %v1591_v55 = vld [vmem:[#allocation2 + $0x3b8] sm:$0xfe]  ;;  %v1593_v43 = vld [vmem:[#allocation2 + $0x178] sm:$0x1] }
 0x1a3   :  { %v559_v62 = vrot.slane %v495_v17, 1  ;;  %v794_v50 = vmul.f32 %v3483_v11, %v719_v34  ;;  %v2899_v2 = vadd.f32 %v3586_v58, %v2823_v13  ;;  %v3054_v35 = vrot.slane %v2897_v3, 7 }
 0x1a4   :  { %v2900_v63 = vadd.f32 %v3589_v59, %v2824_v18  ;;  %v3057_v0 = vrot.slane %v2898_v61, 7  ;;  %v652_v60 = vadd.f32 %v558_v38, %v351_v29  ;;  %v654_v15 = vadd.f32 %v558_v38, %v353_v28  ;;  %v2020_v38 = vld [vmem:[#allocation2 + $0xb0] sm:$0x80] }
 0x1a5   :  { %v653_v30 = vadd.f32 %v559_v62, %v352_v39  ;;  %v655_v44 = vadd.f32 %v559_v62, %v354_v20  ;;  %v3055_v47 = vrot.slane %v2899_v2, 7  ;;  %v795_v24 = vmul.f32 %v3480_v10, %v720_v32 }
 0x1a6   :  { %v3058_v33 = vrot.slane %v2900_v63, 7  ;;  %v796_v6 = vmul.f32 %v3483_v11, %v721_v7  ;;  %v952_v53 = vrot.slane %v793_v5, 2  ;;  %v953_v45 = vrot.slane %v794_v50, 2  ;;  %v1590_v11 = vld [vmem:[#allocation2 + $0xc8] sm:$0xfe] }
 0x1a7   :  { %v1223_v8 = vmul.f32 %v3486_v16, %v1148_v56  ;;  %v1224_v9 = vmul.f32 %v3489_v19, %v1149_v25  ;;  %v3056_v31 = vsel %vm2969_vm1, %v3054_v35, %v3055_v47  ;;  %v954_v12 = vrot.slane %v795_v24, 2  ;;  %v2021_v7 = vld [vmem:[#allocation2 + $0x398] sm:$0x80]  ;;  %v2022_v5 = vld [vmem:[#allocation2 + $0x2d8] sm:$0x7f] }
 0x1a8   :  { %v3059_v29 = vsel %vm2969_vm1, %v3057_v0, %v3058_v33  ;;  %v956_v49 = vrot.slane %v796_v6, 2  ;;  %v1082_v39 = vadd.f32 %v952_v53, %v652_v60  ;;  %v1083_v1 = vadd.f32 %v953_v45, %v653_v30  ;;  %v2023_v0 = vld [vmem:[#allocation2 + $0x1c8] sm:$0x7f] }
 0x1a9   :  { %v3252_v37 = vpack.c.bf16 %v3059_v29, %v3056_v31  ;;  %v1225_v10 = vmul.f32 %v3486_v16, %v1150_v14  ;;  %v955_v28 = vsel %vm861_vm0, %v952_v53, %v954_v12  ;;  %v1226_v4 = vmul.f32 %v3489_v19, %v1151_v23  ;;  %v2463_v47 = vld [vmem:[#allocation2 + $0x1c8] sm:$0xfe]  ;;  %v2464_v14 = vld [vmem:[#allocation2 + $0x2c8] sm:$0x1]  ;;  %v3256_v31 = vld [vmem:[#allocation2 + $0xd8] sm:$0xff] }
 0x1aa   :  { %v957_v20 = vsel %vm861_vm0, %v953_v45, %v956_v49  ;;  %v1366_v34 = vmul.f32 %v4342_v51, %v3522_v54  ;;  %v1084_v40 = vadd.f32 %v955_v28, %v654_v15  ;;  %v1287_v16 = vadd.f32 %v1223_v8, %v1082_v39 }
 0x1ab   :  { %3208 = vst [vmem:[%s4422_s3 + $0x70] sm:$0xff] %v3252_v37  ;;  %v1085_v17 = vadd.f32 %v957_v20, %v655_v44  ;;  %v1288_v13 = vadd.f32 %v1224_v9, %v1083_v1  ;;  %v1367_v18 = vmul.f32 %v4344_v52, %v3525_v57  ;;  %v1665_v61 = vmul.f32 %v3532_v21, %v1590_v11  ;;  %v2465_v9 = vld [vmem:[#allocation2 + $0x310] sm:$0x1] }
 0x1ac   :  { %v1430_v3 = vrot.slane %v1366_v34, 1  ;;  %v1666_v19 = vmul.f32 %v3535_v22, %v1591_v55  ;;  %v1289_v54 = vadd.f32 %v1225_v10, %v1084_v40  ;;  %v1667_v62 = vmul.f32 %v3532_v21, %v1592_v46  ;;  %v2462_v21 = vld [vmem:[#allocation2 + $0x2d8] sm:$0xfe] }
 0x1ad   :  { %v1290_v51 = vadd.f32 %v1226_v4, %v1085_v17  ;;  %v1668_v32 = vmul.f32 %v3535_v22, %v1593_v43  ;;  %v1431_v50 = vrot.slane %v1367_v18, 1  ;;  %v1823_v63 = vrot.slane %v1665_v61, 2 }
 0x1ae   :  { %v1524_v2 = vadd.f32 %v1430_v3, %v1287_v16  ;;  %v1824_v35 = vrot.slane %v1666_v19, 2  ;;  %v1526_v57 = vadd.f32 %v1430_v3, %v1289_v54  ;;  %v1825_v52 = vrot.slane %v1667_v62, 2 }
 0x1af   :  { %v1827_v56 = vrot.slane %v1668_v32, 2  ;;  %v2095_v25 = vmul.f32 %v3545_v48, %v2020_v38  ;;  %v1525_v60 = vadd.f32 %v1431_v50, %v1288_v13  ;;  %v1527_v30 = vadd.f32 %v1431_v50, %v1290_v51 }
 0x1b0   :  { %v1953_v15 = vadd.f32 %v1823_v63, %v1524_v2  ;;  %v2096_v44 = vmul.f32 %v3548_v36, %v2021_v7  ;;  %v1826_v22 = vsel %vm861_vm0, %v1823_v63, %v1825_v52  ;;  %v2097_v24 = vmul.f32 %v3545_v48, %v2022_v5 }
 0x1b1   :  { %v1828_v33 = vsel %vm861_vm0, %v1824_v35, %v1827_v56  ;;  %v2098_v6 = vmul.f32 %v3548_v36, %v2023_v0  ;;  %v1954_v53 = vadd.f32 %v1824_v35, %v1525_v60  ;;  %v1955_v45 = vadd.f32 %v1826_v22, %v1526_v57 }
 0x1b2   :  { %v1956_v23 = vadd.f32 %v1828_v33, %v1527_v30  ;;  %v2159_v8 = vadd.f32 %v2095_v25, %v1953_v15  ;;  %v2238_v29 = vmul.f32 %v3256_v31, %v3563_v26  ;;  %v2239_v12 = vmul.f32 %v3256_v31, %v3566_v27 }
 0x1b3   :  { %v2537_v49 = vmul.f32 %v3569_v41, %v2462_v21  ;;  %v2538_v37 = vmul.f32 %v3572_v42, %v2463_v47  ;;  %v2160_v39 = vadd.f32 %v2096_v44, %v1954_v53  ;;  %v2161_v1 = vadd.f32 %v2097_v24, %v1955_v45 }
 0x1b4   :  { %v2162_v48 = vadd.f32 %v2098_v6, %v1956_v23  ;;  %v2539_v36 = vmul.f32 %v3569_v41, %v2464_v14  ;;  %v2302_v10 = vrot.slane %v2238_v29, 1  ;;  %v2303_v11 = vrot.slane %v2239_v12, 1 }
 0x1b5   :  { %v2540_v55 = vmul.f32 %v3572_v42, %v2465_v9  ;;  %v2695_v28 = vrot.slane %v2537_v49, 2  ;;  %v2696_v20 = vrot.slane %v2538_v37, 2 }
 0x1b6   :  { %v2697_v4 = vrot.slane %v2539_v36, 2  ;;  %v2396_v34 = vadd.f32 %v2302_v10, %v2159_v8  ;;  %v2397_v26 = vadd.f32 %v2303_v11, %v2160_v39  ;;  %v2398_v46 = vadd.f32 %v2302_v10, %v2161_v1 }
 0x1b7   :  { %v2399_v27 = vadd.f32 %v2303_v11, %v2162_v48  ;;  %v2699_v40 = vrot.slane %v2540_v55, 2 }
 0x1b8   :  { %v2698_v43 = vsel %vm861_vm0, %v2695_v28, %v2697_v4  ;;  %v2825_v17 = vadd.f32 %v2695_v28, %v2396_v34  ;;  %v2826_v16 = vadd.f32 %v2696_v20, %v2397_v26 }
 0x1b9   :  { %v2827_v13 = vadd.f32 %v2698_v43, %v2398_v46  ;;  %v2700_v18 = vsel %vm861_vm0, %v2696_v20, %v2699_v40 }
 0x1ba   :  { %v2828_v41 = vadd.f32 %v2700_v18, %v2399_v27  ;;  %v2901_v3 = vadd.f32 %v3586_v58, %v2825_v17  ;;  %v2902_v42 = vadd.f32 %v3589_v59, %v2826_v16 }
 0x1bb   :  { %v2903_v61 = vadd.f32 %v3586_v58, %v2827_v13 }
 0x1bc   :  { %v2904_v19 = vadd.f32 %v3589_v59, %v2828_v41  ;;  %v3060_v38 = vrot.slane %v2901_v3, 7  ;;  %v3063_v51 = vrot.slane %v2902_v42, 7 }
 0x1bd   :  { %v3061_v54 = vrot.slane %v2903_v61, 7 }
 0x1be   :  { %v3064_v32 = vrot.slane %v2904_v19, 7 }
 0x1bf   :  { %v3062_v62 = vsel %vm2969_vm1, %v3060_v38, %v3061_v54 }
 0x1c0   :  { %v3065_v7 = vsel %vm2969_vm1, %v3063_v51, %v3064_v32 }
 0x1c1   :  { %v3253_v5 = vpack.c.bf16 %v3065_v7, %v3062_v62 }
 0x1c3   :  { %3209 = vst [vmem:[%s4422_s3 + $0x78] sm:$0xff] %v3253_v5 }

// kernel: classifier_forward.8
= control target key start
LH: loop header
LB: loop body
LE: loop exit
PB: predicated region body
PF: predicated region fallthrough
CT: control target
= control target key end

     0   :  { %v3241_v0 = vmov 0.0   ;;  %v265_v7 = vlaneseq  ;;  %vm845_vm0 = vcmask 1045504   ;;  %vm2953_vm1 = vcmask 1040384   ;;  %s4438_s0 = inlined_call_operand.vmem [shape: f32[2,8,8,256], index: 0, kind: input, shape index: {}]   ;;  %s4439_s1 = inlined_call_operand.vmem [shape: f32[9,256], index: 1, kind: input, shape index: {}]   ;;  %s4440_s2 = inlined_call_operand.vmem [shape: f32[1,256], index: 2, kind: input, shape index: {}]   ;;  %s4441_s3 = inlined_call_operand.vmem [shape: bf16[128,256], index: 3, kind: output, shape index: {}]  }
   0x1   :  { %16 = vst [vmem:[#allocation2 + $0xd8] sm:$0xff] %v3241_v0  ;;  %14 = vst [vmem:[#allocation2 + $0x2b0] sm:$0xff] %v3241_v0  ;;  %v3353_v1 = vld [vmem:[%s4438_s0] sm:$0xff]  ;;  %v3358_v2 = vld [vmem:[%s4438_s0 + $0x8] sm:$0xff] }
   0x2   :  { %15 = vst [vmem:[#allocation2 + $0x3b0] sm:$0xff] %v3241_v0  ;;  %17 = vst [vmem:[#allocation2 + $0x18] sm:$0xff] %v3241_v0  ;;  %v3363_v3 = vld [vmem:[%s4438_s0 + $0x10] sm:$0xff]  ;;  %v3371_v4 = vld [vmem:[%s4438_s0 + $0x18] sm:$0xff]  ;;  %v266_v20 = vshrl.u32 %v265_v7, 7 }
   0x3   :  { %18 = vst [vmem:[#allocation2 + $0x50] sm:$0x1] %v3241_v0  ;;  %19 = vst [vmem:[#allocation2 + $0x368] sm:$0x1] %v3241_v0  ;;  %v3376_v5 = vld [vmem:[%s4438_s0 + $0x20] sm:$0xff]  ;;  %v3381_v6 = vld [vmem:[%s4438_s0 + $0x28] sm:$0xff] }
   0x4   :  { %20 = vst [vmem:[#allocation2 + $0x330] sm:$0xff] %v3241_v0  ;;  %21 = vst [vmem:[#allocation2 + $0x48] sm:$0xff] %v3241_v0  ;;  %v140_v8 = vld [vmem:[%s4438_s0 + $0x30] sm:$0xff]  ;;  %v141_v9 = vld [vmem:[%s4438_s0 + $0x38] sm:$0xff]  ;;  %v3470_v33 = vsub.s32 0, %v266_v20  ;;  %v3472_v34 = vsub.s32 1, %v266_v20 }
   0x5   :  { %24 = vst [vmem:[#allocation2 + $0x118] sm:$0x1] %v3241_v0  ;;  %25 = vst [vmem:[#allocation2 + $0x98] sm:$0x1] %v3241_v0  ;;  %v142_v10 = vld [vmem:[%s4438_s0 + $0x40] sm:$0xff]  ;;  %v143_v11 = vld [vmem:[%s4438_s0 + $0x48] sm:$0xff] }
   0x6   :  { %26 = vst [vmem:[#allocation2 + $0x320] sm:$0xff] %v3241_v0  ;;  %27 = vst [vmem:[#allocation2 + $0x150] sm:$0xff] %v3241_v0  ;;  %v144_v12 = vld [vmem:[%s4438_s0 + $0x50] sm:$0xff]  ;;  %v145_v13 = vld [vmem:[%s4438_s0 + $0x58] sm:$0xff] }
   0x7   :  { %30 = vst [vmem:[#allocation2 + $0x2e0] sm:$0x1] %v3241_v0  ;;  %31 = vst [vmem:[#allocation2 + $0x388] sm:$0x1] %v3241_v0  ;;  %v146_v14 = vld [vmem:[%s4438_s0 + $0x60] sm:$0xff]  ;;  %v147_v15 = vld [vmem:[%s4438_s0 + $0x68] sm:$0xff] }
   0x8   :  { %32 = vst [vmem:[#allocation2 + $0x338] sm:$0xff] %v3241_v0  ;;  %33 = vst [vmem:[#allocation2 + $0x340] sm:$0xff] %v3241_v0  ;;  %v3413_v16 = vld [vmem:[%s4438_s0 + $0x80] sm:$0xff]  ;;  %v3419_v17 = vld [vmem:[%s4438_s0 + $0x88] sm:$0xff] }
   0x9   :  { %36 = vst [vmem:[#allocation2 + $0x1b8] sm:$0x1] %v3241_v0  ;;  %37 = vst [vmem:[#allocation2 + $0x168] sm:$0x1] %v3241_v0  ;;  %v3424_v18 = vld [vmem:[%s4438_s0 + $0x90] sm:$0xff]  ;;  %v3429_v19 = vld [vmem:[%s4438_s0 + $0x98] sm:$0xff] }
   0xa   :  { %38 = vst [vmem:[#allocation2 + $0x2f0] sm:$0xff] %v3241_v0  ;;  %39 = vst [vmem:[#allocation2 + $0x288] sm:$0xff] %v3241_v0  ;;  %v154_v21 = vld [vmem:[%s4438_s0 + $0xa0] sm:$0xff]  ;;  %v155_v22 = vld [vmem:[%s4438_s0 + $0xa8] sm:$0xff] }
   0xb   :  { %42 = vst [vmem:[#allocation2 + $0x1b0] sm:$0x1] %v3241_v0  ;;  %43 = vst [vmem:[#allocation2 + $0x270] sm:$0x1] %v3241_v0  ;;  %v156_v23 = vld [vmem:[%s4438_s0 + $0xb0] sm:$0xff]  ;;  %v157_v24 = vld [vmem:[%s4438_s0 + $0xb8] sm:$0xff] }
   0xc   :  { %44 = vst [vmem:[#allocation2 + $0xf0] sm:$0xff] %v3241_v0  ;;  %45 = vst [vmem:[#allocation2 + $0x8] sm:$0xff] %v3241_v0  ;;  %v158_v25 = vld [vmem:[%s4438_s0 + $0xc0] sm:$0xff]  ;;  %v159_v26 = vld [vmem:[%s4438_s0 + $0xc8] sm:$0xff] }
   0xd   :  { %48 = vst [vmem:[#allocation2 + $0x390] sm:$0x1] %v3241_v0  ;;  %49 = vst [vmem:[#allocation2 + $0x278] sm:$0x1] %v3241_v0  ;;  %v160_v27 = vld [vmem:[%s4438_s0 + $0xd0] sm:$0xff]  ;;  %v161_v28 = vld [vmem:[%s4438_s0 + $0xd8] sm:$0xff] }
   0xe   :  { %50 = vst [vmem:[#allocation2] sm:$0xff] %v3241_v0  ;;  %51 = vst [vmem:[#allocation2 + $0x290] sm:$0xff] %v3241_v0  ;;  %v162_v29 = vld [vmem:[%s4438_s0 + $0xe0] sm:$0xff]  ;;  %v163_v30 = vld [vmem:[%s4438_s0 + $0xe8] sm:$0xff] }
   0xf   :  { %54 = vst [vmem:[#allocation2 + $0x1c0] sm:$0x1] %v3241_v0  ;;  %55 = vst [vmem:[#allocation2 + $0x90] sm:$0x1] %v3241_v0  ;;  %v148_v31 = vld [vmem:[%s4438_s0 + $0x70] sm:$0xff]  ;;  %v149_v32 = vld [vmem:[%s4438_s0 + $0x78] sm:$0xff] }
  0x10   :  { %56 = vst [vmem:[#allocation2 + $0x70] sm:$0xff] %v3241_v0  ;;  %57 = vst [vmem:[#allocation2 + $0x210] sm:$0xff] %v3241_v0  ;;  %v164_v35 = vld [vmem:[%s4438_s0 + $0xf0] sm:$0xff]  ;;  %v165_v36 = vld [vmem:[%s4438_s0 + $0xf8] sm:$0xff] }
  0x11   :  { %60 = vst [vmem:[#allocation2 + $0x1d8] sm:$0x1] %v3241_v0  ;;  %61 = vst [vmem:[#allocation2 + $0x260] sm:$0x1] %v3241_v0  ;;  %v200_v38 = vld [vmem:[#allocation2 + $0x2b0] sm:$0x80] }
  0x12   :  { %62 = vst [vmem:[#allocation2 + $0x358] sm:$0xff] %v3241_v0  ;;  %63 = vst [vmem:[#allocation2 + $0x2c0] sm:$0xff] %v3241_v0  ;;  %v199_v37 = vld [vmem:[%s4439_s1] ss:$8 sm:$0x3] }
  0x13   :  { %66 = vst [vmem:[#allocation2 + $0x78] sm:$0x1] %v3241_v0  ;;  %67 = vst [vmem:[#allocation2 + $0x158] sm:$0x1] %v3241_v0  ;;  %v201_v39 = vld [vmem:[#allocation2 + $0x3b0] sm:$0x80]  ;;  %v3484_v41 = vrot.slane %v199_v37, %v3470_v33  ;;  %v3487_v42 = vrot.slane %v199_v37, %v3472_v34 }
  0x14   :  { %68 = vst [vmem:[#allocation2 + $0xa8] sm:$0xff] %v3241_v0  ;;  %69 = vst [vmem:[#allocation2 + $0x300] sm:$0xff] %v3241_v0  ;;  %v202_v40 = vld [vmem:[#allocation2 + $0xd8] sm:$0x7f]  ;;  %v644_v50 = vld [vmem:[#allocation2 + $0x50] sm:$0x1] }
  0x15   :  { %70 = vst [vmem:[#allocation2 + $0xe8] sm:$0xff] %v3241_v0  ;;  %71 = vst [vmem:[#allocation2 + $0x20] sm:$0xff] %v3241_v0  ;;  %v203_v43 = vld [vmem:[#allocation2 + $0x18] sm:$0x7f]  ;;  %v645_v51 = vld [vmem:[#allocation2 + $0x368] sm:$0x1]  ;;  %v275_v54 = vmul.f32 %v3484_v41, %v200_v38  ;;  %v276_v55 = vmul.f32 %v3487_v42, %v201_v39  ;;  %v277_v56 = vmul.f32 %v3484_v41, %v202_v40 }
  0x16   :  { %72 = vst [vmem:[#allocation2 + $0x40] sm:$0x1] %v3241_v0  ;;  %73 = vst [vmem:[#allocation2 + $0x1d0] sm:$0x1] %v3241_v0  ;;  %v642_v46 = vld [vmem:[#allocation2 + $0xd8] sm:$0xfe]  ;;  %v278_v57 = vmul.f32 %v3487_v42, %v203_v43 }
  0x17   :  { %74 = vst [vmem:[#allocation2 + $0x2e8] sm:$0xff] %v3241_v0  ;;  %75 = vst [vmem:[#allocation2 + $0x1f0] sm:$0xff] %v3241_v0  ;;  %v3198_v44 = vld [vmem:[%s4439_s1 + $0x1] ss:$8 sm:$0x3] }
  0x18   :  { %76 = vst [vmem:[#allocation2 + $0x38] sm:$0xff] %v3241_v0  ;;  %77 = vst [vmem:[#allocation2 + $0x2d0] sm:$0xff] %v3241_v0  ;;  %v3199_v45 = vld [vmem:[%s4439_s1 + $0x2] ss:$8 sm:$0x3]  ;;  %v3496_v47 = vrot.slane %v3198_v44, %v3470_v33  ;;  %v3499_v48 = vrot.slane %v3198_v44, %v3472_v34 }
  0x19   :  { %78 = vst [vmem:[#allocation2 + $0x30] sm:$0x1] %v3241_v0  ;;  %79 = vst [vmem:[#allocation2 + $0xc0] sm:$0x1] %v3241_v0  ;;  %v643_v49 = vld [vmem:[#allocation2 + $0x18] sm:$0xfe]  ;;  %v3502_v52 = vrot.slane %v3199_v45, %v3470_v33  ;;  %v3505_v53 = vrot.slane %v3199_v45, %v3472_v34 }
  0x1a   :  { %80 = vst [vmem:[#allocation2 + $0x228] sm:$0xff] %v3241_v0  ;;  %81 = vst [vmem:[#allocation2 + $0x170] sm:$0xff] %v3241_v0  ;;  %v3200_v58 = vld [vmem:[%s4439_s1 + $0x3] ss:$8 sm:$0x3]  ;;  %v448_v59 = vmul.f32 0.0, %v3496_v47 }
  0x1b   :  { %84 = vst [vmem:[#allocation2 + $0x348] sm:$0x1] %v3241_v0  ;;  %85 = vst [vmem:[#allocation2 + $0x3a8] sm:$0x1] %v3241_v0  ;;  %v449_v60 = vmul.f32 0.0, %v3499_v48  ;;  %v717_v61 = vmul.f32 %v3502_v52, %v642_v46  ;;  %v718_v62 = vmul.f32 %v3505_v53, %v643_v49  ;;  %v719_v7 = vmul.f32 %v3502_v52, %v644_v50 }
  0x1c   :  { %86 = vst [vmem:[#allocation2 + $0xf8] sm:$0xff] %v3241_v0  ;;  %87 = vst [vmem:[#allocation2 + $0x250] sm:$0xff] %v3241_v0  ;;  %v1072_v63 = vld [vmem:[#allocation2 + $0x330] sm:$0x80]  ;;  %v1516_v45 = vld [vmem:[#allocation2 + $0x118] sm:$0x1] }
  0x1d   :  { %90 = vst [vmem:[#allocation2 + $0x2b8] sm:$0x1] %v3241_v0  ;;  %91 = vst [vmem:[#allocation2 + $0x128] sm:$0x1] %v3241_v0  ;;  %v1517_v50 = vld [vmem:[#allocation2 + $0x98] sm:$0x1] }
  0x1e   :  { %92 = vst [vmem:[#allocation2 + $0xa0] sm:$0xff] %v3241_v0  ;;  %93 = vst [vmem:[#allocation2 + $0x3a0] sm:$0xff] %v3241_v0 }
  0x1f   :  { %96 = vst [vmem:[#allocation2 + $0x230] sm:$0x1] %v3241_v0  ;;  %97 = vst [vmem:[#allocation2 + $0x298] sm:$0x1] %v3241_v0 }
  0x20   :  { %98 = vst [vmem:[#allocation2 + $0x318] sm:$0xff] %v3241_v0  ;;  %99 = vst [vmem:[#allocation2 + $0x160] sm:$0xff] %v3241_v0 }
  0x21   :  { %102 = vst [vmem:[#allocation2 + $0x120] sm:$0x1] %v3241_v0  ;;  %103 = vst [vmem:[#allocation2 + $0x140] sm:$0x1] %v3241_v0 }
  0x22   :  { %104 = vst [vmem:[#allocation2 + $0x68] sm:$0xff] %v3241_v0  ;;  %105 = vst [vmem:[#allocation2 + $0xd0] sm:$0xff] %v3241_v0 }
  0x23   :  { %108 = vst [vmem:[#allocation2 + $0x258] sm:$0x1] %v3241_v0  ;;  %109 = vst [vmem:[#allocation2 + $0x220] sm:$0x1] %v3241_v0 }
  0x24   :  { %110 = vst [vmem:[#allocation2 + $0x2a0] sm:$0xff] %v3241_v0  ;;  %111 = vst [vmem:[#allocation2 + $0x1a0] sm:$0xff] %v3241_v0 }
  0x25   :  { %114 = vst [vmem:[#allocation2 + $0x1e0] sm:$0x1] %v3241_v0  ;;  %115 = vst [vmem:[#allocation2 + $0x100] sm:$0x1] %v3241_v0 }
  0x26   :  { %116 = vst [vmem:[#allocation2 + $0x10] sm:$0xff] %v3241_v0  ;;  %117 = vst [vmem:[#allocation2 + $0x268] sm:$0xff] %v3241_v0 }
  0x27   :  { %120 = vst [vmem:[#allocation2 + $0x1f8] sm:$0x1] %v3241_v0  ;;  %121 = vst [vmem:[#allocation2 + $0x218] sm:$0x1] %v3241_v0 }
  0x28   :  { %122 = vst [vmem:[#allocation2 + $0x198] sm:$0xff] %v3241_v0  ;;  %123 = vst [vmem:[#allocation2 + $0x2a8] sm:$0xff] %v3241_v0 }
  0x29   :  { %126 = vst [vmem:[#allocation2 + $0x240] sm:$0x1] %v3241_v0  ;;  %127 = vst [vmem:[#allocation2 + $0x178] sm:$0x1] %v3241_v0 }
  0x2a   :  { %128 = vst [vmem:[#allocation2 + $0xb0] sm:$0xff] %v3241_v0  ;;  %129 = vst [vmem:[#allocation2 + $0x398] sm:$0xff] %v3241_v0 }
  0x2b   :  { %130 = vst [vmem:[#allocation2 + $0x2d8] sm:$0xff] %v3241_v0  ;;  %131 = vst [vmem:[#allocation2 + $0x1c8] sm:$0xff] %v3241_v0 }
  0x2c   :  { %132 = vst [vmem:[#allocation2 + $0x2c8] sm:$0x1] %v3241_v0  ;;  %133 = vst [vmem:[#allocation2 + $0x310] sm:$0x1] %v3241_v0  ;;  %v1073_v0 = vld [vmem:[#allocation2 + $0x48] sm:$0x80] }
  0x2d   :  { %167 = vst [vmem:[#allocation2 + $0x380] sm:$0xff] %v3353_v1  ;;  %168 = vst [vmem:[#allocation2 + $0x110] sm:$0xff] %v3358_v2 }
  0x2e   :  { %169 = vst [vmem:[#allocation2 + $0x108] sm:$0xff] %v3363_v3  ;;  %170 = vst [vmem:[#allocation2 + $0x60] sm:$0xff] %v3371_v4 }
  0x2f   :  { %171 = vst [vmem:[#allocation2 + $0x80] sm:$0xff] %v3376_v5  ;;  %172 = vst [vmem:[#allocation2 + $0x1a8] sm:$0xff] %v3381_v6 }
  0x30   :  { %173 = vst [vmem:[#allocation2 + $0x360] sm:$0xff] %v140_v8  ;;  %174 = vst [vmem:[#allocation2 + $0x130] sm:$0xff] %v141_v9  ;;  %v720_v8 = vmul.f32 %v3505_v53, %v645_v51 }
  0x31   :  { %175 = vst [vmem:[#allocation2 + $0x148] sm:$0xff] %v142_v10  ;;  %176 = vst [vmem:[#allocation2 + $0x200] sm:$0xff] %v143_v11  ;;  %v3521_v10 = vrot.slane %v3200_v58, %v3470_v33  ;;  %v3524_v11 = vrot.slane %v3200_v58, %v3472_v34 }
  0x32   :  { %177 = vst [vmem:[#allocation2 + $0x188] sm:$0xff] %v144_v12  ;;  %178 = vst [vmem:[#allocation2 + $0xe0] sm:$0xff] %v145_v13  ;;  %v3526_v12 = vrot.slane %v448_v59, 1  ;;  %v3528_v13 = vrot.slane %v449_v60, 1 }
  0x33   :  { %179 = vst [vmem:[#allocation2 + $0x308] sm:$0xff] %v146_v14  ;;  %180 = vst [vmem:[#allocation2 + $0x370] sm:$0xff] %v147_v15  ;;  %v846_v14 = vrot.slane %v717_v61, 2  ;;  %v847_v15 = vrot.slane %v718_v62, 2 }
  0x34   :  { %183 = vst [vmem:[#allocation2 + $0x280] sm:$0xff] %v3413_v16  ;;  %184 = vst [vmem:[#allocation2 + $0x138] sm:$0xff] %v3419_v17  ;;  %v1074_v9 = vld [vmem:[#allocation2 + $0x380] sm:$0x7f]  ;;  %v1075_v20 = vld [vmem:[#allocation2 + $0x110] sm:$0x7f] }
  0x35   :  { %185 = vst [vmem:[#allocation2 + $0xb8] sm:$0xff] %v3424_v18  ;;  %186 = vst [vmem:[#allocation2 + $0x1e8] sm:$0xff] %v3429_v19  ;;  %v1514_v43 = vld [vmem:[#allocation2 + $0x380] sm:$0xfe]  ;;  %v1515_v44 = vld [vmem:[#allocation2 + $0x110] sm:$0xfe] }
  0x36   :  { %187 = vst [vmem:[#allocation2 + $0x2f8] sm:$0xff] %v154_v21  ;;  %188 = vst [vmem:[#allocation2 + $0x350] sm:$0xff] %v155_v22  ;;  %v848_v21 = vrot.slane %v719_v7, 2  ;;  %v850_v22 = vrot.slane %v720_v8, 2  ;;  %v1945_v7 = vld [vmem:[#allocation2 + $0x150] sm:$0x80] }
  0x37   :  { %189 = vst [vmem:[#allocation2 + $0x88] sm:$0xff] %v156_v23  ;;  %190 = vst [vmem:[#allocation2 + $0x28] sm:$0xff] %v157_v24  ;;  %v1147_v23 = vmul.f32 %v3521_v10, %v1072_v63  ;;  %v1148_v24 = vmul.f32 %v3524_v11, %v1073_v0  ;;  %v1944_v0 = vld [vmem:[#allocation2 + $0x320] sm:$0x80] }
  0x38   :  { %191 = vst [vmem:[#allocation2 + $0x180] sm:$0xff] %v158_v25  ;;  %192 = vst [vmem:[#allocation2 + $0x378] sm:$0xff] %v159_v26  ;;  %v576_v25 = vadd.f32 %v3526_v12, %v275_v54  ;;  %v577_v26 = vadd.f32 %v3528_v13, %v276_v55  ;;  %v3203_v55 = vld [vmem:[%s4439_s1 + $0x6] ss:$8 sm:$0x3] }
  0x39   :  { %193 = vst [vmem:[#allocation2 + $0x58] sm:$0xff] %v160_v27  ;;  %194 = vst [vmem:[#allocation2 + $0x208] sm:$0xff] %v161_v28  ;;  %v578_v27 = vadd.f32 %v3526_v12, %v277_v56  ;;  %v579_v28 = vadd.f32 %v3528_v13, %v278_v57 }
  0x3a   :  { %195 = vst [vmem:[#allocation2 + $0x248] sm:$0xff] %v162_v29  ;;  %196 = vst [vmem:[#allocation2 + $0x190] sm:$0xff] %v163_v30  ;;  %v3201_v29 = vld [vmem:[%s4439_s1 + $0x4] ss:$8 sm:$0x3]  ;;  %v1006_v37 = vadd.f32 %v846_v14, %v576_v25  ;;  %v1007_v38 = vadd.f32 %v847_v15, %v577_v26 }
  0x3b   :  { %181 = vst [vmem:[#allocation2 + $0x328] sm:$0xff] %v148_v31  ;;  %182 = vst [vmem:[#allocation2 + $0x238] sm:$0xff] %v149_v32  ;;  %v3202_v30 = vld [vmem:[%s4439_s1 + $0x5] ss:$8 sm:$0x3]  ;;  %v849_v31 = vsel %vm845_vm0, %v846_v14, %v848_v21  ;;  %v851_v32 = vsel %vm845_vm0, %v847_v15, %v850_v22  ;;  %v3547_v46 = vrot.slane %v3201_v29, %v3470_v33 }
  0x3c   :  { %197 = vst [vmem:[#allocation2 + $0xc8] sm:$0xff] %v164_v35  ;;  %198 = vst [vmem:[#allocation2 + $0x3b8] sm:$0xff] %v165_v36  ;;  %v1149_v35 = vmul.f32 %v3521_v10, %v1074_v9  ;;  %v1150_v36 = vmul.f32 %v3524_v11, %v1075_v20  ;;  %v1008_v39 = vadd.f32 %v849_v31, %v578_v27  ;;  %v1946_v14 = vld [vmem:[#allocation2 + $0x108] sm:$0x7f]  ;;  %v1947_v25 = vld [vmem:[#allocation2 + $0x60] sm:$0x7f] }
  0x3d   :  { %v1009_v40 = vadd.f32 %v851_v32, %v579_v28  ;;  %v3550_v49 = vrot.slane %v3201_v29, %v3472_v34  ;;  %v3553_v51 = vrot.slane %v3202_v30, %v3470_v33  ;;  %v3556_v54 = vrot.slane %v3202_v30, %v3472_v34 }
  0x3e   :  { %v1211_v56 = vadd.f32 %v1147_v23, %v1006_v37  ;;  %v1212_v57 = vadd.f32 %v1148_v24, %v1007_v38  ;;  %v1213_v58 = vadd.f32 %v1149_v35, %v1008_v39  ;;  %v1320_v60 = vmul.f32 %v3547_v46, %v3353_v1  ;;  %v3205_v37 = vld [vmem:[%s4439_s1 + $0x10] ss:$8 sm:$0x3] }
  0x3f   :  { %v1214_v59 = vadd.f32 %v1150_v36, %v1009_v40  ;;  %v1321_v61 = vmul.f32 %v3550_v49, %v3358_v2  ;;  %v1589_v62 = vmul.f32 %v3553_v51, %v1514_v43  ;;  %v1590_v63 = vmul.f32 %v3556_v54, %v1515_v44  ;;  %v3204_v36 = vld [vmem:[%s4439_s1 + $0x7] ss:$8 sm:$0x3] }
  0x40   :  { %v1591_v8 = vmul.f32 %v3553_v51, %v1516_v45  ;;  %v1592_v9 = vmul.f32 %v3556_v54, %v1517_v50  ;;  %v3570_v15 = vrot.slane %v3203_v55, %v3470_v33  ;;  %v3573_v20 = vrot.slane %v3203_v55, %v3472_v34 }
  0x41   :  { %v1384_v21 = vrot.slane %v1320_v60, 1  ;;  %v1385_v22 = vrot.slane %v1321_v61, 1  ;;  %v1717_v23 = vrot.slane %v1589_v62, 2  ;;  %v1718_v24 = vrot.slane %v1590_v63, 2  ;;  %v2388_v60 = vld [vmem:[#allocation2 + $0x2e0] sm:$0x1] }
  0x42   :  { %v1719_v26 = vrot.slane %v1591_v8, 2  ;;  %v1721_v27 = vrot.slane %v1592_v9, 2  ;;  %v2019_v28 = vmul.f32 %v3570_v15, %v1944_v0  ;;  %v2020_v29 = vmul.f32 %v3573_v20, %v1945_v7  ;;  %v2389_v61 = vld [vmem:[#allocation2 + $0x388] sm:$0x1]  ;;  %v2813_v0 = vld [vmem:[%s4440_s2] sm:$0x3] }
  0x43   :  { %v1448_v30 = vadd.f32 %v1384_v21, %v1211_v56  ;;  %v1449_v31 = vadd.f32 %v1385_v22, %v1212_v57  ;;  %v1450_v32 = vadd.f32 %v1384_v21, %v1213_v58  ;;  %v1451_v35 = vadd.f32 %v1385_v22, %v1214_v59  ;;  %v2386_v56 = vld [vmem:[#allocation2 + $0x108] sm:$0xfe]  ;;  %v2387_v57 = vld [vmem:[#allocation2 + $0x60] sm:$0xfe] }
  0x44   :  { %v1720_v38 = vsel %vm845_vm0, %v1717_v23, %v1719_v26  ;;  %v1722_v39 = vsel %vm845_vm0, %v1718_v24, %v1721_v27  ;;  %v2021_v40 = vmul.f32 %v3570_v15, %v1946_v14  ;;  %v2022_v43 = vmul.f32 %v3573_v20, %v1947_v25  ;;  %v232_v25 = vld [vmem:[#allocation2 + $0x2e8] sm:$0x80]  ;;  %v233_v26 = vld [vmem:[#allocation2 + $0x1f0] sm:$0x80] }
  0x45   :  { %v1877_v44 = vadd.f32 %v1717_v23, %v1448_v30  ;;  %v1878_v45 = vadd.f32 %v1718_v24, %v1449_v31  ;;  %v1879_v50 = vadd.f32 %v1720_v38, %v1450_v32  ;;  %v1880_v55 = vadd.f32 %v1722_v39, %v1451_v35  ;;  %v234_v31 = vld [vmem:[#allocation2 + $0x38] sm:$0x7f]  ;;  %v235_v38 = vld [vmem:[#allocation2 + $0x2d0] sm:$0x7f] }
  0x46   :  { %v3588_v58 = vrot.slane %v3204_v36, %v3470_v33  ;;  %v3591_v59 = vrot.slane %v3204_v36, %v3472_v34  ;;  %v3594_v62 = vrot.slane %v3205_v37, %v3470_v33  ;;  %v3597_v63 = vrot.slane %v3205_v37, %v3472_v34 }
  0x47   :  { %v2083_v7 = vadd.f32 %v2019_v28, %v1877_v44  ;;  %v2084_v8 = vadd.f32 %v2020_v29, %v1878_v45  ;;  %v2085_v9 = vadd.f32 %v2021_v40, %v1879_v50  ;;  %v2086_v14 = vadd.f32 %v2022_v43, %v1880_v55 }
  0x48   :  { %v2192_v21 = vmul.f32 %v3588_v58, %v3363_v3  ;;  %v2193_v22 = vmul.f32 %v3591_v59, %v3371_v4  ;;  %v2461_v23 = vmul.f32 %v3594_v62, %v2386_v56  ;;  %v2462_v24 = vmul.f32 %v3597_v63, %v2387_v57 }
  0x49   :  { %v2463_v27 = vmul.f32 %v3594_v62, %v2388_v60  ;;  %v2464_v30 = vmul.f32 %v3597_v63, %v2389_v61  ;;  %v3611_v28 = vrot.slane %v2813_v0, %v3470_v33  ;;  %v3614_v29 = vrot.slane %v2813_v0, %v3472_v34  ;;  %v674_v61 = vld [vmem:[#allocation2 + $0x38] sm:$0xfe] }
  0x4a   :  { %v2256_v32 = vrot.slane %v2192_v21, 1  ;;  %v2257_v35 = vrot.slane %v2193_v22, 1  ;;  %v2589_v36 = vrot.slane %v2461_v23, 2  ;;  %v2590_v37 = vrot.slane %v2462_v24, 2  ;;  %v675_v24 = vld [vmem:[#allocation2 + $0x2d0] sm:$0xfe] }
  0x4b   :  { %v2591_v39 = vrot.slane %v2463_v27, 2  ;;  %v2593_v40 = vrot.slane %v2464_v30, 2  ;;  %v307_v43 = vmul.f32 %v3484_v41, %v232_v25  ;;  %v308_v44 = vmul.f32 %v3487_v42, %v233_v26  ;;  %v676_v25 = vld [vmem:[#allocation2 + $0x30] sm:$0x1]  ;;  %v677_v26 = vld [vmem:[#allocation2 + $0xc0] sm:$0x1] }
  0x4c   :  { %v2320_v45 = vadd.f32 %v2256_v32, %v2083_v7  ;;  %v2321_v50 = vadd.f32 %v2257_v35, %v2084_v8  ;;  %v2322_v33 = vadd.f32 %v2256_v32, %v2085_v9  ;;  %v2323_v55 = vadd.f32 %v2257_v35, %v2086_v14 }
  0x4d   :  { %v2592_v34 = vsel %vm845_vm0, %v2589_v36, %v2591_v39  ;;  %v2594_v56 = vsel %vm845_vm0, %v2590_v37, %v2593_v40  ;;  %v309_v57 = vmul.f32 %v3484_v41, %v234_v31  ;;  %v310_v60 = vmul.f32 %v3487_v42, %v235_v38  ;;  %v1104_v39 = vld [vmem:[#allocation2 + $0x228] sm:$0x80] }
  0x4e   :  { %v2749_v0 = vadd.f32 %v2589_v36, %v2320_v45  ;;  %v2750_v21 = vadd.f32 %v2590_v37, %v2321_v50  ;;  %v2751_v22 = vadd.f32 %v2592_v34, %v2322_v33  ;;  %v2752_v23 = vadd.f32 %v2594_v56, %v2323_v55  ;;  %v1106_v34 = vld [vmem:[#allocation2 + $0x280] sm:$0x7f] }
  0x4f   :  { %v608_v7 = vadd.f32 %v3526_v12, %v307_v43  ;;  %v609_v8 = vadd.f32 %v3528_v13, %v308_v44  ;;  %v610_v9 = vadd.f32 %v3526_v12, %v309_v57  ;;  %v611_v14 = vadd.f32 %v3528_v13, %v310_v60  ;;  %v1105_v12 = vld [vmem:[#allocation2 + $0x170] sm:$0x80]  ;;  %v1107_v60 = vld [vmem:[#allocation2 + $0x138] sm:$0x7f] }
  0x50   :  { %v2825_v27 = vadd.f32 %v3611_v28, %v2749_v0  ;;  %v2826_v30 = vadd.f32 %v3614_v29, %v2750_v21  ;;  %v2827_v31 = vadd.f32 %v3611_v28, %v2751_v22  ;;  %v2828_v32 = vadd.f32 %v3614_v29, %v2752_v23 }
  0x51   :  { %v749_v35 = vmul.f32 %v3502_v52, %v674_v61  ;;  %v750_v36 = vmul.f32 %v3505_v53, %v675_v24  ;;  %v751_v37 = vmul.f32 %v3502_v52, %v676_v25  ;;  %v752_v38 = vmul.f32 %v3505_v53, %v677_v26  ;;  %v1546_v25 = vld [vmem:[#allocation2 + $0x280] sm:$0xfe]  ;;  %v1547_v26 = vld [vmem:[#allocation2 + $0x138] sm:$0xfe] }
  0x52   :  { %v2954_v40 = vrot.slane %v2825_v27, 7  ;;  %v2955_v13 = vrot.slane %v2827_v31, 7  ;;  %v2957_v43 = vrot.slane %v2826_v30, 7  ;;  %v2958_v44 = vrot.slane %v2828_v32, 7 }
  0x53   :  { %v894_v45 = vrot.slane %v749_v35, 2  ;;  %v895_v50 = vrot.slane %v750_v36, 2  ;;  %v896_v33 = vrot.slane %v751_v37, 2  ;;  %v898_v55 = vrot.slane %v752_v38, 2  ;;  %v1548_v35 = vld [vmem:[#allocation2 + $0x348] sm:$0x1] }
  0x54   :  { %v2956_v56 = vsel %vm2953_vm1, %v2954_v40, %v2955_v13  ;;  %v2959_v57 = vsel %vm2953_vm1, %v2957_v43, %v2958_v44  ;;  %v1179_v61 = vmul.f32 %v3521_v10, %v1104_v39  ;;  %v1180_v0 = vmul.f32 %v3524_v11, %v1105_v12  ;;  %v1549_v39 = vld [vmem:[#allocation2 + $0x3a8] sm:$0x1] }
  0x55   :  { %v3222_v21 = vpack.c.bf16 %v2959_v57, %v2956_v56  ;;  %v897_v22 = vsel %vm845_vm0, %v894_v45, %v896_v33  ;;  %v899_v23 = vsel %vm845_vm0, %v895_v50, %v898_v55  ;;  %v1038_v24 = vadd.f32 %v894_v45, %v608_v7  ;;  %v1978_v33 = vld [vmem:[#allocation2 + $0xb8] sm:$0x7f] }
  0x56   :  { %v1039_v27 = vadd.f32 %v895_v50, %v609_v8  ;;  %v1040_v30 = vadd.f32 %v897_v22, %v610_v9  ;;  %v1041_v31 = vadd.f32 %v899_v23, %v611_v14  ;;  %v1181_v32 = vmul.f32 %v3521_v10, %v1106_v34  ;;  %v1976_v8 = vld [vmem:[#allocation2 + $0xf8] sm:$0x80]  ;;  %v1977_v50 = vld [vmem:[#allocation2 + $0x250] sm:$0x80] }
  0x57   :  { %3178 = vst [vmem:[%s4441_s3] sm:$0xff] %v3222_v21  ;;  %v1182_v36 = vmul.f32 %v3524_v11, %v1107_v60  ;;  %v1243_v37 = vadd.f32 %v1179_v61, %v1038_v24  ;;  %v1336_v38 = vmul.f32 %v3547_v46, %v3413_v16  ;;  %v1337_v7 = vmul.f32 %v3550_v49, %v3419_v17  ;;  %v1979_v17 = vld [vmem:[#allocation2 + $0x1e8] sm:$0x7f]  ;;  %v2418_v21 = vld [vmem:[#allocation2 + $0xb8] sm:$0xfe] }
  0x58   :  { %v1244_v9 = vadd.f32 %v1180_v0, %v1039_v27  ;;  %v1245_v14 = vadd.f32 %v1181_v32, %v1040_v30  ;;  %v1621_v12 = vmul.f32 %v3553_v51, %v1546_v25  ;;  %v1622_v40 = vmul.f32 %v3556_v54, %v1547_v26  ;;  %v2419_v32 = vld [vmem:[#allocation2 + $0x1e8] sm:$0xfe] }
  0x59   :  { %v1246_v13 = vadd.f32 %v1182_v36, %v1041_v31  ;;  %v1400_v43 = vrot.slane %v1336_v38, 1  ;;  %v1401_v44 = vrot.slane %v1337_v7, 1  ;;  %v1623_v45 = vmul.f32 %v3553_v51, %v1548_v35  ;;  %v2420_v35 = vld [vmem:[#allocation2 + $0x2b8] sm:$0x1]  ;;  %v2421_v7 = vld [vmem:[#allocation2 + $0x128] sm:$0x1] }
  0x5a   :  { %v1624_v16 = vmul.f32 %v3556_v54, %v1549_v39  ;;  %v1765_v55 = vrot.slane %v1621_v12, 2  ;;  %v1766_v34 = vrot.slane %v1622_v40, 2  ;;  %v2051_v56 = vmul.f32 %v3570_v15, %v1976_v8 }
  0x5b   :  { %v1480_v57 = vadd.f32 %v1400_v43, %v1243_v37  ;;  %v1481_v60 = vadd.f32 %v1401_v44, %v1244_v9  ;;  %v1482_v61 = vadd.f32 %v1400_v43, %v1245_v14  ;;  %v1483_v0 = vadd.f32 %v1401_v44, %v1246_v13  ;;  %v204_v44 = vld [vmem:[#allocation2 + $0x330] sm:$0x80] }
  0x5c   :  { %v1767_v22 = vrot.slane %v1623_v45, 2  ;;  %v1769_v23 = vrot.slane %v1624_v16, 2  ;;  %v2052_v24 = vmul.f32 %v3573_v20, %v1977_v50  ;;  %v2053_v25 = vmul.f32 %v3570_v15, %v1978_v33 }
  0x5d   :  { %v1909_v26 = vadd.f32 %v1765_v55, %v1480_v57  ;;  %v1910_v27 = vadd.f32 %v1766_v34, %v1481_v60  ;;  %v2054_v30 = vmul.f32 %v3573_v20, %v1979_v17  ;;  %v2208_v31 = vmul.f32 %v3588_v58, %v3424_v18  ;;  %v206_v60 = vld [vmem:[#allocation2 + $0x380] sm:$0x7f] }
  0x5e   :  { %v1768_v36 = vsel %vm845_vm0, %v1765_v55, %v1767_v22  ;;  %v1770_v37 = vsel %vm845_vm0, %v1766_v34, %v1769_v23  ;;  %v2209_v38 = vmul.f32 %v3591_v59, %v3429_v19  ;;  %v2493_v39 = vmul.f32 %v3594_v62, %v2418_v21  ;;  %v205_v19 = vld [vmem:[#allocation2 + $0x48] sm:$0x80] }
  0x5f   :  { %v1911_v8 = vadd.f32 %v1768_v36, %v1482_v61  ;;  %v1912_v9 = vadd.f32 %v1770_v37, %v1483_v0  ;;  %v2115_v14 = vadd.f32 %v2051_v56, %v1909_v26  ;;  %v2116_v12 = vadd.f32 %v2052_v24, %v1910_v27  ;;  %v207_v56 = vld [vmem:[#allocation2 + $0x110] sm:$0x7f]  ;;  %v646_v27 = vld [vmem:[#allocation2 + $0x380] sm:$0xfe] }
  0x60   :  { %v2272_v40 = vrot.slane %v2208_v31, 1  ;;  %v2273_v13 = vrot.slane %v2209_v38, 1  ;;  %v2494_v18 = vmul.f32 %v3597_v63, %v2419_v32  ;;  %v2495_v43 = vmul.f32 %v3594_v62, %v2420_v35 }
  0x61   :  { %v2117_v45 = vadd.f32 %v2053_v25, %v1911_v8  ;;  %v2118_v50 = vadd.f32 %v2054_v30, %v1912_v9  ;;  %v2496_v33 = vmul.f32 %v3597_v63, %v2421_v7  ;;  %v2637_v16 = vrot.slane %v2493_v39, 2  ;;  %v647_v30 = vld [vmem:[#allocation2 + $0x110] sm:$0xfe]  ;;  %v648_v8 = vld [vmem:[#allocation2 + $0x118] sm:$0x1] }
  0x62   :  { %v2352_v55 = vadd.f32 %v2272_v40, %v2115_v14  ;;  %v2353_v34 = vadd.f32 %v2273_v13, %v2116_v12  ;;  %v2638_v17 = vrot.slane %v2494_v18, 2  ;;  %v2639_v57 = vrot.slane %v2495_v43, 2  ;;  %v649_v9 = vld [vmem:[#allocation2 + $0x98] sm:$0x1] }
  0x63   :  { %v2354_v61 = vadd.f32 %v2272_v40, %v2117_v45  ;;  %v2355_v0 = vadd.f32 %v2273_v13, %v2118_v50  ;;  %v2641_v21 = vrot.slane %v2496_v33, 2  ;;  %v279_v22 = vmul.f32 %v3484_v41, %v204_v44 }
  0x64   :  { %v2640_v23 = vsel %vm845_vm0, %v2637_v16, %v2639_v57  ;;  %v2781_v24 = vadd.f32 %v2637_v16, %v2352_v55  ;;  %v2782_v25 = vadd.f32 %v2638_v17, %v2353_v34  ;;  %v280_v26 = vmul.f32 %v3487_v42, %v205_v19  ;;  %v1077_v57 = vld [vmem:[#allocation2 + $0x150] sm:$0x80] }
  0x65   :  { %v2642_v31 = vsel %vm845_vm0, %v2638_v17, %v2641_v21  ;;  %v2783_v32 = vadd.f32 %v2640_v23, %v2354_v61  ;;  %v281_v35 = vmul.f32 %v3484_v41, %v206_v60  ;;  %v282_v36 = vmul.f32 %v3487_v42, %v207_v56  ;;  %v1078_v21 = vld [vmem:[#allocation2 + $0x108] sm:$0x7f]  ;;  %v1079_v23 = vld [vmem:[#allocation2 + $0x60] sm:$0x7f] }
  0x66   :  { %v2784_v37 = vadd.f32 %v2642_v31, %v2355_v0  ;;  %v2857_v38 = vadd.f32 %v3611_v28, %v2781_v24  ;;  %v2858_v7 = vadd.f32 %v3614_v29, %v2782_v25  ;;  %v450_v39 = vmul.f32 %v3496_v47, %v3353_v1 }
  0x67   :  { %v2859_v14 = vadd.f32 %v3611_v28, %v2783_v32  ;;  %v451_v12 = vmul.f32 %v3499_v48, %v3358_v2  ;;  %v721_v40 = vmul.f32 %v3502_v52, %v646_v27  ;;  %v722_v13 = vmul.f32 %v3505_v53, %v647_v30  ;;  %v1076_v2 = vld [vmem:[#allocation2 + $0x320] sm:$0x80] }
  0x68   :  { %v2860_v18 = vadd.f32 %v3614_v29, %v2784_v37  ;;  %v3002_v43 = vrot.slane %v2857_v38, 7  ;;  %v3005_v44 = vrot.slane %v2858_v7, 7  ;;  %v514_v45 = vrot.slane %v450_v39, 1  ;;  %v1518_v37 = vld [vmem:[#allocation2 + $0x108] sm:$0xfe] }
  0x69   :  { %v3003_v50 = vrot.slane %v2859_v14, 7  ;;  %v515_v33 = vrot.slane %v451_v12, 1  ;;  %v723_v1 = vmul.f32 %v3502_v52, %v648_v8  ;;  %v724_v16 = vmul.f32 %v3505_v53, %v649_v9  ;;  %v1519_v38 = vld [vmem:[#allocation2 + $0x60] sm:$0xfe]  ;;  %v1520_v8 = vld [vmem:[#allocation2 + $0x2e0] sm:$0x1] }
  0x6a   :  { %v3006_v19 = vrot.slane %v2860_v18, 7  ;;  %v580_v55 = vadd.f32 %v514_v45, %v279_v22  ;;  %v582_v34 = vadd.f32 %v514_v45, %v281_v35  ;;  %v852_v17 = vrot.slane %v721_v40, 2  ;;  %v1521_v9 = vld [vmem:[#allocation2 + $0x388] sm:$0x1] }
  0x6b   :  { %v3004_v60 = vsel %vm2953_vm1, %v3002_v43, %v3003_v50  ;;  %v581_v56 = vadd.f32 %v515_v33, %v280_v26  ;;  %v583_v61 = vadd.f32 %v515_v33, %v282_v36  ;;  %v853_v0 = vrot.slane %v722_v13, 2  ;;  %v1948_v50 = vld [vmem:[#allocation2 + $0x338] sm:$0x80]  ;;  %v1949_v33 = vld [vmem:[#allocation2 + $0x340] sm:$0x80] }
  0x6c   :  { %v3007_v24 = vsel %vm2953_vm1, %v3005_v44, %v3006_v19  ;;  %v854_v25 = vrot.slane %v723_v1, 2  ;;  %v856_v27 = vrot.slane %v724_v16, 2  ;;  %v1010_v30 = vadd.f32 %v852_v17, %v580_v55 }
  0x6d   :  { %v3230_v31 = vpack.c.bf16 %v3007_v24, %v3004_v60  ;;  %v1011_v32 = vadd.f32 %v853_v0, %v581_v56  ;;  %v1151_v22 = vmul.f32 %v3521_v10, %v1076_v2  ;;  %v1152_v35 = vmul.f32 %v3524_v11, %v1077_v57  ;;  %v1951_v56 = vld [vmem:[#allocation2 + $0x1a8] sm:$0x7f] }
  0x6e   :  { %v855_v7 = vsel %vm845_vm0, %v852_v17, %v854_v25  ;;  %v857_v26 = vsel %vm845_vm0, %v853_v0, %v856_v27  ;;  %v1153_v36 = vmul.f32 %v3521_v10, %v1078_v21  ;;  %v1154_v39 = vmul.f32 %v3524_v11, %v1079_v23 }
  0x6f   :  { %3186 = vst [vmem:[%s4441_s3 + $0x40] sm:$0xff] %v3230_v31  ;;  %v1012_v14 = vadd.f32 %v855_v7, %v582_v34  ;;  %v1013_v12 = vadd.f32 %v857_v26, %v583_v61  ;;  %v1215_v40 = vadd.f32 %v1151_v22, %v1010_v30  ;;  %v1216_v13 = vadd.f32 %v1152_v35, %v1011_v32  ;;  %v1950_v34 = vld [vmem:[#allocation2 + $0x80] sm:$0x7f]  ;;  %v2391_v32 = vld [vmem:[#allocation2 + $0x1a8] sm:$0xfe] }
  0x70   :  { %v1322_v18 = vmul.f32 %v3547_v46, %v3363_v3  ;;  %v1323_v43 = vmul.f32 %v3550_v49, %v3371_v4  ;;  %v1593_v44 = vmul.f32 %v3553_v51, %v1518_v37  ;;  %v1594_v45 = vmul.f32 %v3556_v54, %v1519_v38  ;;  %v2390_v31 = vld [vmem:[#allocation2 + $0x80] sm:$0xfe] }
  0x71   :  { %v1217_v1 = vadd.f32 %v1153_v36, %v1012_v14  ;;  %v1218_v16 = vadd.f32 %v1154_v39, %v1013_v12  ;;  %v1595_v19 = vmul.f32 %v3553_v51, %v1520_v8  ;;  %v1596_v55 = vmul.f32 %v3556_v54, %v1521_v9  ;;  %v2392_v8 = vld [vmem:[#allocation2 + $0x1b8] sm:$0x1]  ;;  %v2393_v9 = vld [vmem:[#allocation2 + $0x168] sm:$0x1] }
  0x72   :  { %v1386_v17 = vrot.slane %v1322_v18, 1  ;;  %v1387_v2 = vrot.slane %v1323_v43, 1  ;;  %v1723_v57 = vrot.slane %v1593_v44, 2  ;;  %v1724_v60 = vrot.slane %v1594_v45, 2  ;;  %v208_v18 = vld [vmem:[#allocation2 + $0x320] sm:$0x80] }
  0x73   :  { %v1725_v61 = vrot.slane %v1595_v19, 2  ;;  %v1727_v0 = vrot.slane %v1596_v55, 2  ;;  %v2023_v21 = vmul.f32 %v3570_v15, %v1948_v50  ;;  %v2024_v23 = vmul.f32 %v3573_v20, %v1949_v33  ;;  %v209_v43 = vld [vmem:[#allocation2 + $0x150] sm:$0x80] }
  0x74   :  { %v1452_v24 = vadd.f32 %v1386_v17, %v1215_v40  ;;  %v1453_v25 = vadd.f32 %v1387_v2, %v1216_v13  ;;  %v1454_v27 = vadd.f32 %v1386_v17, %v1217_v1  ;;  %v1455_v30 = vadd.f32 %v1387_v2, %v1218_v16 }
  0x75   :  { %v1726_v22 = vsel %vm845_vm0, %v1723_v57, %v1725_v61  ;;  %v1728_v35 = vsel %vm845_vm0, %v1724_v60, %v1727_v0  ;;  %v2025_v37 = vmul.f32 %v3570_v15, %v1950_v34  ;;  %v2026_v38 = vmul.f32 %v3573_v20, %v1951_v56  ;;  %v211_v34 = vld [vmem:[#allocation2 + $0x60] sm:$0x7f] }
  0x76   :  { %v1881_v7 = vadd.f32 %v1723_v57, %v1452_v24  ;;  %v1882_v26 = vadd.f32 %v1724_v60, %v1453_v25  ;;  %v1883_v36 = vadd.f32 %v1726_v22, %v1454_v27  ;;  %v1884_v39 = vadd.f32 %v1728_v35, %v1455_v30 }
  0x77   :  { %v2194_v14 = vmul.f32 %v3588_v58, %v3376_v5  ;;  %v2195_v12 = vmul.f32 %v3591_v59, %v3381_v6  ;;  %v2465_v40 = vmul.f32 %v3594_v62, %v2390_v31  ;;  %v2466_v13 = vmul.f32 %v3597_v63, %v2391_v32  ;;  %v210_v5 = vld [vmem:[#allocation2 + $0x108] sm:$0x7f] }
  0x78   :  { %v2087_v44 = vadd.f32 %v2023_v21, %v1881_v7  ;;  %v2088_v45 = vadd.f32 %v2024_v23, %v1882_v26  ;;  %v2089_v50 = vadd.f32 %v2025_v37, %v1883_v36  ;;  %v2090_v33 = vadd.f32 %v2026_v38, %v1884_v39  ;;  %v650_v21 = vld [vmem:[#allocation2 + $0x108] sm:$0xfe]  ;;  %v651_v23 = vld [vmem:[#allocation2 + $0x60] sm:$0xfe]  ;;  %v652_v37 = vld [vmem:[#allocation2 + $0x2e0] sm:$0x1] }
  0x79   :  { %v2258_v1 = vrot.slane %v2194_v14, 1  ;;  %v2259_v16 = vrot.slane %v2195_v12, 1  ;;  %v2467_v19 = vmul.f32 %v3594_v62, %v2392_v8  ;;  %v2468_v55 = vmul.f32 %v3597_v63, %v2393_v9  ;;  %v653_v38 = vld [vmem:[#allocation2 + $0x388] sm:$0x1] }
  0x7a   :  { %v2595_v17 = vrot.slane %v2465_v40, 2  ;;  %v2596_v6 = vrot.slane %v2466_v13, 2  ;;  %v283_v2 = vmul.f32 %v3484_v41, %v208_v18  ;;  %v284_v57 = vmul.f32 %v3487_v42, %v209_v43 }
  0x7b   :  { %v2324_v60 = vadd.f32 %v2258_v1, %v2087_v44  ;;  %v2325_v56 = vadd.f32 %v2259_v16, %v2088_v45  ;;  %v2326_v61 = vadd.f32 %v2258_v1, %v2089_v50  ;;  %v2327_v0 = vadd.f32 %v2259_v16, %v2090_v33  ;;  %v1080_v50 = vld [vmem:[#allocation2 + $0x338] sm:$0x80]  ;;  %v1081_v33 = vld [vmem:[#allocation2 + $0x340] sm:$0x80] }
  0x7c   :  { %v2597_v24 = vrot.slane %v2467_v19, 2  ;;  %v2599_v25 = vrot.slane %v2468_v55, 2  ;;  %v285_v27 = vmul.f32 %v3484_v41, %v210_v5  ;;  %v286_v30 = vmul.f32 %v3487_v42, %v211_v34 }
  0x7d   :  { %v2753_v31 = vadd.f32 %v2595_v17, %v2324_v60  ;;  %v2754_v32 = vadd.f32 %v2596_v6, %v2325_v56  ;;  %v452_v22 = vmul.f32 %v3496_v47, %v3363_v3  ;;  %v453_v35 = vmul.f32 %v3499_v48, %v3371_v4  ;;  %v1082_v60 = vld [vmem:[#allocation2 + $0x80] sm:$0x7f] }
  0x7e   :  { %v2598_v7 = vsel %vm845_vm0, %v2595_v17, %v2597_v24  ;;  %v2600_v26 = vsel %vm845_vm0, %v2596_v6, %v2599_v25  ;;  %v725_v36 = vmul.f32 %v3502_v52, %v650_v21  ;;  %v726_v39 = vmul.f32 %v3505_v53, %v651_v23 }
  0x7f   :  { %v2755_v8 = vadd.f32 %v2598_v7, %v2326_v61  ;;  %v2756_v9 = vadd.f32 %v2600_v26, %v2327_v0  ;;  %v2829_v14 = vadd.f32 %v3611_v28, %v2753_v31  ;;  %v2830_v12 = vadd.f32 %v3614_v29, %v2754_v32  ;;  %v1083_v0 = vld [vmem:[#allocation2 + $0x1a8] sm:$0x7f]  ;;  %v1522_v31 = vld [vmem:[#allocation2 + $0x80] sm:$0xfe]  ;;  %v1524_v7 = vld [vmem:[#allocation2 + $0x1b8] sm:$0x1] }
  0x80   :  { %v516_v3 = vrot.slane %v452_v22, 1  ;;  %v517_v40 = vrot.slane %v453_v35, 1  ;;  %v727_v4 = vmul.f32 %v3502_v52, %v652_v37  ;;  %v728_v13 = vmul.f32 %v3505_v53, %v653_v38  ;;  %v1523_v38 = vld [vmem:[#allocation2 + $0x1a8] sm:$0xfe] }
  0x81   :  { %v2831_v18 = vadd.f32 %v3611_v28, %v2755_v8  ;;  %v2832_v43 = vadd.f32 %v3614_v29, %v2756_v9  ;;  %v2960_v44 = vrot.slane %v2829_v14, 7  ;;  %v2963_v45 = vrot.slane %v2830_v12, 7  ;;  %v1525_v9 = vld [vmem:[#allocation2 + $0x168] sm:$0x1] }
  0x82   :  { %v584_v1 = vadd.f32 %v516_v3, %v283_v2  ;;  %v585_v16 = vadd.f32 %v517_v40, %v284_v57  ;;  %v586_v19 = vadd.f32 %v516_v3, %v285_v27  ;;  %v587_v55 = vadd.f32 %v517_v40, %v286_v30  ;;  %v3740_v27 = vld [vmem:[#allocation2 + $0x80] sm:$0xff]  ;;  %v3742_v30 = vld [vmem:[#allocation2 + $0x1a8] sm:$0xff] }
  0x83   :  { %v2961_v5 = vrot.slane %v2831_v18, 7  ;;  %v2964_v34 = vrot.slane %v2832_v43, 7  ;;  %v858_v17 = vrot.slane %v725_v36, 2  ;;  %v859_v6 = vrot.slane %v726_v39, 2 }
  0x84   :  { %v860_v56 = vrot.slane %v727_v4, 2  ;;  %v862_v61 = vrot.slane %v728_v13, 2  ;;  %v1155_v21 = vmul.f32 %v3521_v10, %v1080_v50  ;;  %v1156_v23 = vmul.f32 %v3524_v11, %v1081_v33  ;;  %v1952_v4 = vld [vmem:[#allocation2 + $0x2f0] sm:$0x80]  ;;  %v1953_v13 = vld [vmem:[#allocation2 + $0x288] sm:$0x80] }
  0x85   :  { %v2962_v24 = vsel %vm2953_vm1, %v2960_v44, %v2961_v5  ;;  %v2965_v25 = vsel %vm2953_vm1, %v2963_v45, %v2964_v34  ;;  %v1014_v2 = vadd.f32 %v858_v17, %v584_v1  ;;  %v1015_v57 = vadd.f32 %v859_v6, %v585_v16  ;;  %v1954_v50 = vld [vmem:[#allocation2 + $0x360] sm:$0x7f] }
  0x86   :  { %v3223_v32 = vpack.c.bf16 %v2965_v25, %v2962_v24  ;;  %v861_v22 = vsel %vm845_vm0, %v858_v17, %v860_v56  ;;  %v863_v35 = vsel %vm845_vm0, %v859_v6, %v862_v61  ;;  %v1157_v37 = vmul.f32 %v3521_v10, %v1082_v60  ;;  %v3761_v60 = vld [vmem:[#allocation2 + $0x360] sm:$0xff]  ;;  %v2395_v25 = vld [vmem:[#allocation2 + $0x130] sm:$0xfe] }
  0x87   :  { %v1016_v26 = vadd.f32 %v861_v22, %v586_v19  ;;  %v1017_v36 = vadd.f32 %v863_v35, %v587_v55  ;;  %v1158_v39 = vmul.f32 %v3524_v11, %v1083_v0  ;;  %v1219_v8 = vadd.f32 %v1155_v21, %v1014_v2  ;;  %v1955_v55 = vld [vmem:[#allocation2 + $0x130] sm:$0x7f]  ;;  %v2394_v24 = vld [vmem:[#allocation2 + $0x360] sm:$0xfe] }
  0x88   :  { %3179 = vst [vmem:[%s4441_s3 + $0x8] sm:$0xff] %v3223_v32  ;;  %v1220_v14 = vadd.f32 %v1156_v23, %v1015_v57  ;;  %v1324_v12 = vmul.f32 %v3547_v46, %v3740_v27  ;;  %v1325_v3 = vmul.f32 %v3550_v49, %v3742_v30  ;;  %v1597_v40 = vmul.f32 %v3553_v51, %v1522_v31  ;;  %v3763_v23 = vld [vmem:[#allocation2 + $0x130] sm:$0xff] }
  0x89   :  { %v1221_v18 = vadd.f32 %v1157_v37, %v1016_v26  ;;  %v1222_v43 = vadd.f32 %v1158_v39, %v1017_v36  ;;  %v1598_v44 = vmul.f32 %v3556_v54, %v1523_v38  ;;  %v1599_v45 = vmul.f32 %v3553_v51, %v1524_v7  ;;  %v2396_v7 = vld [vmem:[#allocation2 + $0x1b0] sm:$0x1] }
  0x8a   :  { %v1388_v33 = vrot.slane %v1324_v12, 1  ;;  %v1389_v1 = vrot.slane %v1325_v3, 1  ;;  %v1600_v16 = vmul.f32 %v3556_v54, %v1525_v9  ;;  %v1729_v19 = vrot.slane %v1597_v40, 2  ;;  %v2397_v26 = vld [vmem:[#allocation2 + $0x270] sm:$0x1] }
  0x8b   :  { %v1730_v5 = vrot.slane %v1598_v44, 2  ;;  %v1731_v34 = vrot.slane %v1599_v45, 2  ;;  %v2027_v17 = vmul.f32 %v3570_v15, %v1952_v4  ;;  %v2028_v6 = vmul.f32 %v3573_v20, %v1953_v13  ;;  %v213_v45 = vld [vmem:[#allocation2 + $0x340] sm:$0x80] }
  0x8c   :  { %v1456_v56 = vadd.f32 %v1388_v33, %v1219_v8  ;;  %v1457_v61 = vadd.f32 %v1389_v1, %v1220_v14  ;;  %v1458_v0 = vadd.f32 %v1388_v33, %v1221_v18  ;;  %v1459_v21 = vadd.f32 %v1389_v1, %v1222_v43  ;;  %v212_v14 = vld [vmem:[#allocation2 + $0x338] sm:$0x80] }
  0x8d   :  { %v1732_v2 = vsel %vm845_vm0, %v1729_v19, %v1731_v34  ;;  %v1733_v57 = vrot.slane %v1600_v16, 2  ;;  %v2029_v31 = vmul.f32 %v3570_v15, %v1954_v50  ;;  %v2030_v32 = vmul.f32 %v3573_v20, %v1955_v55  ;;  %v214_v50 = vld [vmem:[#allocation2 + $0x80] sm:$0x7f] }
  0x8e   :  { %v1885_v22 = vadd.f32 %v1729_v19, %v1456_v56  ;;  %v1886_v35 = vadd.f32 %v1730_v5, %v1457_v61  ;;  %v1887_v37 = vadd.f32 %v1732_v2, %v1458_v0  ;;  %v2196_v38 = vmul.f32 %v3588_v58, %v3761_v60  ;;  %v215_v19 = vld [vmem:[#allocation2 + $0x1a8] sm:$0x7f] }
  0x8f   :  { %v1734_v36 = vsel %vm845_vm0, %v1730_v5, %v1733_v57  ;;  %v2197_v39 = vmul.f32 %v3591_v59, %v3763_v23  ;;  %v2469_v8 = vmul.f32 %v3594_v62, %v2394_v24  ;;  %v2470_v9 = vmul.f32 %v3597_v63, %v2395_v25  ;;  %v654_v24 = vld [vmem:[#allocation2 + $0x80] sm:$0xfe] }
  0x90   :  { %v1888_v12 = vadd.f32 %v1734_v36, %v1459_v21  ;;  %v2091_v3 = vadd.f32 %v2027_v17, %v1885_v22  ;;  %v2092_v40 = vadd.f32 %v2028_v6, %v1886_v35  ;;  %v2093_v4 = vadd.f32 %v2029_v31, %v1887_v37 }
  0x91   :  { %v2260_v13 = vrot.slane %v2196_v38, 1  ;;  %v2261_v18 = vrot.slane %v2197_v39, 1  ;;  %v2471_v43 = vmul.f32 %v3594_v62, %v2396_v7  ;;  %v2472_v44 = vmul.f32 %v3597_v63, %v2397_v26  ;;  %v656_v7 = vld [vmem:[#allocation2 + $0x1b8] sm:$0x1] }
  0x92   :  { %v2094_v33 = vadd.f32 %v2030_v32, %v1888_v12  ;;  %v2601_v1 = vrot.slane %v2469_v8, 2  ;;  %v2602_v16 = vrot.slane %v2470_v9, 2  ;;  %v287_v55 = vmul.f32 %v3484_v41, %v212_v14  ;;  %v655_v32 = vld [vmem:[#allocation2 + $0x1a8] sm:$0xfe] }
  0x93   :  { %v2328_v5 = vadd.f32 %v2260_v13, %v2091_v3  ;;  %v2329_v34 = vadd.f32 %v2261_v18, %v2092_v40  ;;  %v2330_v56 = vadd.f32 %v2260_v13, %v2093_v4  ;;  %v2603_v17 = vrot.slane %v2471_v43, 2  ;;  %v657_v3 = vld [vmem:[#allocation2 + $0x168] sm:$0x1] }
  0x94   :  { %v2331_v6 = vadd.f32 %v2261_v18, %v2094_v33  ;;  %v2605_v61 = vrot.slane %v2472_v44, 2  ;;  %v288_v0 = vmul.f32 %v3487_v42, %v213_v45  ;;  %v289_v21 = vmul.f32 %v3484_v41, %v214_v50  ;;  %v1084_v18 = vld [vmem:[#allocation2 + $0x2f0] sm:$0x80]  ;;  %v1085_v33 = vld [vmem:[#allocation2 + $0x288] sm:$0x80] }
  0x95   :  { %v2604_v25 = vsel %vm845_vm0, %v2601_v1, %v2603_v17  ;;  %v2757_v2 = vadd.f32 %v2601_v1, %v2328_v5  ;;  %v2758_v57 = vadd.f32 %v2602_v16, %v2329_v34  ;;  %v290_v31 = vmul.f32 %v3487_v42, %v215_v19  ;;  %v1086_v34 = vld [vmem:[#allocation2 + $0x360] sm:$0x7f] }
  0x96   :  { %v2606_v22 = vsel %vm845_vm0, %v2602_v16, %v2605_v61  ;;  %v2759_v35 = vadd.f32 %v2604_v25, %v2330_v56  ;;  %v454_v37 = vmul.f32 %v3740_v27, %v3496_v47  ;;  %v455_v38 = vmul.f32 %v3742_v30, %v3499_v48  ;;  %v1087_v61 = vld [vmem:[#allocation2 + $0x130] sm:$0x7f] }
  0x97   :  { %v2760_v26 = vadd.f32 %v2606_v22, %v2331_v6  ;;  %v2833_v36 = vadd.f32 %v3611_v28, %v2757_v2  ;;  %v2834_v39 = vadd.f32 %v3614_v29, %v2758_v57  ;;  %v729_v8 = vmul.f32 %v3502_v52, %v654_v24  ;;  %v1526_v22 = vld [vmem:[#allocation2 + $0x360] sm:$0xfe] }
  0x98   :  { %v2835_v9 = vadd.f32 %v3611_v28, %v2759_v35  ;;  %v518_v14 = vrot.slane %v454_v37, 1  ;;  %v519_v12 = vrot.slane %v455_v38, 1  ;;  %v730_v40 = vmul.f32 %v3505_v53, %v655_v32  ;;  %v1527_v35 = vld [vmem:[#allocation2 + $0x130] sm:$0xfe]  ;;  %v1528_v37 = vld [vmem:[#allocation2 + $0x1b0] sm:$0x1] }
  0x99   :  { %v2836_v27 = vadd.f32 %v3614_v29, %v2760_v26  ;;  %v2966_v4 = vrot.slane %v2833_v36, 7  ;;  %v2969_v13 = vrot.slane %v2834_v39, 7  ;;  %v731_v30 = vmul.f32 %v3502_v52, %v656_v7  ;;  %v1529_v39 = vld [vmem:[#allocation2 + $0x270] sm:$0x1] }
  0x9a   :  { %v2967_v43 = vrot.slane %v2835_v9, 7  ;;  %v588_v44 = vadd.f32 %v518_v14, %v287_v55  ;;  %v589_v45 = vadd.f32 %v519_v12, %v288_v0  ;;  %v590_v50 = vadd.f32 %v518_v14, %v289_v21 }
  0x9b   :  { %v2970_v1 = vrot.slane %v2836_v27, 7  ;;  %v591_v16 = vadd.f32 %v519_v12, %v290_v31  ;;  %v732_v19 = vmul.f32 %v3505_v53, %v657_v3  ;;  %v864_v5 = vrot.slane %v729_v8, 2  ;;  %v1956_v3 = vld [vmem:[#allocation2 + $0xf0] sm:$0x80] }
  0x9c   :  { %v2968_v56 = vsel %vm2953_vm1, %v2966_v4, %v2967_v43  ;;  %v865_v17 = vrot.slane %v730_v40, 2  ;;  %v866_v6 = vrot.slane %v731_v30, 2  ;;  %v1159_v24 = vmul.f32 %v3521_v10, %v1084_v18 }
  0x9d   :  { %v2971_v25 = vsel %vm2953_vm1, %v2969_v13, %v2970_v1  ;;  %v868_v2 = vrot.slane %v732_v19, 2  ;;  %v1018_v55 = vadd.f32 %v864_v5, %v588_v44  ;;  %v1160_v0 = vmul.f32 %v3524_v11, %v1085_v33  ;;  %v1959_v19 = vld [vmem:[#allocation2 + $0x200] sm:$0x7f] }
  0x9e   :  { %v3224_v21 = vpack.c.bf16 %v2971_v25, %v2968_v56  ;;  %v867_v57 = vsel %vm845_vm0, %v864_v5, %v866_v6  ;;  %v1019_v31 = vadd.f32 %v865_v17, %v589_v45  ;;  %v1161_v32 = vmul.f32 %v3521_v10, %v1086_v34  ;;  %v1957_v45 = vld [vmem:[#allocation2 + $0x8] sm:$0x80] }
  0x9f   :  { %v869_v38 = vsel %vm845_vm0, %v865_v17, %v868_v2  ;;  %v1020_v7 = vadd.f32 %v867_v57, %v590_v50  ;;  %v1162_v26 = vmul.f32 %v3524_v11, %v1087_v61  ;;  %v1223_v36 = vadd.f32 %v1159_v24, %v1018_v55  ;;  %v1958_v50 = vld [vmem:[#allocation2 + $0x148] sm:$0x7f]  ;;  %v3817_v24 = vld [vmem:[#allocation2 + $0x200] sm:$0xff] }
  0xa0   :  { %3180 = vst [vmem:[%s4441_s3 + $0x10] sm:$0xff] %v3224_v21  ;;  %v1021_v8 = vadd.f32 %v869_v38, %v591_v16  ;;  %v1224_v9 = vadd.f32 %v1160_v0, %v1019_v31  ;;  %v1326_v14 = vmul.f32 %v3761_v60, %v3547_v46  ;;  %v1327_v12 = vmul.f32 %v3763_v23, %v3550_v49  ;;  %v3815_v61 = vld [vmem:[#allocation2 + $0x148] sm:$0xff] }
  0xa1   :  { %v1225_v40 = vadd.f32 %v1161_v32, %v1020_v7  ;;  %v1601_v27 = vmul.f32 %v3553_v51, %v1526_v22  ;;  %v1602_v4 = vmul.f32 %v3556_v54, %v1527_v35  ;;  %v1603_v13 = vmul.f32 %v3553_v51, %v1528_v37  ;;  %v2398_v25 = vld [vmem:[#allocation2 + $0x148] sm:$0xfe]  ;;  %v2399_v35 = vld [vmem:[#allocation2 + $0x200] sm:$0xfe]  ;;  %v2400_v37 = vld [vmem:[#allocation2 + $0x390] sm:$0x1] }
  0xa2   :  { %v1226_v30 = vadd.f32 %v1162_v26, %v1021_v8  ;;  %v1390_v18 = vrot.slane %v1326_v14, 1  ;;  %v1391_v43 = vrot.slane %v1327_v12, 1  ;;  %v1604_v44 = vmul.f32 %v3556_v54, %v1529_v39  ;;  %v216_v8 = vld [vmem:[#allocation2 + $0x2f0] sm:$0x80] }
  0xa3   :  { %v1735_v33 = vrot.slane %v1601_v27, 2  ;;  %v1736_v1 = vrot.slane %v1602_v4, 2  ;;  %v1737_v16 = vrot.slane %v1603_v13, 2  ;;  %v2031_v5 = vmul.f32 %v3570_v15, %v1956_v3 }
  0xa4   :  { %v1460_v34 = vadd.f32 %v1390_v18, %v1223_v36  ;;  %v1461_v56 = vadd.f32 %v1391_v43, %v1224_v9  ;;  %v1462_v17 = vadd.f32 %v1390_v18, %v1225_v40  ;;  %v1463_v6 = vadd.f32 %v1391_v43, %v1226_v30  ;;  %v2401_v36 = vld [vmem:[#allocation2 + $0x278] sm:$0x1]  ;;  %v217_v30 = vld [vmem:[#allocation2 + $0x288] sm:$0x80] }
  0xa5   :  { %v1738_v2 = vsel %vm845_vm0, %v1735_v33, %v1737_v16  ;;  %v1739_v55 = vrot.slane %v1604_v44, 2  ;;  %v2032_v0 = vmul.f32 %v3573_v20, %v1957_v45  ;;  %v2033_v21 = vmul.f32 %v3570_v15, %v1958_v50  ;;  %v218_v45 = vld [vmem:[#allocation2 + $0x360] sm:$0x7f]  ;;  %v219_v50 = vld [vmem:[#allocation2 + $0x130] sm:$0x7f] }
  0xa6   :  { %v1889_v57 = vadd.f32 %v1735_v33, %v1460_v34  ;;  %v1890_v31 = vadd.f32 %v1736_v1, %v1461_v56  ;;  %v1891_v32 = vadd.f32 %v1738_v2, %v1462_v17  ;;  %v2034_v22 = vmul.f32 %v3573_v20, %v1959_v19 }
  0xa7   :  { %v1740_v38 = vsel %vm845_vm0, %v1736_v1, %v1739_v55  ;;  %v2198_v7 = vmul.f32 %v3588_v58, %v3815_v61  ;;  %v2199_v26 = vmul.f32 %v3591_v59, %v3817_v24  ;;  %v2473_v39 = vmul.f32 %v3594_v62, %v2398_v25 }
  0xa8   :  { %v1892_v9 = vadd.f32 %v1740_v38, %v1463_v6  ;;  %v2095_v14 = vadd.f32 %v2031_v5, %v1889_v57  ;;  %v2096_v12 = vadd.f32 %v2032_v0, %v1890_v31  ;;  %v2097_v3 = vadd.f32 %v2033_v21, %v1891_v32  ;;  %v658_v21 = vld [vmem:[#allocation2 + $0x360] sm:$0xfe]  ;;  %v659_v57 = vld [vmem:[#allocation2 + $0x130] sm:$0xfe] }
  0xa9   :  { %v2262_v40 = vrot.slane %v2198_v7, 1  ;;  %v2263_v27 = vrot.slane %v2199_v26, 1  ;;  %v2474_v4 = vmul.f32 %v3597_v63, %v2399_v35  ;;  %v2475_v13 = vmul.f32 %v3594_v62, %v2400_v37 }
  0xaa   :  { %v2098_v18 = vadd.f32 %v2034_v22, %v1892_v9  ;;  %v2476_v43 = vmul.f32 %v3597_v63, %v2401_v36  ;;  %v2607_v44 = vrot.slane %v2473_v39, 2  ;;  %v291_v33 = vmul.f32 %v3484_v41, %v216_v8  ;;  %v660_v8 = vld [vmem:[#allocation2 + $0x1b0] sm:$0x1] }
  0xab   :  { %v2332_v1 = vadd.f32 %v2262_v40, %v2095_v14  ;;  %v2333_v16 = vadd.f32 %v2263_v27, %v2096_v12  ;;  %v2334_v19 = vadd.f32 %v2262_v40, %v2097_v3  ;;  %v2608_v5 = vrot.slane %v2474_v4, 2  ;;  %v661_v9 = vld [vmem:[#allocation2 + $0x270] sm:$0x1]  ;;  %v1089_v4 = vld [vmem:[#allocation2 + $0x8] sm:$0x80] }
  0xac   :  { %v2335_v34 = vadd.f32 %v2263_v27, %v2098_v18  ;;  %v2609_v56 = vrot.slane %v2475_v13, 2  ;;  %v2611_v17 = vrot.slane %v2476_v43, 2  ;;  %v292_v6 = vmul.f32 %v3487_v42, %v217_v30  ;;  %v1088_v27 = vld [vmem:[#allocation2 + $0xf0] sm:$0x80] }
  0xad   :  { %v2761_v25 = vadd.f32 %v2607_v44, %v2332_v1  ;;  %v2762_v2 = vadd.f32 %v2608_v5, %v2333_v16  ;;  %v293_v55 = vmul.f32 %v3484_v41, %v218_v45  ;;  %v294_v0 = vmul.f32 %v3487_v42, %v219_v50  ;;  %v1090_v16 = vld [vmem:[#allocation2 + $0x148] sm:$0x7f] }
  0xae   :  { %v2610_v31 = vsel %vm845_vm0, %v2607_v44, %v2609_v56  ;;  %v2612_v32 = vsel %vm845_vm0, %v2608_v5, %v2611_v17  ;;  %v456_v22 = vmul.f32 %v3761_v60, %v3496_v47  ;;  %v457_v35 = vmul.f32 %v3763_v23, %v3499_v48 }
  0xaf   :  { %v2763_v37 = vadd.f32 %v2610_v31, %v2334_v19  ;;  %v2764_v38 = vadd.f32 %v2612_v32, %v2335_v34  ;;  %v2837_v7 = vadd.f32 %v3611_v28, %v2761_v25  ;;  %v2838_v26 = vadd.f32 %v3614_v29, %v2762_v2  ;;  %v1091_v34 = vld [vmem:[#allocation2 + $0x200] sm:$0x7f]  ;;  %v1530_v31 = vld [vmem:[#allocation2 + $0x148] sm:$0xfe] }
  0xb0   :  { %v520_v36 = vrot.slane %v456_v22, 1  ;;  %v521_v39 = vrot.slane %v457_v35, 1  ;;  %v733_v14 = vmul.f32 %v3502_v52, %v658_v21  ;;  %v734_v12 = vmul.f32 %v3505_v53, %v659_v57  ;;  %v1531_v32 = vld [vmem:[#allocation2 + $0x200] sm:$0xfe] }
  0xb1   :  { %v2839_v3 = vadd.f32 %v3611_v28, %v2763_v37  ;;  %v2840_v60 = vadd.f32 %v3614_v29, %v2764_v38  ;;  %v2972_v40 = vrot.slane %v2837_v7, 7  ;;  %v2975_v23 = vrot.slane %v2838_v26, 7  ;;  %v1532_v7 = vld [vmem:[#allocation2 + $0x390] sm:$0x1]  ;;  %v1533_v26 = vld [vmem:[#allocation2 + $0x278] sm:$0x1] }
  0xb2   :  { %v592_v13 = vadd.f32 %v520_v36, %v291_v33  ;;  %v593_v30 = vadd.f32 %v521_v39, %v292_v6  ;;  %v594_v18 = vadd.f32 %v520_v36, %v293_v55  ;;  %v595_v43 = vadd.f32 %v521_v39, %v294_v0 }
  0xb3   :  { %v2973_v44 = vrot.slane %v2839_v3, 7  ;;  %v2976_v45 = vrot.slane %v2840_v60, 7  ;;  %v735_v50 = vmul.f32 %v3502_v52, %v660_v8  ;;  %v736_v1 = vmul.f32 %v3505_v53, %v661_v9 }
  0xb4   :  { %v870_v19 = vrot.slane %v733_v14, 2  ;;  %v871_v5 = vrot.slane %v734_v12, 2  ;;  %v1163_v56 = vmul.f32 %v3521_v10, %v1088_v27  ;;  %v1164_v17 = vmul.f32 %v3524_v11, %v1089_v4 }
  0xb5   :  { %v2974_v25 = vsel %vm2953_vm1, %v2972_v40, %v2973_v44  ;;  %v2977_v33 = vsel %vm2953_vm1, %v2975_v23, %v2976_v45  ;;  %v872_v6 = vrot.slane %v735_v50, 2  ;;  %v874_v2 = vrot.slane %v736_v1, 2  ;;  %v1960_v40 = vld [vmem:[#allocation2] sm:$0x80]  ;;  %v1963_v1 = vld [vmem:[#allocation2 + $0xe0] sm:$0x7f] }
  0xb6   :  { %v3225_v55 = vpack.c.bf16 %v2977_v33, %v2974_v25  ;;  %v1022_v0 = vadd.f32 %v870_v19, %v592_v13  ;;  %v1023_v21 = vadd.f32 %v871_v5, %v593_v30  ;;  %v1165_v57 = vmul.f32 %v3521_v10, %v1090_v16  ;;  %v1961_v30 = vld [vmem:[#allocation2 + $0x290] sm:$0x80] }
  0xb7   :  { %v873_v22 = vsel %vm845_vm0, %v870_v19, %v872_v6  ;;  %v875_v35 = vsel %vm845_vm0, %v871_v5, %v874_v2  ;;  %v1166_v37 = vmul.f32 %v3524_v11, %v1091_v34  ;;  %v1328_v38 = vmul.f32 %v3815_v61, %v3547_v46  ;;  %v3873_v2 = vld [vmem:[#allocation2 + $0xe0] sm:$0xff] }
  0xb8   :  { %3181 = vst [vmem:[%s4441_s3 + $0x18] sm:$0xff] %v3225_v55  ;;  %v1024_v36 = vadd.f32 %v873_v22, %v594_v18  ;;  %v1025_v39 = vadd.f32 %v875_v35, %v595_v43  ;;  %v1227_v8 = vadd.f32 %v1163_v56, %v1022_v0  ;;  %v1228_v9 = vadd.f32 %v1164_v17, %v1023_v21  ;;  %v1962_v18 = vld [vmem:[#allocation2 + $0x188] sm:$0x7f]  ;;  %v2403_v0 = vld [vmem:[#allocation2 + $0xe0] sm:$0xfe] }
  0xb9   :  { %v1329_v14 = vmul.f32 %v3817_v24, %v3550_v49  ;;  %v1392_v12 = vrot.slane %v1328_v38, 1  ;;  %v1605_v3 = vmul.f32 %v3553_v51, %v1530_v31  ;;  %v1606_v60 = vmul.f32 %v3556_v54, %v1531_v32  ;;  %v3870_v56 = vld [vmem:[#allocation2 + $0x188] sm:$0xff]  ;;  %v2404_v22 = vld [vmem:[#allocation2 + $0x1c0] sm:$0x1] }
  0xba   :  { %v1229_v23 = vadd.f32 %v1165_v57, %v1024_v36  ;;  %v1230_v27 = vadd.f32 %v1166_v37, %v1025_v39  ;;  %v1607_v4 = vmul.f32 %v3553_v51, %v1532_v7  ;;  %v1608_v13 = vmul.f32 %v3556_v54, %v1533_v26  ;;  %v2402_v55 = vld [vmem:[#allocation2 + $0x188] sm:$0xfe]  ;;  %v2405_v26 = vld [vmem:[#allocation2 + $0x90] sm:$0x1] }
  0xbb   :  { %v1393_v43 = vrot.slane %v1329_v14, 1  ;;  %v1464_v44 = vadd.f32 %v1392_v12, %v1227_v8  ;;  %v1741_v45 = vrot.slane %v1605_v3, 2  ;;  %v1742_v50 = vrot.slane %v1606_v60, 2  ;;  %v220_v14 = vld [vmem:[#allocation2 + $0xf0] sm:$0x80] }
  0xbc   :  { %v1466_v16 = vadd.f32 %v1392_v12, %v1229_v23  ;;  %v1743_v19 = vrot.slane %v1607_v4, 2  ;;  %v1745_v5 = vrot.slane %v1608_v13, 2  ;;  %v2035_v34 = vmul.f32 %v3570_v15, %v1960_v40  ;;  %v221_v12 = vld [vmem:[#allocation2 + $0x8] sm:$0x80] }
  0xbd   :  { %v1465_v17 = vadd.f32 %v1393_v43, %v1228_v9  ;;  %v1467_v25 = vadd.f32 %v1393_v43, %v1230_v27  ;;  %v1893_v33 = vadd.f32 %v1741_v45, %v1464_v44  ;;  %v2036_v6 = vmul.f32 %v3573_v20, %v1961_v30  ;;  %v222_v27 = vld [vmem:[#allocation2 + $0x148] sm:$0x7f]  ;;  %v223_v43 = vld [vmem:[#allocation2 + $0x200] sm:$0x7f] }
  0xbe   :  { %v1744_v21 = vsel %vm845_vm0, %v1741_v45, %v1743_v19  ;;  %v1746_v57 = vsel %vm845_vm0, %v1742_v50, %v1745_v5  ;;  %v2037_v31 = vmul.f32 %v3570_v15, %v1962_v18  ;;  %v2038_v32 = vmul.f32 %v3573_v20, %v1963_v1 }
  0xbf   :  { %v1894_v35 = vadd.f32 %v1742_v50, %v1465_v17  ;;  %v1895_v37 = vadd.f32 %v1744_v21, %v1466_v16  ;;  %v1896_v38 = vadd.f32 %v1746_v57, %v1467_v25  ;;  %v2099_v7 = vadd.f32 %v2035_v34, %v1893_v33  ;;  %v662_v17 = vld [vmem:[#allocation2 + $0x148] sm:$0xfe]  ;;  %v663_v25 = vld [vmem:[#allocation2 + $0x200] sm:$0xfe] }
  0xc0   :  { %v2200_v36 = vmul.f32 %v3588_v58, %v3870_v56  ;;  %v2201_v39 = vmul.f32 %v3591_v59, %v3873_v2  ;;  %v2477_v8 = vmul.f32 %v3594_v62, %v2402_v55  ;;  %v2478_v9 = vmul.f32 %v3597_v63, %v2403_v0 }
  0xc1   :  { %v2100_v3 = vadd.f32 %v2036_v6, %v1894_v35  ;;  %v2101_v60 = vadd.f32 %v2037_v31, %v1895_v37  ;;  %v2102_v40 = vadd.f32 %v2038_v32, %v1896_v38  ;;  %v2479_v23 = vmul.f32 %v3594_v62, %v2404_v22  ;;  %v664_v22 = vld [vmem:[#allocation2 + $0x390] sm:$0x1]  ;;  %v665_v35 = vld [vmem:[#allocation2 + $0x278] sm:$0x1] }
  0xc2   :  { %v2264_v4 = vrot.slane %v2200_v36, 1  ;;  %v2265_v13 = vrot.slane %v2201_v39, 1  ;;  %v2480_v30 = vmul.f32 %v3597_v63, %v2405_v26  ;;  %v2613_v18 = vrot.slane %v2477_v8, 2 }
  0xc3   :  { %v2614_v44 = vrot.slane %v2478_v9, 2  ;;  %v2615_v45 = vrot.slane %v2479_v23, 2  ;;  %v295_v50 = vmul.f32 %v3484_v41, %v220_v14  ;;  %v296_v1 = vmul.f32 %v3487_v42, %v221_v12 }
  0xc4   :  { %v2336_v16 = vadd.f32 %v2264_v4, %v2099_v7  ;;  %v2337_v19 = vadd.f32 %v2265_v13, %v2100_v3  ;;  %v2338_v5 = vadd.f32 %v2264_v4, %v2101_v60  ;;  %v2339_v34 = vadd.f32 %v2265_v13, %v2102_v40  ;;  %v1092_v60 = vld [vmem:[#allocation2] sm:$0x80]  ;;  %v1093_v4 = vld [vmem:[#allocation2 + $0x290] sm:$0x80] }
  0xc5   :  { %v2616_v33 = vsel %vm845_vm0, %v2613_v18, %v2615_v45  ;;  %v2617_v6 = vrot.slane %v2480_v30, 2  ;;  %v297_v55 = vmul.f32 %v3484_v41, %v222_v27  ;;  %v298_v0 = vmul.f32 %v3487_v42, %v223_v43 }
  0xc6   :  { %v2765_v21 = vadd.f32 %v2613_v18, %v2336_v16  ;;  %v2766_v57 = vadd.f32 %v2614_v44, %v2337_v19  ;;  %v2767_v31 = vadd.f32 %v2616_v33, %v2338_v5  ;;  %v458_v32 = vmul.f32 %v3815_v61, %v3496_v47 }
  0xc7   :  { %v2618_v37 = vsel %vm845_vm0, %v2614_v44, %v2617_v6  ;;  %v459_v38 = vmul.f32 %v3817_v24, %v3499_v48  ;;  %v737_v7 = vmul.f32 %v3502_v52, %v662_v17  ;;  %v738_v26 = vmul.f32 %v3505_v53, %v663_v25  ;;  %v1094_v44 = vld [vmem:[#allocation2 + $0x188] sm:$0x7f] }
  0xc8   :  { %v2768_v36 = vadd.f32 %v2618_v37, %v2339_v34  ;;  %v2841_v39 = vadd.f32 %v3611_v28, %v2765_v21  ;;  %v2842_v8 = vadd.f32 %v3614_v29, %v2766_v57  ;;  %v2843_v9 = vadd.f32 %v3611_v28, %v2767_v31  ;;  %v1095_v34 = vld [vmem:[#allocation2 + $0xe0] sm:$0x7f] }
  0xc9   :  { %v522_v14 = vrot.slane %v458_v32, 1  ;;  %v523_v61 = vrot.slane %v459_v38, 1  ;;  %v739_v12 = vmul.f32 %v3502_v52, %v664_v22  ;;  %v740_v3 = vmul.f32 %v3505_v53, %v665_v35  ;;  %v1536_v37 = vld [vmem:[#allocation2 + $0x1c0] sm:$0x1]  ;;  %v1537_v38 = vld [vmem:[#allocation2 + $0x90] sm:$0x1] }
  0xca   :  { %v2844_v24 = vadd.f32 %v3614_v29, %v2768_v36  ;;  %v2978_v40 = vrot.slane %v2841_v39, 7  ;;  %v2979_v23 = vrot.slane %v2843_v9, 7  ;;  %v2981_v27 = vrot.slane %v2842_v8, 7 }
  0xcb   :  { %v596_v13 = vadd.f32 %v522_v14, %v295_v50  ;;  %v597_v30 = vadd.f32 %v523_v61, %v296_v1  ;;  %v598_v18 = vadd.f32 %v522_v14, %v297_v55  ;;  %v599_v43 = vadd.f32 %v523_v61, %v298_v0  ;;  %v1534_v55 = vld [vmem:[#allocation2 + $0x188] sm:$0xfe]  ;;  %v1535_v0 = vld [vmem:[#allocation2 + $0xe0] sm:$0xfe] }
  0xcc   :  { %v2980_v45 = vsel %vm2953_vm1, %v2978_v40, %v2979_v23  ;;  %v2982_v16 = vrot.slane %v2844_v24, 7  ;;  %v876_v19 = vrot.slane %v737_v7, 2  ;;  %v877_v5 = vrot.slane %v738_v26, 2 }
  0xcd   :  { %v878_v17 = vrot.slane %v739_v12, 2  ;;  %v880_v25 = vrot.slane %v740_v3, 2  ;;  %v1167_v33 = vmul.f32 %v3521_v10, %v1092_v60  ;;  %v1168_v6 = vmul.f32 %v3524_v11, %v1093_v4  ;;  %v1964_v12 = vld [vmem:[#allocation2 + $0x70] sm:$0x80] }
  0xce   :  { %v2983_v21 = vsel %vm2953_vm1, %v2981_v27, %v2982_v16  ;;  %v1026_v57 = vadd.f32 %v876_v19, %v596_v13  ;;  %v1027_v50 = vadd.f32 %v877_v5, %v597_v30  ;;  %v1169_v1 = vmul.f32 %v3521_v10, %v1094_v44  ;;  %v1965_v3 = vld [vmem:[#allocation2 + $0x210] sm:$0x80]  ;;  %v1966_v27 = vld [vmem:[#allocation2 + $0x308] sm:$0x7f] }
  0xcf   :  { %v3226_v31 = vpack.c.bf16 %v2983_v21, %v2980_v45  ;;  %v879_v32 = vsel %vm845_vm0, %v876_v19, %v878_v17  ;;  %v881_v22 = vsel %vm845_vm0, %v877_v5, %v880_v25  ;;  %v1170_v35 = vmul.f32 %v3524_v11, %v1095_v34  ;;  %v3926_v5 = vld [vmem:[#allocation2 + $0x308] sm:$0xff] }
  0xd0   :  { %v1028_v7 = vadd.f32 %v879_v32, %v598_v18  ;;  %v1029_v26 = vadd.f32 %v881_v22, %v599_v43  ;;  %v1231_v36 = vadd.f32 %v1167_v33, %v1026_v57  ;;  %v1232_v39 = vadd.f32 %v1168_v6, %v1027_v50  ;;  %v1967_v43 = vld [vmem:[#allocation2 + $0x370] sm:$0x7f]  ;;  %v2406_v21 = vld [vmem:[#allocation2 + $0x308] sm:$0xfe] }
  0xd1   :  { %3182 = vst [vmem:[%s4441_s3 + $0x20] sm:$0xff] %v3226_v31  ;;  %v1330_v8 = vmul.f32 %v3870_v56, %v3547_v46  ;;  %v1331_v9 = vmul.f32 %v3873_v2, %v3550_v49  ;;  %v1609_v14 = vmul.f32 %v3553_v51, %v1534_v55  ;;  %v1610_v61 = vmul.f32 %v3556_v54, %v1535_v0  ;;  %v3928_v6 = vld [vmem:[#allocation2 + $0x370] sm:$0xff] }
  0xd2   :  { %v1233_v60 = vadd.f32 %v1169_v1, %v1028_v7  ;;  %v1234_v24 = vadd.f32 %v1170_v35, %v1029_v26  ;;  %v1611_v40 = vmul.f32 %v3553_v51, %v1536_v37  ;;  %v1612_v23 = vmul.f32 %v3556_v54, %v1537_v38  ;;  %v2407_v57 = vld [vmem:[#allocation2 + $0x370] sm:$0xfe]  ;;  %v2408_v37 = vld [vmem:[#allocation2 + $0x1d8] sm:$0x1]  ;;  %v2409_v38 = vld [vmem:[#allocation2 + $0x260] sm:$0x1] }
  0xd3   :  { %v1394_v4 = vrot.slane %v1330_v8, 1  ;;  %v1395_v13 = vrot.slane %v1331_v9, 1  ;;  %v1747_v30 = vrot.slane %v1609_v14, 2  ;;  %v1748_v18 = vrot.slane %v1610_v61, 2  ;;  %v224_v8 = vld [vmem:[#allocation2] sm:$0x80] }
  0xd4   :  { %v1749_v44 = vrot.slane %v1611_v40, 2  ;;  %v1751_v45 = vrot.slane %v1612_v23, 2  ;;  %v2039_v16 = vmul.f32 %v3570_v15, %v1964_v12  ;;  %v2040_v19 = vmul.f32 %v3573_v20, %v1965_v3  ;;  %v225_v9 = vld [vmem:[#allocation2 + $0x290] sm:$0x80] }
  0xd5   :  { %v1468_v34 = vadd.f32 %v1394_v4, %v1231_v36  ;;  %v1469_v17 = vadd.f32 %v1395_v13, %v1232_v39  ;;  %v1470_v25 = vadd.f32 %v1394_v4, %v1233_v60  ;;  %v1471_v33 = vadd.f32 %v1395_v13, %v1234_v24  ;;  %v227_v4 = vld [vmem:[#allocation2 + $0xe0] sm:$0x7f] }
  0xd6   :  { %v1750_v50 = vsel %vm845_vm0, %v1747_v30, %v1749_v44  ;;  %v1752_v1 = vsel %vm845_vm0, %v1748_v18, %v1751_v45  ;;  %v2041_v55 = vmul.f32 %v3570_v15, %v1966_v27  ;;  %v2042_v0 = vmul.f32 %v3573_v20, %v1967_v43  ;;  %v226_v27 = vld [vmem:[#allocation2 + $0x188] sm:$0x7f] }
  0xd7   :  { %v1897_v31 = vadd.f32 %v1747_v30, %v1468_v34  ;;  %v1898_v32 = vadd.f32 %v1748_v18, %v1469_v17  ;;  %v1899_v22 = vadd.f32 %v1750_v50, %v1470_v25  ;;  %v1900_v35 = vadd.f32 %v1752_v1, %v1471_v33  ;;  %v666_v34 = vld [vmem:[#allocation2 + $0x188] sm:$0xfe]  ;;  %v667_v17 = vld [vmem:[#allocation2 + $0xe0] sm:$0xfe] }
  0xd8   :  { %v2202_v7 = vmul.f32 %v3588_v58, %v3926_v5  ;;  %v2203_v26 = vmul.f32 %v3591_v59, %v3928_v6  ;;  %v2481_v36 = vmul.f32 %v3594_v62, %v2406_v21  ;;  %v2482_v39 = vmul.f32 %v3597_v63, %v2407_v57 }
  0xd9   :  { %v2103_v14 = vadd.f32 %v2039_v16, %v1897_v31  ;;  %v2104_v61 = vadd.f32 %v2040_v19, %v1898_v32  ;;  %v2105_v12 = vadd.f32 %v2041_v55, %v1899_v22  ;;  %v2106_v3 = vadd.f32 %v2042_v0, %v1900_v35  ;;  %v668_v31 = vld [vmem:[#allocation2 + $0x1c0] sm:$0x1]  ;;  %v669_v32 = vld [vmem:[#allocation2 + $0x90] sm:$0x1] }
  0xda   :  { %v2266_v60 = vrot.slane %v2202_v7, 1  ;;  %v2267_v24 = vrot.slane %v2203_v26, 1  ;;  %v2483_v40 = vmul.f32 %v3594_v62, %v2408_v37  ;;  %v2484_v23 = vmul.f32 %v3597_v63, %v2409_v38 }
  0xdb   :  { %v2619_v13 = vrot.slane %v2481_v36, 2  ;;  %v2620_v30 = vrot.slane %v2482_v39, 2  ;;  %v299_v18 = vmul.f32 %v3484_v41, %v224_v8  ;;  %v300_v43 = vmul.f32 %v3487_v42, %v225_v9 }
  0xdc   :  { %v2340_v44 = vadd.f32 %v2266_v60, %v2103_v14  ;;  %v2341_v45 = vadd.f32 %v2267_v24, %v2104_v61  ;;  %v2342_v16 = vadd.f32 %v2266_v60, %v2105_v12  ;;  %v2343_v19 = vadd.f32 %v2267_v24, %v2106_v3  ;;  %v1096_v60 = vld [vmem:[#allocation2 + $0x70] sm:$0x80] }
  0xdd   :  { %v2621_v25 = vrot.slane %v2483_v40, 2  ;;  %v2623_v33 = vrot.slane %v2484_v23, 2  ;;  %v301_v21 = vmul.f32 %v3484_v41, %v226_v27  ;;  %v302_v57 = vmul.f32 %v3487_v42, %v227_v4  ;;  %v1097_v24 = vld [vmem:[#allocation2 + $0x210] sm:$0x80] }
  0xde   :  { %v2769_v50 = vadd.f32 %v2619_v13, %v2340_v44  ;;  %v2770_v1 = vadd.f32 %v2620_v30, %v2341_v45  ;;  %v460_v55 = vmul.f32 %v3870_v56, %v3496_v47  ;;  %v461_v0 = vmul.f32 %v3873_v2, %v3499_v48 }
  0xdf   :  { %v2622_v22 = vsel %vm845_vm0, %v2619_v13, %v2621_v25  ;;  %v2624_v35 = vsel %vm845_vm0, %v2620_v30, %v2623_v33  ;;  %v741_v37 = vmul.f32 %v3502_v52, %v666_v34  ;;  %v742_v38 = vmul.f32 %v3505_v53, %v667_v17  ;;  %v1099_v17 = vld [vmem:[#allocation2 + $0x370] sm:$0x7f] }
  0xe0   :  { %v2771_v7 = vadd.f32 %v2622_v22, %v2342_v16  ;;  %v2772_v26 = vadd.f32 %v2624_v35, %v2343_v19  ;;  %v2845_v36 = vadd.f32 %v3611_v28, %v2769_v50  ;;  %v2846_v39 = vadd.f32 %v3614_v29, %v2770_v1  ;;  %v1098_v16 = vld [vmem:[#allocation2 + $0x308] sm:$0x7f]  ;;  %v1540_v22 = vld [vmem:[#allocation2 + $0x1d8] sm:$0x1] }
  0xe1   :  { %v524_v56 = vrot.slane %v460_v55, 1  ;;  %v525_v8 = vrot.slane %v461_v0, 1  ;;  %v743_v2 = vmul.f32 %v3502_v52, %v668_v31  ;;  %v744_v9 = vmul.f32 %v3505_v53, %v669_v32  ;;  %v1539_v32 = vld [vmem:[#allocation2 + $0x370] sm:$0xfe] }
  0xe2   :  { %v2847_v14 = vadd.f32 %v3611_v28, %v2771_v7  ;;  %v2848_v61 = vadd.f32 %v3614_v29, %v2772_v26  ;;  %v2984_v12 = vrot.slane %v2845_v36, 7  ;;  %v2987_v3 = vrot.slane %v2846_v39, 7  ;;  %v1541_v26 = vld [vmem:[#allocation2 + $0x260] sm:$0x1] }
  0xe3   :  { %v600_v40 = vadd.f32 %v524_v56, %v299_v18  ;;  %v601_v23 = vadd.f32 %v525_v8, %v300_v43  ;;  %v602_v27 = vadd.f32 %v524_v56, %v301_v21  ;;  %v603_v4 = vadd.f32 %v525_v8, %v302_v57  ;;  %v1538_v21 = vld [vmem:[#allocation2 + $0x308] sm:$0xfe] }
  0xe4   :  { %v2985_v13 = vrot.slane %v2847_v14, 7  ;;  %v2988_v30 = vrot.slane %v2848_v61, 7  ;;  %v882_v44 = vrot.slane %v741_v37, 2  ;;  %v883_v45 = vrot.slane %v742_v38, 2 }
  0xe5   :  { %v884_v19 = vrot.slane %v743_v2, 2  ;;  %v886_v34 = vrot.slane %v744_v9, 2  ;;  %v1171_v25 = vmul.f32 %v3521_v10, %v1096_v60  ;;  %v1172_v33 = vmul.f32 %v3524_v11, %v1097_v24  ;;  %v1968_v2 = vld [vmem:[#allocation2 + $0x358] sm:$0x80]  ;;  %v1969_v9 = vld [vmem:[#allocation2 + $0x2c0] sm:$0x80] }
  0xe6   :  { %v2986_v50 = vsel %vm2953_vm1, %v2984_v12, %v2985_v13  ;;  %v2989_v1 = vsel %vm2953_vm1, %v2987_v3, %v2988_v30  ;;  %v1030_v18 = vadd.f32 %v882_v44, %v600_v40  ;;  %v1031_v43 = vadd.f32 %v883_v45, %v601_v23  ;;  %v1970_v60 = vld [vmem:[#allocation2 + $0x328] sm:$0x7f] }
  0xe7   :  { %v3227_v57 = vpack.c.bf16 %v2989_v1, %v2986_v50  ;;  %v885_v55 = vsel %vm845_vm0, %v882_v44, %v884_v19  ;;  %v887_v0 = vsel %vm845_vm0, %v883_v45, %v886_v34  ;;  %v1173_v31 = vmul.f32 %v3521_v10, %v1098_v16  ;;  %v3981_v16 = vld [vmem:[#allocation2 + $0x328] sm:$0xff]  ;;  %v2411_v1 = vld [vmem:[#allocation2 + $0x238] sm:$0xfe] }
  0xe8   :  { %v1032_v35 = vadd.f32 %v885_v55, %v602_v27  ;;  %v1033_v37 = vadd.f32 %v887_v0, %v603_v4  ;;  %v1174_v38 = vmul.f32 %v3524_v11, %v1099_v17  ;;  %v1235_v7 = vadd.f32 %v1171_v25, %v1030_v18  ;;  %v1971_v4 = vld [vmem:[#allocation2 + $0x238] sm:$0x7f]  ;;  %v2410_v50 = vld [vmem:[#allocation2 + $0x328] sm:$0xfe] }
  0xe9   :  { %3183 = vst [vmem:[%s4441_s3 + $0x28] sm:$0xff] %v3227_v57  ;;  %v1236_v36 = vadd.f32 %v1172_v33, %v1031_v43  ;;  %v1332_v39 = vmul.f32 %v3926_v5, %v3547_v46  ;;  %v1333_v56 = vmul.f32 %v3928_v6, %v3550_v49  ;;  %v1613_v8 = vmul.f32 %v3553_v51, %v1538_v21  ;;  %v3983_v33 = vld [vmem:[#allocation2 + $0x238] sm:$0xff] }
  0xea   :  { %v1237_v14 = vadd.f32 %v1173_v31, %v1032_v35  ;;  %v1238_v61 = vadd.f32 %v1174_v38, %v1033_v37  ;;  %v1614_v12 = vmul.f32 %v3556_v54, %v1539_v32  ;;  %v1615_v3 = vmul.f32 %v3553_v51, %v1540_v22  ;;  %v2412_v22 = vld [vmem:[#allocation2 + $0x78] sm:$0x1] }
  0xeb   :  { %v1396_v24 = vrot.slane %v1332_v39, 1  ;;  %v1397_v40 = vrot.slane %v1333_v56, 1  ;;  %v1616_v23 = vmul.f32 %v3556_v54, %v1541_v26  ;;  %v1753_v27 = vrot.slane %v1613_v8, 2  ;;  %v2413_v35 = vld [vmem:[#allocation2 + $0x158] sm:$0x1] }
  0xec   :  { %v1754_v13 = vrot.slane %v1614_v12, 2  ;;  %v1755_v30 = vrot.slane %v1615_v3, 2  ;;  %v2043_v44 = vmul.f32 %v3570_v15, %v1968_v2  ;;  %v2044_v45 = vmul.f32 %v3573_v20, %v1969_v9  ;;  %v229_v3 = vld [vmem:[#allocation2 + $0x210] sm:$0x80] }
  0xed   :  { %v1472_v19 = vadd.f32 %v1396_v24, %v1235_v7  ;;  %v1473_v34 = vadd.f32 %v1397_v40, %v1236_v36  ;;  %v1474_v17 = vadd.f32 %v1396_v24, %v1237_v14  ;;  %v1475_v25 = vadd.f32 %v1397_v40, %v1238_v61  ;;  %v228_v36 = vld [vmem:[#allocation2 + $0x70] sm:$0x80] }
  0xee   :  { %v1756_v18 = vsel %vm845_vm0, %v1753_v27, %v1755_v30  ;;  %v1757_v43 = vrot.slane %v1616_v23, 2  ;;  %v2045_v21 = vmul.f32 %v3570_v15, %v1970_v60  ;;  %v2046_v57 = vmul.f32 %v3573_v20, %v1971_v4  ;;  %v230_v60 = vld [vmem:[#allocation2 + $0x308] sm:$0x7f] }
  0xef   :  { %v1901_v55 = vadd.f32 %v1753_v27, %v1472_v19  ;;  %v1902_v0 = vadd.f32 %v1754_v13, %v1473_v34  ;;  %v1903_v31 = vadd.f32 %v1756_v18, %v1474_v17  ;;  %v2204_v32 = vmul.f32 %v3588_v58, %v3981_v16  ;;  %v231_v27 = vld [vmem:[#allocation2 + $0x370] sm:$0x7f] }
  0xf0   :  { %v1758_v37 = vsel %vm845_vm0, %v1754_v13, %v1757_v43  ;;  %v2205_v38 = vmul.f32 %v3591_v59, %v3983_v33  ;;  %v2485_v7 = vmul.f32 %v3594_v62, %v2410_v50  ;;  %v2486_v26 = vmul.f32 %v3597_v63, %v2411_v1  ;;  %v670_v50 = vld [vmem:[#allocation2 + $0x308] sm:$0xfe] }
  0xf1   :  { %v1904_v39 = vadd.f32 %v1758_v37, %v1475_v25  ;;  %v2107_v56 = vadd.f32 %v2043_v44, %v1901_v55  ;;  %v2108_v8 = vadd.f32 %v2044_v45, %v1902_v0  ;;  %v2109_v2 = vadd.f32 %v2045_v21, %v1903_v31 }
  0xf2   :  { %v2268_v9 = vrot.slane %v2204_v32, 1  ;;  %v2269_v14 = vrot.slane %v2205_v38, 1  ;;  %v2487_v61 = vmul.f32 %v3594_v62, %v2412_v22  ;;  %v2488_v12 = vmul.f32 %v3597_v63, %v2413_v35  ;;  %v672_v22 = vld [vmem:[#allocation2 + $0x1d8] sm:$0x1] }
  0xf3   :  { %v2110_v24 = vadd.f32 %v2046_v57, %v1904_v39  ;;  %v2625_v40 = vrot.slane %v2485_v7, 2  ;;  %v2626_v23 = vrot.slane %v2486_v26, 2  ;;  %v303_v4 = vmul.f32 %v3484_v41, %v228_v36  ;;  %v671_v57 = vld [vmem:[#allocation2 + $0x370] sm:$0xfe] }
  0xf4   :  { %v2344_v13 = vadd.f32 %v2268_v9, %v2107_v56  ;;  %v2345_v30 = vadd.f32 %v2269_v14, %v2108_v8  ;;  %v2346_v19 = vadd.f32 %v2268_v9, %v2109_v2  ;;  %v2627_v44 = vrot.slane %v2487_v61, 2  ;;  %v673_v56 = vld [vmem:[#allocation2 + $0x260] sm:$0x1] }
  0xf5   :  { %v2347_v45 = vadd.f32 %v2269_v14, %v2110_v24  ;;  %v2629_v34 = vrot.slane %v2488_v12, 2  ;;  %v304_v17 = vmul.f32 %v3487_v42, %v229_v3  ;;  %v305_v25 = vmul.f32 %v3484_v41, %v230_v60  ;;  %v1100_v14 = vld [vmem:[#allocation2 + $0x358] sm:$0x80]  ;;  %v1101_v24 = vld [vmem:[#allocation2 + $0x2c0] sm:$0x80] }
  0xf6   :  { %v2628_v1 = vsel %vm845_vm0, %v2625_v40, %v2627_v44  ;;  %v2773_v18 = vadd.f32 %v2625_v40, %v2344_v13  ;;  %v2774_v43 = vadd.f32 %v2626_v23, %v2345_v30  ;;  %v306_v21 = vmul.f32 %v3487_v42, %v231_v27  ;;  %v1102_v30 = vld [vmem:[#allocation2 + $0x328] sm:$0x7f] }
  0xf7   :  { %v2630_v55 = vsel %vm845_vm0, %v2626_v23, %v2629_v34  ;;  %v2775_v0 = vadd.f32 %v2628_v1, %v2346_v19  ;;  %v462_v31 = vmul.f32 %v3926_v5, %v3496_v47  ;;  %v463_v32 = vmul.f32 %v3928_v6, %v3499_v48  ;;  %v1103_v34 = vld [vmem:[#allocation2 + $0x238] sm:$0x7f] }
  0xf8   :  { %v2776_v35 = vadd.f32 %v2630_v55, %v2347_v45  ;;  %v2849_v37 = vadd.f32 %v3611_v28, %v2773_v18  ;;  %v2850_v38 = vadd.f32 %v3614_v29, %v2774_v43  ;;  %v745_v7 = vmul.f32 %v3502_v52, %v670_v50  ;;  %v1542_v55 = vld [vmem:[#allocation2 + $0x328] sm:$0xfe] }
  0xf9   :  { %v2851_v26 = vadd.f32 %v3611_v28, %v2775_v0  ;;  %v526_v36 = vrot.slane %v462_v31, 1  ;;  %v527_v39 = vrot.slane %v463_v32, 1  ;;  %v746_v8 = vmul.f32 %v3505_v53, %v671_v57  ;;  %v1543_v0 = vld [vmem:[#allocation2 + $0x238] sm:$0xfe]  ;;  %v1544_v31 = vld [vmem:[#allocation2 + $0x78] sm:$0x1] }
  0xfa   :  { %v2852_v5 = vadd.f32 %v3614_v29, %v2776_v35  ;;  %v2990_v2 = vrot.slane %v2849_v37, 7  ;;  %v2993_v9 = vrot.slane %v2850_v38, 7  ;;  %v747_v6 = vmul.f32 %v3502_v52, %v672_v22  ;;  %v1545_v38 = vld [vmem:[#allocation2 + $0x158] sm:$0x1] }
  0xfb   :  { %v2991_v61 = vrot.slane %v2851_v26, 7  ;;  %v604_v12 = vadd.f32 %v526_v36, %v303_v4  ;;  %v605_v3 = vadd.f32 %v527_v39, %v304_v17  ;;  %v606_v60 = vadd.f32 %v526_v36, %v305_v25 }
  0xfc   :  { %v2994_v40 = vrot.slane %v2852_v5, 7  ;;  %v607_v23 = vadd.f32 %v527_v39, %v306_v21  ;;  %v748_v27 = vmul.f32 %v3505_v53, %v673_v56  ;;  %v888_v13 = vrot.slane %v745_v7, 2  ;;  %v1972_v56 = vld [vmem:[#allocation2 + $0xa8] sm:$0x80] }
  0xfd   :  { %v2992_v19 = vsel %vm2953_vm1, %v2990_v2, %v2991_v61  ;;  %v889_v44 = vrot.slane %v746_v8, 2  ;;  %v890_v45 = vrot.slane %v747_v6, 2  ;;  %v1175_v50 = vmul.f32 %v3521_v10, %v1100_v14 }
  0xfe   :  { %v2995_v1 = vsel %vm2953_vm1, %v2993_v9, %v2994_v40  ;;  %v892_v18 = vrot.slane %v748_v27, 2  ;;  %v1034_v4 = vadd.f32 %v888_v13, %v604_v12  ;;  %v1176_v17 = vmul.f32 %v3524_v11, %v1101_v24 }
  0xff   :  { %v3228_v25 = vpack.c.bf16 %v2995_v1, %v2992_v19  ;;  %v891_v43 = vsel %vm845_vm0, %v888_v13, %v890_v45  ;;  %v1035_v21 = vadd.f32 %v889_v44, %v605_v3  ;;  %v1177_v57 = vmul.f32 %v3521_v10, %v1102_v30  ;;  %v1973_v3 = vld [vmem:[#allocation2 + $0x300] sm:$0x80] }
 0x100   :  { %v893_v32 = vsel %vm845_vm0, %v889_v44, %v892_v18  ;;  %v1036_v22 = vadd.f32 %v891_v43, %v606_v60  ;;  %v1178_v35 = vmul.f32 %v3524_v11, %v1103_v34  ;;  %v1239_v37 = vadd.f32 %v1175_v50, %v1034_v4  ;;  %v1974_v60 = vld [vmem:[#allocation2 + $0xe8] sm:$0x7f]  ;;  %v2415_v43 = vld [vmem:[#allocation2 + $0x20] sm:$0xfe] }
 0x101   :  { %3184 = vst [vmem:[%s4441_s3 + $0x30] sm:$0xff] %v3228_v25  ;;  %v1037_v7 = vadd.f32 %v893_v32, %v607_v23  ;;  %v1240_v26 = vadd.f32 %v1176_v17, %v1035_v21  ;;  %v1334_v36 = vmul.f32 %v3981_v16, %v3547_v46  ;;  %v1335_v39 = vmul.f32 %v3983_v33, %v3550_v49  ;;  %v1975_v23 = vld [vmem:[#allocation2 + $0x20] sm:$0x7f]  ;;  %v2414_v44 = vld [vmem:[#allocation2 + $0xe8] sm:$0xfe] }
 0x102   :  { %v1241_v8 = vadd.f32 %v1177_v57, %v1036_v22  ;;  %v1617_v5 = vmul.f32 %v3553_v51, %v1542_v55  ;;  %v1618_v2 = vmul.f32 %v3556_v54, %v1543_v0  ;;  %v1619_v9 = vmul.f32 %v3553_v51, %v1544_v31  ;;  %v2416_v21 = vld [vmem:[#allocation2 + $0x40] sm:$0x1]  ;;  %v3239_v55 = vld [vmem:[#allocation2 + $0xd8] sm:$0xff]  ;;  %v2417_v32 = vld [vmem:[#allocation2 + $0x1d0] sm:$0x1] }
 0x103   :  { %v1242_v6 = vadd.f32 %v1178_v35, %v1037_v7  ;;  %v1398_v14 = vrot.slane %v1334_v36, 1  ;;  %v1399_v61 = vrot.slane %v1335_v39, 1  ;;  %v1620_v12 = vmul.f32 %v3556_v54, %v1545_v38  ;;  %v236_v35 = vld [vmem:[#allocation2 + $0x228] sm:$0x80] }
 0x104   :  { %v1759_v24 = vrot.slane %v1617_v5, 2  ;;  %v1760_v16 = vrot.slane %v1618_v2, 2  ;;  %v1761_v40 = vrot.slane %v1619_v9, 2  ;;  %v2047_v33 = vmul.f32 %v3570_v15, %v1972_v56  ;;  %v237_v5 = vld [vmem:[#allocation2 + $0x170] sm:$0x80] }
 0x105   :  { %v1476_v27 = vadd.f32 %v1398_v14, %v1239_v37  ;;  %v1477_v13 = vadd.f32 %v1399_v61, %v1240_v26  ;;  %v1478_v30 = vadd.f32 %v1398_v14, %v1241_v8  ;;  %v1479_v19 = vadd.f32 %v1399_v61, %v1242_v6  ;;  %v238_v14 = vld [vmem:[#allocation2 + $0x280] sm:$0x7f]  ;;  %v239_v61 = vld [vmem:[#allocation2 + $0x138] sm:$0x7f] }
 0x106   :  { %v1762_v45 = vsel %vm845_vm0, %v1759_v24, %v1761_v40  ;;  %v1763_v34 = vrot.slane %v1620_v12, 2  ;;  %v2048_v50 = vmul.f32 %v3573_v20, %v1973_v3  ;;  %v2049_v1 = vmul.f32 %v3570_v15, %v1974_v60  ;;  %v423_v40 = vld [vmem:[#allocation2 + $0x280] sm:$0xff] }
 0x107   :  { %v1905_v18 = vadd.f32 %v1759_v24, %v1476_v27  ;;  %v1906_v4 = vadd.f32 %v1760_v16, %v1477_v13  ;;  %v1907_v17 = vadd.f32 %v1762_v45, %v1478_v30  ;;  %v2050_v25 = vmul.f32 %v3573_v20, %v1975_v23  ;;  %v424_v23 = vld [vmem:[#allocation2 + $0x138] sm:$0xff] }
 0x108   :  { %v1764_v57 = vsel %vm845_vm0, %v1760_v16, %v1763_v34  ;;  %v2206_v0 = vmul.f32 %v3239_v55, %v3588_v58  ;;  %v2207_v31 = vmul.f32 %v3239_v55, %v3591_v59  ;;  %v2489_v22 = vmul.f32 %v3594_v62, %v2414_v44 }
 0x109   :  { %v1908_v37 = vadd.f32 %v1764_v57, %v1479_v19  ;;  %v2111_v38 = vadd.f32 %v2047_v33, %v1905_v18  ;;  %v2112_v7 = vadd.f32 %v2048_v50, %v1906_v4  ;;  %v2113_v26 = vadd.f32 %v2049_v1, %v1907_v17  ;;  %v678_v50 = vld [vmem:[#allocation2 + $0x280] sm:$0xfe]  ;;  %v679_v1 = vld [vmem:[#allocation2 + $0x138] sm:$0xfe] }
 0x10a   :  { %v2270_v36 = vrot.slane %v2206_v0, 1  ;;  %v2271_v39 = vrot.slane %v2207_v31, 1  ;;  %v2490_v56 = vmul.f32 %v3597_v63, %v2415_v43  ;;  %v2491_v8 = vmul.f32 %v3594_v62, %v2416_v21 }
 0x10b   :  { %v2114_v2 = vadd.f32 %v2050_v25, %v1908_v37  ;;  %v2492_v9 = vmul.f32 %v3597_v63, %v2417_v32  ;;  %v2631_v6 = vrot.slane %v2489_v22, 2  ;;  %v311_v12 = vmul.f32 %v3484_v41, %v236_v35  ;;  %v680_v32 = vld [vmem:[#allocation2 + $0x348] sm:$0x1] }
 0x10c   :  { %v2348_v3 = vadd.f32 %v2270_v36, %v2111_v38  ;;  %v2349_v60 = vadd.f32 %v2271_v39, %v2112_v7  ;;  %v2350_v24 = vadd.f32 %v2270_v36, %v2113_v26  ;;  %v2632_v16 = vrot.slane %v2490_v56, 2  ;;  %v681_v22 = vld [vmem:[#allocation2 + $0x3a8] sm:$0x1]  ;;  %v1109_v56 = vld [vmem:[#allocation2 + $0x250] sm:$0x80] }
 0x10d   :  { %v2351_v33 = vadd.f32 %v2271_v39, %v2114_v2  ;;  %v2633_v27 = vrot.slane %v2491_v8, 2  ;;  %v2635_v13 = vrot.slane %v2492_v9, 2  ;;  %v312_v30 = vmul.f32 %v3487_v42, %v237_v5  ;;  %v1108_v39 = vld [vmem:[#allocation2 + $0xf8] sm:$0x80] }
 0x10e   :  { %v2777_v19 = vadd.f32 %v2631_v6, %v2348_v3  ;;  %v2778_v44 = vadd.f32 %v2632_v16, %v2349_v60  ;;  %v313_v45 = vmul.f32 %v3484_v41, %v238_v14  ;;  %v314_v34 = vmul.f32 %v3487_v42, %v239_v61  ;;  %v1110_v60 = vld [vmem:[#allocation2 + $0xb8] sm:$0x7f] }
 0x10f   :  { %v2634_v18 = vsel %vm845_vm0, %v2631_v6, %v2633_v27  ;;  %v2636_v4 = vsel %vm845_vm0, %v2632_v16, %v2635_v13  ;;  %v466_v17 = vmul.f32 %v3496_v47, %v423_v40  ;;  %v467_v25 = vmul.f32 %v3499_v48, %v424_v23  ;;  %v1111_v40 = vld [vmem:[#allocation2 + $0x1e8] sm:$0x7f]  ;;  %v4064_v27 = vld [vmem:[#allocation2 + $0xb8] sm:$0xff] }
 0x110   :  { %v2779_v43 = vadd.f32 %v2634_v18, %v2350_v24  ;;  %v2780_v21 = vadd.f32 %v2636_v4, %v2351_v33  ;;  %v2853_v57 = vadd.f32 %v3611_v28, %v2777_v19  ;;  %v2854_v55 = vadd.f32 %v3614_v29, %v2778_v44  ;;  %v1550_v18 = vld [vmem:[#allocation2 + $0xb8] sm:$0xfe]  ;;  %v1551_v4 = vld [vmem:[#allocation2 + $0x1e8] sm:$0xfe] }
 0x111   :  { %v530_v0 = vrot.slane %v466_v17, 1  ;;  %v531_v31 = vrot.slane %v467_v25, 1  ;;  %v753_v35 = vmul.f32 %v3502_v52, %v678_v50  ;;  %v754_v37 = vmul.f32 %v3505_v53, %v679_v1  ;;  %v4069_v1 = vld [vmem:[#allocation2 + $0x1e8] sm:$0xff] }
 0x112   :  { %v2855_v38 = vadd.f32 %v3611_v28, %v2779_v43  ;;  %v2856_v7 = vadd.f32 %v3614_v29, %v2780_v21  ;;  %v2996_v26 = vrot.slane %v2853_v57, 7  ;;  %v2999_v36 = vrot.slane %v2854_v55, 7  ;;  %v1552_v57 = vld [vmem:[#allocation2 + $0x2b8] sm:$0x1]  ;;  %v1553_v55 = vld [vmem:[#allocation2 + $0x128] sm:$0x1] }
 0x113   :  { %v612_v8 = vadd.f32 %v530_v0, %v311_v12  ;;  %v613_v5 = vadd.f32 %v531_v31, %v312_v30  ;;  %v614_v2 = vadd.f32 %v530_v0, %v313_v45  ;;  %v615_v9 = vadd.f32 %v531_v31, %v314_v34 }
 0x114   :  { %v2997_v6 = vrot.slane %v2855_v38, 7  ;;  %v3000_v14 = vrot.slane %v2856_v7, 7  ;;  %v755_v61 = vmul.f32 %v3502_v52, %v680_v32  ;;  %v756_v3 = vmul.f32 %v3505_v53, %v681_v22 }
 0x115   :  { %v900_v24 = vrot.slane %v753_v35, 2  ;;  %v901_v16 = vrot.slane %v754_v37, 2  ;;  %v1183_v23 = vmul.f32 %v3521_v10, %v1108_v39  ;;  %v1184_v33 = vmul.f32 %v3524_v11, %v1109_v56 }
 0x116   :  { %v2998_v12 = vsel %vm2953_vm1, %v2996_v26, %v2997_v6  ;;  %v3001_v13 = vsel %vm2953_vm1, %v2999_v36, %v3000_v14  ;;  %v902_v30 = vrot.slane %v755_v61, 2  ;;  %v904_v19 = vrot.slane %v756_v3, 2  ;;  %v1980_v26 = vld [vmem:[#allocation2 + $0xa0] sm:$0x80]  ;;  %v1983_v3 = vld [vmem:[#allocation2 + $0x350] sm:$0x7f] }
 0x117   :  { %v3229_v44 = vpack.c.bf16 %v3001_v13, %v2998_v12  ;;  %v1042_v45 = vadd.f32 %v900_v24, %v612_v8  ;;  %v1043_v34 = vadd.f32 %v901_v16, %v613_v5  ;;  %v1185_v50 = vmul.f32 %v3521_v10, %v1110_v60  ;;  %v1981_v5 = vld [vmem:[#allocation2 + $0x3a0] sm:$0x80] }
 0x118   :  { %v903_v17 = vsel %vm845_vm0, %v900_v24, %v902_v30  ;;  %v905_v25 = vsel %vm845_vm0, %v901_v16, %v904_v19  ;;  %v1186_v43 = vmul.f32 %v3524_v11, %v1111_v40  ;;  %v1338_v21 = vmul.f32 %v3547_v46, %v4064_v27  ;;  %v4089_v19 = vld [vmem:[#allocation2 + $0x350] sm:$0xff] }
 0x119   :  { %3185 = vst [vmem:[%s4441_s3 + $0x38] sm:$0xff] %v3229_v44  ;;  %v1044_v0 = vadd.f32 %v903_v17, %v614_v2  ;;  %v1045_v31 = vadd.f32 %v905_v25, %v615_v9  ;;  %v1247_v32 = vadd.f32 %v1183_v23, %v1042_v45  ;;  %v1248_v22 = vadd.f32 %v1184_v33, %v1043_v34  ;;  %v1982_v2 = vld [vmem:[#allocation2 + $0x2f8] sm:$0x7f]  ;;  %v2423_v45 = vld [vmem:[#allocation2 + $0x350] sm:$0xfe] }
 0x11a   :  { %v1339_v35 = vmul.f32 %v3550_v49, %v4069_v1  ;;  %v1402_v37 = vrot.slane %v1338_v21, 1  ;;  %v1625_v38 = vmul.f32 %v3553_v51, %v1550_v18  ;;  %v1626_v7 = vmul.f32 %v3556_v54, %v1551_v4  ;;  %v4086_v23 = vld [vmem:[#allocation2 + $0x2f8] sm:$0xff]  ;;  %v2424_v17 = vld [vmem:[#allocation2 + $0x230] sm:$0x1] }
 0x11b   :  { %v1249_v36 = vadd.f32 %v1185_v50, %v1044_v0  ;;  %v1250_v39 = vadd.f32 %v1186_v43, %v1045_v31  ;;  %v1627_v56 = vmul.f32 %v3553_v51, %v1552_v57  ;;  %v1628_v8 = vmul.f32 %v3556_v54, %v1553_v55  ;;  %v2422_v44 = vld [vmem:[#allocation2 + $0x2f8] sm:$0xfe]  ;;  %v2425_v55 = vld [vmem:[#allocation2 + $0x298] sm:$0x1] }
 0x11c   :  { %v1403_v9 = vrot.slane %v1339_v35, 1  ;;  %v1484_v6 = vadd.f32 %v1402_v37, %v1247_v32  ;;  %v1771_v14 = vrot.slane %v1625_v38, 2  ;;  %v1772_v61 = vrot.slane %v1626_v7, 2  ;;  %v240_v35 = vld [vmem:[#allocation2 + $0xf8] sm:$0x80] }
 0x11d   :  { %v1486_v60 = vadd.f32 %v1402_v37, %v1249_v36  ;;  %v1773_v24 = vrot.slane %v1627_v56, 2  ;;  %v1775_v16 = vrot.slane %v1628_v8, 2  ;;  %v2055_v40 = vmul.f32 %v3570_v15, %v1980_v26  ;;  %v241_v37 = vld [vmem:[#allocation2 + $0x250] sm:$0x80] }
 0x11e   :  { %v1485_v33 = vadd.f32 %v1403_v9, %v1248_v22  ;;  %v1487_v12 = vadd.f32 %v1403_v9, %v1250_v39  ;;  %v1913_v13 = vadd.f32 %v1771_v14, %v1484_v6  ;;  %v2056_v30 = vmul.f32 %v3573_v20, %v1981_v5  ;;  %v242_v39 = vld [vmem:[#allocation2 + $0xb8] sm:$0x7f]  ;;  %v243_v9 = vld [vmem:[#allocation2 + $0x1e8] sm:$0x7f] }
 0x11f   :  { %v1774_v34 = vsel %vm845_vm0, %v1771_v14, %v1773_v24  ;;  %v1776_v50 = vsel %vm845_vm0, %v1772_v61, %v1775_v16  ;;  %v2057_v18 = vmul.f32 %v3570_v15, %v1982_v2  ;;  %v2058_v4 = vmul.f32 %v3573_v20, %v1983_v3 }
 0x120   :  { %v1914_v25 = vadd.f32 %v1772_v61, %v1485_v33  ;;  %v1915_v43 = vadd.f32 %v1774_v34, %v1486_v60  ;;  %v1916_v21 = vadd.f32 %v1776_v50, %v1487_v12  ;;  %v2119_v57 = vadd.f32 %v2055_v40, %v1913_v13  ;;  %v682_v33 = vld [vmem:[#allocation2 + $0xb8] sm:$0xfe]  ;;  %v683_v12 = vld [vmem:[#allocation2 + $0x1e8] sm:$0xfe] }
 0x121   :  { %v2210_v0 = vmul.f32 %v3588_v58, %v4086_v23  ;;  %v2211_v31 = vmul.f32 %v3591_v59, %v4089_v19  ;;  %v2497_v32 = vmul.f32 %v3594_v62, %v2422_v44  ;;  %v2498_v22 = vmul.f32 %v3597_v63, %v2423_v45 }
 0x122   :  { %v2120_v38 = vadd.f32 %v2056_v30, %v1914_v25  ;;  %v2121_v7 = vadd.f32 %v2057_v18, %v1915_v43  ;;  %v2122_v26 = vadd.f32 %v2058_v4, %v1916_v21  ;;  %v2499_v36 = vmul.f32 %v3594_v62, %v2424_v17  ;;  %v684_v17 = vld [vmem:[#allocation2 + $0x2b8] sm:$0x1]  ;;  %v685_v25 = vld [vmem:[#allocation2 + $0x128] sm:$0x1] }
 0x123   :  { %v2274_v56 = vrot.slane %v2210_v0, 1  ;;  %v2275_v8 = vrot.slane %v2211_v31, 1  ;;  %v2500_v5 = vmul.f32 %v3597_v63, %v2425_v55  ;;  %v2643_v2 = vrot.slane %v2497_v32, 2 }
 0x124   :  { %v2644_v6 = vrot.slane %v2498_v22, 2  ;;  %v2645_v14 = vrot.slane %v2499_v36, 2  ;;  %v315_v61 = vmul.f32 %v3484_v41, %v240_v35  ;;  %v316_v3 = vmul.f32 %v3487_v42, %v241_v37 }
 0x125   :  { %v2356_v60 = vadd.f32 %v2274_v56, %v2119_v57  ;;  %v2357_v24 = vadd.f32 %v2275_v8, %v2120_v38  ;;  %v2358_v16 = vadd.f32 %v2274_v56, %v2121_v7  ;;  %v2359_v40 = vadd.f32 %v2275_v8, %v2122_v26  ;;  %v1112_v7 = vld [vmem:[#allocation2 + $0xa0] sm:$0x80] }
 0x126   :  { %v2646_v13 = vsel %vm845_vm0, %v2643_v2, %v2645_v14  ;;  %v2647_v30 = vrot.slane %v2500_v5, 2  ;;  %v317_v44 = vmul.f32 %v3484_v41, %v242_v39  ;;  %v318_v45 = vmul.f32 %v3487_v42, %v243_v9  ;;  %v1113_v56 = vld [vmem:[#allocation2 + $0x3a0] sm:$0x80] }
 0x127   :  { %v2785_v34 = vadd.f32 %v2643_v2, %v2356_v60  ;;  %v2786_v50 = vadd.f32 %v2644_v6, %v2357_v24  ;;  %v2787_v18 = vadd.f32 %v2646_v13, %v2358_v16  ;;  %v468_v4 = vmul.f32 %v4064_v27, %v3496_v47 }
 0x128   :  { %v2648_v43 = vsel %vm845_vm0, %v2644_v6, %v2647_v30  ;;  %v469_v21 = vmul.f32 %v4069_v1, %v3499_v48  ;;  %v757_v57 = vmul.f32 %v3502_v52, %v682_v33  ;;  %v758_v55 = vmul.f32 %v3505_v53, %v683_v12  ;;  %v1114_v6 = vld [vmem:[#allocation2 + $0x2f8] sm:$0x7f] }
 0x129   :  { %v2788_v0 = vadd.f32 %v2648_v43, %v2359_v40  ;;  %v2861_v31 = vadd.f32 %v3611_v28, %v2785_v34  ;;  %v2862_v32 = vadd.f32 %v3614_v29, %v2786_v50  ;;  %v2863_v22 = vadd.f32 %v3611_v28, %v2787_v18  ;;  %v1115_v40 = vld [vmem:[#allocation2 + $0x350] sm:$0x7f] }
 0x12a   :  { %v532_v35 = vrot.slane %v468_v4, 1  ;;  %v533_v27 = vrot.slane %v469_v21, 1  ;;  %v759_v37 = vmul.f32 %v3502_v52, %v684_v17  ;;  %v760_v38 = vmul.f32 %v3505_v53, %v685_v25  ;;  %v1556_v43 = vld [vmem:[#allocation2 + $0x230] sm:$0x1]  ;;  %v1557_v21 = vld [vmem:[#allocation2 + $0x298] sm:$0x1] }
 0x12b   :  { %v2864_v1 = vadd.f32 %v3614_v29, %v2788_v0  ;;  %v3008_v26 = vrot.slane %v2861_v31, 7  ;;  %v3009_v36 = vrot.slane %v2863_v22, 7  ;;  %v3011_v39 = vrot.slane %v2862_v32, 7 }
 0x12c   :  { %v616_v8 = vadd.f32 %v532_v35, %v315_v61  ;;  %v617_v5 = vadd.f32 %v533_v27, %v316_v3  ;;  %v618_v2 = vadd.f32 %v532_v35, %v317_v44  ;;  %v619_v9 = vadd.f32 %v533_v27, %v318_v45  ;;  %v1554_v44 = vld [vmem:[#allocation2 + $0x2f8] sm:$0xfe]  ;;  %v1555_v45 = vld [vmem:[#allocation2 + $0x350] sm:$0xfe] }
 0x12d   :  { %v3010_v14 = vsel %vm2953_vm1, %v3008_v26, %v3009_v36  ;;  %v3012_v60 = vrot.slane %v2864_v1, 7  ;;  %v906_v24 = vrot.slane %v757_v57, 2  ;;  %v907_v16 = vrot.slane %v758_v55, 2 }
 0x12e   :  { %v908_v33 = vrot.slane %v759_v37, 2  ;;  %v910_v12 = vrot.slane %v760_v38, 2  ;;  %v1187_v13 = vmul.f32 %v3521_v10, %v1112_v7  ;;  %v1188_v30 = vmul.f32 %v3524_v11, %v1113_v56  ;;  %v1984_v37 = vld [vmem:[#allocation2 + $0x318] sm:$0x80]  ;;  %v1985_v38 = vld [vmem:[#allocation2 + $0x160] sm:$0x80] }
 0x12f   :  { %v3013_v34 = vsel %vm2953_vm1, %v3011_v39, %v3012_v60  ;;  %v1046_v50 = vadd.f32 %v906_v24, %v616_v8  ;;  %v1047_v61 = vadd.f32 %v907_v16, %v617_v5  ;;  %v1189_v3 = vmul.f32 %v3521_v10, %v1114_v6  ;;  %v1986_v39 = vld [vmem:[#allocation2 + $0x88] sm:$0x7f] }
 0x130   :  { %v3231_v18 = vpack.c.bf16 %v3013_v34, %v3010_v14  ;;  %v909_v4 = vsel %vm845_vm0, %v906_v24, %v908_v33  ;;  %v911_v17 = vsel %vm845_vm0, %v907_v16, %v910_v12  ;;  %v1190_v25 = vmul.f32 %v3524_v11, %v1115_v40  ;;  %v4142_v16 = vld [vmem:[#allocation2 + $0x88] sm:$0xff] }
 0x131   :  { %v1048_v57 = vadd.f32 %v909_v4, %v618_v2  ;;  %v1049_v55 = vadd.f32 %v911_v17, %v619_v9  ;;  %v1251_v0 = vadd.f32 %v1187_v13, %v1046_v50  ;;  %v1252_v31 = vadd.f32 %v1188_v30, %v1047_v61  ;;  %v1987_v9 = vld [vmem:[#allocation2 + $0x28] sm:$0x7f] }
 0x132   :  { %3187 = vst [vmem:[%s4441_s3 + $0x48] sm:$0xff] %v3231_v18  ;;  %v1340_v32 = vmul.f32 %v4086_v23, %v3547_v46  ;;  %v1341_v22 = vmul.f32 %v4089_v19, %v3550_v49  ;;  %v1629_v35 = vmul.f32 %v3553_v51, %v1554_v44  ;;  %v1630_v27 = vmul.f32 %v3556_v54, %v1555_v45  ;;  %v4144_v30 = vld [vmem:[#allocation2 + $0x28] sm:$0xff] }
 0x133   :  { %v1253_v7 = vadd.f32 %v1189_v3, %v1048_v57  ;;  %v1254_v1 = vadd.f32 %v1190_v25, %v1049_v55  ;;  %v1631_v26 = vmul.f32 %v3553_v51, %v1556_v43  ;;  %v1632_v36 = vmul.f32 %v3556_v54, %v1557_v21  ;;  %v2426_v34 = vld [vmem:[#allocation2 + $0x88] sm:$0xfe]  ;;  %v2428_v43 = vld [vmem:[#allocation2 + $0x120] sm:$0x1] }
 0x134   :  { %v1404_v56 = vrot.slane %v1340_v32, 1  ;;  %v1405_v8 = vrot.slane %v1341_v22, 1  ;;  %v1777_v5 = vrot.slane %v1629_v35, 2  ;;  %v1778_v2 = vrot.slane %v1630_v27, 2  ;;  %v2427_v50 = vld [vmem:[#allocation2 + $0x28] sm:$0xfe] }
 0x135   :  { %v1779_v6 = vrot.slane %v1631_v26, 2  ;;  %v1781_v14 = vrot.slane %v1632_v36, 2  ;;  %v2059_v60 = vmul.f32 %v3570_v15, %v1984_v37  ;;  %v2060_v24 = vmul.f32 %v3573_v20, %v1985_v38  ;;  %v2429_v21 = vld [vmem:[#allocation2 + $0x140] sm:$0x1]  ;;  %v244_v32 = vld [vmem:[#allocation2 + $0xa0] sm:$0x80] }
 0x136   :  { %v1488_v40 = vadd.f32 %v1404_v56, %v1251_v0  ;;  %v1489_v33 = vadd.f32 %v1405_v8, %v1252_v31  ;;  %v1490_v12 = vadd.f32 %v1404_v56, %v1253_v7  ;;  %v1491_v13 = vadd.f32 %v1405_v8, %v1254_v1  ;;  %v245_v22 = vld [vmem:[#allocation2 + $0x3a0] sm:$0x80]  ;;  %v247_v56 = vld [vmem:[#allocation2 + $0x350] sm:$0x7f] }
 0x137   :  { %v1780_v61 = vsel %vm845_vm0, %v1777_v5, %v1779_v6  ;;  %v1782_v3 = vsel %vm845_vm0, %v1778_v2, %v1781_v14  ;;  %v2061_v44 = vmul.f32 %v3570_v15, %v1986_v39  ;;  %v2062_v45 = vmul.f32 %v3573_v20, %v1987_v9  ;;  %v246_v39 = vld [vmem:[#allocation2 + $0x2f8] sm:$0x7f] }
 0x138   :  { %v1917_v18 = vadd.f32 %v1777_v5, %v1488_v40  ;;  %v1918_v4 = vadd.f32 %v1778_v2, %v1489_v33  ;;  %v1919_v17 = vadd.f32 %v1780_v61, %v1490_v12  ;;  %v1920_v25 = vadd.f32 %v1782_v3, %v1491_v13  ;;  %v686_v40 = vld [vmem:[#allocation2 + $0x2f8] sm:$0xfe]  ;;  %v687_v33 = vld [vmem:[#allocation2 + $0x350] sm:$0xfe] }
 0x139   :  { %v2212_v57 = vmul.f32 %v3588_v58, %v4142_v16  ;;  %v2213_v55 = vmul.f32 %v3591_v59, %v4144_v30  ;;  %v2501_v0 = vmul.f32 %v3594_v62, %v2426_v34  ;;  %v2502_v31 = vmul.f32 %v3597_v63, %v2427_v50 }
 0x13a   :  { %v2123_v35 = vadd.f32 %v2059_v60, %v1917_v18  ;;  %v2124_v27 = vadd.f32 %v2060_v24, %v1918_v4  ;;  %v2125_v37 = vadd.f32 %v2061_v44, %v1919_v17  ;;  %v2126_v38 = vadd.f32 %v2062_v45, %v1920_v25  ;;  %v688_v18 = vld [vmem:[#allocation2 + $0x230] sm:$0x1]  ;;  %v689_v4 = vld [vmem:[#allocation2 + $0x298] sm:$0x1] }
 0x13b   :  { %v2276_v7 = vrot.slane %v2212_v57, 1  ;;  %v2277_v1 = vrot.slane %v2213_v55, 1  ;;  %v2503_v26 = vmul.f32 %v3594_v62, %v2428_v43  ;;  %v2504_v36 = vmul.f32 %v3597_v63, %v2429_v21 }
 0x13c   :  { %v2649_v8 = vrot.slane %v2501_v0, 2  ;;  %v2650_v5 = vrot.slane %v2502_v31, 2  ;;  %v319_v2 = vmul.f32 %v3484_v41, %v244_v32  ;;  %v320_v9 = vmul.f32 %v3487_v42, %v245_v22 }
 0x13d   :  { %v2360_v6 = vadd.f32 %v2276_v7, %v2123_v35  ;;  %v2361_v14 = vadd.f32 %v2277_v1, %v2124_v27  ;;  %v2362_v60 = vadd.f32 %v2276_v7, %v2125_v37  ;;  %v2363_v24 = vadd.f32 %v2277_v1, %v2126_v38  ;;  %v1116_v7 = vld [vmem:[#allocation2 + $0x318] sm:$0x80]  ;;  %v1117_v1 = vld [vmem:[#allocation2 + $0x160] sm:$0x80] }
 0x13e   :  { %v2651_v12 = vrot.slane %v2503_v26, 2  ;;  %v2653_v13 = vrot.slane %v2504_v36, 2  ;;  %v321_v34 = vmul.f32 %v3484_v41, %v246_v39  ;;  %v322_v50 = vmul.f32 %v3487_v42, %v247_v56 }
 0x13f   :  { %v2789_v61 = vadd.f32 %v2649_v8, %v2360_v6  ;;  %v2790_v3 = vadd.f32 %v2650_v5, %v2361_v14  ;;  %v470_v44 = vmul.f32 %v4086_v23, %v3496_v47  ;;  %v471_v45 = vmul.f32 %v4089_v19, %v3499_v48 }
 0x140   :  { %v2652_v17 = vsel %vm845_vm0, %v2649_v8, %v2651_v12  ;;  %v2654_v25 = vsel %vm845_vm0, %v2650_v5, %v2653_v13  ;;  %v761_v43 = vmul.f32 %v3502_v52, %v686_v40  ;;  %v762_v21 = vmul.f32 %v3505_v53, %v687_v33  ;;  %v1119_v33 = vld [vmem:[#allocation2 + $0x28] sm:$0x7f] }
 0x141   :  { %v2791_v57 = vadd.f32 %v2652_v17, %v2362_v60  ;;  %v2792_v55 = vadd.f32 %v2654_v25, %v2363_v24  ;;  %v2865_v0 = vadd.f32 %v3611_v28, %v2789_v61  ;;  %v2866_v31 = vadd.f32 %v3614_v29, %v2790_v3  ;;  %v1118_v60 = vld [vmem:[#allocation2 + $0x88] sm:$0x7f]  ;;  %v1560_v17 = vld [vmem:[#allocation2 + $0x120] sm:$0x1] }
 0x142   :  { %v534_v23 = vrot.slane %v470_v44, 1  ;;  %v535_v32 = vrot.slane %v471_v45, 1  ;;  %v763_v19 = vmul.f32 %v3502_v52, %v688_v18  ;;  %v764_v22 = vmul.f32 %v3505_v53, %v689_v4  ;;  %v1559_v4 = vld [vmem:[#allocation2 + $0x28] sm:$0xfe] }
 0x143   :  { %v2867_v35 = vadd.f32 %v3611_v28, %v2791_v57  ;;  %v2868_v27 = vadd.f32 %v3614_v29, %v2792_v55  ;;  %v3014_v37 = vrot.slane %v2865_v0, 7  ;;  %v3017_v38 = vrot.slane %v2866_v31, 7  ;;  %v1561_v55 = vld [vmem:[#allocation2 + $0x140] sm:$0x1] }
 0x144   :  { %v620_v26 = vadd.f32 %v534_v23, %v319_v2  ;;  %v621_v36 = vadd.f32 %v535_v32, %v320_v9  ;;  %v622_v39 = vadd.f32 %v534_v23, %v321_v34  ;;  %v623_v56 = vadd.f32 %v535_v32, %v322_v50  ;;  %v1558_v34 = vld [vmem:[#allocation2 + $0x88] sm:$0xfe] }
 0x145   :  { %v3015_v8 = vrot.slane %v2867_v35, 7  ;;  %v3018_v5 = vrot.slane %v2868_v27, 7  ;;  %v912_v6 = vrot.slane %v761_v43, 2  ;;  %v913_v14 = vrot.slane %v762_v21, 2 }
 0x146   :  { %v914_v24 = vrot.slane %v763_v19, 2  ;;  %v916_v40 = vrot.slane %v764_v22, 2  ;;  %v1191_v12 = vmul.f32 %v3521_v10, %v1116_v7  ;;  %v1192_v13 = vmul.f32 %v3524_v11, %v1117_v1  ;;  %v1988_v19 = vld [vmem:[#allocation2 + $0x68] sm:$0x80]  ;;  %v1989_v22 = vld [vmem:[#allocation2 + $0xd0] sm:$0x80] }
 0x147   :  { %v3016_v61 = vsel %vm2953_vm1, %v3014_v37, %v3015_v8  ;;  %v3019_v3 = vsel %vm2953_vm1, %v3017_v38, %v3018_v5  ;;  %v1050_v2 = vadd.f32 %v912_v6, %v620_v26  ;;  %v1051_v9 = vadd.f32 %v913_v14, %v621_v36  ;;  %v1990_v7 = vld [vmem:[#allocation2 + $0x180] sm:$0x7f] }
 0x148   :  { %v3232_v50 = vpack.c.bf16 %v3019_v3, %v3016_v61  ;;  %v915_v44 = vsel %vm845_vm0, %v912_v6, %v914_v24  ;;  %v917_v45 = vsel %vm845_vm0, %v913_v14, %v916_v40  ;;  %v1193_v18 = vmul.f32 %v3521_v10, %v1118_v60  ;;  %v4197_v60 = vld [vmem:[#allocation2 + $0x180] sm:$0xff]  ;;  %v2431_v3 = vld [vmem:[#allocation2 + $0x378] sm:$0xfe] }
 0x149   :  { %v1052_v25 = vadd.f32 %v915_v44, %v622_v39  ;;  %v1053_v43 = vadd.f32 %v917_v45, %v623_v56  ;;  %v1194_v21 = vmul.f32 %v3524_v11, %v1119_v33  ;;  %v1255_v57 = vadd.f32 %v1191_v12, %v1050_v2  ;;  %v1991_v56 = vld [vmem:[#allocation2 + $0x378] sm:$0x7f]  ;;  %v2430_v61 = vld [vmem:[#allocation2 + $0x180] sm:$0xfe] }
 0x14a   :  { %3188 = vst [vmem:[%s4441_s3 + $0x50] sm:$0xff] %v3232_v50  ;;  %v1256_v0 = vadd.f32 %v1192_v13, %v1051_v9  ;;  %v1342_v31 = vmul.f32 %v4142_v16, %v3547_v46  ;;  %v1343_v23 = vmul.f32 %v4144_v30, %v3550_v49  ;;  %v1633_v32 = vmul.f32 %v3553_v51, %v1558_v34  ;;  %v4199_v13 = vld [vmem:[#allocation2 + $0x378] sm:$0xff] }
 0x14b   :  { %v1257_v35 = vadd.f32 %v1193_v18, %v1052_v25  ;;  %v1258_v27 = vadd.f32 %v1194_v21, %v1053_v43  ;;  %v1634_v37 = vmul.f32 %v3556_v54, %v1559_v4  ;;  %v1635_v38 = vmul.f32 %v3553_v51, %v1560_v17  ;;  %v2432_v17 = vld [vmem:[#allocation2 + $0x258] sm:$0x1]  ;;  %v2433_v25 = vld [vmem:[#allocation2 + $0x220] sm:$0x1] }
 0x14c   :  { %v1406_v1 = vrot.slane %v1342_v31, 1  ;;  %v1407_v26 = vrot.slane %v1343_v23, 1  ;;  %v1636_v36 = vmul.f32 %v3556_v54, %v1561_v55  ;;  %v1783_v39 = vrot.slane %v1633_v32, 2 }
 0x14d   :  { %v1784_v8 = vrot.slane %v1634_v37, 2  ;;  %v1785_v5 = vrot.slane %v1635_v38, 2  ;;  %v2063_v6 = vmul.f32 %v3570_v15, %v1988_v19  ;;  %v2064_v14 = vmul.f32 %v3573_v20, %v1989_v22  ;;  %v249_v38 = vld [vmem:[#allocation2 + $0x160] sm:$0x80] }
 0x14e   :  { %v1492_v24 = vadd.f32 %v1406_v1, %v1255_v57  ;;  %v1493_v40 = vadd.f32 %v1407_v26, %v1256_v0  ;;  %v1494_v33 = vadd.f32 %v1406_v1, %v1257_v35  ;;  %v1495_v12 = vadd.f32 %v1407_v26, %v1258_v27  ;;  %v248_v0 = vld [vmem:[#allocation2 + $0x318] sm:$0x80] }
 0x14f   :  { %v1786_v2 = vsel %vm845_vm0, %v1783_v39, %v1785_v5  ;;  %v1787_v9 = vrot.slane %v1636_v36, 2  ;;  %v2065_v34 = vmul.f32 %v3570_v15, %v1990_v7  ;;  %v2066_v50 = vmul.f32 %v3573_v20, %v1991_v56  ;;  %v250_v7 = vld [vmem:[#allocation2 + $0x88] sm:$0x7f] }
 0x150   :  { %v1921_v44 = vadd.f32 %v1783_v39, %v1492_v24  ;;  %v1922_v45 = vadd.f32 %v1784_v8, %v1493_v40  ;;  %v1923_v18 = vadd.f32 %v1786_v2, %v1494_v33  ;;  %v2214_v4 = vmul.f32 %v3588_v58, %v4197_v60  ;;  %v251_v39 = vld [vmem:[#allocation2 + $0x28] sm:$0x7f] }
 0x151   :  { %v1788_v43 = vsel %vm845_vm0, %v1784_v8, %v1787_v9  ;;  %v2215_v21 = vmul.f32 %v3591_v59, %v4199_v13  ;;  %v2505_v57 = vmul.f32 %v3594_v62, %v2430_v61  ;;  %v2506_v55 = vmul.f32 %v3597_v63, %v2431_v3  ;;  %v690_v61 = vld [vmem:[#allocation2 + $0x88] sm:$0xfe] }
 0x152   :  { %v1924_v31 = vadd.f32 %v1788_v43, %v1495_v12  ;;  %v2127_v23 = vadd.f32 %v2063_v6, %v1921_v44  ;;  %v2128_v32 = vadd.f32 %v2064_v14, %v1922_v45  ;;  %v2129_v19 = vadd.f32 %v2065_v34, %v1923_v18 }
 0x153   :  { %v2278_v22 = vrot.slane %v2214_v4, 1  ;;  %v2279_v35 = vrot.slane %v2215_v21, 1  ;;  %v2507_v27 = vmul.f32 %v3594_v62, %v2432_v17  ;;  %v2508_v37 = vmul.f32 %v3597_v63, %v2433_v25  ;;  %v692_v17 = vld [vmem:[#allocation2 + $0x120] sm:$0x1] }
 0x154   :  { %v2130_v1 = vadd.f32 %v2066_v50, %v1924_v31  ;;  %v2655_v26 = vrot.slane %v2505_v57, 2  ;;  %v2656_v36 = vrot.slane %v2506_v55, 2  ;;  %v323_v56 = vmul.f32 %v3484_v41, %v248_v0  ;;  %v691_v50 = vld [vmem:[#allocation2 + $0x28] sm:$0xfe] }
 0x155   :  { %v2364_v8 = vadd.f32 %v2278_v22, %v2127_v23  ;;  %v2365_v5 = vadd.f32 %v2279_v35, %v2128_v32  ;;  %v2366_v24 = vadd.f32 %v2278_v22, %v2129_v19  ;;  %v2657_v6 = vrot.slane %v2507_v27, 2  ;;  %v693_v23 = vld [vmem:[#allocation2 + $0x140] sm:$0x1] }
 0x156   :  { %v2367_v14 = vadd.f32 %v2279_v35, %v2130_v1  ;;  %v2659_v40 = vrot.slane %v2508_v37, 2  ;;  %v324_v33 = vmul.f32 %v3487_v42, %v249_v38  ;;  %v325_v12 = vmul.f32 %v3484_v41, %v250_v7  ;;  %v1120_v35 = vld [vmem:[#allocation2 + $0x68] sm:$0x80]  ;;  %v1121_v1 = vld [vmem:[#allocation2 + $0xd0] sm:$0x80] }
 0x157   :  { %v2658_v3 = vsel %vm845_vm0, %v2655_v26, %v2657_v6  ;;  %v2793_v2 = vadd.f32 %v2655_v26, %v2364_v8  ;;  %v2794_v9 = vadd.f32 %v2656_v36, %v2365_v5  ;;  %v326_v34 = vmul.f32 %v3487_v42, %v251_v39  ;;  %v1122_v5 = vld [vmem:[#allocation2 + $0x180] sm:$0x7f] }
 0x158   :  { %v2660_v44 = vsel %vm845_vm0, %v2656_v36, %v2659_v40  ;;  %v2795_v45 = vadd.f32 %v2658_v3, %v2366_v24  ;;  %v472_v18 = vmul.f32 %v4142_v16, %v3496_v47  ;;  %v473_v4 = vmul.f32 %v4144_v30, %v3499_v48  ;;  %v1123_v40 = vld [vmem:[#allocation2 + $0x378] sm:$0x7f] }
 0x159   :  { %v2796_v25 = vadd.f32 %v2660_v44, %v2367_v14  ;;  %v2869_v43 = vadd.f32 %v3611_v28, %v2793_v2  ;;  %v2870_v21 = vadd.f32 %v3614_v29, %v2794_v9  ;;  %v765_v57 = vmul.f32 %v3502_v52, %v690_v61  ;;  %v1562_v44 = vld [vmem:[#allocation2 + $0x180] sm:$0xfe] }
 0x15a   :  { %v2871_v55 = vadd.f32 %v3611_v28, %v2795_v45  ;;  %v536_v0 = vrot.slane %v472_v18, 1  ;;  %v537_v31 = vrot.slane %v473_v4, 1  ;;  %v766_v32 = vmul.f32 %v3505_v53, %v691_v50  ;;  %v1563_v45 = vld [vmem:[#allocation2 + $0x378] sm:$0xfe]  ;;  %v1564_v18 = vld [vmem:[#allocation2 + $0x258] sm:$0x1] }
 0x15b   :  { %v2872_v16 = vadd.f32 %v3614_v29, %v2796_v25  ;;  %v3020_v19 = vrot.slane %v2869_v43, 7  ;;  %v3023_v22 = vrot.slane %v2870_v21, 7  ;;  %v767_v30 = vmul.f32 %v3502_v52, %v692_v17  ;;  %v1565_v21 = vld [vmem:[#allocation2 + $0x220] sm:$0x1] }
 0x15c   :  { %v3021_v27 = vrot.slane %v2871_v55, 7  ;;  %v624_v37 = vadd.f32 %v536_v0, %v323_v56  ;;  %v625_v38 = vadd.f32 %v537_v31, %v324_v33  ;;  %v626_v7 = vadd.f32 %v536_v0, %v325_v12 }
 0x15d   :  { %v3024_v26 = vrot.slane %v2872_v16, 7  ;;  %v627_v36 = vadd.f32 %v537_v31, %v326_v34  ;;  %v768_v39 = vmul.f32 %v3505_v53, %v693_v23  ;;  %v918_v8 = vrot.slane %v765_v57, 2  ;;  %v1992_v23 = vld [vmem:[#allocation2 + $0x2a0] sm:$0x80] }
 0x15e   :  { %v3022_v24 = vsel %vm2953_vm1, %v3020_v19, %v3021_v27  ;;  %v919_v6 = vrot.slane %v766_v32, 2  ;;  %v920_v14 = vrot.slane %v767_v30, 2  ;;  %v1195_v61 = vmul.f32 %v3521_v10, %v1120_v35 }
 0x15f   :  { %v3025_v3 = vsel %vm2953_vm1, %v3023_v22, %v3024_v26  ;;  %v922_v2 = vrot.slane %v768_v39, 2  ;;  %v1054_v56 = vadd.f32 %v918_v8, %v624_v37  ;;  %v1196_v33 = vmul.f32 %v3524_v11, %v1121_v1  ;;  %v1995_v39 = vld [vmem:[#allocation2 + $0x208] sm:$0x7f] }
 0x160   :  { %v3233_v12 = vpack.c.bf16 %v3025_v3, %v3022_v24  ;;  %v921_v9 = vsel %vm845_vm0, %v918_v8, %v920_v14  ;;  %v1055_v34 = vadd.f32 %v919_v6, %v625_v38  ;;  %v1197_v50 = vmul.f32 %v3521_v10, %v1122_v5  ;;  %v1993_v38 = vld [vmem:[#allocation2 + $0x1a0] sm:$0x80]  ;;  %v2434_v3 = vld [vmem:[#allocation2 + $0x58] sm:$0xfe] }
 0x161   :  { %v923_v4 = vsel %vm845_vm0, %v919_v6, %v922_v2  ;;  %v1056_v17 = vadd.f32 %v921_v9, %v626_v7  ;;  %v1198_v25 = vmul.f32 %v3524_v11, %v1123_v40  ;;  %v1259_v43 = vadd.f32 %v1195_v61, %v1054_v56  ;;  %v1994_v7 = vld [vmem:[#allocation2 + $0x58] sm:$0x7f]  ;;  %v4253_v61 = vld [vmem:[#allocation2 + $0x208] sm:$0xff] }
 0x162   :  { %3189 = vst [vmem:[%s4441_s3 + $0x58] sm:$0xff] %v3233_v12  ;;  %v1057_v57 = vadd.f32 %v923_v4, %v627_v36  ;;  %v1260_v55 = vadd.f32 %v1196_v33, %v1055_v34  ;;  %v1344_v0 = vmul.f32 %v4197_v60, %v3547_v46  ;;  %v1345_v31 = vmul.f32 %v4199_v13, %v3550_v49  ;;  %v4251_v40 = vld [vmem:[#allocation2 + $0x58] sm:$0xff] }
 0x163   :  { %v1261_v32 = vadd.f32 %v1197_v50, %v1056_v17  ;;  %v1637_v16 = vmul.f32 %v3553_v51, %v1562_v44  ;;  %v1638_v19 = vmul.f32 %v3556_v54, %v1563_v45  ;;  %v1639_v22 = vmul.f32 %v3553_v51, %v1564_v18  ;;  %v2435_v45 = vld [vmem:[#allocation2 + $0x208] sm:$0xfe]  ;;  %v2436_v18 = vld [vmem:[#allocation2 + $0x1e0] sm:$0x1] }
 0x164   :  { %v1262_v30 = vadd.f32 %v1198_v25, %v1057_v57  ;;  %v1408_v35 = vrot.slane %v1344_v0, 1  ;;  %v1409_v27 = vrot.slane %v1345_v31, 1  ;;  %v1640_v37 = vmul.f32 %v3556_v54, %v1565_v21  ;;  %v252_v57 = vld [vmem:[#allocation2 + $0x68] sm:$0x80] }
 0x165   :  { %v1789_v1 = vrot.slane %v1637_v16, 2  ;;  %v1790_v26 = vrot.slane %v1638_v19, 2  ;;  %v1791_v36 = vrot.slane %v1639_v22, 2  ;;  %v2067_v8 = vmul.f32 %v3570_v15, %v1992_v23 }
 0x166   :  { %v1496_v5 = vadd.f32 %v1408_v35, %v1259_v43  ;;  %v1497_v24 = vadd.f32 %v1409_v27, %v1260_v55  ;;  %v1498_v6 = vadd.f32 %v1408_v35, %v1261_v32  ;;  %v1499_v14 = vadd.f32 %v1409_v27, %v1262_v30  ;;  %v2437_v43 = vld [vmem:[#allocation2 + $0x100] sm:$0x1]  ;;  %v253_v30 = vld [vmem:[#allocation2 + $0xd0] sm:$0x80] }
 0x167   :  { %v1792_v2 = vsel %vm845_vm0, %v1789_v1, %v1791_v36  ;;  %v1793_v56 = vrot.slane %v1640_v37, 2  ;;  %v2068_v33 = vmul.f32 %v3573_v20, %v1993_v38  ;;  %v2069_v12 = vmul.f32 %v3570_v15, %v1994_v7  ;;  %v254_v38 = vld [vmem:[#allocation2 + $0x180] sm:$0x7f]  ;;  %v255_v7 = vld [vmem:[#allocation2 + $0x378] sm:$0x7f] }
 0x168   :  { %v1925_v9 = vadd.f32 %v1789_v1, %v1496_v5  ;;  %v1926_v34 = vadd.f32 %v1790_v26, %v1497_v24  ;;  %v1927_v50 = vadd.f32 %v1792_v2, %v1498_v6  ;;  %v2070_v44 = vmul.f32 %v3573_v20, %v1995_v39 }
 0x169   :  { %v1794_v4 = vsel %vm845_vm0, %v1790_v26, %v1793_v56  ;;  %v2216_v17 = vmul.f32 %v3588_v58, %v4251_v40  ;;  %v2217_v25 = vmul.f32 %v3591_v59, %v4253_v61  ;;  %v2509_v21 = vmul.f32 %v3594_v62, %v2434_v3 }
 0x16a   :  { %v1928_v55 = vadd.f32 %v1794_v4, %v1499_v14  ;;  %v2131_v0 = vadd.f32 %v2067_v8, %v1925_v9  ;;  %v2132_v31 = vadd.f32 %v2068_v33, %v1926_v34  ;;  %v2133_v23 = vadd.f32 %v2069_v12, %v1927_v50  ;;  %v694_v12 = vld [vmem:[#allocation2 + $0x180] sm:$0xfe]  ;;  %v695_v9 = vld [vmem:[#allocation2 + $0x378] sm:$0xfe] }
 0x16b   :  { %v2280_v32 = vrot.slane %v2216_v17, 1  ;;  %v2281_v16 = vrot.slane %v2217_v25, 1  ;;  %v2510_v19 = vmul.f32 %v3597_v63, %v2435_v45  ;;  %v2511_v22 = vmul.f32 %v3594_v62, %v2436_v18 }
 0x16c   :  { %v2134_v35 = vadd.f32 %v2070_v44, %v1928_v55  ;;  %v2512_v27 = vmul.f32 %v3597_v63, %v2437_v43  ;;  %v2661_v37 = vrot.slane %v2509_v21, 2  ;;  %v327_v1 = vmul.f32 %v3484_v41, %v252_v57  ;;  %v696_v57 = vld [vmem:[#allocation2 + $0x258] sm:$0x1]  ;;  %v697_v55 = vld [vmem:[#allocation2 + $0x220] sm:$0x1] }
 0x16d   :  { %v2368_v26 = vadd.f32 %v2280_v32, %v2131_v0  ;;  %v2369_v36 = vadd.f32 %v2281_v16, %v2132_v31  ;;  %v2370_v39 = vadd.f32 %v2280_v32, %v2133_v23  ;;  %v2662_v8 = vrot.slane %v2510_v19, 2  ;;  %v1125_v19 = vld [vmem:[#allocation2 + $0x1a0] sm:$0x80] }
 0x16e   :  { %v2371_v5 = vadd.f32 %v2281_v16, %v2134_v35  ;;  %v2663_v24 = vrot.slane %v2511_v22, 2  ;;  %v2665_v6 = vrot.slane %v2512_v27, 2  ;;  %v328_v14 = vmul.f32 %v3487_v42, %v253_v30  ;;  %v1124_v16 = vld [vmem:[#allocation2 + $0x2a0] sm:$0x80] }
 0x16f   :  { %v2797_v3 = vadd.f32 %v2661_v37, %v2368_v26  ;;  %v2798_v2 = vadd.f32 %v2662_v8, %v2369_v36  ;;  %v329_v56 = vmul.f32 %v3484_v41, %v254_v38  ;;  %v330_v33 = vmul.f32 %v3487_v42, %v255_v7  ;;  %v1126_v36 = vld [vmem:[#allocation2 + $0x58] sm:$0x7f] }
 0x170   :  { %v2664_v34 = vsel %vm845_vm0, %v2661_v37, %v2663_v24  ;;  %v2666_v50 = vsel %vm845_vm0, %v2662_v8, %v2665_v6  ;;  %v474_v44 = vmul.f32 %v4197_v60, %v3496_v47  ;;  %v475_v45 = vmul.f32 %v4199_v13, %v3499_v48 }
 0x171   :  { %v2799_v18 = vadd.f32 %v2664_v34, %v2370_v39  ;;  %v2800_v4 = vadd.f32 %v2666_v50, %v2371_v5  ;;  %v2873_v17 = vadd.f32 %v3611_v28, %v2797_v3  ;;  %v2874_v25 = vadd.f32 %v3614_v29, %v2798_v2  ;;  %v1127_v5 = vld [vmem:[#allocation2 + $0x208] sm:$0x7f]  ;;  %v1566_v34 = vld [vmem:[#allocation2 + $0x58] sm:$0xfe] }
 0x172   :  { %v538_v43 = vrot.slane %v474_v44, 1  ;;  %v539_v21 = vrot.slane %v475_v45, 1  ;;  %v769_v0 = vmul.f32 %v3502_v52, %v694_v12  ;;  %v770_v31 = vmul.f32 %v3505_v53, %v695_v9  ;;  %v1567_v50 = vld [vmem:[#allocation2 + $0x208] sm:$0xfe] }
 0x173   :  { %v2875_v23 = vadd.f32 %v3611_v28, %v2799_v18  ;;  %v2876_v60 = vadd.f32 %v3614_v29, %v2800_v4  ;;  %v3026_v32 = vrot.slane %v2873_v17, 7  ;;  %v3029_v13 = vrot.slane %v2874_v25, 7  ;;  %v1568_v17 = vld [vmem:[#allocation2 + $0x1e0] sm:$0x1] }
 0x174   :  { %v628_v22 = vadd.f32 %v538_v43, %v327_v1  ;;  %v629_v30 = vadd.f32 %v539_v21, %v328_v14  ;;  %v630_v35 = vadd.f32 %v538_v43, %v329_v56  ;;  %v631_v27 = vadd.f32 %v539_v21, %v330_v33  ;;  %v1569_v25 = vld [vmem:[#allocation2 + $0x100] sm:$0x1] }
 0x175   :  { %v3027_v37 = vrot.slane %v2875_v23, 7  ;;  %v3030_v38 = vrot.slane %v2876_v60, 7  ;;  %v771_v7 = vmul.f32 %v3502_v52, %v696_v57  ;;  %v772_v26 = vmul.f32 %v3505_v53, %v697_v55 }
 0x176   :  { %v924_v39 = vrot.slane %v769_v0, 2  ;;  %v925_v8 = vrot.slane %v770_v31, 2  ;;  %v1199_v24 = vmul.f32 %v3521_v10, %v1124_v16  ;;  %v1200_v6 = vmul.f32 %v3524_v11, %v1125_v19 }
 0x177   :  { %v3028_v3 = vsel %vm2953_vm1, %v3026_v32, %v3027_v37  ;;  %v3031_v1 = vsel %vm2953_vm1, %v3029_v13, %v3030_v38  ;;  %v926_v14 = vrot.slane %v771_v7, 2  ;;  %v928_v2 = vrot.slane %v772_v26, 2  ;;  %v1996_v32 = vld [vmem:[#allocation2 + $0x10] sm:$0x80]  ;;  %v1999_v26 = vld [vmem:[#allocation2 + $0x190] sm:$0x7f] }
 0x178   :  { %v3234_v56 = vpack.c.bf16 %v3031_v1, %v3028_v3  ;;  %v1058_v33 = vadd.f32 %v924_v39, %v628_v22  ;;  %v1059_v12 = vadd.f32 %v925_v8, %v629_v30  ;;  %v1201_v9 = vmul.f32 %v3521_v10, %v1126_v36  ;;  %v1997_v30 = vld [vmem:[#allocation2 + $0x268] sm:$0x80] }
 0x179   :  { %v927_v44 = vsel %vm845_vm0, %v924_v39, %v926_v14  ;;  %v929_v45 = vsel %vm845_vm0, %v925_v8, %v928_v2  ;;  %v1202_v18 = vmul.f32 %v3524_v11, %v1127_v5  ;;  %v1346_v4 = vmul.f32 %v4251_v40, %v3547_v46  ;;  %v4309_v2 = vld [vmem:[#allocation2 + $0x190] sm:$0xff] }
 0x17a   :  { %3190 = vst [vmem:[%s4441_s3 + $0x60] sm:$0xff] %v3234_v56  ;;  %v1060_v43 = vadd.f32 %v927_v44, %v630_v35  ;;  %v1061_v21 = vadd.f32 %v929_v45, %v631_v27  ;;  %v1263_v57 = vadd.f32 %v1199_v24, %v1058_v33  ;;  %v1264_v55 = vadd.f32 %v1200_v6, %v1059_v12  ;;  %v1998_v35 = vld [vmem:[#allocation2 + $0x248] sm:$0x7f]  ;;  %v2439_v33 = vld [vmem:[#allocation2 + $0x190] sm:$0xfe] }
 0x17b   :  { %v1347_v0 = vmul.f32 %v4253_v61, %v3550_v49  ;;  %v1410_v31 = vrot.slane %v1346_v4, 1  ;;  %v1641_v23 = vmul.f32 %v3553_v51, %v1566_v34  ;;  %v1642_v60 = vmul.f32 %v3556_v54, %v1567_v50  ;;  %v4306_v24 = vld [vmem:[#allocation2 + $0x248] sm:$0xff]  ;;  %v2440_v44 = vld [vmem:[#allocation2 + $0x1f8] sm:$0x1] }
 0x17c   :  { %v1265_v13 = vadd.f32 %v1201_v9, %v1060_v43  ;;  %v1266_v16 = vadd.f32 %v1202_v18, %v1061_v21  ;;  %v1643_v19 = vmul.f32 %v3553_v51, %v1568_v17  ;;  %v1644_v22 = vmul.f32 %v3556_v54, %v1569_v25  ;;  %v2438_v56 = vld [vmem:[#allocation2 + $0x248] sm:$0xfe]  ;;  %v2441_v25 = vld [vmem:[#allocation2 + $0x218] sm:$0x1] }
 0x17d   :  { %v1411_v27 = vrot.slane %v1347_v0, 1  ;;  %v1500_v37 = vadd.f32 %v1410_v31, %v1263_v57  ;;  %v1795_v38 = vrot.slane %v1641_v23, 2  ;;  %v1796_v7 = vrot.slane %v1642_v60, 2  ;;  %v256_v0 = vld [vmem:[#allocation2 + $0x2a0] sm:$0x80] }
 0x17e   :  { %v1502_v36 = vadd.f32 %v1410_v31, %v1265_v13  ;;  %v1797_v39 = vrot.slane %v1643_v19, 2  ;;  %v1799_v8 = vrot.slane %v1644_v22, 2  ;;  %v2071_v5 = vmul.f32 %v3570_v15, %v1996_v32  ;;  %v257_v31 = vld [vmem:[#allocation2 + $0x1a0] sm:$0x80] }
 0x17f   :  { %v1501_v6 = vadd.f32 %v1411_v27, %v1264_v55  ;;  %v1503_v3 = vadd.f32 %v1411_v27, %v1266_v16  ;;  %v1929_v1 = vadd.f32 %v1795_v38, %v1500_v37  ;;  %v2072_v14 = vmul.f32 %v3573_v20, %v1997_v30  ;;  %v258_v16 = vld [vmem:[#allocation2 + $0x58] sm:$0x7f]  ;;  %v259_v27 = vld [vmem:[#allocation2 + $0x208] sm:$0x7f] }
 0x180   :  { %v1798_v12 = vsel %vm845_vm0, %v1795_v38, %v1797_v39  ;;  %v1800_v9 = vsel %vm845_vm0, %v1796_v7, %v1799_v8  ;;  %v2073_v34 = vmul.f32 %v3570_v15, %v1998_v35  ;;  %v2074_v50 = vmul.f32 %v3573_v20, %v1999_v26 }
 0x181   :  { %v1930_v45 = vadd.f32 %v1796_v7, %v1501_v6  ;;  %v1931_v18 = vadd.f32 %v1798_v12, %v1502_v36  ;;  %v1932_v4 = vadd.f32 %v1800_v9, %v1503_v3  ;;  %v2135_v17 = vadd.f32 %v2071_v5, %v1929_v1  ;;  %v698_v6 = vld [vmem:[#allocation2 + $0x58] sm:$0xfe]  ;;  %v699_v3 = vld [vmem:[#allocation2 + $0x208] sm:$0xfe] }
 0x182   :  { %v2218_v43 = vmul.f32 %v3588_v58, %v4306_v24  ;;  %v2219_v21 = vmul.f32 %v3591_v59, %v4309_v2  ;;  %v2513_v57 = vmul.f32 %v3594_v62, %v2438_v56  ;;  %v2514_v55 = vmul.f32 %v3597_v63, %v2439_v33 }
 0x183   :  { %v2136_v23 = vadd.f32 %v2072_v14, %v1930_v45  ;;  %v2137_v60 = vadd.f32 %v2073_v34, %v1931_v18  ;;  %v2138_v32 = vadd.f32 %v2074_v50, %v1932_v4  ;;  %v2515_v13 = vmul.f32 %v3594_v62, %v2440_v44  ;;  %v700_v44 = vld [vmem:[#allocation2 + $0x1e0] sm:$0x1] }
 0x184   :  { %v2282_v19 = vrot.slane %v2218_v43, 1  ;;  %v2283_v22 = vrot.slane %v2219_v21, 1  ;;  %v2516_v30 = vmul.f32 %v3597_v63, %v2441_v25  ;;  %v2667_v35 = vrot.slane %v2513_v57, 2  ;;  %v701_v45 = vld [vmem:[#allocation2 + $0x100] sm:$0x1] }
 0x185   :  { %v2668_v37 = vrot.slane %v2514_v55, 2  ;;  %v2669_v38 = vrot.slane %v2515_v13, 2  ;;  %v331_v7 = vmul.f32 %v3484_v41, %v256_v0  ;;  %v332_v26 = vmul.f32 %v3487_v42, %v257_v31 }
 0x186   :  { %v2372_v36 = vadd.f32 %v2282_v19, %v2135_v17  ;;  %v2373_v39 = vadd.f32 %v2283_v22, %v2136_v23  ;;  %v2374_v8 = vadd.f32 %v2282_v19, %v2137_v60  ;;  %v2375_v5 = vadd.f32 %v2283_v22, %v2138_v32  ;;  %v1128_v60 = vld [vmem:[#allocation2 + $0x10] sm:$0x80]  ;;  %v1129_v19 = vld [vmem:[#allocation2 + $0x268] sm:$0x80] }
 0x187   :  { %v2670_v1 = vsel %vm845_vm0, %v2667_v35, %v2669_v38  ;;  %v2671_v14 = vrot.slane %v2516_v30, 2  ;;  %v333_v56 = vmul.f32 %v3484_v41, %v258_v16  ;;  %v334_v33 = vmul.f32 %v3487_v42, %v259_v27 }
 0x188   :  { %v2801_v12 = vadd.f32 %v2667_v35, %v2372_v36  ;;  %v2802_v9 = vadd.f32 %v2668_v37, %v2373_v39  ;;  %v2803_v34 = vadd.f32 %v2670_v1, %v2374_v8  ;;  %v476_v50 = vmul.f32 %v4251_v40, %v3496_v47 }
 0x189   :  { %v2672_v18 = vsel %vm845_vm0, %v2668_v37, %v2671_v14  ;;  %v477_v4 = vmul.f32 %v4253_v61, %v3499_v48  ;;  %v773_v17 = vmul.f32 %v3502_v52, %v698_v6  ;;  %v774_v25 = vmul.f32 %v3505_v53, %v699_v3  ;;  %v1130_v37 = vld [vmem:[#allocation2 + $0x248] sm:$0x7f] }
 0x18a   :  { %v2804_v43 = vadd.f32 %v2672_v18, %v2375_v5  ;;  %v2877_v21 = vadd.f32 %v3611_v28, %v2801_v12  ;;  %v2878_v57 = vadd.f32 %v3614_v29, %v2802_v9  ;;  %v2879_v55 = vadd.f32 %v3611_v28, %v2803_v34  ;;  %v1131_v5 = vld [vmem:[#allocation2 + $0x190] sm:$0x7f]  ;;  %v1572_v18 = vld [vmem:[#allocation2 + $0x1f8] sm:$0x1] }
 0x18b   :  { %v540_v0 = vrot.slane %v476_v50, 1  ;;  %v541_v40 = vrot.slane %v477_v4, 1  ;;  %v775_v31 = vmul.f32 %v3502_v52, %v700_v44  ;;  %v776_v23 = vmul.f32 %v3505_v53, %v701_v45  ;;  %v1573_v4 = vld [vmem:[#allocation2 + $0x218] sm:$0x1] }
 0x18c   :  { %v2880_v61 = vadd.f32 %v3614_v29, %v2804_v43  ;;  %v3032_v32 = vrot.slane %v2877_v21, 7  ;;  %v3033_v13 = vrot.slane %v2879_v55, 7  ;;  %v3035_v16 = vrot.slane %v2878_v57, 7 }
 0x18d   :  { %v632_v22 = vadd.f32 %v540_v0, %v331_v7  ;;  %v633_v30 = vadd.f32 %v541_v40, %v332_v26  ;;  %v634_v35 = vadd.f32 %v540_v0, %v333_v56  ;;  %v635_v27 = vadd.f32 %v541_v40, %v334_v33  ;;  %v1570_v56 = vld [vmem:[#allocation2 + $0x248] sm:$0xfe]  ;;  %v1571_v33 = vld [vmem:[#allocation2 + $0x190] sm:$0xfe] }
 0x18e   :  { %v3034_v38 = vsel %vm2953_vm1, %v3032_v32, %v3033_v13  ;;  %v3036_v36 = vrot.slane %v2880_v61, 7  ;;  %v930_v39 = vrot.slane %v773_v17, 2  ;;  %v931_v8 = vrot.slane %v774_v25, 2 }
 0x18f   :  { %v932_v6 = vrot.slane %v775_v31, 2  ;;  %v934_v3 = vrot.slane %v776_v23, 2  ;;  %v1203_v1 = vmul.f32 %v3521_v10, %v1128_v60  ;;  %v1204_v14 = vmul.f32 %v3524_v11, %v1129_v19  ;;  %v2000_v31 = vld [vmem:[#allocation2 + $0x198] sm:$0x80]  ;;  %v2001_v23 = vld [vmem:[#allocation2 + $0x2a8] sm:$0x80] }
 0x190   :  { %v3037_v12 = vsel %vm2953_vm1, %v3035_v16, %v3036_v36  ;;  %v1062_v9 = vadd.f32 %v930_v39, %v632_v22  ;;  %v1063_v7 = vadd.f32 %v931_v8, %v633_v30  ;;  %v1205_v26 = vmul.f32 %v3521_v10, %v1130_v37  ;;  %v2002_v16 = vld [vmem:[#allocation2 + $0xc8] sm:$0x7f] }
 0x191   :  { %v3235_v34 = vpack.c.bf16 %v3037_v12, %v3034_v38  ;;  %v933_v50 = vsel %vm845_vm0, %v930_v39, %v932_v6  ;;  %v935_v44 = vsel %vm845_vm0, %v931_v8, %v934_v3  ;;  %v1206_v45 = vmul.f32 %v3524_v11, %v1131_v5  ;;  %v4362_v8 = vld [vmem:[#allocation2 + $0xc8] sm:$0xff] }
 0x192   :  { %v1064_v17 = vadd.f32 %v933_v50, %v634_v35  ;;  %v1065_v25 = vadd.f32 %v935_v44, %v635_v27  ;;  %v1267_v43 = vadd.f32 %v1203_v1, %v1062_v9  ;;  %v1268_v21 = vadd.f32 %v1204_v14, %v1063_v7  ;;  %v2003_v27 = vld [vmem:[#allocation2 + $0x3b8] sm:$0x7f]  ;;  %v2442_v12 = vld [vmem:[#allocation2 + $0xc8] sm:$0xfe] }
 0x193   :  { %3191 = vst [vmem:[%s4441_s3 + $0x68] sm:$0xff] %v3235_v34  ;;  %v1348_v57 = vmul.f32 %v4306_v24, %v3547_v46  ;;  %v1349_v55 = vmul.f32 %v4309_v2, %v3550_v49  ;;  %v1645_v0 = vmul.f32 %v3553_v51, %v1570_v56  ;;  %v1646_v40 = vmul.f32 %v3556_v54, %v1571_v33  ;;  %v4364_v14 = vld [vmem:[#allocation2 + $0x3b8] sm:$0xff] }
 0x194   :  { %v1269_v60 = vadd.f32 %v1205_v26, %v1064_v17  ;;  %v1270_v61 = vadd.f32 %v1206_v45, %v1065_v25  ;;  %v1647_v32 = vmul.f32 %v3553_v51, %v1572_v18  ;;  %v1648_v13 = vmul.f32 %v3556_v54, %v1573_v4  ;;  %v2443_v9 = vld [vmem:[#allocation2 + $0x3b8] sm:$0xfe]  ;;  %v2444_v18 = vld [vmem:[#allocation2 + $0x240] sm:$0x1]  ;;  %v2445_v4 = vld [vmem:[#allocation2 + $0x178] sm:$0x1] }
 0x195   :  { %v1412_v19 = vrot.slane %v1348_v57, 1  ;;  %v1413_v22 = vrot.slane %v1349_v55, 1  ;;  %v1801_v30 = vrot.slane %v1645_v0, 2  ;;  %v1802_v35 = vrot.slane %v1646_v40, 2  ;;  %v260_v57 = vld [vmem:[#allocation2 + $0x10] sm:$0x80] }
 0x196   :  { %v1803_v37 = vrot.slane %v1647_v32, 2  ;;  %v1805_v38 = vrot.slane %v1648_v13, 2  ;;  %v2075_v36 = vmul.f32 %v3570_v15, %v2000_v31  ;;  %v2076_v39 = vmul.f32 %v3573_v20, %v2001_v23  ;;  %v261_v55 = vld [vmem:[#allocation2 + $0x268] sm:$0x80] }
 0x197   :  { %v1504_v5 = vadd.f32 %v1412_v19, %v1267_v43  ;;  %v1505_v6 = vadd.f32 %v1413_v22, %v1268_v21  ;;  %v1506_v3 = vadd.f32 %v1412_v19, %v1269_v60  ;;  %v1507_v1 = vadd.f32 %v1413_v22, %v1270_v61  ;;  %v263_v19 = vld [vmem:[#allocation2 + $0x190] sm:$0x7f] }
 0x198   :  { %v1804_v7 = vsel %vm845_vm0, %v1801_v30, %v1803_v37  ;;  %v1806_v26 = vsel %vm845_vm0, %v1802_v35, %v1805_v38  ;;  %v2077_v56 = vmul.f32 %v3570_v15, %v2002_v16  ;;  %v2078_v33 = vmul.f32 %v3573_v20, %v2003_v27  ;;  %v262_v16 = vld [vmem:[#allocation2 + $0x248] sm:$0x7f] }
 0x199   :  { %v1933_v34 = vadd.f32 %v1801_v30, %v1504_v5  ;;  %v1934_v50 = vadd.f32 %v1802_v35, %v1505_v6  ;;  %v1935_v44 = vadd.f32 %v1804_v7, %v1506_v3  ;;  %v1936_v45 = vadd.f32 %v1806_v26, %v1507_v1  ;;  %v702_v5 = vld [vmem:[#allocation2 + $0x248] sm:$0xfe]  ;;  %v703_v6 = vld [vmem:[#allocation2 + $0x190] sm:$0xfe] }
 0x19a   :  { %v2220_v17 = vmul.f32 %v3588_v58, %v4362_v8  ;;  %v2221_v25 = vmul.f32 %v3591_v59, %v4364_v14  ;;  %v2517_v43 = vmul.f32 %v3594_v62, %v2442_v12  ;;  %v2518_v21 = vmul.f32 %v3597_v63, %v2443_v9 }
 0x19b   :  { %v2139_v0 = vadd.f32 %v2075_v36, %v1933_v34  ;;  %v2140_v40 = vadd.f32 %v2076_v39, %v1934_v50  ;;  %v2141_v31 = vadd.f32 %v2077_v56, %v1935_v44  ;;  %v2142_v23 = vadd.f32 %v2078_v33, %v1936_v45  ;;  %v704_v34 = vld [vmem:[#allocation2 + $0x1f8] sm:$0x1] }
 0x19c   :  { %v2284_v60 = vrot.slane %v2220_v17, 1  ;;  %v2285_v61 = vrot.slane %v2221_v25, 1  ;;  %v2519_v32 = vmul.f32 %v3594_v62, %v2444_v18  ;;  %v2520_v13 = vmul.f32 %v3597_v63, %v2445_v4  ;;  %v705_v50 = vld [vmem:[#allocation2 + $0x218] sm:$0x1] }
 0x19d   :  { %v2673_v22 = vrot.slane %v2517_v43, 2  ;;  %v2674_v30 = vrot.slane %v2518_v21, 2  ;;  %v335_v35 = vmul.f32 %v3484_v41, %v260_v57  ;;  %v336_v27 = vmul.f32 %v3487_v42, %v261_v55 }
 0x19e   :  { %v2376_v37 = vadd.f32 %v2284_v60, %v2139_v0  ;;  %v2377_v38 = vadd.f32 %v2285_v61, %v2140_v40  ;;  %v2378_v36 = vadd.f32 %v2284_v60, %v2141_v31  ;;  %v2379_v39 = vadd.f32 %v2285_v61, %v2142_v23  ;;  %v1132_v0 = vld [vmem:[#allocation2 + $0x198] sm:$0x80]  ;;  %v1133_v40 = vld [vmem:[#allocation2 + $0x2a8] sm:$0x80] }
 0x19f   :  { %v2675_v3 = vrot.slane %v2519_v32, 2  ;;  %v2677_v1 = vrot.slane %v2520_v13, 2  ;;  %v337_v12 = vmul.f32 %v3484_v41, %v262_v16  ;;  %v338_v9 = vmul.f32 %v3487_v42, %v263_v19 }
 0x1a0   :  { %v2805_v7 = vadd.f32 %v2673_v22, %v2376_v37  ;;  %v2806_v26 = vadd.f32 %v2674_v30, %v2377_v38  ;;  %v478_v56 = vmul.f32 %v4306_v24, %v3496_v47  ;;  %v479_v33 = vmul.f32 %v4309_v2, %v3499_v48 }
 0x1a1   :  { %v2676_v44 = vsel %vm845_vm0, %v2673_v22, %v2675_v3  ;;  %v2678_v45 = vsel %vm845_vm0, %v2674_v30, %v2677_v1  ;;  %v777_v18 = vmul.f32 %v3502_v52, %v702_v5  ;;  %v778_v41 = vmul.f32 %v3505_v53, %v703_v6  ;;  %v1134_v22 = vld [vmem:[#allocation2 + $0xc8] sm:$0x7f] }
 0x1a2   :  { %v2807_v4 = vadd.f32 %v2676_v44, %v2378_v36  ;;  %v2808_v42 = vadd.f32 %v2678_v45, %v2379_v39  ;;  %v2881_v17 = vadd.f32 %v3611_v28, %v2805_v7  ;;  %v2882_v25 = vadd.f32 %v3614_v29, %v2806_v26  ;;  %v1574_v5 = vld [vmem:[#allocation2 + $0xc8] sm:$0xfe]  ;;  %v1576_v7 = vld [vmem:[#allocation2 + $0x240] sm:$0x1] }
 0x1a3   :  { %v542_v47 = vrot.slane %v478_v56, 1  ;;  %v543_v24 = vrot.slane %v479_v33, 1  ;;  %v779_v48 = vmul.f32 %v3502_v52, %v704_v34  ;;  %v780_v2 = vmul.f32 %v3505_v53, %v705_v50  ;;  %v1135_v53 = vld [vmem:[#allocation2 + $0x3b8] sm:$0x7f] }
 0x1a4   :  { %v2883_v43 = vadd.f32 %v3611_v28, %v2807_v4  ;;  %v2884_v21 = vadd.f32 %v3614_v29, %v2808_v42  ;;  %v3038_v57 = vrot.slane %v2881_v17, 7  ;;  %v3041_v55 = vrot.slane %v2882_v25, 7  ;;  %v1577_v50 = vld [vmem:[#allocation2 + $0x178] sm:$0x1]  ;;  %v2005_v4 = vld [vmem:[#allocation2 + $0x398] sm:$0x80] }
 0x1a5   :  { %v636_v31 = vadd.f32 %v542_v47, %v335_v35  ;;  %v637_v23 = vadd.f32 %v543_v24, %v336_v27  ;;  %v638_v60 = vadd.f32 %v542_v47, %v337_v12  ;;  %v639_v61 = vadd.f32 %v543_v24, %v338_v9  ;;  %v1575_v9 = vld [vmem:[#allocation2 + $0x3b8] sm:$0xfe] }
 0x1a6   :  { %v3039_v32 = vrot.slane %v2883_v43, 7  ;;  %v3042_v13 = vrot.slane %v2884_v21, 7  ;;  %v936_v16 = vrot.slane %v777_v18, 2  ;;  %v937_v19 = vrot.slane %v778_v41, 2  ;;  %v2004_v41 = vld [vmem:[#allocation2 + $0xb0] sm:$0x80] }
 0x1a7   :  { %v938_v52 = vrot.slane %v779_v48, 2  ;;  %v940_v30 = vrot.slane %v780_v2, 2  ;;  %v1207_v37 = vmul.f32 %v3521_v10, %v1132_v0  ;;  %v1208_v38 = vmul.f32 %v3524_v11, %v1133_v40  ;;  %v2006_v47 = vld [vmem:[#allocation2 + $0x2d8] sm:$0x7f] }
 0x1a8   :  { %v3040_v36 = vsel %vm2953_vm1, %v3038_v57, %v3039_v32  ;;  %v3043_v39 = vsel %vm2953_vm1, %v3041_v55, %v3042_v13  ;;  %v1066_v35 = vadd.f32 %v936_v16, %v636_v31  ;;  %v1067_v27 = vadd.f32 %v937_v19, %v637_v23  ;;  %v2446_v31 = vld [vmem:[#allocation2 + $0x2d8] sm:$0xfe]  ;;  %v2447_v23 = vld [vmem:[#allocation2 + $0x1c8] sm:$0xfe] }
 0x1a9   :  { %v3236_v6 = vpack.c.bf16 %v3043_v39, %v3040_v36  ;;  %v939_v3 = vsel %vm845_vm0, %v936_v16, %v938_v52  ;;  %v941_v1 = vsel %vm845_vm0, %v937_v19, %v940_v30  ;;  %v1209_v12 = vmul.f32 %v3521_v10, %v1134_v22  ;;  %v3240_v19 = vld [vmem:[#allocation2 + $0xd8] sm:$0xff]  ;;  %v2448_v52 = vld [vmem:[#allocation2 + $0x2c8] sm:$0x1]  ;;  %v2449_v30 = vld [vmem:[#allocation2 + $0x310] sm:$0x1] }
 0x1aa   :  { %v1068_v26 = vadd.f32 %v939_v3, %v638_v60  ;;  %v1069_v56 = vadd.f32 %v941_v1, %v639_v61  ;;  %v1210_v33 = vmul.f32 %v3524_v11, %v1135_v53  ;;  %v1271_v34 = vadd.f32 %v1207_v37, %v1066_v35 }
 0x1ab   :  { %3192 = vst [vmem:[%s4441_s3 + $0x70] sm:$0xff] %v3236_v6  ;;  %v1272_v44 = vadd.f32 %v1208_v38, %v1067_v27  ;;  %v1350_v45 = vmul.f32 %v4362_v8, %v3547_v46  ;;  %v1351_v18 = vmul.f32 %v4364_v14, %v3550_v49  ;;  %v1649_v10 = vmul.f32 %v3553_v51, %v1574_v5  ;;  %v2007_v46 = vld [vmem:[#allocation2 + $0x1c8] sm:$0x7f] }
 0x1ac   :  { %v1273_v42 = vadd.f32 %v1209_v12, %v1068_v26  ;;  %v1274_v17 = vadd.f32 %v1210_v33, %v1069_v56  ;;  %v1650_v11 = vmul.f32 %v3556_v54, %v1575_v9  ;;  %v1651_v25 = vmul.f32 %v3553_v51, %v1576_v7 }
 0x1ad   :  { %v1414_v24 = vrot.slane %v1350_v45, 1  ;;  %v1415_v48 = vrot.slane %v1351_v18, 1  ;;  %v1652_v2 = vmul.f32 %v3556_v54, %v1577_v50  ;;  %v1807_v43 = vrot.slane %v1649_v10, 2 }
 0x1ae   :  { %v1808_v8 = vrot.slane %v1650_v11, 2  ;;  %v1809_v21 = vrot.slane %v1651_v25, 2  ;;  %v2079_v49 = vmul.f32 %v3570_v15, %v2004_v41  ;;  %v2080_v14 = vmul.f32 %v3573_v20, %v2005_v4 }
 0x1af   :  { %v1508_v57 = vadd.f32 %v1414_v24, %v1271_v34  ;;  %v1509_v55 = vadd.f32 %v1415_v48, %v1272_v44  ;;  %v1510_v0 = vadd.f32 %v1414_v24, %v1273_v42  ;;  %v1511_v40 = vadd.f32 %v1415_v48, %v1274_v17 }
 0x1b0   :  { %v1810_v51 = vsel %vm845_vm0, %v1807_v43, %v1809_v21  ;;  %v1811_v60 = vrot.slane %v1652_v2, 2  ;;  %v2081_v61 = vmul.f32 %v3570_v15, %v2006_v47  ;;  %v2082_v54 = vmul.f32 %v3573_v20, %v2007_v46 }
 0x1b1   :  { %v1937_v32 = vadd.f32 %v1807_v43, %v1508_v57  ;;  %v1938_v13 = vadd.f32 %v1808_v8, %v1509_v55  ;;  %v1939_v16 = vadd.f32 %v1810_v51, %v1510_v0  ;;  %v2222_v22 = vmul.f32 %v3240_v19, %v3588_v58 }
 0x1b2   :  { %v1812_v53 = vsel %vm845_vm0, %v1808_v8, %v1811_v60  ;;  %v2223_v37 = vmul.f32 %v3240_v19, %v3591_v59  ;;  %v2521_v38 = vmul.f32 %v3594_v62, %v2446_v31  ;;  %v2522_v36 = vmul.f32 %v3597_v63, %v2447_v23 }
 0x1b3   :  { %v1940_v39 = vadd.f32 %v1812_v53, %v1511_v40  ;;  %v2143_v15 = vadd.f32 %v2079_v49, %v1937_v32  ;;  %v2144_v35 = vadd.f32 %v2080_v14, %v1938_v13  ;;  %v2145_v20 = vadd.f32 %v2081_v61, %v1939_v16 }
 0x1b4   :  { %v2286_v27 = vrot.slane %v2222_v22, 1  ;;  %v2287_v5 = vrot.slane %v2223_v37, 1  ;;  %v2523_v6 = vmul.f32 %v3594_v62, %v2448_v52  ;;  %v2524_v58 = vmul.f32 %v3597_v63, %v2449_v30 }
 0x1b5   :  { %v2146_v3 = vadd.f32 %v2082_v54, %v1940_v39  ;;  %v2679_v1 = vrot.slane %v2521_v38, 2  ;;  %v2680_v12 = vrot.slane %v2522_v36, 2 }
 0x1b6   :  { %v2380_v9 = vadd.f32 %v2286_v27, %v2143_v15  ;;  %v2381_v7 = vadd.f32 %v2287_v5, %v2144_v35  ;;  %v2382_v59 = vadd.f32 %v2286_v27, %v2145_v20  ;;  %v2681_v26 = vrot.slane %v2523_v6, 2 }
 0x1b7   :  { %v2383_v56 = vadd.f32 %v2287_v5, %v2146_v3  ;;  %v2683_v33 = vrot.slane %v2524_v58, 2 }
 0x1b8   :  { %v2682_v34 = vsel %vm845_vm0, %v2679_v1, %v2681_v26  ;;  %v2809_v50 = vadd.f32 %v2679_v1, %v2380_v9  ;;  %v2810_v44 = vadd.f32 %v2680_v12, %v2381_v7 }
 0x1b9   :  { %v2684_v45 = vsel %vm845_vm0, %v2680_v12, %v2683_v33  ;;  %v2811_v18 = vadd.f32 %v2682_v34, %v2382_v59 }
 0x1ba   :  { %v2812_v10 = vadd.f32 %v2684_v45, %v2383_v56  ;;  %v2885_v62 = vadd.f32 %v3611_v28, %v2809_v50  ;;  %v2886_v63 = vadd.f32 %v3614_v29, %v2810_v44 }
 0x1bb   :  { %v2887_v41 = vadd.f32 %v3611_v28, %v2811_v18 }
 0x1bc   :  { %v2888_v4 = vadd.f32 %v3614_v29, %v2812_v10  ;;  %v3044_v42 = vrot.slane %v2885_v62, 7  ;;  %v3047_v17 = vrot.slane %v2886_v63, 7 }
 0x1bd   :  { %v3045_v11 = vrot.slane %v2887_v41, 7 }
 0x1be   :  { %v3048_v25 = vrot.slane %v2888_v4, 7 }
 0x1bf   :  { %v3046_v47 = vsel %vm2953_vm1, %v3044_v42, %v3045_v11 }
 0x1c0   :  { %v3049_v24 = vsel %vm2953_vm1, %v3047_v17, %v3048_v25 }
 0x1c1   :  { %v3237_v48 = vpack.c.bf16 %v3049_v24, %v3046_v47 }
 0x1c3   :  { %3193 = vst [vmem:[%s4441_s3 + $0x78] sm:$0xff] %v3237_v48 }

// kernel: classifier_forward.13
= control target key start
LH: loop header
LB: loop body
LE: loop exit
PB: predicated region body
PF: predicated region fallthrough
CT: control target
= control target key end

     0   :  { %s687_s1 = inlined_call_operand.vmem [shape: bf16[128,128], index: 1, kind: input, shape index: {}]   ;;  %s688_s0 = inlined_call_operand.vmem [shape: bf16[128,128], index: 0, kind: input, shape index: {}]   ;;  %s689_s2 = inlined_call_operand.vmem [shape: f32[1,128], index: 2, kind: input, shape index: {}]   ;;  %s690_s3 = inlined_call_operand.vmem [shape: f32[1,128], index: 3, kind: input, shape index: {}]   ;;  %s691_s4 = inlined_call_operand.vmem [shape: bf16[128,128], index: 4, kind: output, shape index: {}]  }
   0x1   :  { %v550_v0 = vld [vmem:[%s687_s1 + $0x38] sm:$0xff]   ;;  %v551_v1 = vld [vmem:[%s687_s1 + $0x30] sm:$0xff]   ;;  %v552_v2 = vld [vmem:[%s687_s1 + $0x28] sm:$0xff]  }
   0x2   :  { %502 = vmatprep.subr.bf16.mxu0 %v550_v0  ;;  %534 = vmatprep.subr.bf16.mxu1 %v550_v0  ;;  %v553_v3 = vld [vmem:[%s687_s1 + $0x20] sm:$0xff]   ;;  %v554_v6 = vld [vmem:[%s687_s1 + $0x18] sm:$0xff]   ;;  %v555_v7 = vld [vmem:[%s687_s1 + $0x10] sm:$0xff]  }
   0x3   :  { %503 = vmatpush3.bf16.msra.mxu0 %v550_v0  ;;  %542 = vmatpush3.bf16.msra.mxu1 %v550_v0  ;;  %v558_v4 = vld [vmem:[%s688_s0] sm:$0xff]   ;;  %v556_v8 = vld [vmem:[%s687_s1 + $0x8] sm:$0xff]   ;;  %v562_v12 = vld [vmem:[%s688_s0 + $0x10] sm:$0xff]  }
   0x4   :  { %504 = vmatprep.subr.bf16.mxu0 %v551_v1  ;;  %535 = vmatprep.subr.bf16.mxu1 %v551_v1  ;;  %v559_v5 = vld [vmem:[%s688_s0 + $0x20] sm:$0xff]   ;;  %v560_v10 = vld [vmem:[%s688_s0 + $0x8] sm:$0xff]   ;;  %v563_v13 = vld [vmem:[%s688_s0 + $0x30] sm:$0xff]  }
   0x5   :  { %518 = vmatprep.mubr.bf16.mxu0 %v558_v4  ;;  %526 = vmatprep.mubr.bf16.mxu1 %v559_v5  ;;  %v557_v9 = vld [vmem:[%s687_s1] sm:$0xff]   ;;  %v561_v11 = vld [vmem:[%s688_s0 + $0x28] sm:$0xff]   ;;  %v564_v14 = vld [vmem:[%s688_s0 + $0x18] sm:$0xff]  }
   0x6   :  { %v565_v15 = vld [vmem:[%s688_s0 + $0x38] sm:$0xff]   ;;  %v642_v16 = vld [vmem:[%s689_s2] ss:$0 sm:$0xff] }
   0x7   :  { %505 = vmatpush3.bf16.msra.mxu0 %v551_v1  ;;  %543 = vmatpush3.bf16.msra.mxu1 %v551_v1  ;;  %v406_v21 = vld [vmem:[%s690_s3] ss:$0 sm:$0xff] }
   0x8   :  { %506 = vmatprep.subr.bf16.mxu0 %v552_v2  ;;  %536 = vmatprep.subr.bf16.mxu1 %v552_v2 }
   0xb   :  { %507 = vmatpush3.bf16.msra.mxu0 %v552_v2  ;;  %544 = vmatpush3.bf16.msra.mxu1 %v552_v2 }
   0xc   :  { %508 = vmatprep.subr.bf16.mxu0 %v553_v3  ;;  %537 = vmatprep.subr.bf16.mxu1 %v553_v3 }
   0xf   :  { %509 = vmatpush3.bf16.msra.mxu0 %v553_v3  ;;  %545 = vmatpush3.bf16.msra.mxu1 %v553_v3 }
  0x10   :  { %510 = vmatprep.subr.bf16.mxu0 %v554_v6  ;;  %538 = vmatprep.subr.bf16.mxu1 %v554_v6 }
  0x13   :  { %511 = vmatpush3.bf16.msra.mxu0 %v554_v6  ;;  %546 = vmatpush3.bf16.msra.mxu1 %v554_v6 }
  0x14   :  { %512 = vmatprep.subr.bf16.mxu0 %v555_v7  ;;  %539 = vmatprep.subr.bf16.mxu1 %v555_v7 }
  0x17   :  { %513 = vmatpush3.bf16.msra.mxu0 %v555_v7  ;;  %547 = vmatpush3.bf16.msra.mxu1 %v555_v7 }
  0x18   :  { %514 = vmatprep.subr.bf16.mxu0 %v556_v8  ;;  %540 = vmatprep.subr.bf16.mxu1 %v556_v8 }
  0x1b   :  { %515 = vmatpush3.bf16.msra.mxu0 %v556_v8  ;;  %548 = vmatpush3.bf16.msra.mxu1 %v556_v8 }
  0x1c   :  { %516 = vmatprep.subr.bf16.mxu0 %v557_v9  ;;  %541 = vmatprep.subr.bf16.mxu1 %v557_v9 }
  0x1f   :  { %517 = vmatpush3.bf16.msra.mxu0 %v557_v9  ;;  %549 = vmatpush3.bf16.msra.mxu1 %v557_v9 }
  0x22   :  { %519 = vmatmul.mubr.bf16.vlgmr.msra.gmra.mxu0 %v560_v10  ;;  %527 = vmatmul.mubr.bf16.vlgmr.msra.gmra.mxu1 %v561_v11 }
  0x23   :  { %522 = vmatprep.mubr.bf16.mxu0 %v562_v12  ;;  %530 = vmatprep.mubr.bf16.mxu1 %v563_v13 }
  0x2a   :  { %523 = vmatmul.mubr.bf16.gmra.mxu0 %v564_v14  ;;  %531 = vmatmul.mubr.bf16.gmra.mxu1 %v565_v15 }
  0xe2   :  { %v520_v17 = vpop.f32.mrf.mxu0  ;;  %v528_v18 = vpop.f32.mrf.mxu1 }
  0xe3   :  { %v252_v19 = vmul.f32 %v520_v17, %v642_v16  ;;  %v260_v20 = vmul.f32 %v528_v18, %v642_v16 }
  0xe4   :  { %v180_v22 = vpop.f32.mrf.mxu0  ;;  %v212_v23 = vpop.f32.mrf.mxu1 }
  0xe5   :  { %v250_v24 = vmul.f32 %v642_v16, %v180_v22  ;;  %v258_v25 = vmul.f32 %v642_v16, %v212_v23  ;;  %v275_v28 = vadd.f32 %v406_v21, %v252_v19  ;;  %v283_v29 = vadd.f32 %v406_v21, %v260_v20 }
  0xe6   :  { %v521_v26 = vpop.f32.mrf.mxu0  ;;  %v529_v27 = vpop.f32.mrf.mxu1 }
  0xe7   :  { %v253_v30 = vmul.f32 %v521_v26, %v642_v16  ;;  %v261_v31 = vmul.f32 %v529_v27, %v642_v16  ;;  %v273_v34 = vadd.f32 %v406_v21, %v250_v24  ;;  %v281_v35 = vadd.f32 %v406_v21, %v258_v25 }
  0xe8   :  { %v183_v32 = vpop.f32.mrf.mxu0  ;;  %v215_v33 = vpop.f32.mrf.mxu1  ;;  %v291_v42 = vmax.f32 %v275_v28, 0.0  ;;  %v299_v43 = vmax.f32 %v283_v29, 0.0 }
  0xe9   :  { %v251_v36 = vmul.f32 %v642_v16, %v183_v32  ;;  %v259_v37 = vmul.f32 %v642_v16, %v215_v33  ;;  %v276_v38 = vadd.f32 %v406_v21, %v253_v30  ;;  %v284_v39 = vadd.f32 %v406_v21, %v261_v31 }
  0xea   :  { %v524_v40 = vpop.f32.mrf.mxu0  ;;  %v532_v41 = vpop.f32.mrf.mxu1  ;;  %v289_v52 = vmax.f32 %v273_v34, 0.0  ;;  %v297_v53 = vmax.f32 %v281_v35, 0.0 }
  0xeb   :  { %v274_v44 = vadd.f32 %v406_v21, %v251_v36  ;;  %v282_v45 = vadd.f32 %v406_v21, %v259_v37  ;;  %v292_v46 = vmax.f32 %v276_v38, 0.0  ;;  %v300_v47 = vmax.f32 %v284_v39, 0.0 }
  0xec   :  { %v256_v48 = vmul.f32 %v524_v40, %v642_v16  ;;  %v264_v49 = vmul.f32 %v532_v41, %v642_v16  ;;  %v196_v50 = vpop.f32.mrf.mxu0  ;;  %v228_v51 = vpop.f32.mrf.mxu1 }
  0xed   :  { %v290_v54 = vmax.f32 %v274_v44, 0.0  ;;  %v298_v55 = vmax.f32 %v282_v45, 0.0  ;;  %v447_v56 = vpack.c.bf16 %v292_v46, %v291_v42  ;;  %v467_v57 = vpack.c.bf16 %v300_v47, %v299_v43 }
  0xee   :  { %v254_v58 = vmul.f32 %v642_v16, %v196_v50  ;;  %v262_v59 = vmul.f32 %v642_v16, %v228_v51  ;;  %v525_v60 = vpop.f32.mrf.mxu0  ;;  %v533_v61 = vpop.f32.mrf.mxu1  ;;  %v279_v0 = vadd.f32 %v406_v21, %v256_v48  ;;  %v287_v1 = vadd.f32 %v406_v21, %v264_v49 }
  0xef   :  { %v442_v62 = vpack.c.bf16 %v290_v54, %v289_v52  ;;  %v462_v63 = vpack.c.bf16 %v298_v55, %v297_v53  ;;  %479 = vst [vmem:[%s691_s4 + $0x8] sm:$0xff] %v447_v56   ;;  %483 = vst [vmem:[%s691_s4 + $0x28] sm:$0xff] %v467_v57   ;;  %v257_v2 = vmul.f32 %v525_v60, %v642_v16 }
  0xf0   :  { %v265_v3 = vmul.f32 %v533_v61, %v642_v16  ;;  %v199_v4 = vpop.f32.mrf.mxu0  ;;  %v231_v5 = vpop.f32.mrf.mxu1  ;;  %v277_v6 = vadd.f32 %v406_v21, %v254_v58  ;;  %v285_v7 = vadd.f32 %v406_v21, %v262_v59  ;;  %v295_v14 = vmax.f32 %v279_v0, 0.0 }
  0xf1   :  { %443 = vst [vmem:[%s691_s4] sm:$0xff] %v442_v62   ;;  %482 = vst [vmem:[%s691_s4 + $0x20] sm:$0xff] %v462_v63   ;;  %v255_v8 = vmul.f32 %v642_v16, %v199_v4  ;;  %v263_v9 = vmul.f32 %v642_v16, %v231_v5  ;;  %v280_v10 = vadd.f32 %v406_v21, %v257_v2  ;;  %v303_v15 = vmax.f32 %v287_v1, 0.0 }
  0xf2   :  { %v288_v11 = vadd.f32 %v406_v21, %v265_v3  ;;  %v293_v19 = vmax.f32 %v277_v6, 0.0  ;;  %v301_v20 = vmax.f32 %v285_v7, 0.0 }
  0xf3   :  { %v278_v12 = vadd.f32 %v406_v21, %v255_v8  ;;  %v286_v13 = vadd.f32 %v406_v21, %v263_v9  ;;  %v296_v17 = vmax.f32 %v280_v10, 0.0 }
  0xf4   :  { %v304_v18 = vmax.f32 %v288_v11, 0.0 }
  0xf5   :  { %v294_v22 = vmax.f32 %v278_v12, 0.0  ;;  %v302_v23 = vmax.f32 %v286_v13, 0.0  ;;  %v457_v24 = vpack.c.bf16 %v296_v17, %v295_v14 }
  0xf6   :  { %v477_v25 = vpack.c.bf16 %v304_v18, %v303_v15 }
  0xf7   :  { %v452_v26 = vpack.c.bf16 %v294_v22, %v293_v19  ;;  %v472_v27 = vpack.c.bf16 %v302_v23, %v301_v20  ;;  %481 = vst [vmem:[%s691_s4 + $0x18] sm:$0xff] %v457_v24  }
  0xf8   :  { %485 = vst [vmem:[%s691_s4 + $0x38] sm:$0xff] %v477_v25  }
  0xf9   :  { %480 = vst [vmem:[%s691_s4 + $0x10] sm:$0xff] %v452_v26   ;;  %484 = vst [vmem:[%s691_s4 + $0x30] sm:$0xff] %v472_v27  }

// kernel: classifier_forward.15
= control target key start
LH: loop header
LB: loop body
LE: loop exit
PB: predicated region body
PF: predicated region fallthrough
CT: control target
= control target key end

     0   :  { %v568_v16 = vmov 0.0   ;;  %vm569_vm0 = vmmov 0   ;;  %vm354_vm1 = vcmask 1041409   ;;  %s741_s1 = inlined_call_operand.vmem [shape: bf16[128,128], index: 1, kind: input, shape index: {}]   ;;  %s742_s0 = inlined_call_operand.vmem [shape: bf16[128,128], index: 0, kind: input, shape index: {}]   ;;  %s743_s4 = inlined_call_operand.vmem [shape: f32[128,128], index: 4, kind: input, shape index: {}]   ;;  %s744_s2 = inlined_call_operand.vmem [shape: f32[1,128], index: 2, kind: input, shape index: {}]   ;;  %s745_s3 = inlined_call_operand.vmem [shape: f32[1,128], index: 3, kind: input, shape index: {}]   ;;  %s746_s5 = inlined_call_operand.vmem [shape: f32[1,2,128], index: 5, kind: output, shape index: {}]  }
   0x1   :  { %v552_v0 = vld [vmem:[%s741_s1 + $0x38] sm:$0xff]   ;;  %v553_v1 = vld [vmem:[%s741_s1 + $0x30] sm:$0xff]   ;;  %v554_v2 = vld [vmem:[%s741_s1 + $0x28] sm:$0xff]   ;;  %515 = vmatprep.subr.mxu1 %v568_v16  ;;  %547 = vmatprep.mubr.msk.f32.mxu1 %vm569_vm0, %v568_v16 }
   0x2   :  { %483 = vmatprep.subr.bf16.mxu0 %v552_v0  ;;  %v555_v3 = vld [vmem:[%s741_s1 + $0x20] sm:$0xff]   ;;  %v556_v5 = vld [vmem:[%s741_s1 + $0x18] sm:$0xff]   ;;  %v557_v6 = vld [vmem:[%s741_s1 + $0x10] sm:$0xff]  }
   0x3   :  { %484 = vmatpush3.bf16.msra.mxu0 %v552_v0  ;;  %v560_v4 = vld [vmem:[%s742_s0] sm:$0xff]   ;;  %v558_v7 = vld [vmem:[%s741_s1 + $0x8] sm:$0xff]   ;;  %v562_v10 = vld [vmem:[%s742_s0 + $0x10] sm:$0xff]  }
   0x4   :  { %485 = vmatprep.subr.bf16.mxu0 %v553_v1  ;;  %499 = vmatprep.mubr.bf16.mxu0 %v560_v4  ;;  %v559_v8 = vld [vmem:[%s741_s1] sm:$0xff]   ;;  %v561_v9 = vld [vmem:[%s742_s0 + $0x8] sm:$0xff]   ;;  %v563_v11 = vld [vmem:[%s742_s0 + $0x18] sm:$0xff]  }
   0x5   :  { %v564_v12 = vld [vmem:[%s742_s0 + $0x20] sm:$0xff]   ;;  %v565_v13 = vld [vmem:[%s742_s0 + $0x28] sm:$0xff]   ;;  %v566_v14 = vld [vmem:[%s742_s0 + $0x30] sm:$0xff]  }
   0x6   :  { %v567_v15 = vld [vmem:[%s742_s0 + $0x38] sm:$0xff]   ;;  %v350_v18 = vld [vmem:[%s743_s4 + $0x70] sm:$0xff]  ;;  %v349_v19 = vld [vmem:[%s743_s4 + $0x68] sm:$0xff] }
   0x7   :  { %486 = vmatpush3.bf16.msra.mxu0 %v553_v1  ;;  %v351_v17 = vld [vmem:[%s743_s4 + $0x78] sm:$0xff]  ;;  %v348_v20 = vld [vmem:[%s743_s4 + $0x60] sm:$0xff]  ;;  %v346_v22 = vld [vmem:[%s743_s4 + $0x50] sm:$0xff] }
   0x8   :  { %487 = vmatprep.subr.bf16.mxu0 %v554_v2  ;;  %516 = vmatpush3.msra.mxu1 %v351_v17  ;;  %v347_v21 = vld [vmem:[%s743_s4 + $0x58] sm:$0xff]  ;;  %v345_v23 = vld [vmem:[%s743_s4 + $0x48] sm:$0xff]  ;;  %v344_v24 = vld [vmem:[%s743_s4 + $0x40] sm:$0xff] }
   0x9   :  { %517 = vmatprep.subr.mxu1 %v568_v16  ;;  %v343_v25 = vld [vmem:[%s743_s4 + $0x38] sm:$0xff]  ;;  %v342_v26 = vld [vmem:[%s743_s4 + $0x30] sm:$0xff]  ;;  %v341_v27 = vld [vmem:[%s743_s4 + $0x28] sm:$0xff] }
   0xa   :  { %518 = vmatpush3.msra.mxu1 %v350_v18  ;;  %v340_v28 = vld [vmem:[%s743_s4 + $0x20] sm:$0xff]  ;;  %v339_v29 = vld [vmem:[%s743_s4 + $0x18] sm:$0xff]  ;;  %v338_v30 = vld [vmem:[%s743_s4 + $0x10] sm:$0xff] }
   0xb   :  { %488 = vmatpush3.bf16.msra.mxu0 %v554_v2  ;;  %519 = vmatprep.subr.mxu1 %v568_v16  ;;  %v337_v31 = vld [vmem:[%s743_s4 + $0x8] sm:$0xff]  ;;  %v336_v32 = vld [vmem:[%s743_s4] sm:$0xff] }
   0xc   :  { %489 = vmatprep.subr.bf16.mxu0 %v555_v3  ;;  %520 = vmatpush3.msra.mxu1 %v349_v19  ;;  %v699_v34 = vld [vmem:[%s744_s2] ss:$0 sm:$0xff] }
   0xd   :  { %521 = vmatprep.subr.mxu1 %v568_v16  ;;  %v706_v39 = vld [vmem:[%s745_s3] ss:$0 sm:$0xff] }
   0xe   :  { %522 = vmatpush3.msra.mxu1 %v348_v20 }
   0xf   :  { %490 = vmatpush3.bf16.msra.mxu0 %v555_v3  ;;  %523 = vmatprep.subr.mxu1 %v568_v16 }
  0x10   :  { %491 = vmatprep.subr.bf16.mxu0 %v556_v5  ;;  %524 = vmatpush3.msra.mxu1 %v347_v21 }
  0x11   :  { %525 = vmatprep.subr.mxu1 %v568_v16 }
  0x12   :  { %526 = vmatpush3.msra.mxu1 %v346_v22 }
  0x13   :  { %492 = vmatpush3.bf16.msra.mxu0 %v556_v5  ;;  %527 = vmatprep.subr.mxu1 %v568_v16 }
  0x14   :  { %493 = vmatprep.subr.bf16.mxu0 %v557_v6  ;;  %528 = vmatpush3.msra.mxu1 %v345_v23 }
  0x15   :  { %529 = vmatprep.subr.mxu1 %v568_v16 }
  0x16   :  { %530 = vmatpush3.msra.mxu1 %v344_v24 }
  0x17   :  { %494 = vmatpush3.bf16.msra.mxu0 %v557_v6  ;;  %531 = vmatprep.subr.mxu1 %v568_v16 }
  0x18   :  { %495 = vmatprep.subr.bf16.mxu0 %v558_v7  ;;  %532 = vmatpush3.msra.mxu1 %v343_v25 }
  0x19   :  { %533 = vmatprep.subr.mxu1 %v568_v16 }
  0x1a   :  { %534 = vmatpush3.msra.mxu1 %v342_v26 }
  0x1b   :  { %496 = vmatpush3.bf16.msra.mxu0 %v558_v7  ;;  %535 = vmatprep.subr.mxu1 %v568_v16 }
  0x1c   :  { %497 = vmatprep.subr.bf16.mxu0 %v559_v8  ;;  %536 = vmatpush3.msra.mxu1 %v341_v27 }
  0x1d   :  { %537 = vmatprep.subr.mxu1 %v568_v16 }
  0x1e   :  { %538 = vmatpush3.msra.mxu1 %v340_v28 }
  0x1f   :  { %498 = vmatpush3.bf16.msra.mxu0 %v559_v8  ;;  %539 = vmatprep.subr.mxu1 %v568_v16 }
  0x20   :  { %540 = vmatpush3.msra.mxu1 %v339_v29 }
  0x21   :  { %541 = vmatprep.subr.mxu1 %v568_v16 }
  0x22   :  { %500 = vmatmul.mubr.bf16.vlgmr.msra.gmra.mxu0 %v561_v9  ;;  %542 = vmatpush3.msra.mxu1 %v338_v30 }
  0x23   :  { %503 = vmatprep.mubr.bf16.mxu0 %v562_v10  ;;  %543 = vmatprep.subr.mxu1 %v568_v16 }
  0x24   :  { %544 = vmatpush3.msra.mxu1 %v337_v31 }
  0x25   :  { %545 = vmatprep.subr.mxu1 %v568_v16 }
  0x26   :  { %546 = vmatpush3.msra.mxu1 %v336_v32 }
  0x2a   :  { %504 = vmatmul.mubr.bf16.gmra.mxu0 %v563_v11 }
  0x2b   :  { %507 = vmatprep.mubr.bf16.mxu0 %v564_v12 }
  0x32   :  { %508 = vmatmul.mubr.bf16.gmra.mxu0 %v565_v13 }
  0x33   :  { %511 = vmatprep.mubr.bf16.mxu0 %v566_v14 }
  0x3a   :  { %512 = vmatmul.mubr.bf16.gmra.mxu0 %v567_v15 }
  0xe2   :  { %v501_v33 = vpop.f32.mrf.mxu0 }
  0xe3   :  { %v255_v38 = vmul.f32 %v501_v33, %v699_v34 }
  0xe4   :  { %v183_v35 = vpop.f32.mrf.mxu0 }
  0xe5   :  { %v253_v36 = vmul.f32 %v699_v34, %v183_v35  ;;  %v278_v45 = vadd.f32 %v706_v39, %v255_v38 }
  0xe6   :  { %v502_v37 = vpop.f32.mrf.mxu0 }
  0xe7   :  { %v276_v41 = vadd.f32 %v706_v39, %v253_v36  ;;  %v256_v42 = vmul.f32 %v502_v37, %v699_v34  ;;  %v294_v54 = vmax.f32 %v278_v45, 0.0 }
  0xe8   :  { %v186_v40 = vpop.f32.mrf.mxu0 }
  0xe9   :  { %v254_v43 = vmul.f32 %v699_v34, %v186_v40  ;;  %v292_v48 = vmax.f32 %v276_v41, 0.0  ;;  %v279_v49 = vadd.f32 %v706_v39, %v256_v42 }
  0xea   :  { %v505_v44 = vpop.f32.mrf.mxu0 }
  0xeb   :  { %v277_v46 = vadd.f32 %v706_v39, %v254_v43  ;;  %v259_v52 = vmul.f32 %v505_v44, %v699_v34  ;;  %v295_v58 = vmax.f32 %v279_v49, 0.0 }
  0xec   :  { %v199_v47 = vpop.f32.mrf.mxu0 }
  0xed   :  { %v293_v50 = vmax.f32 %v277_v46, 0.0  ;;  %v257_v51 = vmul.f32 %v699_v34, %v199_v47  ;;  %v282_v61 = vadd.f32 %v706_v39, %v259_v52 }
  0xee   :  { %v506_v53 = vpop.f32.mrf.mxu0 }
  0xef   :  { %v308_v55 = vadd.f32 %v293_v50, %v292_v48  ;;  %v280_v56 = vadd.f32 %v706_v39, %v257_v51  ;;  %v260_v1 = vmul.f32 %v506_v53, %v699_v34  ;;  %v298_v8 = vmax.f32 %v282_v61, 0.0 }
  0xf0   :  { %v202_v57 = vpop.f32.mrf.mxu0 }
  0xf1   :  { %v309_v59 = vadd.f32 %v308_v55, %v294_v54  ;;  %v258_v60 = vmul.f32 %v699_v34, %v202_v57  ;;  %v296_v63 = vmax.f32 %v280_v56, 0.0  ;;  %v283_v9 = vadd.f32 %v706_v39, %v260_v1 }
  0xf2   :  { %v509_v62 = vpop.f32.mrf.mxu0 }
  0xf3   :  { %v310_v0 = vadd.f32 %v309_v59, %v295_v58  ;;  %v281_v2 = vadd.f32 %v706_v39, %v258_v60  ;;  %v263_v11 = vmul.f32 %v509_v62, %v699_v34  ;;  %v299_v18 = vmax.f32 %v283_v9, 0.0 }
  0xf4   :  { %v215_v3 = vpop.f32.mrf.mxu0 }
  0xf5   :  { %v311_v4 = vadd.f32 %v310_v0, %v296_v63  ;;  %v297_v5 = vmax.f32 %v281_v2, 0.0  ;;  %v261_v6 = vmul.f32 %v699_v34, %v215_v3  ;;  %v286_v19 = vadd.f32 %v706_v39, %v263_v11 }
  0xf6   :  { %v510_v7 = vpop.f32.mrf.mxu0 }
  0xf7   :  { %v312_v10 = vadd.f32 %v311_v4, %v297_v5  ;;  %v264_v12 = vmul.f32 %v510_v7, %v699_v34  ;;  %v284_v15 = vadd.f32 %v706_v39, %v261_v6  ;;  %v302_v28 = vmax.f32 %v286_v19, 0.0 }
  0xf8   :  { %v218_v13 = vpop.f32.mrf.mxu0 }
  0xf9   :  { %v313_v14 = vadd.f32 %v312_v10, %v298_v8  ;;  %v262_v16 = vmul.f32 %v699_v34, %v218_v13  ;;  %v287_v21 = vadd.f32 %v706_v39, %v264_v12  ;;  %v300_v24 = vmax.f32 %v284_v15, 0.0 }
  0xfa   :  { %v513_v17 = vpop.f32.mrf.mxu0 }
  0xfb   :  { %v285_v20 = vadd.f32 %v706_v39, %v262_v16  ;;  %v314_v23 = vadd.f32 %v313_v14, %v299_v18  ;;  %v267_v30 = vmul.f32 %v513_v17, %v699_v34  ;;  %v303_v32 = vmax.f32 %v287_v21, 0.0 }
  0xfc   :  { %v231_v22 = vpop.f32.mrf.mxu0 }
  0xfd   :  { %v301_v25 = vmax.f32 %v285_v20, 0.0  ;;  %v265_v26 = vmul.f32 %v699_v34, %v231_v22  ;;  %v315_v35 = vrot.slane %v314_v23, 4  ;;  %v290_v40 = vadd.f32 %v706_v39, %v267_v30 }
  0xfe   :  { %v514_v27 = vpop.f32.mrf.mxu0 }
  0xff   :  { %v321_v29 = vadd.f32 %v301_v25, %v300_v24  ;;  %v288_v31 = vadd.f32 %v706_v39, %v265_v26  ;;  %v268_v37 = vmul.f32 %v514_v27, %v699_v34  ;;  %v316_v47 = vadd.f32 %v315_v35, %v314_v23 }
 0x100   :  { %v234_v33 = vpop.f32.mrf.mxu0  ;;  %v306_v48 = vmax.f32 %v290_v40, 0.0 }
 0x101   :  { %v322_v36 = vadd.f32 %v321_v29, %v302_v28  ;;  %v266_v38 = vmul.f32 %v699_v34, %v234_v33  ;;  %v304_v41 = vmax.f32 %v288_v31, 0.0  ;;  %v291_v45 = vadd.f32 %v706_v39, %v268_v37 }
 0x102   :  { %v317_v52 = vrot.slane %v316_v47, 2 }
 0x103   :  { %v323_v42 = vadd.f32 %v322_v36, %v303_v32  ;;  %v289_v43 = vadd.f32 %v706_v39, %v266_v38  ;;  %v307_v50 = vmax.f32 %v291_v45, 0.0 }
 0x104   :  { %v318_v55 = vadd.f32 %v317_v52, %v316_v47 }
 0x105   :  { %v324_v44 = vadd.f32 %v323_v42, %v304_v41  ;;  %v305_v46 = vmax.f32 %v289_v43, 0.0 }
 0x106   :  { %v319_v56 = vrot.slane %v318_v55, 1 }
 0x107   :  { %v325_v49 = vadd.f32 %v324_v44, %v305_v46 }
 0x108   :  { %v320_v59 = vadd.f32 %v319_v56, %v318_v55 }
 0x109   :  { %v326_v51 = vadd.f32 %v325_v49, %v306_v48 }
 0x10a   :  { %v334_v62 = vmul.f32 0.015625, %v320_v59 }
 0x10b   :  { %v327_v53 = vadd.f32 %v326_v51, %v307_v50 }
 0x10d   :  { %v328_v54 = vrot.slane %v327_v53, 4 }
 0x10f   :  { %v329_v34 = vadd.f32 %v328_v54, %v327_v53 }
 0x111   :  { %v330_v57 = vrot.slane %v329_v34, 2 }
 0x113   :  { %v331_v58 = vadd.f32 %v330_v57, %v329_v34 }
 0x115   :  { %v332_v60 = vrot.slane %v331_v58, 1 }
 0x117   :  { %v333_v61 = vadd.f32 %v332_v60, %v331_v58 }
 0x119   :  { %v335_v39 = vmul.f32 0.015625, %v333_v61 }
 0x11b   :  { %v355_v63 = vsel %vm354_vm1, %v335_v39, %v334_v62 }
 0x11c   :  { %548 = vmatmul.mubr.f32.vlgmr.msra.gmra.mxu1 %v355_v63 }
 0x1dc   :  { %v423_v0 = vpop.f32.mrf.mxu1 }
 0x1dd   :  { %427 = vst [vmem:[%s746_s5] sm:$0x3] %v423_v0 }
 0x1de   :  { %v549_v1 = vpop.f32.mrf.mxu1 }

</bundles_post_ra>
